<compile_context>
chip_gen: v7x
topology: tpu7x:2x2x1
jax: 0.10.0
libtpu: 0.0.40
codegen_flags: <defaults>
</compile_context>

<pallas_src>
import functools

import jax
import jax.numpy as jnp
from jax.experimental import pallas as pl
from jax.experimental.pallas import tpu as pltpu

EPS = 1e-5  # PyTorch GroupNorm default eps


def _concat(parts, axis):
    return parts[0] if len(parts) == 1 else jnp.concatenate(parts, axis=axis)


# ---------------------------------------------------------------------------
# In-kernel GroupNorm (+ folded affine) + ReLU, two-pass centered stats (f32).
# M (C, G) / MT (G, C) are host-precomputed one-hot group-membership matrices,
# so per-group reductions are tiny dots.  (The 4 M=1/N=1 dots per call could be
# replaced by VPU/XLU grouped reductions -- kept as dots for simplicity.)
# ---------------------------------------------------------------------------
def _gn_relu_rows(acc, gamma, beta, M, MT, cg):
    """GroupNorm+ReLU on an (S, C) f32 tile (channels on lanes); gamma/beta (1, C)."""
    S, _ = acc.shape
    inv_cnt = 1.0 / float(S * cg)
    s1 = jnp.sum(acc, axis=0, keepdims=True)                                  # (1, C)
    gmean = jnp.dot(s1, M, preferred_element_type=jnp.float32) * inv_cnt      # (1, G)
    cmean = jnp.dot(gmean, MT, preferred_element_type=jnp.float32)            # (1, C)
    xc = acc - cmean
    s2 = jnp.sum(xc * xc, axis=0, keepdims=True)                              # (1, C)
    gvar = jnp.dot(s2, M, preferred_element_type=jnp.float32) * inv_cnt       # (1, G)
    cinv = jnp.dot(jax.lax.rsqrt(gvar + EPS), MT,
                   preferred_element_type=jnp.float32)                        # (1, C)
    return jnp.maximum(xc * (cinv * gamma) + beta, 0.0)


def _gn_relu_cols(acc, gamma, beta, M, MT, cg):
    """Same, but on a (C, S) tile (channels on sublanes, space on lanes); gamma/beta (C, 1)."""
    _, S = acc.shape
    inv_cnt = 1.0 / float(S * cg)
    s1 = jnp.sum(acc, axis=1, keepdims=True)                                  # (C, 1)
    gmean = jnp.dot(MT, s1, preferred_element_type=jnp.float32) * inv_cnt     # (G, 1)
    cmean = jnp.dot(M, gmean, preferred_element_type=jnp.float32)             # (C, 1)
    xc = acc - cmean
    s2 = jnp.sum(xc * xc, axis=1, keepdims=True)                              # (C, 1)
    gvar = jnp.dot(MT, s2, preferred_element_type=jnp.float32) * inv_cnt      # (G, 1)
    cinv = jnp.dot(M, jax.lax.rsqrt(gvar + EPS),
                   preferred_element_type=jnp.float32)                        # (C, 1)
    return jnp.maximum(xc * (cinv * gamma) + beta, 0.0)


# ---------------------------------------------------------------------------
# Fused ASPP kernel: one batch element per grid step.
# ---------------------------------------------------------------------------
def _aspp_kernel(x_ref, w9_ref, gb_ref, bb_ref, wgp_ref, ggp_ref, bgp_ref,
                 wp4t_ref, wgpt_ref, pg_ref, pb_ref, m_ref, mt_ref,
                 o_ref, xp_ref, *, H, W, dmax, dilations, cg):
    S = H * W
    cin = x_ref.shape[-1]
    Mm = m_ref[...]
    MTm = mt_ref[...]

    # ---- in-kernel zero padding: one shared (Hp, Wp, cin) halo for all branches.
    # Fully re-initialised every step (cheap, and safe under megacore splitting).
    xp_ref[...] = jnp.zeros_like(xp_ref)
    xp_ref[dmax:dmax + H, dmax:dmax + W, :] = x_ref[0]

    # ---- dilated 3x3 branches: im2col -> one wide-K bf16 matmul -> GN + ReLU ----
    ys = []
    for b, d in enumerate(dilations):
        off = dmax - d
        w_full = w9_ref[b]                                       # (9*cin, cout) f32
        # Taps whose window lies fully inside the zero halo contribute nothing.
        taps = [(ky, kx) for ky in range(3) for kx in range(3)
                if abs(ky - 1) * d <= H - 1 and abs(kx - 1) * d <= W - 1]
        cols, wrows = [], []
        for ky, kx in taps:
            r0, c0 = off + ky * d, off + kx * d
            cols.append(xp_ref[r0:r0 + H, c0:c0 + W, :].reshape(S, cin))
            t = ky * 3 + kx
            wrows.append(w_full[t * cin:(t + 1) * cin, :])
        im2col = _concat(cols, -1).astype(jnp.bfloat16)          # (S, ntap*cin)
        wb = _concat(wrows, 0).astype(jnp.bfloat16)              # (ntap*cin, cout)
        acc = jnp.dot(im2col, wb, preferred_element_type=jnp.float32)
        ys.append(_gn_relu_rows(acc, gb_ref[b], bb_ref[b], Mm, MTm, cg))

    f4 = jnp.concatenate(ys, axis=-1).astype(jnp.bfloat16)       # (S, nb*cout)

    # ---- global-average-pool branch (kept f32: M=1 work is tiny and its
    # 2-values-per-group GroupNorm is sensitive to operand error).  Bilinear
    # upsample from 1x1 with align_corners=False is a constant broadcast. -------
    xm = jnp.mean(x_ref[0].reshape(S, cin), axis=0, keepdims=True)          # (1, cin)
    ygp = jnp.dot(xm, wgp_ref[...], preferred_element_type=jnp.float32)     # (1, cout)
    ygp = _gn_relu_rows(ygp, ggp_ref[...], bgp_ref[...], Mm, MTm, cg)

    # ---- projection: ONE wide-K NT matmul producing (cout, S) directly
    # (channels on sublanes, space on lanes => lane-dense store) plus a rank-1
    # global-pool fold.  No (S, 5*cout) concat, no accumulator round trips. -----
    nt = (((1,), (1,)), ((), ()))
    zt = jax.lax.dot_general(wp4t_ref[...], f4, nt,
                             preferred_element_type=jnp.float32)            # (cout, S)
    gpt = jax.lax.dot_general(wgpt_ref[...], ygp, nt,
                              preferred_element_type=jnp.float32)           # (cout, 1)
    out = _gn_relu_cols(zt + gpt, pg_ref[...], pb_ref[...], Mm, MTm, cg)
    o_ref[0] = out.astype(o_ref.dtype)


# ---------------------------------------------------------------------------
# Rough tiling-aware VMEM footprint of one buffer (last two dims padded).
# ---------------------------------------------------------------------------
def _vmem_bytes(shape, itemsize):
    dims = list(shape)
    sub = 32 // itemsize                      # 8 sublanes for f32, 16 for bf16
    dims[-1] = -(-dims[-1] // 128) * 128
    dims[-2] = -(-dims[-2] // sub) * sub
    n = 1
    for v in dims:
        n *= v
    return n * itemsize


# ---------------------------------------------------------------------------
# ASPP forward (matches the PyTorch module; NCHW in / NCHW out)
# ---------------------------------------------------------------------------
def aspp_forward(x_nchw, params, dilations=(1, 6, 12, 18), num_groups=16):
    x = jnp.transpose(x_nchw, (0, 2, 3, 1)).astype(jnp.float32)   # NCHW -> NHWC (tiny input)
    N, H, W, cin = x.shape
    cout = params["gp"][0].shape[-1]
    G = min(num_groups, cout)
    cg = cout // G
    nb = len(dilations)
    dmax = max(dilations)
    S = H * W
    Hp, Wp = H + 2 * dmax, W + 2 * dmax

    # Host-side packing: matmul-ready operands.  Branch conv weights stay f32 so
    # the in-kernel per-tap slicing is on an unpacked dtype; they are cast to
    # bf16 right before the MXU.  The big projection block is stored as bf16.
    w9 = jnp.stack([w.reshape(9 * cin, cout) for (w, _, _) in params["branches"]])
    gb = jnp.stack([g.reshape(1, cout) for (_, g, _) in params["branches"]])
    bb = jnp.stack([b.reshape(1, cout) for (_, _, b) in params["branches"]])
    wgp, ggp, bgp = params["gp"]
    ggp = ggp.reshape(1, cout)
    bgp = bgp.reshape(1, cout)
    wp, pg, pb = params["project"]
    wp4t = jnp.asarray(wp[:nb * cout, :].T, dtype=jnp.bfloat16)   # (cout, nb*cout)
    wgpt = jnp.asarray(wp[nb * cout:, :].T, dtype=jnp.float32)    # (cout, cout)
    pg_c = pg.reshape(cout, 1)
    pb_c = pb.reshape(cout, 1)

    # One-hot group-membership matrices (GroupNorm per-group reductions as dots).
    c_ids = jnp.arange(cout) // cg
    Mmat = (c_ids[:, None] == jnp.arange(G)[None, :]).astype(jnp.float32)   # (C, G)
    MTmat = Mmat.T                                                          # (G, C)

    weights = (w9, gb, bb, wgp, ggp, bgp, wp4t, wgpt, pg_c, pb_c, Mmat, MTmat)

    # Explicit VMEM budget: double-buffered IO blocks + pad scratch + headroom
    # for in-kernel temporaries (im2col / branch outputs / f4 / zt), x2 margin.
    vmem = 2 * _vmem_bytes((1, H, W, cin), 4) + 2 * _vmem_bytes((1, cout, S), 4)
    vmem += sum(2 * _vmem_bytes(a.shape, a.dtype.itemsize) for a in weights)
    vmem += _vmem_bytes((Hp, Wp, cin), 4)
    vmem += 16 * _vmem_bytes((S, 128), 4)
    vmem_limit = int(min(64 * 2 ** 20, max(16 * 2 ** 20, 2 * vmem)))

    kern = functools.partial(_aspp_kernel, H=H, W=W, dmax=dmax,
                             dilations=tuple(dilations), cg=cg)
    out = pl.pallas_call(
        kern,
        out_shape=jax.ShapeDtypeStruct((N, cout, S), jnp.float32),
        grid=(N,),
        in_specs=[
            pl.BlockSpec((1, H, W, cin), lambda n: (n, 0, 0, 0)),        # unpadded x
            pl.BlockSpec((nb, 9 * cin, cout), lambda n: (0, 0, 0)),      # branch conv weights
            pl.BlockSpec((nb, 1, cout), lambda n: (0, 0, 0)),            # branch GN gamma
            pl.BlockSpec((nb, 1, cout), lambda n: (0, 0, 0)),            # branch GN beta
            pl.BlockSpec((cin, cout), lambda n: (0, 0)),                 # GP 1x1 weight
            pl.BlockSpec((1, cout), lambda n: (0, 0)),                   # GP GN gamma
            pl.BlockSpec((1, cout), lambda n: (0, 0)),                   # GP GN beta
            pl.BlockSpec((cout, nb * cout), lambda n: (0, 0)),           # proj weight (branch blocks, transposed, bf16)
            pl.BlockSpec((cout, cout), lambda n: (0, 0)),                # proj weight (GP block, transposed)
            pl.BlockSpec((cout, 1), lambda n: (0, 0)),                   # proj GN gamma (column)
            pl.BlockSpec((cout, 1), lambda n: (0, 0)),                   # proj GN beta  (column)
            pl.BlockSpec((cout, G), lambda n: (0, 0)),                   # group membership M
            pl.BlockSpec((G, cout), lambda n: (0, 0)),                   # group membership M^T
        ],
        out_specs=pl.BlockSpec((1, cout, S), lambda n: (n, 0, 0)),
        scratch_shapes=[pltpu.VMEM((Hp, Wp, cin), jnp.float32)],         # shared zero-padded input
        compiler_params=pltpu.CompilerParams(
            dimension_semantics=("parallel",),
            vmem_limit_bytes=vmem_limit),
    )(x, *weights)

    # Output is already channels-major: (N, cout, S) -> NCHW is a free reshape.
    return out.reshape(N, cout, H, W)


# ---------------------------------------------------------------------------
# Pure-JAX reference (sanity check against the fused Pallas kernel)
# ---------------------------------------------------------------------------
def _ref_group_norm(x, gamma, beta, G):
    N, H, W, C = x.shape
    cg = C // G
    xg = x.reshape(N, H, W, G, cg)
    mean = xg.mean(axis=(1, 2, 4), keepdims=True)
    var = ((xg - mean) ** 2).mean(axis=(1, 2, 4), keepdims=True)
    xn = ((xg - mean) / jnp.sqrt(var + EPS)).reshape(N, H, W, C)
    return xn * gamma.reshape(1, 1, 1, C) + beta.reshape(1, 1, 1, C)


def _ref_forward(x_nhwc, params, dilations, G):
    feats = []
    for d, (w, g, b) in zip(dilations, params["branches"]):
        y = jax.lax.conv_general_dilated(
            x_nhwc, w, (1, 1), ((d, d), (d, d)), rhs_dilation=(d, d),
            dimension_numbers=("NHWC", "HWIO", "NHWC"))
        feats.append(jax.nn.relu(_ref_group_norm(y, g, b, G)))
    wgp, gg, bg = params["gp"]
    ym = x_nhwc.mean(axis=(1, 2), keepdims=True)
    y = jnp.einsum("nhwc,cd->nhwd", ym, wgp)
    y = jax.nn.relu(_ref_group_norm(y, gg, bg, G))
    N, H, W, _ = x_nhwc.shape
    feats.append(jnp.broadcast_to(y, (N, H, W, y.shape[-1])))
    wp, pg, pb = params["project"]
    f = jnp.concatenate(feats, axis=-1)
    z = jnp.einsum("nhwc,cd->nhwd", f, wp)
    return jax.nn.relu(_ref_group_norm(z, pg, pb, G))


# ---------------------------------------------------------------------------
if __name__ == "__main__":
    in_ch, out_ch = 4, 32
    N, H, W = 2, 16, 16
    dilations = (1, 6, 12, 18)
    num_groups = 16
    G = min(num_groups, out_ch)

    key = jax.random.PRNGKey(0)
    keys = jax.random.split(key, 20)

    def nrm(k, shape, s=0.1):
        return (s * jax.random.normal(k, shape)).astype(jnp.float32)

    params = {
        "branches": [
            (nrm(keys[i], (3, 3, in_ch, out_ch)),              # conv weight, HWIO
             1.0 + nrm(keys[4 + i], (1, out_ch)),              # GN gamma
             nrm(keys[8 + i], (1, out_ch)))                    # GN beta
            for i in range(4)
        ],
        "gp": (nrm(keys[12], (in_ch, out_ch)),                 # 1x1 conv weight
               1.0 + nrm(keys[13], (1, out_ch)),
               nrm(keys[14], (1, out_ch))),
        "project": (nrm(keys[15], (5 * out_ch, out_ch)),       # 1x1 conv weight
                    1.0 + nrm(keys[16], (1, out_ch)),
                    nrm(keys[17], (1, out_ch))),
    }

    x = jax.random.normal(keys[18], (N, in_ch, H, W), dtype=jnp.float32)

    out = aspp_forward(x, params, dilations, num_groups)
    out = jax.block_until_ready(out)
    assert out.shape == (N, out_ch, H, W)

    ref = _ref_forward(jnp.transpose(x, (0, 2, 3, 1)), params, dilations, G)
    ref = jnp.transpose(ref, (0, 3, 1, 2))
    # bf16 MXU operands (with f32 accumulation / GN stats) vs. the all-f32
    # reference: expected drift is O(1e-2) max-abs at these magnitudes.
    max_err = float(jnp.max(jnp.abs(out - ref)))
    assert max_err < 5e-2, f"mismatch vs reference: {max_err}"

    print("KERNEL_OK")
</pallas_src>

<mosaic_0001>
module attributes {stable_mosaic.version = 11 : i64} {
  func.func @_aspp_kernel(%arg0: i32, %arg1: memref<1x16x16x4xf32, #tpu.memory_space<vmem>>, %arg2: memref<4x36x32xf32, #tpu.memory_space<vmem>>, %arg3: memref<4x1x32xf32, #tpu.memory_space<vmem>>, %arg4: memref<4x1x32xf32, #tpu.memory_space<vmem>>, %arg5: memref<4x32xf32, #tpu.memory_space<vmem>>, %arg6: memref<1x32xf32, #tpu.memory_space<vmem>>, %arg7: memref<1x32xf32, #tpu.memory_space<vmem>>, %arg8: memref<32x128xbf16, #tpu.memory_space<vmem>>, %arg9: memref<32x32xf32, #tpu.memory_space<vmem>>, %arg10: memref<32x1xf32, #tpu.memory_space<vmem>>, %arg11: memref<32x1xf32, #tpu.memory_space<vmem>>, %arg12: memref<32x16xf32, #tpu.memory_space<vmem>>, %arg13: memref<16x32xf32, #tpu.memory_space<vmem>>, %arg14: memref<1x32x256xf32, #tpu.memory_space<vmem>>, %arg15: memref<52x52x4xf32, #tpu.memory_space<vmem>>) attributes {dimension_semantics = [#tpu.dimension_semantics<parallel>], iteration_bounds = array<i64: 2>, scalar_prefetch = 0 : i64, scratch_operands = 1 : i64, tpu.core_type = #tpu.core_type<tc>, window_params = [{transform_indices = @transform_0, window_bounds = array<i64: 1, 16, 16, 4>}, {pipeline_mode = #tpu.pipeline_mode<synchronous>, transform_indices = @transform_1, window_bounds = array<i64: 4, 36, 32>}, {pipeline_mode = #tpu.pipeline_mode<synchronous>, transform_indices = @transform_2, window_bounds = array<i64: 4, 1, 32>}, {pipeline_mode = #tpu.pipeline_mode<synchronous>, transform_indices = @transform_3, window_bounds = array<i64: 4, 1, 32>}, {pipeline_mode = #tpu.pipeline_mode<synchronous>, transform_indices = @transform_4, window_bounds = array<i64: 4, 32>}, {pipeline_mode = #tpu.pipeline_mode<synchronous>, transform_indices = @transform_5, window_bounds = array<i64: 1, 32>}, {pipeline_mode = #tpu.pipeline_mode<synchronous>, transform_indices = @transform_6, window_bounds = array<i64: 1, 32>}, {pipeline_mode = #tpu.pipeline_mode<synchronous>, transform_indices = @transform_7, window_bounds = array<i64: 32, 128>}, {pipeline_mode = #tpu.pipeline_mode<synchronous>, transform_indices = @transform_8, window_bounds = array<i64: 32, 32>}, {pipeline_mode = #tpu.pipeline_mode<synchronous>, transform_indices = @transform_9, window_bounds = array<i64: 32, 1>}, {pipeline_mode = #tpu.pipeline_mode<synchronous>, transform_indices = @transform_10, window_bounds = array<i64: 32, 1>}, {pipeline_mode = #tpu.pipeline_mode<synchronous>, transform_indices = @transform_11, window_bounds = array<i64: 32, 16>}, {pipeline_mode = #tpu.pipeline_mode<synchronous>, transform_indices = @transform_12, window_bounds = array<i64: 16, 32>}, {transform_indices = @transform_13, window_bounds = array<i64: 1, 32, 256>}]} {
    %c0 = arith.constant 0 : index
    %c0_0 = arith.constant 0 : index
    %0 = vector.load %arg12[%c0, %c0_0] : memref<32x16xf32, #tpu.memory_space<vmem>>, vector<32x16xf32>
    %c0_1 = arith.constant 0 : index
    %c0_2 = arith.constant 0 : index
    %1 = vector.load %arg13[%c0_1, %c0_2] : memref<16x32xf32, #tpu.memory_space<vmem>>, vector<16x32xf32>
    %cst = arith.constant 0.000000e+00 : f32
    %2 = vector.broadcast %cst : f32 to vector<52x52x4xf32>
    %c0_3 = arith.constant 0 : index
    %c0_4 = arith.constant 0 : index
    %c0_5 = arith.constant 0 : index
    %3 = vector.load %arg15[%c0_3, %c0_4, %c0_5] : memref<52x52x4xf32, #tpu.memory_space<vmem>>, vector<52x52x4xf32>
    tpu.vector_store %arg15[%c0_3, %c0_4, %c0_5], %2 {strides = array<i32>} : memref<52x52x4xf32, #tpu.memory_space<vmem>>, vector<52x52x4xf32>,
    %c0_6 = arith.constant 0 : index
    %c0_7 = arith.constant 0 : index
    %c0_8 = arith.constant 0 : index
    %c0_9 = arith.constant 0 : index
    %4 = vector.load %arg1[%c0_6, %c0_7, %c0_8, %c0_9] : memref<1x16x16x4xf32, #tpu.memory_space<vmem>>, vector<1x16x16x4xf32>
    %5 = vector.shape_cast %4 : vector<1x16x16x4xf32> to vector<16x16x4xf32>
    %c18 = arith.constant 18 : index
    %c18_10 = arith.constant 18 : index
    %c0_11 = arith.constant 0 : index
    %6 = vector.load %arg15[%c18, %c18_10, %c0_11] : memref<52x52x4xf32, #tpu.memory_space<vmem>>, vector<16x16x4xf32>
    tpu.vector_store %arg15[%c18, %c18_10, %c0_11], %5 {strides = array<i32>} : memref<52x52x4xf32, #tpu.memory_space<vmem>>, vector<16x16x4xf32>,
    %c0_12 = arith.constant 0 : index
    %c0_13 = arith.constant 0 : index
    %c0_14 = arith.constant 0 : index
    %7 = vector.load %arg2[%c0_12, %c0_13, %c0_14] : memref<4x36x32xf32, #tpu.memory_space<vmem>>, vector<1x36x32xf32>
    %8 = vector.shape_cast %7 : vector<1x36x32xf32> to vector<36x32xf32>
    %c17 = arith.constant 17 : index
    %c17_15 = arith.constant 17 : index
    %c0_16 = arith.constant 0 : index
    %9 = vector.load %arg15[%c17, %c17_15, %c0_16] : memref<52x52x4xf32, #tpu.memory_space<vmem>>, vector<16x16x4xf32>
    %10 = vector.shape_cast %9 : vector<16x16x4xf32> to vector<256x4xf32>
    %11 = vector.extract_strided_slice %8 {offsets = [0, 0], sizes = [4, 32], strides = [1, 1]} : vector<36x32xf32> to vector<4x32xf32>
    %c17_17 = arith.constant 17 : index
    %c18_18 = arith.constant 18 : index
    %c0_19 = arith.constant 0 : index
    %12 = vector.load %arg15[%c17_17, %c18_18, %c0_19] : memref<52x52x4xf32, #tpu.memory_space<vmem>>, vector<16x16x4xf32>
    %13 = vector.shape_cast %12 : vector<16x16x4xf32> to vector<256x4xf32>
    %14 = vector.extract_strided_slice %8 {offsets = [4, 0], sizes = [4, 32], strides = [1, 1]} : vector<36x32xf32> to vector<4x32xf32>
    %c17_20 = arith.constant 17 : index
    %c19 = arith.constant 19 : index
    %c0_21 = arith.constant 0 : index
    %15 = vector.load %arg15[%c17_20, %c19, %c0_21] : memref<52x52x4xf32, #tpu.memory_space<vmem>>, vector<16x16x4xf32>
    %16 = vector.shape_cast %15 : vector<16x16x4xf32> to vector<256x4xf32>
    %17 = vector.extract_strided_slice %8 {offsets = [8, 0], sizes = [4, 32], strides = [1, 1]} : vector<36x32xf32> to vector<4x32xf32>
    %c18_22 = arith.constant 18 : index
    %c17_23 = arith.constant 17 : index
    %c0_24 = arith.constant 0 : index
    %18 = vector.load %arg15[%c18_22, %c17_23, %c0_24] : memref<52x52x4xf32, #tpu.memory_space<vmem>>, vector<16x16x4xf32>
    %19 = vector.shape_cast %18 : vector<16x16x4xf32> to vector<256x4xf32>
    %20 = vector.extract_strided_slice %8 {offsets = [12, 0], sizes = [4, 32], strides = [1, 1]} : vector<36x32xf32> to vector<4x32xf32>
    %c18_25 = arith.constant 18 : index
    %c18_26 = arith.constant 18 : index
    %c0_27 = arith.constant 0 : index
    %21 = vector.load %arg15[%c18_25, %c18_26, %c0_27] : memref<52x52x4xf32, #tpu.memory_space<vmem>>, vector<16x16x4xf32>
    %22 = vector.shape_cast %21 : vector<16x16x4xf32> to vector<256x4xf32>
    %23 = vector.extract_strided_slice %8 {offsets = [16, 0], sizes = [4, 32], strides = [1, 1]} : vector<36x32xf32> to vector<4x32xf32>
    %c18_28 = arith.constant 18 : index
    %c19_29 = arith.constant 19 : index
    %c0_30 = arith.constant 0 : index
    %24 = vector.load %arg15[%c18_28, %c19_29, %c0_30] : memref<52x52x4xf32, #tpu.memory_space<vmem>>, vector<16x16x4xf32>
    %25 = vector.shape_cast %24 : vector<16x16x4xf32> to vector<256x4xf32>
    %26 = vector.extract_strided_slice %8 {offsets = [20, 0], sizes = [4, 32], strides = [1, 1]} : vector<36x32xf32> to vector<4x32xf32>
    %c19_31 = arith.constant 19 : index
    %c17_32 = arith.constant 17 : index
    %c0_33 = arith.constant 0 : index
    %27 = vector.load %arg15[%c19_31, %c17_32, %c0_33] : memref<52x52x4xf32, #tpu.memory_space<vmem>>, vector<16x16x4xf32>
    %28 = vector.shape_cast %27 : vector<16x16x4xf32> to vector<256x4xf32>
    %29 = vector.extract_strided_slice %8 {offsets = [24, 0], sizes = [4, 32], strides = [1, 1]} : vector<36x32xf32> to vector<4x32xf32>
    %c19_34 = arith.constant 19 : index
    %c18_35 = arith.constant 18 : index
    %c0_36 = arith.constant 0 : index
    %30 = vector.load %arg15[%c19_34, %c18_35, %c0_36] : memref<52x52x4xf32, #tpu.memory_space<vmem>>, vector<16x16x4xf32>
    %31 = vector.shape_cast %30 : vector<16x16x4xf32> to vector<256x4xf32>
    %32 = vector.extract_strided_slice %8 {offsets = [28, 0], sizes = [4, 32], strides = [1, 1]} : vector<36x32xf32> to vector<4x32xf32>
    %c19_37 = arith.constant 19 : index
    %c19_38 = arith.constant 19 : index
    %c0_39 = arith.constant 0 : index
    %33 = vector.load %arg15[%c19_37, %c19_38, %c0_39] : memref<52x52x4xf32, #tpu.memory_space<vmem>>, vector<16x16x4xf32>
    %34 = vector.shape_cast %33 : vector<16x16x4xf32> to vector<256x4xf32>
    %35 = vector.extract_strided_slice %8 {offsets = [32, 0], sizes = [4, 32], strides = [1, 1]} : vector<36x32xf32> to vector<4x32xf32>
    %36 = tpu.concatenate %10, %13, %16, %19, %22, %25, %28, %31, %34 in 1 : vector<256x4xf32>, vector<256x4xf32>, vector<256x4xf32>, vector<256x4xf32>, vector<256x4xf32>, vector<256x4xf32>, vector<256x4xf32>, vector<256x4xf32>, vector<256x4xf32> -> vector<256x36xf32>
    %37 = arith.truncf %36 : vector<256x36xf32> to vector<256x36xbf16>
    %38 = tpu.concatenate %11, %14, %17, %20, %23, %26, %29, %32, %35 in 0 : vector<4x32xf32>, vector<4x32xf32>, vector<4x32xf32>, vector<4x32xf32>, vector<4x32xf32>, vector<4x32xf32>, vector<4x32xf32>, vector<4x32xf32>, vector<4x32xf32> -> vector<36x32xf32>
    %39 = arith.truncf %38 : vector<36x32xf32> to vector<36x32xbf16>
    %cst_40 = arith.constant dense<0.000000e+00> : vector<256x32xf32>
    %40 = tpu.matmul %37, %39, %cst_40 {dimension_numbers = #tpu.dot_dimension_numbers<[1], [0], [0], [1], [0, 0, 1, 1], [], []>} : vector<256x36xbf16>, vector<36x32xbf16>, vector<256x32xf32> -> vector<256x32xf32>
    %c0_41 = arith.constant 0 : index
    %c0_42 = arith.constant 0 : index
    %c0_43 = arith.constant 0 : index
    %41 = vector.load %arg3[%c0_41, %c0_42, %c0_43] : memref<4x1x32xf32, #tpu.memory_space<vmem>>, vector<1x1x32xf32>
    %42 = vector.shape_cast %41 : vector<1x1x32xf32> to vector<1x32xf32>
    %c0_44 = arith.constant 0 : index
    %c0_45 = arith.constant 0 : index
    %c0_46 = arith.constant 0 : index
    %43 = vector.load %arg4[%c0_44, %c0_45, %c0_46] : memref<4x1x32xf32, #tpu.memory_space<vmem>>, vector<1x1x32xf32>
    %44 = vector.shape_cast %43 : vector<1x1x32xf32> to vector<1x32xf32>
    %cst_47 = arith.constant dense<0.000000e+00> : vector<32xf32>
    %45 = vector.multi_reduction <add>, %40, %cst_47 [0] : vector<256x32xf32> to vector<32xf32>
    %46 = vector.shape_cast %45 : vector<32xf32> to vector<1x32xf32>
    %cst_48 = arith.constant dense<0.000000e+00> : vector<1x16xf32>
    %47 = tpu.matmul %46, %0, %cst_48 {dimension_numbers = #tpu.dot_dimension_numbers<[1], [0], [0], [1], [0, 0, 1, 1], [], []>} : vector<1x32xf32>, vector<32x16xf32>, vector<1x16xf32> -> vector<1x16xf32>
    %cst_49 = arith.constant 0.001953125 : f32
    %48 = vector.broadcast %cst_49 : f32 to vector<1x16xf32>
    %49 = arith.mulf %47, %48 : vector<1x16xf32>
    %cst_50 = arith.constant dense<0.000000e+00> : vector<1x32xf32>
    %50 = tpu.matmul %49, %1, %cst_50 {dimension_numbers = #tpu.dot_dimension_numbers<[1], [0], [0], [1], [0, 0, 1, 1], [], []>} : vector<1x16xf32>, vector<16x32xf32>, vector<1x32xf32> -> vector<1x32xf32>
    %51 = vector.broadcast %50 : vector<1x32xf32> to vector<256x32xf32>
    %52 = arith.subf %40, %51 : vector<256x32xf32>
    %53 = arith.mulf %52, %52 : vector<256x32xf32>
    %cst_51 = arith.constant dense<0.000000e+00> : vector<32xf32>
    %54 = vector.multi_reduction <add>, %53, %cst_51 [0] : vector<256x32xf32> to vector<32xf32>
    %55 = vector.shape_cast %54 : vector<32xf32> to vector<1x32xf32>
    %cst_52 = arith.constant dense<0.000000e+00> : vector<1x16xf32>
    %56 = tpu.matmul %55, %0, %cst_52 {dimension_numbers = #tpu.dot_dimension_numbers<[1], [0], [0], [1], [0, 0, 1, 1], [], []>} : vector<1x32xf32>, vector<32x16xf32>, vector<1x16xf32> -> vector<1x16xf32>
    %cst_53 = arith.constant 0.001953125 : f32
    %57 = vector.broadcast %cst_53 : f32 to vector<1x16xf32>
    %58 = arith.mulf %56, %57 : vector<1x16xf32>
    %cst_54 = arith.constant 9.99999974E-6 : f32
    %59 = vector.broadcast %cst_54 : f32 to vector<1x16xf32>
    %60 = arith.addf %58, %59 : vector<1x16xf32>
    %61 = math.rsqrt %60 : vector<1x16xf32>
    %cst_55 = arith.constant dense<0.000000e+00> : vector<1x32xf32>
    %62 = tpu.matmul %61, %1, %cst_55 {dimension_numbers = #tpu.dot_dimension_numbers<[1], [0], [0], [1], [0, 0, 1, 1], [], []>} : vector<1x16xf32>, vector<16x32xf32>, vector<1x32xf32> -> vector<1x32xf32>
    %63 = arith.mulf %62, %42 : vector<1x32xf32>
    %64 = vector.broadcast %63 : vector<1x32xf32> to vector<256x32xf32>
    %65 = arith.mulf %52, %64 : vector<256x32xf32>
    %66 = vector.broadcast %44 : vector<1x32xf32> to vector<256x32xf32>
    %67 = arith.addf %65, %66 : vector<256x32xf32>
    %cst_56 = arith.constant 0.000000e+00 : f32
    %68 = vector.broadcast %cst_56 : f32 to vector<256x32xf32>
    %69 = arith.maximumf %67, %68 : vector<256x32xf32>
    %c1 = arith.constant 1 : index
    %c0_57 = arith.constant 0 : index
    %c0_58 = arith.constant 0 : index
    %70 = vector.load %arg2[%c1, %c0_57, %c0_58] : memref<4x36x32xf32, #tpu.memory_space<vmem>>, vector<1x36x32xf32>
    %71 = vector.shape_cast %70 : vector<1x36x32xf32> to vector<36x32xf32>
    %c12 = arith.constant 12 : index
    %c12_59 = arith.constant 12 : index
    %c0_60 = arith.constant 0 : index
    %72 = vector.load %arg15[%c12, %c12_59, %c0_60] : memref<52x52x4xf32, #tpu.memory_space<vmem>>, vector<16x16x4xf32>
    %73 = vector.shape_cast %72 : vector<16x16x4xf32> to vector<256x4xf32>
    %74 = vector.extract_strided_slice %71 {offsets = [0, 0], sizes = [4, 32], strides = [1, 1]} : vector<36x32xf32> to vector<4x32xf32>
    %c12_61 = arith.constant 12 : index
    %c18_62 = arith.constant 18 : index
    %c0_63 = arith.constant 0 : index
    %75 = vector.load %arg15[%c12_61, %c18_62, %c0_63] : memref<52x52x4xf32, #tpu.memory_space<vmem>>, vector<16x16x4xf32>
    %76 = vector.shape_cast %75 : vector<16x16x4xf32> to vector<256x4xf32>
    %77 = vector.extract_strided_slice %71 {offsets = [4, 0], sizes = [4, 32], strides = [1, 1]} : vector<36x32xf32> to vector<4x32xf32>
    %c12_64 = arith.constant 12 : index
    %c24 = arith.constant 24 : index
    %c0_65 = arith.constant 0 : index
    %78 = vector.load %arg15[%c12_64, %c24, %c0_65] : memref<52x52x4xf32, #tpu.memory_space<vmem>>, vector<16x16x4xf32>
    %79 = vector.shape_cast %78 : vector<16x16x4xf32> to vector<256x4xf32>
    %80 = vector.extract_strided_slice %71 {offsets = [8, 0], sizes = [4, 32], strides = [1, 1]} : vector<36x32xf32> to vector<4x32xf32>
    %c18_66 = arith.constant 18 : index
    %c12_67 = arith.constant 12 : index
    %c0_68 = arith.constant 0 : index
    %81 = vector.load %arg15[%c18_66, %c12_67, %c0_68] : memref<52x52x4xf32, #tpu.memory_space<vmem>>, vector<16x16x4xf32>
    %82 = vector.shape_cast %81 : vector<16x16x4xf32> to vector<256x4xf32>
    %83 = vector.extract_strided_slice %71 {offsets = [12, 0], sizes = [4, 32], strides = [1, 1]} : vector<36x32xf32> to vector<4x32xf32>
    %c18_69 = arith.constant 18 : index
    %c18_70 = arith.constant 18 : index
    %c0_71 = arith.constant 0 : index
    %84 = vector.load %arg15[%c18_69, %c18_70, %c0_71] : memref<52x52x4xf32, #tpu.memory_space<vmem>>, vector<16x16x4xf32>
    %85 = vector.shape_cast %84 : vector<16x16x4xf32> to vector<256x4xf32>
    %86 = vector.extract_strided_slice %71 {offsets = [16, 0], sizes = [4, 32], strides = [1, 1]} : vector<36x32xf32> to vector<4x32xf32>
    %c18_72 = arith.constant 18 : index
    %c24_73 = arith.constant 24 : index
    %c0_74 = arith.constant 0 : index
    %87 = vector.load %arg15[%c18_72, %c24_73, %c0_74] : memref<52x52x4xf32, #tpu.memory_space<vmem>>, vector<16x16x4xf32>
    %88 = vector.shape_cast %87 : vector<16x16x4xf32> to vector<256x4xf32>
    %89 = vector.extract_strided_slice %71 {offsets = [20, 0], sizes = [4, 32], strides = [1, 1]} : vector<36x32xf32> to vector<4x32xf32>
    %c24_75 = arith.constant 24 : index
    %c12_76 = arith.constant 12 : index
    %c0_77 = arith.constant 0 : index
    %90 = vector.load %arg15[%c24_75, %c12_76, %c0_77] : memref<52x52x4xf32, #tpu.memory_space<vmem>>, vector<16x16x4xf32>
    %91 = vector.shape_cast %90 : vector<16x16x4xf32> to vector<256x4xf32>
    %92 = vector.extract_strided_slice %71 {offsets = [24, 0], sizes = [4, 32], strides = [1, 1]} : vector<36x32xf32> to vector<4x32xf32>
    %c24_78 = arith.constant 24 : index
    %c18_79 = arith.constant 18 : index
    %c0_80 = arith.constant 0 : index
    %93 = vector.load %arg15[%c24_78, %c18_79, %c0_80] : memref<52x52x4xf32, #tpu.memory_space<vmem>>, vector<16x16x4xf32>
    %94 = vector.shape_cast %93 : vector<16x16x4xf32> to vector<256x4xf32>
    %95 = vector.extract_strided_slice %71 {offsets = [28, 0], sizes = [4, 32], strides = [1, 1]} : vector<36x32xf32> to vector<4x32xf32>
    %c24_81 = arith.constant 24 : index
    %c24_82 = arith.constant 24 : index
    %c0_83 = arith.constant 0 : index
    %96 = vector.load %arg15[%c24_81, %c24_82, %c0_83] : memref<52x52x4xf32, #tpu.memory_space<vmem>>, vector<16x16x4xf32>
    %97 = vector.shape_cast %96 : vector<16x16x4xf32> to vector<256x4xf32>
    %98 = vector.extract_strided_slice %71 {offsets = [32, 0], sizes = [4, 32], strides = [1, 1]} : vector<36x32xf32> to vector<4x32xf32>
    %99 = tpu.concatenate %73, %76, %79, %82, %85, %88, %91, %94, %97 in 1 : vector<256x4xf32>, vector<256x4xf32>, vector<256x4xf32>, vector<256x4xf32>, vector<256x4xf32>, vector<256x4xf32>, vector<256x4xf32>, vector<256x4xf32>, vector<256x4xf32> -> vector<256x36xf32>
    %100 = arith.truncf %99 : vector<256x36xf32> to vector<256x36xbf16>
    %101 = tpu.concatenate %74, %77, %80, %83, %86, %89, %92, %95, %98 in 0 : vector<4x32xf32>, vector<4x32xf32>, vector<4x32xf32>, vector<4x32xf32>, vector<4x32xf32>, vector<4x32xf32>, vector<4x32xf32>, vector<4x32xf32>, vector<4x32xf32> -> vector<36x32xf32>
    %102 = arith.truncf %101 : vector<36x32xf32> to vector<36x32xbf16>
    %cst_84 = arith.constant dense<0.000000e+00> : vector<256x32xf32>
    %103 = tpu.matmul %100, %102, %cst_84 {dimension_numbers = #tpu.dot_dimension_numbers<[1], [0], [0], [1], [0, 0, 1, 1], [], []>} : vector<256x36xbf16>, vector<36x32xbf16>, vector<256x32xf32> -> vector<256x32xf32>
    %c1_85 = arith.constant 1 : index
    %c0_86 = arith.constant 0 : index
    %c0_87 = arith.constant 0 : index
    %104 = vector.load %arg3[%c1_85, %c0_86, %c0_87] : memref<4x1x32xf32, #tpu.memory_space<vmem>>, vector<1x1x32xf32>
    %105 = vector.shape_cast %104 : vector<1x1x32xf32> to vector<1x32xf32>
    %c1_88 = arith.constant 1 : index
    %c0_89 = arith.constant 0 : index
    %c0_90 = arith.constant 0 : index
    %106 = vector.load %arg4[%c1_88, %c0_89, %c0_90] : memref<4x1x32xf32, #tpu.memory_space<vmem>>, vector<1x1x32xf32>
    %107 = vector.shape_cast %106 : vector<1x1x32xf32> to vector<1x32xf32>
    %cst_91 = arith.constant dense<0.000000e+00> : vector<32xf32>
    %108 = vector.multi_reduction <add>, %103, %cst_91 [0] : vector<256x32xf32> to vector<32xf32>
    %109 = vector.shape_cast %108 : vector<32xf32> to vector<1x32xf32>
    %cst_92 = arith.constant dense<0.000000e+00> : vector<1x16xf32>
    %110 = tpu.matmul %109, %0, %cst_92 {dimension_numbers = #tpu.dot_dimension_numbers<[1], [0], [0], [1], [0, 0, 1, 1], [], []>} : vector<1x32xf32>, vector<32x16xf32>, vector<1x16xf32> -> vector<1x16xf32>
    %cst_93 = arith.constant 0.001953125 : f32
    %111 = vector.broadcast %cst_93 : f32 to vector<1x16xf32>
    %112 = arith.mulf %110, %111 : vector<1x16xf32>
    %cst_94 = arith.constant dense<0.000000e+00> : vector<1x32xf32>
    %113 = tpu.matmul %112, %1, %cst_94 {dimension_numbers = #tpu.dot_dimension_numbers<[1], [0], [0], [1], [0, 0, 1, 1], [], []>} : vector<1x16xf32>, vector<16x32xf32>, vector<1x32xf32> -> vector<1x32xf32>
    %114 = vector.broadcast %113 : vector<1x32xf32> to vector<256x32xf32>
    %115 = arith.subf %103, %114 : vector<256x32xf32>
    %116 = arith.mulf %115, %115 : vector<256x32xf32>
    %cst_95 = arith.constant dense<0.000000e+00> : vector<32xf32>
    %117 = vector.multi_reduction <add>, %116, %cst_95 [0] : vector<256x32xf32> to vector<32xf32>
    %118 = vector.shape_cast %117 : vector<32xf32> to vector<1x32xf32>
    %cst_96 = arith.constant dense<0.000000e+00> : vector<1x16xf32>
    %119 = tpu.matmul %118, %0, %cst_96 {dimension_numbers = #tpu.dot_dimension_numbers<[1], [0], [0], [1], [0, 0, 1, 1], [], []>} : vector<1x32xf32>, vector<32x16xf32>, vector<1x16xf32> -> vector<1x16xf32>
    %cst_97 = arith.constant 0.001953125 : f32
    %120 = vector.broadcast %cst_97 : f32 to vector<1x16xf32>
    %121 = arith.mulf %119, %120 : vector<1x16xf32>
    %cst_98 = arith.constant 9.99999974E-6 : f32
    %122 = vector.broadcast %cst_98 : f32 to vector<1x16xf32>
    %123 = arith.addf %121, %122 : vector<1x16xf32>
    %124 = math.rsqrt %123 : vector<1x16xf32>
    %cst_99 = arith.constant dense<0.000000e+00> : vector<1x32xf32>
    %125 = tpu.matmul %124, %1, %cst_99 {dimension_numbers = #tpu.dot_dimension_numbers<[1], [0], [0], [1], [0, 0, 1, 1], [], []>} : vector<1x16xf32>, vector<16x32xf32>, vector<1x32xf32> -> vector<1x32xf32>
    %126 = arith.mulf %125, %105 : vector<1x32xf32>
    %127 = vector.broadcast %126 : vector<1x32xf32> to vector<256x32xf32>
    %128 = arith.mulf %115, %127 : vector<256x32xf32>
    %129 = vector.broadcast %107 : vector<1x32xf32> to vector<256x32xf32>
    %130 = arith.addf %128, %129 : vector<256x32xf32>
    %cst_100 = arith.constant 0.000000e+00 : f32
    %131 = vector.broadcast %cst_100 : f32 to vector<256x32xf32>
    %132 = arith.maximumf %130, %131 : vector<256x32xf32>
    %c2 = arith.constant 2 : index
    %c0_101 = arith.constant 0 : index
    %c0_102 = arith.constant 0 : index
    %133 = vector.load %arg2[%c2, %c0_101, %c0_102] : memref<4x36x32xf32, #tpu.memory_space<vmem>>, vector<1x36x32xf32>
    %134 = vector.shape_cast %133 : vector<1x36x32xf32> to vector<36x32xf32>
    %c6 = arith.constant 6 : index
    %c6_103 = arith.constant 6 : index
    %c0_104 = arith.constant 0 : index
    %135 = vector.load %arg15[%c6, %c6_103, %c0_104] : memref<52x52x4xf32, #tpu.memory_space<vmem>>, vector<16x16x4xf32>
    %136 = vector.shape_cast %135 : vector<16x16x4xf32> to vector<256x4xf32>
    %137 = vector.extract_strided_slice %134 {offsets = [0, 0], sizes = [4, 32], strides = [1, 1]} : vector<36x32xf32> to vector<4x32xf32>
    %c6_105 = arith.constant 6 : index
    %c18_106 = arith.constant 18 : index
    %c0_107 = arith.constant 0 : index
    %138 = vector.load %arg15[%c6_105, %c18_106, %c0_107] : memref<52x52x4xf32, #tpu.memory_space<vmem>>, vector<16x16x4xf32>
    %139 = vector.shape_cast %138 : vector<16x16x4xf32> to vector<256x4xf32>
    %140 = vector.extract_strided_slice %134 {offsets = [4, 0], sizes = [4, 32], strides = [1, 1]} : vector<36x32xf32> to vector<4x32xf32>
    %c6_108 = arith.constant 6 : index
    %c30 = arith.constant 30 : index
    %c0_109 = arith.constant 0 : index
    %141 = vector.load %arg15[%c6_108, %c30, %c0_109] : memref<52x52x4xf32, #tpu.memory_space<vmem>>, vector<16x16x4xf32>
    %142 = vector.shape_cast %141 : vector<16x16x4xf32> to vector<256x4xf32>
    %143 = vector.extract_strided_slice %134 {offsets = [8, 0], sizes = [4, 32], strides = [1, 1]} : vector<36x32xf32> to vector<4x32xf32>
    %c18_110 = arith.constant 18 : index
    %c6_111 = arith.constant 6 : index
    %c0_112 = arith.constant 0 : index
    %144 = vector.load %arg15[%c18_110, %c6_111, %c0_112] : memref<52x52x4xf32, #tpu.memory_space<vmem>>, vector<16x16x4xf32>
    %145 = vector.shape_cast %144 : vector<16x16x4xf32> to vector<256x4xf32>
    %146 = vector.extract_strided_slice %134 {offsets = [12, 0], sizes = [4, 32], strides = [1, 1]} : vector<36x32xf32> to vector<4x32xf32>
    %c18_113 = arith.constant 18 : index
    %c18_114 = arith.constant 18 : index
    %c0_115 = arith.constant 0 : index
    %147 = vector.load %arg15[%c18_113, %c18_114, %c0_115] : memref<52x52x4xf32, #tpu.memory_space<vmem>>, vector<16x16x4xf32>
    %148 = vector.shape_cast %147 : vector<16x16x4xf32> to vector<256x4xf32>
    %149 = vector.extract_strided_slice %134 {offsets = [16, 0], sizes = [4, 32], strides = [1, 1]} : vector<36x32xf32> to vector<4x32xf32>
    %c18_116 = arith.constant 18 : index
    %c30_117 = arith.constant 30 : index
    %c0_118 = arith.constant 0 : index
    %150 = vector.load %arg15[%c18_116, %c30_117, %c0_118] : memref<52x52x4xf32, #tpu.memory_space<vmem>>, vector<16x16x4xf32>
    %151 = vector.shape_cast %150 : vector<16x16x4xf32> to vector<256x4xf32>
    %152 = vector.extract_strided_slice %134 {offsets = [20, 0], sizes = [4, 32], strides = [1, 1]} : vector<36x32xf32> to vector<4x32xf32>
    %c30_119 = arith.constant 30 : index
    %c6_120 = arith.constant 6 : index
    %c0_121 = arith.constant 0 : index
    %153 = vector.load %arg15[%c30_119, %c6_120, %c0_121] : memref<52x52x4xf32, #tpu.memory_space<vmem>>, vector<16x16x4xf32>
    %154 = vector.shape_cast %153 : vector<16x16x4xf32> to vector<256x4xf32>
    %155 = vector.extract_strided_slice %134 {offsets = [24, 0], sizes = [4, 32], strides = [1, 1]} : vector<36x32xf32> to vector<4x32xf32>
    %c30_122 = arith.constant 30 : index
    %c18_123 = arith.constant 18 : index
    %c0_124 = arith.constant 0 : index
    %156 = vector.load %arg15[%c30_122, %c18_123, %c0_124] : memref<52x52x4xf32, #tpu.memory_space<vmem>>, vector<16x16x4xf32>
    %157 = vector.shape_cast %156 : vector<16x16x4xf32> to vector<256x4xf32>
    %158 = vector.extract_strided_slice %134 {offsets = [28, 0], sizes = [4, 32], strides = [1, 1]} : vector<36x32xf32> to vector<4x32xf32>
    %c30_125 = arith.constant 30 : index
    %c30_126 = arith.constant 30 : index
    %c0_127 = arith.constant 0 : index
    %159 = vector.load %arg15[%c30_125, %c30_126, %c0_127] : memref<52x52x4xf32, #tpu.memory_space<vmem>>, vector<16x16x4xf32>
    %160 = vector.shape_cast %159 : vector<16x16x4xf32> to vector<256x4xf32>
    %161 = vector.extract_strided_slice %134 {offsets = [32, 0], sizes = [4, 32], strides = [1, 1]} : vector<36x32xf32> to vector<4x32xf32>
    %162 = tpu.concatenate %136, %139, %142, %145, %148, %151, %154, %157, %160 in 1 : vector<256x4xf32>, vector<256x4xf32>, vector<256x4xf32>, vector<256x4xf32>, vector<256x4xf32>, vector<256x4xf32>, vector<256x4xf32>, vector<256x4xf32>, vector<256x4xf32> -> vector<256x36xf32>
    %163 = arith.truncf %162 : vector<256x36xf32> to vector<256x36xbf16>
    %164 = tpu.concatenate %137, %140, %143, %146, %149, %152, %155, %158, %161 in 0 : vector<4x32xf32>, vector<4x32xf32>, vector<4x32xf32>, vector<4x32xf32>, vector<4x32xf32>, vector<4x32xf32>, vector<4x32xf32>, vector<4x32xf32>, vector<4x32xf32> -> vector<36x32xf32>
    %165 = arith.truncf %164 : vector<36x32xf32> to vector<36x32xbf16>
    %cst_128 = arith.constant dense<0.000000e+00> : vector<256x32xf32>
    %166 = tpu.matmul %163, %165, %cst_128 {dimension_numbers = #tpu.dot_dimension_numbers<[1], [0], [0], [1], [0, 0, 1, 1], [], []>} : vector<256x36xbf16>, vector<36x32xbf16>, vector<256x32xf32> -> vector<256x32xf32>
    %c2_129 = arith.constant 2 : index
    %c0_130 = arith.constant 0 : index
    %c0_131 = arith.constant 0 : index
    %167 = vector.load %arg3[%c2_129, %c0_130, %c0_131] : memref<4x1x32xf32, #tpu.memory_space<vmem>>, vector<1x1x32xf32>
    %168 = vector.shape_cast %167 : vector<1x1x32xf32> to vector<1x32xf32>
    %c2_132 = arith.constant 2 : index
    %c0_133 = arith.constant 0 : index
    %c0_134 = arith.constant 0 : index
    %169 = vector.load %arg4[%c2_132, %c0_133, %c0_134] : memref<4x1x32xf32, #tpu.memory_space<vmem>>, vector<1x1x32xf32>
    %170 = vector.shape_cast %169 : vector<1x1x32xf32> to vector<1x32xf32>
    %cst_135 = arith.constant dense<0.000000e+00> : vector<32xf32>
    %171 = vector.multi_reduction <add>, %166, %cst_135 [0] : vector<256x32xf32> to vector<32xf32>
    %172 = vector.shape_cast %171 : vector<32xf32> to vector<1x32xf32>
    %cst_136 = arith.constant dense<0.000000e+00> : vector<1x16xf32>
    %173 = tpu.matmul %172, %0, %cst_136 {dimension_numbers = #tpu.dot_dimension_numbers<[1], [0], [0], [1], [0, 0, 1, 1], [], []>} : vector<1x32xf32>, vector<32x16xf32>, vector<1x16xf32> -> vector<1x16xf32>
    %cst_137 = arith.constant 0.001953125 : f32
    %174 = vector.broadcast %cst_137 : f32 to vector<1x16xf32>
    %175 = arith.mulf %173, %174 : vector<1x16xf32>
    %cst_138 = arith.constant dense<0.000000e+00> : vector<1x32xf32>
    %176 = tpu.matmul %175, %1, %cst_138 {dimension_numbers = #tpu.dot_dimension_numbers<[1], [0], [0], [1], [0, 0, 1, 1], [], []>} : vector<1x16xf32>, vector<16x32xf32>, vector<1x32xf32> -> vector<1x32xf32>
    %177 = vector.broadcast %176 : vector<1x32xf32> to vector<256x32xf32>
    %178 = arith.subf %166, %177 : vector<256x32xf32>
    %179 = arith.mulf %178, %178 : vector<256x32xf32>
    %cst_139 = arith.constant dense<0.000000e+00> : vector<32xf32>
    %180 = vector.multi_reduction <add>, %179, %cst_139 [0] : vector<256x32xf32> to vector<32xf32>
    %181 = vector.shape_cast %180 : vector<32xf32> to vector<1x32xf32>
    %cst_140 = arith.constant dense<0.000000e+00> : vector<1x16xf32>
    %182 = tpu.matmul %181, %0, %cst_140 {dimension_numbers = #tpu.dot_dimension_numbers<[1], [0], [0], [1], [0, 0, 1, 1], [], []>} : vector<1x32xf32>, vector<32x16xf32>, vector<1x16xf32> -> vector<1x16xf32>
    %cst_141 = arith.constant 0.001953125 : f32
    %183 = vector.broadcast %cst_141 : f32 to vector<1x16xf32>
    %184 = arith.mulf %182, %183 : vector<1x16xf32>
    %cst_142 = arith.constant 9.99999974E-6 : f32
    %185 = vector.broadcast %cst_142 : f32 to vector<1x16xf32>
    %186 = arith.addf %184, %185 : vector<1x16xf32>
    %187 = math.rsqrt %186 : vector<1x16xf32>
    %cst_143 = arith.constant dense<0.000000e+00> : vector<1x32xf32>
    %188 = tpu.matmul %187, %1, %cst_143 {dimension_numbers = #tpu.dot_dimension_numbers<[1], [0], [0], [1], [0, 0, 1, 1], [], []>} : vector<1x16xf32>, vector<16x32xf32>, vector<1x32xf32> -> vector<1x32xf32>
    %189 = arith.mulf %188, %168 : vector<1x32xf32>
    %190 = vector.broadcast %189 : vector<1x32xf32> to vector<256x32xf32>
    %191 = arith.mulf %178, %190 : vector<256x32xf32>
    %192 = vector.broadcast %170 : vector<1x32xf32> to vector<256x32xf32>
    %193 = arith.addf %191, %192 : vector<256x32xf32>
    %cst_144 = arith.constant 0.000000e+00 : f32
    %194 = vector.broadcast %cst_144 : f32 to vector<256x32xf32>
    %195 = arith.maximumf %193, %194 : vector<256x32xf32>
    %c3 = arith.constant 3 : index
    %c0_145 = arith.constant 0 : index
    %c0_146 = arith.constant 0 : index
    %196 = vector.load %arg2[%c3, %c0_145, %c0_146] : memref<4x36x32xf32, #tpu.memory_space<vmem>>, vector<1x36x32xf32>
    %197 = vector.shape_cast %196 : vector<1x36x32xf32> to vector<36x32xf32>
    %c18_147 = arith.constant 18 : index
    %c18_148 = arith.constant 18 : index
    %c0_149 = arith.constant 0 : index
    %198 = vector.load %arg15[%c18_147, %c18_148, %c0_149] : memref<52x52x4xf32, #tpu.memory_space<vmem>>, vector<16x16x4xf32>
    %199 = vector.shape_cast %198 : vector<16x16x4xf32> to vector<256x4xf32>
    %200 = vector.extract_strided_slice %197 {offsets = [16, 0], sizes = [4, 32], strides = [1, 1]} : vector<36x32xf32> to vector<4x32xf32>
    %201 = arith.truncf %199 : vector<256x4xf32> to vector<256x4xbf16>
    %202 = arith.truncf %200 : vector<4x32xf32> to vector<4x32xbf16>
    %cst_150 = arith.constant dense<0.000000e+00> : vector<256x32xf32>
    %203 = tpu.matmul %201, %202, %cst_150 {dimension_numbers = #tpu.dot_dimension_numbers<[1], [0], [0], [1], [0, 0, 1, 1], [], []>} : vector<256x4xbf16>, vector<4x32xbf16>, vector<256x32xf32> -> vector<256x32xf32>
    %c3_151 = arith.constant 3 : index
    %c0_152 = arith.constant 0 : index
    %c0_153 = arith.constant 0 : index
    %204 = vector.load %arg3[%c3_151, %c0_152, %c0_153] : memref<4x1x32xf32, #tpu.memory_space<vmem>>, vector<1x1x32xf32>
    %205 = vector.shape_cast %204 : vector<1x1x32xf32> to vector<1x32xf32>
    %c3_154 = arith.constant 3 : index
    %c0_155 = arith.constant 0 : index
    %c0_156 = arith.constant 0 : index
    %206 = vector.load %arg4[%c3_154, %c0_155, %c0_156] : memref<4x1x32xf32, #tpu.memory_space<vmem>>, vector<1x1x32xf32>
    %207 = vector.shape_cast %206 : vector<1x1x32xf32> to vector<1x32xf32>
    %cst_157 = arith.constant dense<0.000000e+00> : vector<32xf32>
    %208 = vector.multi_reduction <add>, %203, %cst_157 [0] : vector<256x32xf32> to vector<32xf32>
    %209 = vector.shape_cast %208 : vector<32xf32> to vector<1x32xf32>
    %cst_158 = arith.constant dense<0.000000e+00> : vector<1x16xf32>
    %210 = tpu.matmul %209, %0, %cst_158 {dimension_numbers = #tpu.dot_dimension_numbers<[1], [0], [0], [1], [0, 0, 1, 1], [], []>} : vector<1x32xf32>, vector<32x16xf32>, vector<1x16xf32> -> vector<1x16xf32>
    %cst_159 = arith.constant 0.001953125 : f32
    %211 = vector.broadcast %cst_159 : f32 to vector<1x16xf32>
    %212 = arith.mulf %210, %211 : vector<1x16xf32>
    %cst_160 = arith.constant dense<0.000000e+00> : vector<1x32xf32>
    %213 = tpu.matmul %212, %1, %cst_160 {dimension_numbers = #tpu.dot_dimension_numbers<[1], [0], [0], [1], [0, 0, 1, 1], [], []>} : vector<1x16xf32>, vector<16x32xf32>, vector<1x32xf32> -> vector<1x32xf32>
    %214 = vector.broadcast %213 : vector<1x32xf32> to vector<256x32xf32>
    %215 = arith.subf %203, %214 : vector<256x32xf32>
    %216 = arith.mulf %215, %215 : vector<256x32xf32>
    %cst_161 = arith.constant dense<0.000000e+00> : vector<32xf32>
    %217 = vector.multi_reduction <add>, %216, %cst_161 [0] : vector<256x32xf32> to vector<32xf32>
    %218 = vector.shape_cast %217 : vector<32xf32> to vector<1x32xf32>
    %cst_162 = arith.constant dense<0.000000e+00> : vector<1x16xf32>
    %219 = tpu.matmul %218, %0, %cst_162 {dimension_numbers = #tpu.dot_dimension_numbers<[1], [0], [0], [1], [0, 0, 1, 1], [], []>} : vector<1x32xf32>, vector<32x16xf32>, vector<1x16xf32> -> vector<1x16xf32>
    %cst_163 = arith.constant 0.001953125 : f32
    %220 = vector.broadcast %cst_163 : f32 to vector<1x16xf32>
    %221 = arith.mulf %219, %220 : vector<1x16xf32>
    %cst_164 = arith.constant 9.99999974E-6 : f32
    %222 = vector.broadcast %cst_164 : f32 to vector<1x16xf32>
    %223 = arith.addf %221, %222 : vector<1x16xf32>
    %224 = math.rsqrt %223 : vector<1x16xf32>
    %cst_165 = arith.constant dense<0.000000e+00> : vector<1x32xf32>
    %225 = tpu.matmul %224, %1, %cst_165 {dimension_numbers = #tpu.dot_dimension_numbers<[1], [0], [0], [1], [0, 0, 1, 1], [], []>} : vector<1x16xf32>, vector<16x32xf32>, vector<1x32xf32> -> vector<1x32xf32>
    %226 = arith.mulf %225, %205 : vector<1x32xf32>
    %227 = vector.broadcast %226 : vector<1x32xf32> to vector<256x32xf32>
    %228 = arith.mulf %215, %227 : vector<256x32xf32>
    %229 = vector.broadcast %207 : vector<1x32xf32> to vector<256x32xf32>
    %230 = arith.addf %228, %229 : vector<256x32xf32>
    %cst_166 = arith.constant 0.000000e+00 : f32
    %231 = vector.broadcast %cst_166 : f32 to vector<256x32xf32>
    %232 = arith.maximumf %230, %231 : vector<256x32xf32>
    %233 = tpu.concatenate %69, %132, %195, %232 in 1 : vector<256x32xf32>, vector<256x32xf32>, vector<256x32xf32>, vector<256x32xf32> -> vector<256x128xf32>
    %234 = arith.truncf %233 : vector<256x128xf32> to vector<256x128xbf16>
    %c0_167 = arith.constant 0 : index
    %c0_168 = arith.constant 0 : index
    %c0_169 = arith.constant 0 : index
    %c0_170 = arith.constant 0 : index
    %235 = vector.load %arg1[%c0_167, %c0_168, %c0_169, %c0_170] : memref<1x16x16x4xf32, #tpu.memory_space<vmem>>, vector<1x16x16x4xf32>
    %236 = vector.shape_cast %235 : vector<1x16x16x4xf32> to vector<16x16x4xf32>
    %237 = vector.shape_cast %236 : vector<16x16x4xf32> to vector<256x4xf32>
    %cst_171 = arith.constant dense<0.000000e+00> : vector<4xf32>
    %238 = vector.multi_reduction <add>, %237, %cst_171 [0] : vector<256x4xf32> to vector<4xf32>
    %239 = vector.shape_cast %238 : vector<4xf32> to vector<1x4xf32>
    %cst_172 = arith.constant 2.560000e+02 : f32
    %240 = vector.broadcast %cst_172 : f32 to vector<1x4xf32>
    %241 = arith.divf %239, %240 : vector<1x4xf32>
    %c0_173 = arith.constant 0 : index
    %c0_174 = arith.constant 0 : index
    %242 = vector.load %arg5[%c0_173, %c0_174] : memref<4x32xf32, #tpu.memory_space<vmem>>, vector<4x32xf32>
    %cst_175 = arith.constant dense<0.000000e+00> : vector<1x32xf32>
    %243 = tpu.matmul %241, %242, %cst_175 {dimension_numbers = #tpu.dot_dimension_numbers<[1], [0], [0], [1], [0, 0, 1, 1], [], []>} : vector<1x4xf32>, vector<4x32xf32>, vector<1x32xf32> -> vector<1x32xf32>
    %c0_176 = arith.constant 0 : index
    %c0_177 = arith.constant 0 : index
    %244 = vector.load %arg6[%c0_176, %c0_177] : memref<1x32xf32, #tpu.memory_space<vmem>>, vector<1x32xf32>
    %c0_178 = arith.constant 0 : index
    %c0_179 = arith.constant 0 : index
    %245 = vector.load %arg7[%c0_178, %c0_179] : memref<1x32xf32, #tpu.memory_space<vmem>>, vector<1x32xf32>
    %cst_180 = arith.constant dense<0.000000e+00> : vector<32xf32>
    %246 = vector.multi_reduction <add>, %243, %cst_180 [0] : vector<1x32xf32> to vector<32xf32>
    %247 = vector.shape_cast %246 : vector<32xf32> to vector<1x32xf32>
    %cst_181 = arith.constant dense<0.000000e+00> : vector<1x16xf32>
    %248 = tpu.matmul %247, %0, %cst_181 {dimension_numbers = #tpu.dot_dimension_numbers<[1], [0], [0], [1], [0, 0, 1, 1], [], []>} : vector<1x32xf32>, vector<32x16xf32>, vector<1x16xf32> -> vector<1x16xf32>
    %cst_182 = arith.constant 5.000000e-01 : f32
    %249 = vector.broadcast %cst_182 : f32 to vector<1x16xf32>
    %250 = arith.mulf %248, %249 : vector<1x16xf32>
    %cst_183 = arith.constant dense<0.000000e+00> : vector<1x32xf32>
    %251 = tpu.matmul %250, %1, %cst_183 {dimension_numbers = #tpu.dot_dimension_numbers<[1], [0], [0], [1], [0, 0, 1, 1], [], []>} : vector<1x16xf32>, vector<16x32xf32>, vector<1x32xf32> -> vector<1x32xf32>
    %252 = arith.subf %243, %251 : vector<1x32xf32>
    %253 = arith.mulf %252, %252 : vector<1x32xf32>
    %cst_184 = arith.constant dense<0.000000e+00> : vector<32xf32>
    %254 = vector.multi_reduction <add>, %253, %cst_184 [0] : vector<1x32xf32> to vector<32xf32>
    %255 = vector.shape_cast %254 : vector<32xf32> to vector<1x32xf32>
    %cst_185 = arith.constant dense<0.000000e+00> : vector<1x16xf32>
    %256 = tpu.matmul %255, %0, %cst_185 {dimension_numbers = #tpu.dot_dimension_numbers<[1], [0], [0], [1], [0, 0, 1, 1], [], []>} : vector<1x32xf32>, vector<32x16xf32>, vector<1x16xf32> -> vector<1x16xf32>
    %cst_186 = arith.constant 5.000000e-01 : f32
    %257 = vector.broadcast %cst_186 : f32 to vector<1x16xf32>
    %258 = arith.mulf %256, %257 : vector<1x16xf32>
    %cst_187 = arith.constant 9.99999974E-6 : f32
    %259 = vector.broadcast %cst_187 : f32 to vector<1x16xf32>
    %260 = arith.addf %258, %259 : vector<1x16xf32>
    %261 = math.rsqrt %260 : vector<1x16xf32>
    %cst_188 = arith.constant dense<0.000000e+00> : vector<1x32xf32>
    %262 = tpu.matmul %261, %1, %cst_188 {dimension_numbers = #tpu.dot_dimension_numbers<[1], [0], [0], [1], [0, 0, 1, 1], [], []>} : vector<1x16xf32>, vector<16x32xf32>, vector<1x32xf32> -> vector<1x32xf32>
    %263 = arith.mulf %262, %244 : vector<1x32xf32>
    %264 = arith.mulf %252, %263 : vector<1x32xf32>
    %265 = arith.addf %264, %245 : vector<1x32xf32>
    %cst_189 = arith.constant 0.000000e+00 : f32
    %266 = vector.broadcast %cst_189 : f32 to vector<1x32xf32>
    %267 = arith.maximumf %265, %266 : vector<1x32xf32>
    %c0_190 = arith.constant 0 : index
    %c0_191 = arith.constant 0 : index
    %268 = vector.load %arg8[%c0_190, %c0_191] : memref<32x128xbf16, #tpu.memory_space<vmem>>, vector<32x128xbf16>
    %cst_192 = arith.constant dense<0.000000e+00> : vector<32x256xf32>
    %269 = tpu.matmul %268, %234, %cst_192 {dimension_numbers = #tpu.dot_dimension_numbers<[1], [1], [0], [0], [0, 0, 1, 0], [], []>} : vector<32x128xbf16>, vector<256x128xbf16>, vector<32x256xf32> -> vector<32x256xf32>
    %c0_193 = arith.constant 0 : index
    %c0_194 = arith.constant 0 : index
    %270 = vector.load %arg9[%c0_193, %c0_194] : memref<32x32xf32, #tpu.memory_space<vmem>>, vector<32x32xf32>
    %cst_195 = arith.constant dense<0.000000e+00> : vector<32x1xf32>
    %271 = tpu.matmul %270, %267, %cst_195 {dimension_numbers = #tpu.dot_dimension_numbers<[1], [1], [0], [0], [0, 0, 1, 0], [], []>} : vector<32x32xf32>, vector<1x32xf32>, vector<32x1xf32> -> vector<32x1xf32>
    %272 = vector.broadcast %271 : vector<32x1xf32> to vector<32x256xf32>
    %273 = arith.addf %269, %272 : vector<32x256xf32>
    %c0_196 = arith.constant 0 : index
    %c0_197 = arith.constant 0 : index
    %274 = vector.load %arg10[%c0_196, %c0_197] : memref<32x1xf32, #tpu.memory_space<vmem>>, vector<32x1xf32>
    %c0_198 = arith.constant 0 : index
    %c0_199 = arith.constant 0 : index
    %275 = vector.load %arg11[%c0_198, %c0_199] : memref<32x1xf32, #tpu.memory_space<vmem>>, vector<32x1xf32>
    %cst_200 = arith.constant dense<0.000000e+00> : vector<32xf32>
    %276 = vector.multi_reduction <add>, %273, %cst_200 [1] : vector<32x256xf32> to vector<32xf32>
    %277 = vector.shape_cast %276 : vector<32xf32> to vector<32x1xf32>
    %cst_201 = arith.constant dense<0.000000e+00> : vector<16x1xf32>
    %278 = tpu.matmul %1, %277, %cst_201 {dimension_numbers = #tpu.dot_dimension_numbers<[1], [0], [0], [1], [0, 0, 1, 1], [], []>} : vector<16x32xf32>, vector<32x1xf32>, vector<16x1xf32> -> vector<16x1xf32>
    %cst_202 = arith.constant 0.001953125 : f32
    %279 = vector.broadcast %cst_202 : f32 to vector<16x1xf32>
    %280 = arith.mulf %278, %279 : vector<16x1xf32>
    %cst_203 = arith.constant dense<0.000000e+00> : vector<32x1xf32>
    %281 = tpu.matmul %0, %280, %cst_203 {dimension_numbers = #tpu.dot_dimension_numbers<[1], [0], [0], [1], [0, 0, 1, 1], [], []>} : vector<32x16xf32>, vector<16x1xf32>, vector<32x1xf32> -> vector<32x1xf32>
    %282 = vector.broadcast %281 : vector<32x1xf32> to vector<32x256xf32>
    %283 = arith.subf %273, %282 : vector<32x256xf32>
    %284 = arith.mulf %283, %283 : vector<32x256xf32>
    %cst_204 = arith.constant dense<0.000000e+00> : vector<32xf32>
    %285 = vector.multi_reduction <add>, %284, %cst_204 [1] : vector<32x256xf32> to vector<32xf32>
    %286 = vector.shape_cast %285 : vector<32xf32> to vector<32x1xf32>
    %cst_205 = arith.constant dense<0.000000e+00> : vector<16x1xf32>
    %287 = tpu.matmul %1, %286, %cst_205 {dimension_numbers = #tpu.dot_dimension_numbers<[1], [0], [0], [1], [0, 0, 1, 1], [], []>} : vector<16x32xf32>, vector<32x1xf32>, vector<16x1xf32> -> vector<16x1xf32>
    %cst_206 = arith.constant 0.001953125 : f32
    %288 = vector.broadcast %cst_206 : f32 to vector<16x1xf32>
    %289 = arith.mulf %287, %288 : vector<16x1xf32>
    %cst_207 = arith.constant 9.99999974E-6 : f32
    %290 = vector.broadcast %cst_207 : f32 to vector<16x1xf32>
    %291 = arith.addf %289, %290 : vector<16x1xf32>
    %292 = math.rsqrt %291 : vector<16x1xf32>
    %cst_208 = arith.constant dense<0.000000e+00> : vector<32x1xf32>
    %293 = tpu.matmul %0, %292, %cst_208 {dimension_numbers = #tpu.dot_dimension_numbers<[1], [0], [0], [1], [0, 0, 1, 1], [], []>} : vector<32x16xf32>, vector<16x1xf32>, vector<32x1xf32> -> vector<32x1xf32>
    %294 = arith.mulf %293, %274 : vector<32x1xf32>
    %295 = vector.broadcast %294 : vector<32x1xf32> to vector<32x256xf32>
    %296 = arith.mulf %283, %295 : vector<32x256xf32>
    %297 = vector.broadcast %275 : vector<32x1xf32> to vector<32x256xf32>
    %298 = arith.addf %296, %297 : vector<32x256xf32>
    %cst_209 = arith.constant 0.000000e+00 : f32
    %299 = vector.broadcast %cst_209 : f32 to vector<32x256xf32>
    %300 = arith.maximumf %298, %299 : vector<32x256xf32>
    %c0_210 = arith.constant 0 : index
    %c0_211 = arith.constant 0 : index
    %c0_212 = arith.constant 0 : index
    %301 = vector.load %arg14[%c0_210, %c0_211, %c0_212] : memref<1x32x256xf32, #tpu.memory_space<vmem>>, vector<1x32x256xf32>
    %302 = vector.shape_cast %301 : vector<1x32x256xf32> to vector<32x256xf32>
    %303 = vector.shape_cast %300 : vector<32x256xf32> to vector<1x32x256xf32>
    tpu.vector_store %arg14[%c0_210, %c0_211, %c0_212], %303 {strides = array<i32>} : memref<1x32x256xf32, #tpu.memory_space<vmem>>, vector<1x32x256xf32>,
    return
  }
  func.func @transform_0(%arg0: i32) -> (i32, i32, i32, i32) {
    %c0_i32 = arith.constant 0 : i32
    %c0_i32_0 = arith.constant 0 : i32
    %c0_i32_1 = arith.constant 0 : i32
    %c0_i32_2 = arith.constant 0 : i32
    return %arg0, %c0_i32, %c0_i32_0, %c0_i32_1 : i32, i32, i32, i32
  }
  func.func @transform_1(%arg0: i32) -> (i32, i32, i32) {
    %c0_i32 = arith.constant 0 : i32
    %c0_i32_0 = arith.constant 0 : i32
    %c0_i32_1 = arith.constant 0 : i32
    %c0_i32_2 = arith.constant 0 : i32
    return %c0_i32, %c0_i32_0, %c0_i32_1 : i32, i32, i32
  }
  func.func @transform_2(%arg0: i32) -> (i32, i32, i32) {
    %c0_i32 = arith.constant 0 : i32
    %c0_i32_0 = arith.constant 0 : i32
    %c0_i32_1 = arith.constant 0 : i32
    %c0_i32_2 = arith.constant 0 : i32
    return %c0_i32, %c0_i32_0, %c0_i32_1 : i32, i32, i32
  }
  func.func @transform_3(%arg0: i32) -> (i32, i32, i32) {
    %c0_i32 = arith.constant 0 : i32
    %c0_i32_0 = arith.constant 0 : i32
    %c0_i32_1 = arith.constant 0 : i32
    %c0_i32_2 = arith.constant 0 : i32
    return %c0_i32, %c0_i32_0, %c0_i32_1 : i32, i32, i32
  }
  func.func @transform_4(%arg0: i32) -> (i32, i32) {
    %c0_i32 = arith.constant 0 : i32
    %c0_i32_0 = arith.constant 0 : i32
    %c0_i32_1 = arith.constant 0 : i32
    return %c0_i32, %c0_i32_0 : i32, i32
  }
  func.func @transform_5(%arg0: i32) -> (i32, i32) {
    %c0_i32 = arith.constant 0 : i32
    %c0_i32_0 = arith.constant 0 : i32
    %c0_i32_1 = arith.constant 0 : i32
    return %c0_i32, %c0_i32_0 : i32, i32
  }
  func.func @transform_6(%arg0: i32) -> (i32, i32) {
    %c0_i32 = arith.constant 0 : i32
    %c0_i32_0 = arith.constant 0 : i32
    %c0_i32_1 = arith.constant 0 : i32
    return %c0_i32, %c0_i32_0 : i32, i32
  }
  func.func @transform_7(%arg0: i32) -> (i32, i32) {
    %c0_i32 = arith.constant 0 : i32
    %c0_i32_0 = arith.constant 0 : i32
    %c0_i32_1 = arith.constant 0 : i32
    return %c0_i32, %c0_i32_0 : i32, i32
  }
  func.func @transform_8(%arg0: i32) -> (i32, i32) {
    %c0_i32 = arith.constant 0 : i32
    %c0_i32_0 = arith.constant 0 : i32
    %c0_i32_1 = arith.constant 0 : i32
    return %c0_i32, %c0_i32_0 : i32, i32
  }
  func.func @transform_9(%arg0: i32) -> (i32, i32) {
    %c0_i32 = arith.constant 0 : i32
    %c0_i32_0 = arith.constant 0 : i32
    %c0_i32_1 = arith.constant 0 : i32
    return %c0_i32, %c0_i32_0 : i32, i32
  }
  func.func @transform_10(%arg0: i32) -> (i32, i32) {
    %c0_i32 = arith.constant 0 : i32
    %c0_i32_0 = arith.constant 0 : i32
    %c0_i32_1 = arith.constant 0 : i32
    return %c0_i32, %c0_i32_0 : i32, i32
  }
  func.func @transform_11(%arg0: i32) -> (i32, i32) {
    %c0_i32 = arith.constant 0 : i32
    %c0_i32_0 = arith.constant 0 : i32
    %c0_i32_1 = arith.constant 0 : i32
    return %c0_i32, %c0_i32_0 : i32, i32
  }
  func.func @transform_12(%arg0: i32) -> (i32, i32) {
    %c0_i32 = arith.constant 0 : i32
    %c0_i32_0 = arith.constant 0 : i32
    %c0_i32_1 = arith.constant 0 : i32
    return %c0_i32, %c0_i32_0 : i32, i32
  }
  func.func @transform_13(%arg0: i32) -> (i32, i32, i32) {
    %c0_i32 = arith.constant 0 : i32
    %c0_i32_0 = arith.constant 0 : i32
    %c0_i32_1 = arith.constant 0 : i32
    return %arg0, %c0_i32, %c0_i32_0 : i32, i32, i32
  }
}

</mosaic_0001>

<bundles_post_ra>
// kernel: tpu_custom_call.1
= control target key start
LH: loop header
LB: loop body
LE: loop exit
PB: predicated region body
PF: predicated region fallthrough
CT: control target
= control target key end

     0   :  { %s19769_s0 = inlined_call_operand.vmem [shape: f32[2,16,16,4], index: 0, kind: input, shape index: {}]   ;;  %s19770_s1 = inlined_call_operand.vmem [shape: f32[4,36,32], index: 1, kind: input, shape index: {}]   ;;  %s19771_s2 = inlined_call_operand.vmem [shape: f32[4,1,32], index: 2, kind: input, shape index: {}]   ;;  %s19772_s3 = inlined_call_operand.vmem [shape: f32[4,1,32], index: 3, kind: input, shape index: {}]   ;;  %s19773_s4 = inlined_call_operand.vmem [shape: f32[4,32], index: 4, kind: input, shape index: {}]   ;;  %s19774_s5 = inlined_call_operand.vmem [shape: f32[1,32], index: 5, kind: input, shape index: {}]   ;;  %s19775_s6 = inlined_call_operand.vmem [shape: f32[1,32], index: 6, kind: input, shape index: {}]   ;;  %s19776_s7 = inlined_call_operand.vmem [shape: bf16[32,128], index: 7, kind: input, shape index: {}]   ;;  %s19777_s8 = inlined_call_operand.vmem [shape: f32[32,32], index: 8, kind: input, shape index: {}]   ;;  %s19778_s9 = inlined_call_operand.vmem [shape: f32[32,1], index: 9, kind: input, shape index: {}]   ;;  %s19779_s10 = inlined_call_operand.vmem [shape: f32[32,1], index: 10, kind: input, shape index: {}]   ;;  %s19780_s11 = inlined_call_operand.vmem [shape: f32[32,16], index: 11, kind: input, shape index: {}]   ;;  %s19781_s12 = inlined_call_operand.vmem [shape: f32[16,32], index: 12, kind: input, shape index: {}]   ;;  %s19782_s13 = inlined_call_operand.hbm [shape: f32[2,32,256], index: 13, kind: output, shape index: {}]  }
   0x1   :  { %20123 = sst [smem:[#allocation213_spill]] %s19769_s0 }
   0x2   :  { %18 = vsyncpa [#allocation4], 0 }
   0x3   :  { %20 = vsyncpa [#allocation4 + $0x1], 0  ;;  %s13383_s25 = smov 0   ;;  %s13385_s26 = smov 0  }
   0x4   :  { %s13387_s27 = smov 0   ;;  %s13389_s28 = smov 0  }
   0x5 LB: > { %20124 = sst [smem:[#allocation6_spill]] %s13291_s27  ;;  %s13404_s29 = sadd.s32 4294967295, %s13295_s28   ;;  %s13295_s28 = sphi %s13389_s28, %s20843_s28   ;;  %s13291_s27 = sphi %s13387_s27, %s20848_s27   ;;  %s13287_s26 = sphi %s13385_s26, %s20847_s26   ;;  %s13283_s25 = sphi %s13383_s25, %s20846_s25  }
   0x6   : > { %s10311_s30 = sadd.s32 4294967294, %s13295_s28   ;;  %s13408_s14 = sadd.s32 1, %s13295_s28  }
   0x7   : > { %20125 = sst [smem:[#allocation7_spill]] %s13408_s14  ;;  %s311_s15 = sadd.s32 1, %s13291_s27 }
   0x8   : > { %s308_s16 = ssub.s32 %s13295_s28, %s13408_s14  ;;  %p321_p0 = scmp.ne.s32.totalorder %s13291_s27, %s13287_s26 }
   0x9   : > { %p309_p1 = scmp.eq.s32.totalorder %s308_s16, 0  ;;  %p322_p2 = scmp.eq.s32.totalorder %s13404_s29, 1 }
   0xa   : > { %p327_p3 = scmp.ne.s32.totalorder %s13287_s26, %s13283_s25  ;;  %p328_p4 = scmp.eq.s32.totalorder %s10311_s30, 1 }
   0xb   : > { %s13419_s17 = scalar_select %p309_p1, %s13291_s27, %s311_s15  }
   0xc   : > { %p13421_p5 = por %p322_p2, %p321_p0  ;;  %p13425_p6 = por %p328_p4, %p327_p3 }
   0xd   : > { %20126 = sst [smem:[#allocation8_spill]] %s13419_s17  ;;  %p10314_p7 = scmp.ge.s32.totalorder %s13295_s28, 1 }
   0xe   : > { %s20128_s19 = scalar_select %p13425_p6, 1, 0 }
   0xf   : > { %p390_p8 = scmp.lt.s32.totalorder %s13295_s28, 3 }
  0x10   : > { %20129 = sst [smem:[#allocation9_spill]] %s20128_s19 }
  0x11   : > { %p391_p9 = pnand %p10314_p7, %p390_p8 }
  0x13   : > { %394 = sbr.rel (%p391_p9) target bundleno = 6876 (0x1adc), region = 72 }
  0x1a   : > { %vm446_vm0 = vcmask 31744   ;;  %v19793_v0 = vmov 0.0   ;;  %p434_p10 = scmp.lt.s32.totalorder %s13404_s29, 1  ;;  %s20130_s0 = sld [smem:[#allocation213_spill]]  ;;  %vm2527_vm1 = vcmask 1041408   ;;  %vm2228_vm2 = vcmask 64512  }
  0x1b   : > { %569 = vst.msk [vmem:[#allocation2 + $0x3c8] sm:$0xff] %vm446_vm0, %v19793_v0  ;;  %570 = vst.msk [vmem:[#allocation2 + $0x3d0] sm:$0xff] %vm446_vm0, %v19793_v0  ;;  %s19789_s30 = smov 8   ;;  %s19791_s15 = smov 4   ;;  %vm2261_vm3 = vcmask 97280   ;;  %vm2294_vm4 = vcmask 130048  }
  0x1c   : > { %571 = vst.msk [vmem:[#allocation2 + $0x3d8] sm:$0xff] %vm446_vm0, %v19793_v0  ;;  %490 = vst.msk [vmem:[#allocation2 + $0x150] sm:$0xff] %vm446_vm0, %v19793_v0  ;;  %s435_s20 = scalar_select %p434_p10, %s13404_s29, 1  ;;  %vm2327_vm5 = vcmask 162816   ;;  %vm2360_vm6 = vcmask 195584   ;;  %vm2393_vm7 = vcmask 228352  }
  0x1d   : > { %491 = vst.msk [vmem:[#allocation2 + $0x158] sm:$0xff] %vm446_vm0, %v19793_v0  ;;  %492 = vst.msk [vmem:[#allocation2 + $0x160] sm:$0xff] %vm446_vm0, %v19793_v0  ;;  %s19787_s16 = smov 12   ;;  %s19808_s17 = smov 32   ;;  %vm2426_vm8 = vcmask 261120   ;;  %vm2478_vm9 = vcmask 293888  }
  0x1e   : > { %493 = vst.msk [vmem:[#allocation2 + $0x168] sm:$0xff] %vm446_vm0, %v19793_v0  ;;  %494 = vst.msk [vmem:[#allocation2 + $0x170] sm:$0xff] %vm446_vm0, %v19793_v0  ;;  %s10444_s21 = sshll.u32 %s435_s20, 8  ;;  %s19783_s20 = smov 16   ;;  %vm13307_vm10 = vmmov 0   ;;  %vm9083_vm11 = vcmask 523264  }
  0x1f   : > { %495 = vst.msk [vmem:[#allocation2 + $0x178] sm:$0xff] %vm446_vm0, %v19793_v0  ;;  %497 = vst.msk [vmem:[#allocation2 + $0x188] sm:$0xff] %vm446_vm0, %v19793_v0  ;;  %s20159_s22 = smov 20   ;;  %s20184_s23 = smov 28   ;;  %vm9272_vm12 = vcmask 1043456   ;;  %vm9116_vm13 = vcmask 785408  }
  0x20   : > { %498 = vst.msk [vmem:[#allocation2 + $0x190] sm:$0xff] %vm446_vm0, %v19793_v0  ;;  %499 = vst.msk [vmem:[#allocation2 + $0x198] sm:$0xff] %vm446_vm0, %v19793_v0  ;;  %s13916_s24 = scalar_lea.vmem %s20130_s0, %s10444_s21  ;;  %s19785_s21 = smov 20  }
  0x21   : > { %500 = vst.msk [vmem:[#allocation2 + $0x1a0] sm:$0xff] %vm446_vm0, %v19793_v0  ;;  %501 = vst.msk [vmem:[#allocation2 + $0x1a8] sm:$0xff] %vm446_vm0, %v19793_v0  ;;  %v812_v1 = vld [vmem:[%s13916_s24] sm:$0xff]  ;;  %v813_v2 = vld [vmem:[%s13916_s24 + $0x8] sm:$0xff]  ;;  %s20149_s0 = smov 4   ;;  %s13308_s14 = smov 64  }
  0x22   : > { %502 = vst.msk [vmem:[#allocation2 + $0x1b0] sm:$0xff] %vm446_vm0, %v19793_v0  ;;  %504 = vst.msk [vmem:[#allocation2 + $0x1c0] sm:$0xff] %vm446_vm0, %v19793_v0  ;;  %v814_v3 = vld [vmem:[%s13916_s24 + $0x10] sm:$0xff]  ;;  %v815_v9 = vld [vmem:[%s13916_s24 + $0x18] sm:$0xff]  ;;  %s431_s27 = sand.u32 1, %s13287_s26  }
  0x23   : > { %505 = vst.msk [vmem:[#allocation2 + $0x1c8] sm:$0xff] %vm446_vm0, %v19793_v0  ;;  %506 = vst.msk [vmem:[#allocation2 + $0x1d0] sm:$0xff] %vm446_vm0, %v19793_v0  ;;  %v947_v4 = vld [vmem:[#allocation2 + $0x3cb] sm:$0xff]  ;;  %v948_v5 = vld [vmem:[#allocation2 + $0x3d3] sm:$0xff] }
  0x24   : > { %507 = vst.msk [vmem:[#allocation2 + $0x1d8] sm:$0xff] %vm446_vm0, %v19793_v0  ;;  %508 = vst.msk [vmem:[#allocation2 + $0x1e0] sm:$0xff] %vm446_vm0, %v19793_v0  ;;  %v915_v6 = vld [vmem:[#allocation2 + $0x3ca] sm:$0xff]  ;;  %v11205_v7 = vpack.i.bf16 %v948_v5, %v947_v4  ;;  %v916_v8 = vld [vmem:[#allocation2 + $0x3d2] sm:$0xff] }
  0x25   : > { %509 = vst.msk [vmem:[#allocation2 + $0x1e8] sm:$0xff] %vm446_vm0, %v19793_v0  ;;  %511 = vst.msk [vmem:[#allocation2 + $0x1f8] sm:$0xff] %vm446_vm0, %v19793_v0  ;;  %v816_v10 = vld [vmem:[%s13916_s24 + $0x20] sm:$0xff]  ;;  %v11200_v11 = vpack.i.bf16 %v916_v8, %v915_v6  ;;  %v817_v12 = vld [vmem:[%s13916_s24 + $0x28] sm:$0xff] }
  0x26   : > { %512 = vst.msk [vmem:[#allocation2 + $0x200] sm:$0xff] %vm446_vm0, %v19793_v0  ;;  %513 = vst.msk [vmem:[#allocation2 + $0x208] sm:$0xff] %vm446_vm0, %v19793_v0  ;;  %v818_v13 = vld [vmem:[%s13916_s24 + $0x30] sm:$0xff]  ;;  %v819_v14 = vld [vmem:[%s13916_s24 + $0x38] sm:$0xff]  ;;  %11206 = vrot.lane.b32.xlu1 %v11205_v7, %s19789_s30 }
  0x27   : > { %514 = vst.msk [vmem:[#allocation2 + $0x210] sm:$0xff] %vm446_vm0, %v19793_v0  ;;  %515 = vst.msk [vmem:[#allocation2 + $0x218] sm:$0xff] %vm446_vm0, %v19793_v0  ;;  %v820_v15 = vld [vmem:[%s13916_s24 + $0x40] sm:$0xff]  ;;  %v821_v16 = vld [vmem:[%s13916_s24 + $0x48] sm:$0xff]  ;;  %11201 = vrot.lane.b32.xlu0 %v11200_v11, %s19791_s15 }
  0x28   : > { %516 = vst.msk [vmem:[#allocation2 + $0x220] sm:$0xff] %vm446_vm0, %v19793_v0  ;;  %518 = vst.msk [vmem:[#allocation2 + $0x230] sm:$0xff] %vm446_vm0, %v19793_v0  ;;  %v822_v17 = vld [vmem:[%s13916_s24 + $0x50] sm:$0xff]  ;;  %v823_v18 = vld [vmem:[%s13916_s24 + $0x58] sm:$0xff] }
  0x29   : > { %519 = vst.msk [vmem:[#allocation2 + $0x238] sm:$0xff] %vm446_vm0, %v19793_v0  ;;  %520 = vst.msk [vmem:[#allocation2 + $0x240] sm:$0xff] %vm446_vm0, %v19793_v0  ;;  %v824_v19 = vld [vmem:[%s13916_s24 + $0x60] sm:$0xff]  ;;  %v825_v20 = vld [vmem:[%s13916_s24 + $0x68] sm:$0xff] }
  0x2a   : > { %521 = vst.msk [vmem:[#allocation2 + $0x248] sm:$0xff] %vm446_vm0, %v19793_v0  ;;  %522 = vst.msk [vmem:[#allocation2 + $0x250] sm:$0xff] %vm446_vm0, %v19793_v0  ;;  %v826_v21 = vld [vmem:[%s13916_s24 + $0x70] sm:$0xff]  ;;  %v827_v22 = vld [vmem:[%s13916_s24 + $0x78] sm:$0xff] }
  0x2b   : > { %523 = vst.msk [vmem:[#allocation2 + $0x258] sm:$0xff] %vm446_vm0, %v19793_v0  ;;  %525 = vst.msk [vmem:[#allocation2 + $0x268] sm:$0xff] %vm446_vm0, %v19793_v0  ;;  %v828_v23 = vld [vmem:[%s13916_s24 + $0x80] sm:$0xff]  ;;  %v829_v24 = vld [vmem:[%s13916_s24 + $0x88] sm:$0xff] }
  0x2c   : > { %526 = vst.msk [vmem:[#allocation2 + $0x270] sm:$0xff] %vm446_vm0, %v19793_v0  ;;  %527 = vst.msk [vmem:[#allocation2 + $0x278] sm:$0xff] %vm446_vm0, %v19793_v0  ;;  %v830_v5 = vld [vmem:[%s13916_s24 + $0x90] sm:$0xff]  ;;  %v831_v6 = vld [vmem:[%s13916_s24 + $0x98] sm:$0xff] }
  0x2d   : > { %528 = vst.msk [vmem:[#allocation2 + $0x280] sm:$0xff] %vm446_vm0, %v19793_v0  ;;  %529 = vst.msk [vmem:[#allocation2 + $0x288] sm:$0xff] %vm446_vm0, %v19793_v0  ;;  %v877_v7 = vld [vmem:[%s19770_s1] sm:$0xff]  ;;  %v879_v11 = vld [vmem:[%s19770_s1 + $0x10] sm:$0xff] }
  0x2e   : > { %530 = vst.msk [vmem:[#allocation2 + $0x290] sm:$0xff] %vm446_vm0, %v19793_v0  ;;  %532 = vst.msk [vmem:[#allocation2 + $0x2a0] sm:$0xff] %vm446_vm0, %v19793_v0 }
  0x2f   : > { %533 = vst.msk [vmem:[#allocation2 + $0x2a8] sm:$0xff] %vm446_vm0, %v19793_v0  ;;  %534 = vst.msk [vmem:[#allocation2 + $0x2b0] sm:$0xff] %vm446_vm0, %v19793_v0 }
  0x30   : > { %535 = vst.msk [vmem:[#allocation2 + $0x2b8] sm:$0xff] %vm446_vm0, %v19793_v0  ;;  %536 = vst.msk [vmem:[#allocation2 + $0x2c0] sm:$0xff] %vm446_vm0, %v19793_v0 }
  0x31   : > { %537 = vst.msk [vmem:[#allocation2 + $0x2c8] sm:$0xff] %vm446_vm0, %v19793_v0  ;;  %539 = vst.msk [vmem:[#allocation2 + $0x2d8] sm:$0xff] %vm446_vm0, %v19793_v0 }
  0x32   : > { %540 = vst.msk [vmem:[#allocation2 + $0x2e0] sm:$0xff] %vm446_vm0, %v19793_v0  ;;  %541 = vst.msk [vmem:[#allocation2 + $0x2e8] sm:$0xff] %vm446_vm0, %v19793_v0 }
  0x33   : > { %542 = vst.msk [vmem:[#allocation2 + $0x2f0] sm:$0xff] %vm446_vm0, %v19793_v0  ;;  %543 = vst.msk [vmem:[#allocation2 + $0x2f8] sm:$0xff] %vm446_vm0, %v19793_v0 }
  0x34   : > { %544 = vst.msk [vmem:[#allocation2 + $0x300] sm:$0xff] %vm446_vm0, %v19793_v0  ;;  %546 = vst.msk [vmem:[#allocation2 + $0x310] sm:$0xff] %vm446_vm0, %v19793_v0 }
  0x35   : > { %547 = vst.msk [vmem:[#allocation2 + $0x318] sm:$0xff] %vm446_vm0, %v19793_v0  ;;  %548 = vst.msk [vmem:[#allocation2 + $0x320] sm:$0xff] %vm446_vm0, %v19793_v0 }
  0x36   : > { %549 = vst.msk [vmem:[#allocation2 + $0x328] sm:$0xff] %vm446_vm0, %v19793_v0  ;;  %550 = vst.msk [vmem:[#allocation2 + $0x330] sm:$0xff] %vm446_vm0, %v19793_v0 }
  0x37   : > { %551 = vst.msk [vmem:[#allocation2 + $0x338] sm:$0xff] %vm446_vm0, %v19793_v0  ;;  %553 = vst.msk [vmem:[#allocation2 + $0x348] sm:$0xff] %vm446_vm0, %v19793_v0 }
  0x38   : > { %554 = vst.msk [vmem:[#allocation2 + $0x350] sm:$0xff] %vm446_vm0, %v19793_v0  ;;  %555 = vst.msk [vmem:[#allocation2 + $0x358] sm:$0xff] %vm446_vm0, %v19793_v0 }
  0x39   : > { %556 = vst.msk [vmem:[#allocation2 + $0x360] sm:$0xff] %vm446_vm0, %v19793_v0  ;;  %557 = vst.msk [vmem:[#allocation2 + $0x368] sm:$0xff] %vm446_vm0, %v19793_v0 }
  0x3a   : > { %558 = vst.msk [vmem:[#allocation2 + $0x370] sm:$0xff] %vm446_vm0, %v19793_v0  ;;  %560 = vst.msk [vmem:[#allocation2 + $0x380] sm:$0xff] %vm446_vm0, %v19793_v0 }
  0x3b   : > { %561 = vst.msk [vmem:[#allocation2 + $0x388] sm:$0xff] %vm446_vm0, %v19793_v0  ;;  %562 = vst.msk [vmem:[#allocation2 + $0x390] sm:$0xff] %vm446_vm0, %v19793_v0 }
  0x3c   : > { %563 = vst.msk [vmem:[#allocation2 + $0x398] sm:$0xff] %vm446_vm0, %v19793_v0  ;;  %564 = vst.msk [vmem:[#allocation2 + $0x3a0] sm:$0xff] %vm446_vm0, %v19793_v0 }
  0x3d   : > { %565 = vst.msk [vmem:[#allocation2 + $0x3a8] sm:$0xff] %vm446_vm0, %v19793_v0  ;;  %567 = vst.msk [vmem:[#allocation2 + $0x3b8] sm:$0xff] %vm446_vm0, %v19793_v0 }
  0x3e   : > { %568 = vst.msk [vmem:[#allocation2 + $0x3c0] sm:$0xff] %vm446_vm0, %v19793_v0  ;;  %572 = vst.msk [vmem:[#allocation2 + $0x3e0] sm:$0xff] %vm446_vm0, %v19793_v0 }
  0x3f   : > { %574 = vst.msk [vmem:[#allocation2 + $0x3f0] sm:$0xff] %vm446_vm0, %v19793_v0  ;;  %575 = vst.msk [vmem:[#allocation2 + $0x3f8] sm:$0xff] %vm446_vm0, %v19793_v0 }
  0x40   : > { %576 = vst.msk [vmem:[#allocation2 + $0x400] sm:$0xff] %vm446_vm0, %v19793_v0  ;;  %577 = vst.msk [vmem:[#allocation2 + $0x408] sm:$0xff] %vm446_vm0, %v19793_v0 }
  0x41   : > { %578 = vst.msk [vmem:[#allocation2 + $0x410] sm:$0xff] %vm446_vm0, %v19793_v0  ;;  %579 = vst.msk [vmem:[#allocation2 + $0x418] sm:$0xff] %vm446_vm0, %v19793_v0 }
  0x42   : > { %581 = vst.msk [vmem:[#allocation2 + $0x428] sm:$0xff] %vm446_vm0, %v19793_v0  ;;  %582 = vst.msk [vmem:[#allocation2 + $0x430] sm:$0xff] %vm446_vm0, %v19793_v0 }
  0x43   : > { %583 = vst.msk [vmem:[#allocation2 + $0x438] sm:$0xff] %vm446_vm0, %v19793_v0  ;;  %584 = vst.msk [vmem:[#allocation2 + $0x440] sm:$0xff] %vm446_vm0, %v19793_v0 }
  0x44   : > { %585 = vst.msk [vmem:[#allocation2 + $0x448] sm:$0xff] %vm446_vm0, %v19793_v0  ;;  %586 = vst.msk [vmem:[#allocation2 + $0x450] sm:$0xff] %vm446_vm0, %v19793_v0 }
  0x45   : > { %588 = vst.msk [vmem:[#allocation2 + $0x460] sm:$0xff] %vm446_vm0, %v19793_v0  ;;  %589 = vst.msk [vmem:[#allocation2 + $0x468] sm:$0xff] %vm446_vm0, %v19793_v0 }
  0x46   : > { %590 = vst.msk [vmem:[#allocation2 + $0x470] sm:$0xff] %vm446_vm0, %v19793_v0  ;;  %591 = vst.msk [vmem:[#allocation2 + $0x478] sm:$0xff] %vm446_vm0, %v19793_v0 }
  0x47   : > { %592 = vst.msk [vmem:[#allocation2 + $0x480] sm:$0xff] %vm446_vm0, %v19793_v0  ;;  %593 = vst.msk [vmem:[#allocation2 + $0x488] sm:$0xff] %vm446_vm0, %v19793_v0 }
  0x48   : > { %595 = vst.msk [vmem:[#allocation2 + $0x498] sm:$0xff] %vm446_vm0, %v19793_v0  ;;  %596 = vst.msk [vmem:[#allocation2 + $0x4a0] sm:$0xff] %vm446_vm0, %v19793_v0 }
  0x49   : > { %597 = vst.msk [vmem:[#allocation2 + $0x4a8] sm:$0xff] %vm446_vm0, %v19793_v0  ;;  %598 = vst.msk [vmem:[#allocation2 + $0x4b0] sm:$0xff] %vm446_vm0, %v19793_v0 }
  0x4a   : > { %599 = vst.msk [vmem:[#allocation2 + $0x4b8] sm:$0xff] %vm446_vm0, %v19793_v0  ;;  %600 = vst.msk [vmem:[#allocation2 + $0x4c0] sm:$0xff] %vm446_vm0, %v19793_v0 }
  0x4b   : > { %602 = vst.msk [vmem:[#allocation2 + $0x4d0] sm:$0xff] %vm446_vm0, %v19793_v0  ;;  %603 = vst.msk [vmem:[#allocation2 + $0x4d8] sm:$0xff] %vm446_vm0, %v19793_v0 }
  0x4c   : > { %604 = vst.msk [vmem:[#allocation2 + $0x4e0] sm:$0xff] %vm446_vm0, %v19793_v0  ;;  %605 = vst.msk [vmem:[#allocation2 + $0x4e8] sm:$0xff] %vm446_vm0, %v19793_v0 }
  0x4d   : > { %606 = vst.msk [vmem:[#allocation2 + $0x4f0] sm:$0xff] %vm446_vm0, %v19793_v0  ;;  %607 = vst.msk [vmem:[#allocation2 + $0x4f8] sm:$0xff] %vm446_vm0, %v19793_v0 }
  0x4e   : > { %609 = vst.msk [vmem:[#allocation2 + $0x508] sm:$0xff] %vm446_vm0, %v19793_v0  ;;  %610 = vst.msk [vmem:[#allocation2 + $0x510] sm:$0xff] %vm446_vm0, %v19793_v0 }
  0x4f   : > { %611 = vst.msk [vmem:[#allocation2 + $0x518] sm:$0xff] %vm446_vm0, %v19793_v0  ;;  %612 = vst.msk [vmem:[#allocation2 + $0x520] sm:$0xff] %vm446_vm0, %v19793_v0 }
  0x50   : > { %613 = vst.msk [vmem:[#allocation2 + $0x528] sm:$0xff] %vm446_vm0, %v19793_v0  ;;  %614 = vst.msk [vmem:[#allocation2 + $0x530] sm:$0xff] %vm446_vm0, %v19793_v0 }
  0x51   : > { %616 = vst.msk [vmem:[#allocation2 + $0x540] sm:$0xff] %vm446_vm0, %v19793_v0  ;;  %617 = vst.msk [vmem:[#allocation2 + $0x548] sm:$0xff] %vm446_vm0, %v19793_v0 }
  0x52   : > { %618 = vst.msk [vmem:[#allocation2 + $0x550] sm:$0xff] %vm446_vm0, %v19793_v0  ;;  %619 = vst.msk [vmem:[#allocation2 + $0x558] sm:$0xff] %vm446_vm0, %v19793_v0 }
  0x53   : > { %620 = vst.msk [vmem:[#allocation2 + $0x560] sm:$0xff] %vm446_vm0, %v19793_v0  ;;  %621 = vst.msk [vmem:[#allocation2 + $0x568] sm:$0xff] %vm446_vm0, %v19793_v0 }
  0x54   : > { %623 = vst.msk [vmem:[#allocation2 + $0x578] sm:$0xff] %vm446_vm0, %v19793_v0  ;;  %624 = vst.msk [vmem:[#allocation2 + $0x580] sm:$0xff] %vm446_vm0, %v19793_v0 }
  0x55   : > { %625 = vst.msk [vmem:[#allocation2 + $0x588] sm:$0xff] %vm446_vm0, %v19793_v0  ;;  %626 = vst.msk [vmem:[#allocation2 + $0x590] sm:$0xff] %vm446_vm0, %v19793_v0 }
  0x56   : > { %627 = vst.msk [vmem:[#allocation2 + $0x598] sm:$0xff] %vm446_vm0, %v19793_v0  ;;  %628 = vst.msk [vmem:[#allocation2 + $0x5a0] sm:$0xff] %vm446_vm0, %v19793_v0 }
  0x57   : > { %630 = vst.msk [vmem:[#allocation2 + $0x5b0] sm:$0xff] %vm446_vm0, %v19793_v0  ;;  %631 = vst.msk [vmem:[#allocation2 + $0x5b8] sm:$0xff] %vm446_vm0, %v19793_v0 }
  0x58   : > { %632 = vst.msk [vmem:[#allocation2 + $0x5c0] sm:$0xff] %vm446_vm0, %v19793_v0  ;;  %633 = vst.msk [vmem:[#allocation2 + $0x5c8] sm:$0xff] %vm446_vm0, %v19793_v0 }
  0x59   : > { %634 = vst.msk [vmem:[#allocation2 + $0x5d0] sm:$0xff] %vm446_vm0, %v19793_v0  ;;  %635 = vst.msk [vmem:[#allocation2 + $0x5d8] sm:$0xff] %vm446_vm0, %v19793_v0 }
  0x5a   : > { %637 = vst.msk [vmem:[#allocation2 + $0x5e8] sm:$0xff] %vm446_vm0, %v19793_v0  ;;  %638 = vst.msk [vmem:[#allocation2 + $0x5f0] sm:$0xff] %vm446_vm0, %v19793_v0 }
  0x5b   : > { %639 = vst.msk [vmem:[#allocation2 + $0x5f8] sm:$0xff] %vm446_vm0, %v19793_v0  ;;  %640 = vst.msk [vmem:[#allocation2 + $0x600] sm:$0xff] %vm446_vm0, %v19793_v0 }
  0x5c   : > { %641 = vst.msk [vmem:[#allocation2 + $0x608] sm:$0xff] %vm446_vm0, %v19793_v0  ;;  %642 = vst.msk [vmem:[#allocation2 + $0x610] sm:$0xff] %vm446_vm0, %v19793_v0 }
  0x5d   : > { %644 = vst.msk [vmem:[#allocation2 + $0x620] sm:$0xff] %vm446_vm0, %v19793_v0  ;;  %645 = vst.msk [vmem:[#allocation2 + $0x628] sm:$0xff] %vm446_vm0, %v19793_v0 }
  0x5e   : > { %646 = vst.msk [vmem:[#allocation2 + $0x630] sm:$0xff] %vm446_vm0, %v19793_v0  ;;  %647 = vst.msk [vmem:[#allocation2 + $0x638] sm:$0xff] %vm446_vm0, %v19793_v0 }
  0x5f   : > { %648 = vst.msk [vmem:[#allocation2 + $0x640] sm:$0xff] %vm446_vm0, %v19793_v0  ;;  %649 = vst.msk [vmem:[#allocation2 + $0x648] sm:$0xff] %vm446_vm0, %v19793_v0 }
  0x60   : > { %651 = vst.msk [vmem:[#allocation2 + $0x658] sm:$0xff] %vm446_vm0, %v19793_v0  ;;  %652 = vst.msk [vmem:[#allocation2 + $0x660] sm:$0xff] %vm446_vm0, %v19793_v0 }
  0x61   : > { %653 = vst.msk [vmem:[#allocation2 + $0x668] sm:$0xff] %vm446_vm0, %v19793_v0  ;;  %654 = vst.msk [vmem:[#allocation2 + $0x670] sm:$0xff] %vm446_vm0, %v19793_v0 }
  0x62   : > { %655 = vst.msk [vmem:[#allocation2 + $0x678] sm:$0xff] %vm446_vm0, %v19793_v0  ;;  %656 = vst.msk [vmem:[#allocation2 + $0x680] sm:$0xff] %vm446_vm0, %v19793_v0 }
  0x63   : > { %658 = vst.msk [vmem:[#allocation2 + $0x690] sm:$0xff] %vm446_vm0, %v19793_v0  ;;  %659 = vst.msk [vmem:[#allocation2 + $0x698] sm:$0xff] %vm446_vm0, %v19793_v0 }
  0x64   : > { %660 = vst.msk [vmem:[#allocation2 + $0x6a0] sm:$0xff] %vm446_vm0, %v19793_v0  ;;  %661 = vst.msk [vmem:[#allocation2 + $0x6a8] sm:$0xff] %vm446_vm0, %v19793_v0 }
  0x65   : > { %662 = vst.msk [vmem:[#allocation2 + $0x6b0] sm:$0xff] %vm446_vm0, %v19793_v0  ;;  %663 = vst.msk [vmem:[#allocation2 + $0x6b8] sm:$0xff] %vm446_vm0, %v19793_v0 }
  0x66   : > { %665 = vst.msk [vmem:[#allocation2 + $0x6c8] sm:$0xff] %vm446_vm0, %v19793_v0  ;;  %666 = vst.msk [vmem:[#allocation2 + $0x6d0] sm:$0xff] %vm446_vm0, %v19793_v0 }
  0x67   : > { %667 = vst.msk [vmem:[#allocation2 + $0x6d8] sm:$0xff] %vm446_vm0, %v19793_v0  ;;  %668 = vst.msk [vmem:[#allocation2 + $0x6e0] sm:$0xff] %vm446_vm0, %v19793_v0 }
  0x68   : > { %669 = vst.msk [vmem:[#allocation2 + $0x6e8] sm:$0xff] %vm446_vm0, %v19793_v0  ;;  %670 = vst.msk [vmem:[#allocation2 + $0x6f0] sm:$0xff] %vm446_vm0, %v19793_v0 }
  0x69   : > { %672 = vst.msk [vmem:[#allocation2 + $0x700] sm:$0xff] %vm446_vm0, %v19793_v0  ;;  %673 = vst.msk [vmem:[#allocation2 + $0x708] sm:$0xff] %vm446_vm0, %v19793_v0 }
  0x6a   : > { %674 = vst.msk [vmem:[#allocation2 + $0x710] sm:$0xff] %vm446_vm0, %v19793_v0  ;;  %675 = vst.msk [vmem:[#allocation2 + $0x718] sm:$0xff] %vm446_vm0, %v19793_v0 }
  0x6b   : > { %676 = vst.msk [vmem:[#allocation2 + $0x720] sm:$0xff] %vm446_vm0, %v19793_v0  ;;  %677 = vst.msk [vmem:[#allocation2 + $0x728] sm:$0xff] %vm446_vm0, %v19793_v0 }
  0x6c   : > { %679 = vst.msk [vmem:[#allocation2 + $0x738] sm:$0xff] %vm446_vm0, %v19793_v0  ;;  %680 = vst.msk [vmem:[#allocation2 + $0x740] sm:$0xff] %vm446_vm0, %v19793_v0 }
  0x6d   : > { %681 = vst.msk [vmem:[#allocation2 + $0x748] sm:$0xff] %vm446_vm0, %v19793_v0  ;;  %682 = vst.msk [vmem:[#allocation2 + $0x750] sm:$0xff] %vm446_vm0, %v19793_v0 }
  0x6e   : > { %683 = vst.msk [vmem:[#allocation2 + $0x758] sm:$0xff] %vm446_vm0, %v19793_v0  ;;  %684 = vst.msk [vmem:[#allocation2 + $0x760] sm:$0xff] %vm446_vm0, %v19793_v0 }
  0x6f   : > { %686 = vst.msk [vmem:[#allocation2 + $0x770] sm:$0xff] %vm446_vm0, %v19793_v0  ;;  %687 = vst.msk [vmem:[#allocation2 + $0x778] sm:$0xff] %vm446_vm0, %v19793_v0 }
  0x70   : > { %688 = vst.msk [vmem:[#allocation2 + $0x780] sm:$0xff] %vm446_vm0, %v19793_v0  ;;  %689 = vst.msk [vmem:[#allocation2 + $0x788] sm:$0xff] %vm446_vm0, %v19793_v0 }
  0x71   : > { %690 = vst.msk [vmem:[#allocation2 + $0x790] sm:$0xff] %vm446_vm0, %v19793_v0  ;;  %691 = vst.msk [vmem:[#allocation2 + $0x798] sm:$0xff] %vm446_vm0, %v19793_v0 }
  0x72   : > { %693 = vst.msk [vmem:[#allocation2 + $0x7a8] sm:$0xff] %vm446_vm0, %v19793_v0  ;;  %694 = vst.msk [vmem:[#allocation2 + $0x7b0] sm:$0xff] %vm446_vm0, %v19793_v0 }
  0x73   : > { %695 = vst.msk [vmem:[#allocation2 + $0x7b8] sm:$0xff] %vm446_vm0, %v19793_v0  ;;  %696 = vst.msk [vmem:[#allocation2 + $0x7c0] sm:$0xff] %vm446_vm0, %v19793_v0 }
  0x74   : > { %697 = vst.msk [vmem:[#allocation2 + $0x7c8] sm:$0xff] %vm446_vm0, %v19793_v0  ;;  %698 = vst.msk [vmem:[#allocation2 + $0x7d0] sm:$0xff] %vm446_vm0, %v19793_v0 }
  0x75   : > { %700 = vst.msk [vmem:[#allocation2 + $0x7e0] sm:$0xff] %vm446_vm0, %v19793_v0  ;;  %701 = vst.msk [vmem:[#allocation2 + $0x7e8] sm:$0xff] %vm446_vm0, %v19793_v0 }
  0x76   : > { %702 = vst.msk [vmem:[#allocation2 + $0x7f0] sm:$0xff] %vm446_vm0, %v19793_v0  ;;  %703 = vst.msk [vmem:[#allocation2 + $0x7f8] sm:$0xff] %vm446_vm0, %v19793_v0 }
  0x77   : > { %704 = vst.msk [vmem:[#allocation2 + $0x800] sm:$0xff] %vm446_vm0, %v19793_v0  ;;  %705 = vst.msk [vmem:[#allocation2 + $0x808] sm:$0xff] %vm446_vm0, %v19793_v0 }
  0x78   : > { %707 = vst.msk [vmem:[#allocation2 + $0x818] sm:$0xff] %vm446_vm0, %v19793_v0  ;;  %708 = vst.msk [vmem:[#allocation2 + $0x820] sm:$0xff] %vm446_vm0, %v19793_v0 }
  0x79   : > { %709 = vst.msk [vmem:[#allocation2 + $0x828] sm:$0xff] %vm446_vm0, %v19793_v0  ;;  %710 = vst.msk [vmem:[#allocation2 + $0x830] sm:$0xff] %vm446_vm0, %v19793_v0 }
  0x7a   : > { %711 = vst.msk [vmem:[#allocation2 + $0x838] sm:$0xff] %vm446_vm0, %v19793_v0  ;;  %712 = vst.msk [vmem:[#allocation2 + $0x840] sm:$0xff] %vm446_vm0, %v19793_v0 }
  0x7b   : > { %714 = vst.msk [vmem:[#allocation2 + $0x850] sm:$0xff] %vm446_vm0, %v19793_v0  ;;  %715 = vst.msk [vmem:[#allocation2 + $0x858] sm:$0xff] %vm446_vm0, %v19793_v0 }
  0x7c   : > { %716 = vst.msk [vmem:[#allocation2 + $0x860] sm:$0xff] %vm446_vm0, %v19793_v0  ;;  %717 = vst.msk [vmem:[#allocation2 + $0x868] sm:$0xff] %vm446_vm0, %v19793_v0 }
  0x7d   : > { %718 = vst.msk [vmem:[#allocation2 + $0x870] sm:$0xff] %vm446_vm0, %v19793_v0  ;;  %719 = vst.msk [vmem:[#allocation2 + $0x878] sm:$0xff] %vm446_vm0, %v19793_v0 }
  0x7e   : > { %721 = vst.msk [vmem:[#allocation2 + $0x888] sm:$0xff] %vm446_vm0, %v19793_v0  ;;  %722 = vst.msk [vmem:[#allocation2 + $0x890] sm:$0xff] %vm446_vm0, %v19793_v0 }
  0x7f   : > { %723 = vst.msk [vmem:[#allocation2 + $0x898] sm:$0xff] %vm446_vm0, %v19793_v0  ;;  %724 = vst.msk [vmem:[#allocation2 + $0x8a0] sm:$0xff] %vm446_vm0, %v19793_v0 }
  0x80   : > { %725 = vst.msk [vmem:[#allocation2 + $0x8a8] sm:$0xff] %vm446_vm0, %v19793_v0  ;;  %726 = vst.msk [vmem:[#allocation2 + $0x8b0] sm:$0xff] %vm446_vm0, %v19793_v0 }
  0x81   : > { %728 = vst.msk [vmem:[#allocation2 + $0x8c0] sm:$0xff] %vm446_vm0, %v19793_v0  ;;  %729 = vst.msk [vmem:[#allocation2 + $0x8c8] sm:$0xff] %vm446_vm0, %v19793_v0 }
  0x82   : > { %730 = vst.msk [vmem:[#allocation2 + $0x8d0] sm:$0xff] %vm446_vm0, %v19793_v0  ;;  %731 = vst.msk [vmem:[#allocation2 + $0x8d8] sm:$0xff] %vm446_vm0, %v19793_v0 }
  0x83   : > { %732 = vst.msk [vmem:[#allocation2 + $0x8e0] sm:$0xff] %vm446_vm0, %v19793_v0  ;;  %733 = vst.msk [vmem:[#allocation2 + $0x8e8] sm:$0xff] %vm446_vm0, %v19793_v0 }
  0x84   : > { %735 = vst.msk [vmem:[#allocation2 + $0x8f8] sm:$0xff] %vm446_vm0, %v19793_v0  ;;  %736 = vst.msk [vmem:[#allocation2 + $0x900] sm:$0xff] %vm446_vm0, %v19793_v0 }
  0x85   : > { %737 = vst.msk [vmem:[#allocation2 + $0x908] sm:$0xff] %vm446_vm0, %v19793_v0  ;;  %738 = vst.msk [vmem:[#allocation2 + $0x910] sm:$0xff] %vm446_vm0, %v19793_v0 }
  0x86   : > { %739 = vst.msk [vmem:[#allocation2 + $0x918] sm:$0xff] %vm446_vm0, %v19793_v0  ;;  %740 = vst.msk [vmem:[#allocation2 + $0x920] sm:$0xff] %vm446_vm0, %v19793_v0 }
  0x87   : > { %742 = vst.msk [vmem:[#allocation2 + $0x930] sm:$0xff] %vm446_vm0, %v19793_v0  ;;  %743 = vst.msk [vmem:[#allocation2 + $0x938] sm:$0xff] %vm446_vm0, %v19793_v0 }
  0x88   : > { %744 = vst.msk [vmem:[#allocation2 + $0x940] sm:$0xff] %vm446_vm0, %v19793_v0  ;;  %745 = vst.msk [vmem:[#allocation2 + $0x948] sm:$0xff] %vm446_vm0, %v19793_v0 }
  0x89   : > { %746 = vst.msk [vmem:[#allocation2 + $0x950] sm:$0xff] %vm446_vm0, %v19793_v0  ;;  %747 = vst.msk [vmem:[#allocation2 + $0x958] sm:$0xff] %vm446_vm0, %v19793_v0 }
  0x8a   : > { %749 = vst.msk [vmem:[#allocation2 + $0x968] sm:$0xff] %vm446_vm0, %v19793_v0  ;;  %750 = vst.msk [vmem:[#allocation2 + $0x970] sm:$0xff] %vm446_vm0, %v19793_v0 }
  0x8b   : > { %751 = vst.msk [vmem:[#allocation2 + $0x978] sm:$0xff] %vm446_vm0, %v19793_v0  ;;  %752 = vst.msk [vmem:[#allocation2 + $0x980] sm:$0xff] %vm446_vm0, %v19793_v0 }
  0x8c   : > { %753 = vst.msk [vmem:[#allocation2 + $0x988] sm:$0xff] %vm446_vm0, %v19793_v0  ;;  %754 = vst.msk [vmem:[#allocation2 + $0x990] sm:$0xff] %vm446_vm0, %v19793_v0 }
  0x8d   : > { %756 = vst.msk [vmem:[#allocation2 + $0x9a0] sm:$0xff] %vm446_vm0, %v19793_v0  ;;  %757 = vst.msk [vmem:[#allocation2 + $0x9a8] sm:$0xff] %vm446_vm0, %v19793_v0 }
  0x8e   : > { %758 = vst.msk [vmem:[#allocation2 + $0x9b0] sm:$0xff] %vm446_vm0, %v19793_v0  ;;  %759 = vst.msk [vmem:[#allocation2 + $0x9b8] sm:$0xff] %vm446_vm0, %v19793_v0 }
  0x8f   : > { %760 = vst.msk [vmem:[#allocation2 + $0x9c0] sm:$0xff] %vm446_vm0, %v19793_v0  ;;  %761 = vst.msk [vmem:[#allocation2 + $0x9c8] sm:$0xff] %vm446_vm0, %v19793_v0 }
  0x90   : > { %763 = vst.msk [vmem:[#allocation2 + $0x9d8] sm:$0xff] %vm446_vm0, %v19793_v0  ;;  %764 = vst.msk [vmem:[#allocation2 + $0x9e0] sm:$0xff] %vm446_vm0, %v19793_v0 }
  0x91   : > { %765 = vst.msk [vmem:[#allocation2 + $0x9e8] sm:$0xff] %vm446_vm0, %v19793_v0  ;;  %766 = vst.msk [vmem:[#allocation2 + $0x9f0] sm:$0xff] %vm446_vm0, %v19793_v0 }
  0x92   : > { %767 = vst.msk [vmem:[#allocation2 + $0x9f8] sm:$0xff] %vm446_vm0, %v19793_v0  ;;  %768 = vst.msk [vmem:[#allocation2 + $0xa00] sm:$0xff] %vm446_vm0, %v19793_v0 }
  0x93   : > { %845 = vst.msk [vmem:[#allocation2 + $0x402] sm:$0xff] %vm446_vm0, %v812_v1  ;;  %846 = vst.msk [vmem:[#allocation2 + $0x40a] sm:$0xff] %vm446_vm0, %v813_v2 }
  0x94   : > { %847 = vst.msk [vmem:[#allocation2 + $0x43a] sm:$0xff] %vm446_vm0, %v814_v3  ;;  %848 = vst.msk [vmem:[#allocation2 + $0x442] sm:$0xff] %vm446_vm0, %v815_v9 }
  0x95   : > { %849 = vst.msk [vmem:[#allocation2 + $0x472] sm:$0xff] %vm446_vm0, %v816_v10  ;;  %850 = vst.msk [vmem:[#allocation2 + $0x47a] sm:$0xff] %vm446_vm0, %v817_v12  ;;  %v878_v10 = vld [vmem:[%s19770_s1 + $0x8] sm:$0xff]  ;;  %v880_v12 = vld [vmem:[%s19770_s1 + $0x18] sm:$0xff] }
  0x96   : > { %851 = vst.msk [vmem:[#allocation2 + $0x4aa] sm:$0xff] %vm446_vm0, %v818_v13  ;;  %852 = vst.msk [vmem:[#allocation2 + $0x4b2] sm:$0xff] %vm446_vm0, %v819_v14  ;;  %v2475_v13 = vpack.c.bf16 %v878_v10, %v877_v7  ;;  %v2476_v14 = vpack.c.bf16 %v880_v12, %v879_v11 }
  0x97   : > { %853 = vst.msk [vmem:[#allocation2 + $0x4e2] sm:$0xff] %vm446_vm0, %v820_v15  ;;  %854 = vst.msk [vmem:[#allocation2 + $0x4ea] sm:$0xff] %vm446_vm0, %v821_v16  ;;  %v832_v15 = vld [vmem:[%s13916_s24 + $0xa0] sm:$0xff]  ;;  %v833_v16 = vld [vmem:[%s13916_s24 + $0xa8] sm:$0xff] }
  0x98   : > { %855 = vst.msk [vmem:[#allocation2 + $0x51a] sm:$0xff] %vm446_vm0, %v822_v17  ;;  %856 = vst.msk [vmem:[#allocation2 + $0x522] sm:$0xff] %vm446_vm0, %v823_v18  ;;  %v881_v17 = vld [vmem:[%s19770_s1 + $0x20] sm:$0xf]  ;;  %10646 = vmatprep.subr.bf16.mxu0 %v2475_v13 }
  0x99   : > { %857 = vst.msk [vmem:[#allocation2 + $0x552] sm:$0xff] %vm446_vm0, %v824_v19  ;;  %858 = vst.msk [vmem:[#allocation2 + $0x55a] sm:$0xff] %vm446_vm0, %v825_v20  ;;  %10647 = vmatpush3.bf16.msra.mxu0 %v2475_v13  ;;  %v2477_v18 = vpack.c.bf16 %v881_v17, %v881_v17 }
  0x9a   : > { %859 = vst.msk [vmem:[#allocation2 + $0x58a] sm:$0xff] %vm446_vm0, %v826_v21  ;;  %860 = vst.msk [vmem:[#allocation2 + $0x592] sm:$0xff] %vm446_vm0, %v827_v22  ;;  %v949_v25 = vld [vmem:[#allocation2 + $0x403] sm:$0xff]  ;;  %v950_v26 = vld [vmem:[#allocation2 + $0x40b] sm:$0xff]  ;;  %10648 = vmatprep.subr.bf16.mxu0 %v2476_v14 }
  0x9b   : > { %v13954_v27 = vld [vmem:[#allocation2 + $0x402] sm:$0xff]  ;;  %861 = vst.msk [vmem:[#allocation2 + $0x5c2] sm:$0xff] %vm446_vm0, %v828_v23  ;;  %862 = vst.msk [vmem:[#allocation2 + $0x5ca] sm:$0xff] %vm446_vm0, %v829_v24  ;;  %v11215_v28 = vpack.i.bf16 %v950_v26, %v949_v25  ;;  %v13958_v29 = vld [vmem:[#allocation2 + $0x40a] sm:$0xff]  ;;  %v2529_v25 = vsel %vm2527_vm1, %v2477_v18, 0 }
  0x9c   : > { %20131 = vst [vmem:[#allocation10_spill] sm:$0xff] %v13954_v27  ;;  %20132 = vst [vmem:[#allocation11_spill] sm:$0xff] %v13958_v29  ;;  %v13960_v30 = vld [vmem:[#allocation2 + $0x439] sm:$0xff]  ;;  %v13962_v31 = vld [vmem:[#allocation2 + $0x401] sm:$0xff]  ;;  %v11210_v32 = vpack.i.bf16 %v13958_v29, %v13954_v27 }
  0x9d   : > { %v13966_v33 = vld [vmem:[#allocation2 + $0x441] sm:$0xff]  ;;  %v13968_v34 = vld [vmem:[#allocation2 + $0x409] sm:$0xff]  ;;  %11216 = vrot.lane.b32.xlu1 %v11215_v28, %s19789_s30  ;;  %v13984_v41 = vld [vmem:[#allocation2 + $0x472] sm:$0xff]  ;;  %863 = vst.msk [vmem:[#allocation2 + $0x5fa] sm:$0xff] %vm446_vm0, %v830_v5  ;;  %s19810_s30 = smov 28   ;;  %10649 = vmatpush3.bf16.msra.mxu0 %v2476_v14 }
  0x9e   : > { %v11225_v36 = vpack.i.bf16 %v13966_v33, %v13960_v30  ;;  %v13975_v37 = vld [vmem:[#allocation2 + $0x43a] sm:$0xff]  ;;  %v13977_v38 = vld [vmem:[#allocation2 + $0x442] sm:$0xff]  ;;  %11211 = vrot.lane.b32.xlu0 %v11210_v32, %s19791_s15  ;;  %v11220_v39 = vpack.i.bf16 %v13968_v34, %v13962_v31  ;;  %20135 = vst [vmem:[#allocation14_spill] sm:$0xff] %v13984_v41  ;;  %v13993_v45 = vld [vmem:[#allocation2 + $0x4aa] sm:$0xff]  ;;  %11141 = vmatprep.subr.msk.bf16.mxu0 %vm2527_vm1, %v2477_v18  ;;  %s20152_s15 = smov 8  }
  0x9f   : > { %20133 = vst [vmem:[#allocation12_spill] sm:$0xff] %v13975_v37  ;;  %20134 = vst [vmem:[#allocation13_spill] sm:$0xff] %v13977_v38  ;;  %v13986_v42 = vld [vmem:[#allocation2 + $0x47a] sm:$0xff]  ;;  %v11235_v44 = vpack.i.bf16 %v13977_v38, %v13975_v37  ;;  %v13995_v46 = vld [vmem:[#allocation2 + $0x4b2] sm:$0xff] }
  0xa0   : > { %20136 = vst [vmem:[#allocation15_spill] sm:$0xff] %v13986_v42  ;;  %20137 = vst [vmem:[#allocation16_spill] sm:$0xff] %v13993_v45  ;;  %v1045_v47 = vld [vmem:[#allocation2 + $0x43b] sm:$0xff]  ;;  %v1046_v48 = vld [vmem:[#allocation2 + $0x443] sm:$0xff]  ;;  %v11265_v9 = vpack.i.bf16 %v13986_v42, %v13984_v41 }
  0xa1   : > { %11226 = vrot.lane.b32.xlu1 %v11225_v36, %s19787_s16  ;;  %20138 = vst [vmem:[#allocation17_spill] sm:$0xff] %v13995_v46  ;;  %v14000_v50 = vld [vmem:[#allocation2 + $0x4e2] sm:$0xff]  ;;  %v14002_v51 = vld [vmem:[#allocation2 + $0x4ea] sm:$0xff]  ;;  %v14007_v53 = vpack.i.bf16 %v1046_v48, %v1045_v47  ;;  %v14009_v54 = vld [vmem:[#allocation2 + $0x51a] sm:$0xff]  ;;  %10651 = vmatpush3.bf16.msra.mxu0 %v2529_v25 }
  0xa2   : > { %11221 = vrot.lane.b32.xlu0 %v11220_v39, %s19787_s16  ;;  %20139 = vst [vmem:[#allocation18_spill] sm:$0xff] %v14000_v50  ;;  %20140 = vst [vmem:[#allocation19_spill] sm:$0xff] %v14002_v51  ;;  %v14011_v55 = vld [vmem:[#allocation2 + $0x522] sm:$0xff]  ;;  %v14014_v56 = vld [vmem:[#allocation2 + $0x471] sm:$0xff]  ;;  %s20153_s16 = smov 12  }
  0xa3   : > { %20141 = vst [vmem:[#allocation20_spill] sm:$0xff] %v14009_v54  ;;  %20142 = vst [vmem:[#allocation21_spill] sm:$0xff] %v14011_v55  ;;  %v14016_v57 = vld [vmem:[#allocation2 + $0x479] sm:$0xff]  ;;  %v14030_v63 = vld [vmem:[#allocation2 + $0x58a] sm:$0xff] }
  0xa4   : > { %v14020_v59 = vld [vmem:[#allocation2 + $0x552] sm:$0xff]  ;;  %v14022_v60 = vld [vmem:[#allocation2 + $0x55a] sm:$0xff]  ;;  %v11255_v62 = vpack.i.bf16 %v14016_v57, %v14014_v56  ;;  %20145 = vst [vmem:[#allocation24_spill] sm:$0xff] %v14030_v63  ;;  %v14037_v3 = vld [vmem:[#allocation2 + $0x5c2] sm:$0xff] }
  0xa5   : > { %11236 = vrot.lane.b32.xlu1 %v11235_v44, %s19783_s20  ;;  %20143 = vst [vmem:[#allocation22_spill] sm:$0xff] %v14020_v59  ;;  %20144 = vst [vmem:[#allocation23_spill] sm:$0xff] %v14022_v60  ;;  %v14032_v1 = vld [vmem:[#allocation2 + $0x592] sm:$0xff]  ;;  %v14039_v4 = vld [vmem:[#allocation2 + $0x5ca] sm:$0xff] }
  0xa6   : > { %11231 = vrot.lane.b32.xlu0 %v11210_v32, %s19783_s20  ;;  %20146 = vst [vmem:[#allocation25_spill] sm:$0xff] %v14032_v1  ;;  %20147 = vst [vmem:[#allocation26_spill] sm:$0xff] %v14037_v3  ;;  %s19812_s20 = smov 24   ;;  %v1142_v19 = vld [vmem:[#allocation2 + $0x473] sm:$0xff]  ;;  %v1143_v20 = vld [vmem:[#allocation2 + $0x47b] sm:$0xff] }
  0xa7   : > { %20148 = vst [vmem:[#allocation27_spill] sm:$0xff] %v14039_v4  ;;  %864 = vst.msk [vmem:[#allocation2 + $0x602] sm:$0xff] %vm446_vm0, %v831_v6  ;;  %v14073_v21 = vld [vmem:[#allocation2 + $0x5fa] sm:$0xff]  ;;  %v11280_v23 = vpack.i.bf16 %v1143_v20, %v1142_v19  ;;  %v834_v26 = vld [vmem:[%s13916_s24 + $0xb0] sm:$0xff] }
  0xa8   : > { %865 = vst.msk [vmem:[#allocation2 + $0x632] sm:$0xff] %vm446_vm0, %v832_v15  ;;  %866 = vst.msk [vmem:[#allocation2 + $0x63a] sm:$0xff] %vm446_vm0, %v833_v16  ;;  %v985_v32 = vld [vmem:[#allocation2 + $0x4a9] sm:$0xff]  ;;  %v1050_v48 = vld [vmem:[#allocation2 + $0x4b3] sm:$0xff] }
  0xa9   : > { %11246 = vrot.lane.b32.xlu1 %v14007_v53, %s19785_s21  ;;  %20150 = vst [vmem:[#allocation28_spill] sm:$0xff] %v14073_v21  ;;  %867 = vst.msk [vmem:[#allocation2 + $0x66a] sm:$0xff] %vm446_vm0, %v834_v26  ;;  %v1049_v47 = vld [vmem:[#allocation2 + $0x4ab] sm:$0xff]  ;;  %v836_v5 = vld [vmem:[%s13916_s24 + $0xc0] sm:$0xff] }
  0xaa   : > { %11241 = vrot.lane.b32.xlu0 %v11215_v28, %s19785_s21  ;;  %v835_v28 = vld [vmem:[%s13916_s24 + $0xb8] sm:$0xff]  ;;  %v837_v6 = vld [vmem:[%s13916_s24 + $0xc8] sm:$0xff]  ;;  %869 = vst.msk [vmem:[#allocation2 + $0x6a2] sm:$0xff] %vm446_vm0, %v836_v5  ;;  %s20154_s21 = smov 16   ;;  %v11325_v7 = vpack.i.bf16 %v1050_v48, %v1049_v47  ;;  %v838_v20 = vld [vmem:[%s13916_s24 + $0xd0] sm:$0xff] }
  0xab   : > { %868 = vst.msk [vmem:[#allocation2 + $0x672] sm:$0xff] %vm446_vm0, %v835_v28  ;;  %v1082_v10 = vld [vmem:[#allocation2 + $0x4e1] sm:$0xff]  ;;  %v1083_v11 = vld [vmem:[#allocation2 + $0x4e9] sm:$0xff]  ;;  %870 = vst.msk [vmem:[#allocation2 + $0x6aa] sm:$0xff] %vm446_vm0, %v837_v6 }
  0xac   : > { %v11335_v16 = vpack.i.bf16 %v1083_v11, %v1082_v10  ;;  %v1146_v17 = vld [vmem:[#allocation2 + $0x4e3] sm:$0xff]  ;;  %v1147_v18 = vld [vmem:[#allocation2 + $0x4eb] sm:$0xff]  ;;  %871 = vst.msk [vmem:[#allocation2 + $0x6da] sm:$0xff] %vm446_vm0, %v838_v20  ;;  %v989_v25 = vld [vmem:[#allocation2 + $0x519] sm:$0xff]  ;;  %v11425_v10 = vpack.i.bf16 %v14022_v60, %v14020_v59 }
  0xad   : > { %11256 = vrot.lane.b32.xlu1 %v11255_v62, %s19812_s20  ;;  %v11360_v19 = vpack.i.bf16 %v1147_v18, %v1146_v17  ;;  %v990_v26 = vld [vmem:[#allocation2 + $0x521] sm:$0xff]  ;;  %v1086_v5 = vld [vmem:[#allocation2 + $0x551] sm:$0xff]  ;;  %v1087_v6 = vld [vmem:[#allocation2 + $0x559] sm:$0xff] }
  0xae   : > { %11251 = vrot.lane.b32.xlu0 %v11225_v36, %s19812_s20  ;;  %v14075_v22 = vld [vmem:[#allocation2 + $0x602] sm:$0xff]  ;;  %v986_v36 = vld [vmem:[#allocation2 + $0x4b1] sm:$0xff]  ;;  %v11385_v28 = vpack.i.bf16 %v990_v26, %v989_v25  ;;  %v11475_v25 = vpack.i.bf16 %v14032_v1, %v14030_v63 }
  0xaf   : > { %20151 = vst [vmem:[#allocation29_spill] sm:$0xff] %v14075_v22  ;;  %v11305_v39 = vpack.i.bf16 %v986_v36, %v985_v32  ;;  %v14100_v12 = vld [vmem:[#allocation2 + $0x632] sm:$0xff]  ;;  %v11395_v32 = vpack.i.bf16 %v14011_v55, %v14009_v54  ;;  %v1053_v36 = vld [vmem:[#allocation2 + $0x51b] sm:$0xff]  ;;  %v841_v47 = vld [vmem:[%s13916_s24 + $0xe8] sm:$0xff]  ;;  %v14227_v43 = vpack.i.bf16 %v14075_v22, %v14073_v21 }
  0xb0   : > { %20155 = vst [vmem:[#allocation30_spill] sm:$0xff] %v14100_v12  ;;  %874 = vst.msk [vmem:[#allocation2 + $0x71a] sm:$0xff] %vm446_vm0, %v841_v47  ;;  %v1150_v11 = vld [vmem:[#allocation2 + $0x553] sm:$0xff]  ;;  %v1057_v26 = vld [vmem:[#allocation2 + $0x58b] sm:$0xff] }
  0xb1   : > { %11266 = vrot.lane.b32.xlu1 %v11265_v9, %s19810_s30  ;;  %v842_v17 = vld [vmem:[%s13916_s24 + $0xf0] sm:$0xff]  ;;  %v843_v18 = vld [vmem:[%s13916_s24 + $0xf8] sm:$0xff] }
  0xb2   : > { %11261 = vrot.lane.b32.xlu0 %v11235_v44, %s19810_s30  ;;  %v14108_v13 = vld [vmem:[#allocation2 + $0x672] sm:$0xff]  ;;  %875 = vst.msk [vmem:[#allocation2 + $0x74a] sm:$0xff] %vm446_vm0, %v842_v17  ;;  %876 = vst.msk [vmem:[#allocation2 + $0x752] sm:$0xff] %vm446_vm0, %v843_v18  ;;  %v1061_v8 = vld [vmem:[#allocation2 + $0x5fb] sm:$0xff] }
  0xb3   : > { %20158 = vst [vmem:[#allocation33_spill] sm:$0xff] %v14108_v13  ;;  %v994_v20 = vld [vmem:[#allocation2 + $0x591] sm:$0xff]  ;;  %v1095_v49 = vld [vmem:[#allocation2 + $0x639] sm:$0xff] }
  0xb4   : > { %v905_v27 = vld [vmem:[#allocation2 + $0x631] sm:$0xff]  ;;  %v906_v29 = vld [vmem:[#allocation2 + $0x639] sm:$0xff] }
  0xb5   : > { %11276 = vrot.lane.b32.xlu1 %v11235_v44, %s20149_s0  ;;  %v11315_v44 = vpack.i.bf16 %v13995_v46, %v13993_v45 }
  0xb6   : > { %11271 = vrot.lane.b32.xlu0 %v14007_v53, %s19808_s17 }
  0xb9   : > { %11286 = vrot.lane.b32.xlu1 %v11265_v9, %s20149_s0 }
  0xba   : > { %11281 = vrot.lane.b32.xlu0 %v11280_v23, %s19808_s17 }
  0xbd   : > { %11296 = vrot.lane.b32.xlu1 %v11280_v23, %s20152_s15 }
  0xbe   : > { %11291 = vrot.lane.b32.xlu0 %v14007_v53, %s20152_s15  ;;  %v14104_v53 = vld [vmem:[#allocation2 + $0x63a] sm:$0xff] }
  0xbf   : > { %20156 = vst [vmem:[#allocation31_spill] sm:$0xff] %v14104_v53 }
  0xc1   : > { %11306 = vrot.lane.b32.xlu1 %v11305_v39, %s20153_s16 }
  0xc2   : > { %11301 = vrot.lane.b32.xlu0 %v11255_v62, %s20153_s16  ;;  %v14106_v62 = vld [vmem:[#allocation2 + $0x66a] sm:$0xff] }
  0xc3   : > { %20157 = vst [vmem:[#allocation32_spill] sm:$0xff] %v14106_v62 }
  0xc5   : > { %11316 = vrot.lane.b32.xlu1 %v11315_v44, %s20154_s21 }
  0xc6   : > { %11311 = vrot.lane.b32.xlu0 %v11265_v9, %s20154_s21  ;;  %v11345_v9 = vpack.i.bf16 %v14002_v51, %v14000_v50 }
  0xc9   : > { %11326 = vrot.lane.b32.xlu1 %v11325_v7, %s20159_s22 }
  0xca   : > { %11321 = vrot.lane.b32.xlu0 %v11280_v23, %s20159_s22  ;;  %v839_v23 = vld [vmem:[%s13916_s24 + $0xd8] sm:$0xff] }
  0xcb   : > { %872 = vst.msk [vmem:[#allocation2 + $0x6e2] sm:$0xff] %vm446_vm0, %v839_v23 }
  0xcd   : > { %11336 = vrot.lane.b32.xlu1 %v11335_v16, %s19812_s20 }
  0xce   : > { %11331 = vrot.lane.b32.xlu0 %v11305_v39, %s19812_s20  ;;  %v1054_v39 = vld [vmem:[#allocation2 + $0x523] sm:$0xff] }
  0xcf   : > { %v11405_v48 = vpack.i.bf16 %v1054_v39, %v1053_v36  ;;  %v1090_v36 = vld [vmem:[#allocation2 + $0x5c1] sm:$0xff]  ;;  %v1091_v39 = vld [vmem:[#allocation2 + $0x5c9] sm:$0xff] }
  0xd0   : > { %v14169_v47 = vpack.i.bf16 %v1091_v39, %v1090_v36  ;;  %v883_v39 = vld [vmem:[#allocation2 + $0x3c9] sm:$0xff] }
  0xd1   : > { %11346 = vrot.lane.b32.xlu1 %v11345_v9, %s19810_s30 }
  0xd2   : > { %11341 = vrot.lane.b32.xlu0 %v11315_v44, %s19810_s30 }
  0xd5   : > { %11356 = vrot.lane.b32.xlu1 %v11315_v44, %s20149_s0  ;;  %v840_v44 = vld [vmem:[%s13916_s24 + $0xe0] sm:$0xff] }
  0xd6   : > { %11351 = vrot.lane.b32.xlu0 %v11325_v7, %s19808_s17  ;;  %873 = vst.msk [vmem:[#allocation2 + $0x712] sm:$0xff] %vm446_vm0, %v840_v44  ;;  %v14167_v44 = vpop.permute.xlu1 %11206 }
  0xd7   : > { %v11209_v24 = vunpack.i.h.bf16 %v14167_v44 }
  0xd9   : > { %11366 = vrot.lane.b32.xlu1 %v11345_v9, %s20149_s0 }
  0xda   : > { %11361 = vrot.lane.b32.xlu0 %v11360_v19, %s19808_s17 }
  0xdd   : > { %11376 = vrot.lane.b32.xlu1 %v11360_v19, %s20152_s15 }
  0xde   : > { %11371 = vrot.lane.b32.xlu0 %v11325_v7, %s20152_s15  ;;  %v11415_v7 = vpack.i.bf16 %v1087_v6, %v1086_v5  ;;  %v14176_v5 = vpack.i.bf16 %v14039_v4, %v14037_v3 }
  0xe1   : > { %11386 = vrot.lane.b32.xlu1 %v11385_v28, %s20153_s16 }
  0xe2   : > { %11381 = vrot.lane.b32.xlu0 %v11335_v16, %s20153_s16  ;;  %v1151_v16 = vld [vmem:[#allocation2 + $0x55b] sm:$0xff] }
  0xe5   : > { %11396 = vrot.lane.b32.xlu1 %v11395_v32, %s20154_s21 }
  0xe6   : > { %11391 = vrot.lane.b32.xlu0 %v11345_v9, %s20154_s21  ;;  %v11440_v9 = vpack.i.bf16 %v1151_v16, %v1150_v11  ;;  %v1154_v11 = vld [vmem:[#allocation2 + $0x5c3] sm:$0xff]  ;;  %v1155_v16 = vld [vmem:[#allocation2 + $0x5cb] sm:$0xff] }
  0xe7   : > { %v14190_v17 = vpack.i.bf16 %v1155_v16, %v1154_v11 }
  0xe9   : > { %11406 = vrot.lane.b32.xlu1 %v11405_v48, %s20159_s22 }
  0xea   : > { %11401 = vrot.lane.b32.xlu0 %v11360_v19, %s20159_s22  ;;  %v993_v19 = vld [vmem:[#allocation2 + $0x589] sm:$0xff] }
  0xeb   : > { %v11465_v23 = vpack.i.bf16 %v994_v20, %v993_v19  ;;  %v997_v20 = vld [vmem:[#allocation2 + $0x5f9] sm:$0xff] }
  0xed   : > { %11416 = vrot.lane.b32.xlu1 %v11415_v7, %s19812_s20 }
  0xee   : > { %11411 = vrot.lane.b32.xlu0 %v11385_v28, %s19812_s20  ;;  %v1058_v28 = vld [vmem:[#allocation2 + $0x593] sm:$0xff] }
  0xf1   : > { %11426 = vrot.lane.b32.xlu1 %v11425_v10, %s19810_s30 }
  0xf2   : > { %11421 = vrot.lane.b32.xlu0 %v11395_v32, %s19810_s30 }
  0xf5   : > { %11436 = vrot.lane.b32.xlu1 %v11395_v32, %s20149_s0  ;;  %v11485_v32 = vpack.i.bf16 %v1058_v28, %v1057_v26 }
  0xf6   : > { %11431 = vrot.lane.b32.xlu0 %v11405_v48, %s19808_s17 }
  0xf9   : > { %11446 = vrot.lane.b32.xlu1 %v11425_v10, %s20149_s0 }
  0xfa   : > { %11441 = vrot.lane.b32.xlu0 %v11440_v9, %s19808_s17 }
  0xfd   : > { %11456 = vrot.lane.b32.xlu1 %v11440_v9, %s20152_s15 }
  0xfe   : > { %11451 = vrot.lane.b32.xlu0 %v11405_v48, %s20152_s15  ;;  %v11202_v48 = vpop.permute.xlu0 %11201 }
  0xff   : > { %v11204_v26 = vunpack.i.h.bf16 %v11202_v48  ;;  %v11203_v28 = vunpack.i.l.bf16 %v11202_v48  ;;  %v11208_v48 = vunpack.i.l.bf16 %v14167_v44 }
 0x101   : > { %11466 = vrot.lane.b32.xlu1 %v11465_v23, %s20153_s16  ;;  %v2196_v2 = vsel %vm446_vm0, %v883_v39, %v11203_v28 }
 0x102   : > { %11461 = vrot.lane.b32.xlu0 %v11415_v7, %s20153_s16 }
 0x105   : > { %11476 = vrot.lane.b32.xlu1 %v11475_v25, %s20154_s21 }
 0x106   : > { %11471 = vrot.lane.b32.xlu0 %v11425_v10, %s20154_s21 }
 0x109   : > { %11486 = vrot.lane.b32.xlu1 %v11485_v32, %s20159_s22 }
 0x10a   : > { %11481 = vrot.lane.b32.xlu0 %v11440_v9, %s20159_s22 }
 0x10d   : > { %11496 = vrot.lane.b32.xlu1 %v14169_v47, %s19812_s20 }
 0x10e   : > { %11491 = vrot.lane.b32.xlu0 %v11465_v23, %s19812_s20  ;;  %v998_v23 = vld [vmem:[#allocation2 + $0x601] sm:$0xff] }
 0x10f   : > { %v14179_v6 = vpop.permute.xlu1 %11216  ;;  %v14204_v15 = vpack.i.bf16 %v998_v23, %v997_v20  ;;  %v1062_v20 = vld [vmem:[#allocation2 + $0x603] sm:$0xff]  ;;  %v1094_v23 = vld [vmem:[#allocation2 + $0x631] sm:$0xff] }
 0x110   : > { %v11212_v7 = vpop.permute.xlu0 %11211  ;;  %v11219_v61 = vunpack.i.h.bf16 %v14179_v6  ;;  %v11218_v58 = vunpack.i.l.bf16 %v14179_v6 }
 0x111   : > { %11506 = vrot.lane.b32.xlu1 %v14176_v5, %s19810_s30  ;;  %v11214_v14 = vunpack.i.h.bf16 %v11212_v7  ;;  %v11213_v11 = vunpack.i.l.bf16 %v11212_v7 }
 0x112   : > { %11501 = vrot.lane.b32.xlu0 %v11475_v25, %s19810_s30 }
 0x113   : > { %v14184_v10 = vpop.permute.xlu1 %11226  ;;  %v2198_v44 = vsel %vm446_vm0, %v13962_v31, %v11213_v11  ;;  %v2229_v31 = vsel %vm2228_vm2, %v2196_v2, %v11208_v48 }
 0x114   : > { %v14186_v9 = vpop.permute.xlu0 %11221  ;;  %v11228_v28 = vunpack.i.l.bf16 %v14184_v10 }
 0x115   : > { %11516 = vrot.lane.b32.xlu1 %v11475_v25, %s20149_s0  ;;  %v884_v25 = vld [vmem:[#allocation2 + $0x3d1] sm:$0xff]  ;;  %v11224_v39 = vunpack.i.h.bf16 %v14186_v9  ;;  %v11223_v6 = vunpack.i.l.bf16 %v14186_v9  ;;  %v2231_v9 = vsel %vm2228_vm2, %v2198_v44, %v11218_v58 }
 0x116   : > { %11511 = vrot.lane.b32.xlu0 %v11485_v32, %s19808_s17  ;;  %v2197_v7 = vsel %vm446_vm0, %v884_v25, %v11204_v26  ;;  %v11229_v26 = vunpack.i.h.bf16 %v14184_v10  ;;  %v14235_v10 = vpack.i.bf16 %v1095_v49, %v1094_v23  ;;  %v2264_v2 = vsel %vm2261_vm3, %v2231_v9, %v11228_v28 }
 0x117   : > { %v14192_v18 = vpop.permute.xlu1 %11236  ;;  %v2262_v58 = vsel %vm2261_vm3, %v2229_v31, %v11223_v6 }
 0x118   : > { %v11232_v19 = vpop.permute.xlu0 %11231 }
 0x119   : > { %11526 = vrot.lane.b32.xlu1 %v14176_v5, %s20149_s0  ;;  %v14239_v40 = vunpack.i.h.bf16 %v11232_v19  ;;  %v14241_v35 = vunpack.i.l.bf16 %v11232_v19  ;;  %v14252_v19 = vunpack.i.h.bf16 %v14192_v18 }
 0x11a   : > { %11521 = vrot.lane.b32.xlu0 %v14190_v17, %s19808_s17 }
 0x11b   : > { %v14198_v36 = vpop.permute.xlu1 %11246  ;;  %20160 = vst [vmem:[#allocation34_spill] sm:$0xff] %v14239_v40  ;;  %20161 = vst [vmem:[#allocation35_spill] sm:$0xff] %v14241_v35 }
 0x11c   : > { %v14200_v16 = vpop.permute.xlu0 %11241  ;;  %20162 = vst [vmem:[#allocation36_spill] sm:$0xff] %v14252_v19  ;;  %v11248_v28 = vunpack.i.l.bf16 %v14198_v36 }
 0x11d   : > { %11536 = vrot.lane.b32.xlu1 %v14190_v17, %s20152_s15 }
 0x11e   : > { %11531 = vrot.lane.b32.xlu0 %v11485_v32, %s20152_s15  ;;  %v2199_v32 = vsel %vm446_vm0, %v13968_v34, %v11214_v14  ;;  %v2230_v34 = vsel %vm2228_vm2, %v2197_v7, %v11209_v24  ;;  %v14233_v14 = vpack.i.bf16 %v1062_v20, %v1061_v8  ;;  %v11243_v8 = vunpack.i.l.bf16 %v14200_v16 }
 0x11f   : > { %v14213_v52 = vpop.permute.xlu1 %11256  ;;  %v2232_v11 = vsel %vm2228_vm2, %v2199_v32, %v11219_v61  ;;  %v2263_v48 = vsel %vm2261_vm3, %v2230_v34, %v11224_v39  ;;  %v14255_v20 = vunpack.i.l.bf16 %v14192_v18 }
 0x120   : > { %v11252_v25 = vpop.permute.xlu0 %11251  ;;  %v2265_v24 = vsel %vm2261_vm3, %v2232_v11, %v11229_v26  ;;  %v2296_v32 = vsel %vm2294_vm4, %v2263_v48, %v14239_v40  ;;  %v11249_v26 = vunpack.i.h.bf16 %v14198_v36  ;;  %v11259_v6 = vunpack.i.h.bf16 %v14213_v52 }
 0x121   : > { %11546 = vrot.lane.b32.xlu1 %v14204_v15, %s20153_s16  ;;  %v11254_v61 = vunpack.i.h.bf16 %v11252_v25  ;;  %v11253_v7 = vunpack.i.l.bf16 %v11252_v25  ;;  %20163 = vst [vmem:[#allocation37_spill] sm:$0xff] %v14255_v20 }
 0x122   : > { %11541 = vrot.lane.b32.xlu0 %v14169_v47, %s20153_s16  ;;  %v11244_v47 = vunpack.i.h.bf16 %v14200_v16  ;;  %v2295_v16 = vsel %vm2294_vm4, %v2262_v58, %v14241_v35  ;;  %v2298_v58 = vsel %vm2294_vm4, %v2265_v24, %v14252_v19 }
 0x123   : > { %v11267_v0 = vpop.permute.xlu1 %11266  ;;  %v2328_v18 = vsel %vm2327_vm5, %v2295_v16, %v11243_v8 }
 0x124   : > { %v11262_v49 = vpop.permute.xlu0 %11261  ;;  %v2329_v39 = vsel %vm2327_vm5, %v2296_v32, %v11244_v47  ;;  %v2361_v11 = vsel %vm2360_vm6, %v2328_v18, %v11253_v7  ;;  %v11268_v48 = vunpack.i.l.bf16 %v11267_v0 }
 0x125   : > { %11556 = vrot.lane.b32.xlu1 %v14227_v43, %s20154_s21  ;;  %v11264_v23 = vunpack.i.h.bf16 %v11262_v49  ;;  %v11263_v44 = vunpack.i.l.bf16 %v11262_v49  ;;  %v2362_v36 = vsel %vm2360_vm6, %v2329_v39, %v11254_v61  ;;  %v11269_v49 = vunpack.i.h.bf16 %v11267_v0 }
 0x126   : > { %11551 = vrot.lane.b32.xlu0 %v14176_v5, %s20154_s21  ;;  %v11258_v5 = vunpack.i.l.bf16 %v14213_v52  ;;  %v2297_v52 = vsel %vm2294_vm4, %v2264_v2, %v14255_v20 }
 0x127   : > { %v14265_v25 = vpop.permute.xlu1 %11276  ;;  %v2394_v47 = vsel %vm2393_vm7, %v2361_v11, %v11263_v44  ;;  %v2395_v8 = vsel %vm2393_vm7, %v2362_v36, %v11264_v23  ;;  %v2330_v0 = vsel %vm2327_vm5, %v2297_v52, %v11248_v28  ;;  %v14291_v23 = vpack.i.bf16 %v14104_v53, %v14100_v12  ;;  %v1158_v36 = vld [vmem:[#allocation2 + $0x633] sm:$0xff]  ;;  %v1001_v52 = vld [vmem:[#allocation2 + $0x669] sm:$0xff] }
 0x128   : > { %v11272_v31 = vpop.permute.xlu0 %11271  ;;  %v2363_v2 = vsel %vm2360_vm6, %v2330_v0, %v11258_v5  ;;  %v1065_v0 = vld [vmem:[#allocation2 + $0x66b] sm:$0xff] }
 0x129   : > { %v11274_v34 = vunpack.i.h.bf16 %v11272_v31  ;;  %v11273_v9 = vunpack.i.l.bf16 %v11272_v31  ;;  %11566 = vrot.lane.b32.xlu1 %v14233_v14, %s20159_s22  ;;  %v2396_v31 = vsel %vm2393_vm7, %v2363_v2, %v11268_v48  ;;  %v1098_v2 = vld [vmem:[#allocation2 + $0x6a1] sm:$0xff] }
 0x12a   : > { %11561 = vrot.lane.b32.xlu0 %v14190_v17, %s20159_s22  ;;  %v2331_v17 = vsel %vm2327_vm5, %v2298_v58, %v11249_v26  ;;  %v1002_v58 = vld [vmem:[#allocation2 + $0x671] sm:$0xff] }
 0x12b   : > { %v14283_v16 = vpop.permute.xlu1 %11286  ;;  %v2427_v7 = vsel %vm2426_vm8, %v2394_v47, %v11273_v9  ;;  %v2428_v61 = vsel %vm2426_vm8, %v2395_v8, %v11274_v34  ;;  %v2364_v24 = vsel %vm2360_vm6, %v2331_v17, %v11259_v6 }
 0x12c   : > { %v11282_v32 = vpop.permute.xlu0 %11281  ;;  %v2459_v44 = vpack.c.bf16 %v2428_v61, %v2427_v7  ;;  %v2397_v28 = vsel %vm2393_vm7, %v2364_v24, %v11269_v49  ;;  %v11288_v17 = vunpack.i.l.bf16 %v14283_v16  ;;  %v1099_v24 = vld [vmem:[#allocation2 + $0x6a9] sm:$0xff] }
 0x12d   : > { %v11284_v18 = vunpack.i.h.bf16 %v11282_v32  ;;  %v11283_v39 = vunpack.i.l.bf16 %v11282_v32  ;;  %11576 = vrot.lane.b32.xlu1 %v14235_v10, %s19812_s20  ;;  %v14325_v32 = vpack.i.bf16 %v1002_v58, %v1001_v52  ;;  %v14339_v12 = vpack.i.bf16 %v1099_v24, %v1098_v2 }
 0x12e   : > { %11571 = vrot.lane.b32.xlu0 %v14204_v15, %s19812_s20  ;;  %10652 = vmatprep.mubr.msk.bf16.mxu0 %vm2478_vm9, %v2459_v44  ;;  %v1159_v15 = vld [vmem:[#allocation2 + $0x63b] sm:$0xff]  ;;  %v1066_v44 = vld [vmem:[#allocation2 + $0x673] sm:$0xff] }
 0x12f   : > { %v2429_v26 = vsel %vm2426_vm8, %v2396_v31, %v11283_v39  ;;  %v2430_v5 = vsel %vm2426_vm8, %v2397_v28, %v11284_v18  ;;  %v11297_v34 = vpop.permute.xlu1 %11296  ;;  %v14313_v48 = vpack.i.bf16 %v1159_v15, %v1158_v36  ;;  %v11279_v18 = vunpack.i.h.bf16 %v14265_v25 }
 0x130   : > { %v11292_v6 = vpop.permute.xlu0 %11291  ;;  %v2460_v9 = vpack.c.bf16 %v2430_v5, %v2429_v26  ;;  %v11278_v39 = vunpack.i.l.bf16 %v14265_v25  ;;  %v11299_v31 = vunpack.i.h.bf16 %v11297_v34  ;;  %v11298_v28 = vunpack.i.l.bf16 %v11297_v34 }
 0x131   : > { %11586 = vrot.lane.b32.xlu1 %v14291_v23, %s19810_s30  ;;  %v11294_v26 = vunpack.i.h.bf16 %v11292_v6  ;;  %v11293_v5 = vunpack.i.l.bf16 %v11292_v6  ;;  %v14337_v58 = vpack.i.bf16 %v1066_v44, %v1065_v0 }
 0x132   : > { %11581 = vrot.lane.b32.xlu0 %v14227_v43, %s19810_s30  ;;  %10653 = vmatmul.mubr.msk.bf16.vlgmr.msra.gmra.mrb[0].mxu0 %vm2478_vm9, %v2460_v9  ;;  %v14335_v9 = vpack.i.bf16 %v14108_v13, %v14106_v62  ;;  %v2201_v62 = vsel %vm446_vm0, %v13966_v33, %v11279_v18 }
 0x133   : > { %v11307_v11 = vpop.permute.xlu1 %11306 }
 0x134   : > { %v11302_v49 = vpop.permute.xlu0 %11301  ;;  %v11309_v36 = vunpack.i.h.bf16 %v11307_v11  ;;  %v11308_v15 = vunpack.i.l.bf16 %v11307_v11  ;;  %v2200_v11 = vsel %vm446_vm0, %v13960_v30, %v11278_v39 }
 0x135   : > { %11596 = vrot.lane.b32.xlu1 %v14227_v43, %s20149_s0  ;;  %v11289_v43 = vunpack.i.h.bf16 %v14283_v16  ;;  %v11304_v34 = vunpack.i.h.bf16 %v11302_v49  ;;  %v11303_v6 = vunpack.i.l.bf16 %v11302_v49 }
 0x136   : > { %11591 = vrot.lane.b32.xlu0 %v14233_v14, %s19808_s17 }
 0x137   : > { %v11317_v47 = vpop.permute.xlu1 %11316  ;;  %v2203_v25 = vsel %vm446_vm0, %v14016_v57, %v11289_v43  ;;  %v2233_v57 = vsel %vm2228_vm2, %v2200_v11, %v11293_v5 }
 0x138   : > { %v11312_v8 = vpop.permute.xlu0 %11311  ;;  %v2236_v44 = vsel %vm2228_vm2, %v2203_v25, %v11299_v31  ;;  %v2266_v39 = vsel %vm2261_vm3, %v2233_v57, %v11303_v6  ;;  %v1131_v57 = vld [vmem:[#allocation2 + $0x6aa] sm:$0xff] }
 0x139   : > { %11606 = vrot.lane.b32.xlu1 %v14291_v23, %s20149_s0  ;;  %v14357_v49 = vunpack.i.h.bf16 %v11312_v8  ;;  %v14359_v43 = vunpack.i.l.bf16 %v11312_v8  ;;  %v2269_v30 = vsel %vm2261_vm3, %v2236_v44, %v11309_v36  ;;  %v14369_v8 = vunpack.i.l.bf16 %v11317_v47 }
 0x13a   : > { %11601 = vrot.lane.b32.xlu0 %v14313_v48, %s19808_s17 }
 0x13b   : > { %v14319_v7 = vpop.permute.xlu1 %11326  ;;  %20164 = vst [vmem:[#allocation38_spill] sm:$0xff] %v14357_v49  ;;  %20165 = vst [vmem:[#allocation39_spill] sm:$0xff] %v14359_v43 }
 0x13c   : > { %v11322_v61 = vpop.permute.xlu0 %11321  ;;  %20167 = vst [vmem:[#allocation41_spill] sm:$0xff] %v14369_v8 }
 0x13d   : > { %11616 = vrot.lane.b32.xlu1 %v14313_v48, %s20152_s15  ;;  %v11324_v2 = vunpack.i.h.bf16 %v11322_v61  ;;  %v11323_v24 = vunpack.i.l.bf16 %v11322_v61  ;;  %v2299_v61 = vsel %vm2294_vm4, %v2266_v39, %v14359_v43 }
 0x13e   : > { %11611 = vrot.lane.b32.xlu0 %v14233_v14, %s20152_s15  ;;  %v2202_v14 = vsel %vm446_vm0, %v14014_v56, %v11288_v17  ;;  %v2234_v56 = vsel %vm2228_vm2, %v2201_v62, %v11294_v26 }
 0x13f   : > { %v14331_v16 = vpop.permute.xlu1 %11336  ;;  %v2235_v0 = vsel %vm2228_vm2, %v2202_v14, %v11298_v28  ;;  %v14367_v28 = vunpack.i.h.bf16 %v11317_v47  ;;  %v2332_v47 = vsel %vm2327_vm5, %v2299_v61, %v11323_v24 }
 0x140   : > { %v11332_v52 = vpop.permute.xlu0 %11331  ;;  %v2268_v33 = vsel %vm2261_vm3, %v2235_v0, %v11308_v15  ;;  %v11329_v15 = vunpack.i.h.bf16 %v14319_v7 }
 0x141   : > { %11626 = vrot.lane.b32.xlu1 %v14325_v32, %s20153_s16  ;;  %v11334_v31 = vunpack.i.h.bf16 %v11332_v52  ;;  %v11333_v62 = vunpack.i.l.bf16 %v11332_v52  ;;  %20166 = vst [vmem:[#allocation40_spill] sm:$0xff] %v14367_v28  ;;  %v11328_v52 = vunpack.i.l.bf16 %v14319_v7  ;;  %v1130_v7 = vld [vmem:[#allocation2 + $0x6a2] sm:$0xff] }
 0x142   : > { %11621 = vrot.lane.b32.xlu0 %v14235_v10, %s20153_s16  ;;  %v2267_v10 = vsel %vm2261_vm3, %v2234_v56, %v11304_v34  ;;  %v11339_v34 = vunpack.i.h.bf16 %v14331_v16 }
 0x143   : > { %v11347_v17 = vpop.permute.xlu1 %11346  ;;  %v2300_v36 = vsel %vm2294_vm4, %v2267_v10, %v14357_v49  ;;  %v2365_v11 = vsel %vm2360_vm6, %v2332_v47, %v11333_v62  ;;  %v2302_v10 = vsel %vm2294_vm4, %v2269_v30, %v14367_v28  ;;  %v14403_v47 = vpack.i.bf16 %v1131_v57, %v1130_v7 }
 0x144   : > { %v11342_v18 = vpop.permute.xlu0 %11341  ;;  %v2333_v14 = vsel %vm2327_vm5, %v2300_v36, %v11324_v2  ;;  %v11348_v24 = vunpack.i.l.bf16 %v11347_v17 }
 0x145   : > { %11636 = vrot.lane.b32.xlu1 %v14335_v9, %s20154_s21  ;;  %v11344_v26 = vunpack.i.h.bf16 %v11342_v18  ;;  %v11343_v5 = vunpack.i.l.bf16 %v11342_v18  ;;  %v2366_v0 = vsel %vm2360_vm6, %v2333_v14, %v11334_v31  ;;  %v11349_v18 = vunpack.i.h.bf16 %v11347_v17 }
 0x146   : > { %11631 = vrot.lane.b32.xlu0 %v14291_v23, %s20154_s21  ;;  %v11338_v23 = vunpack.i.l.bf16 %v14331_v16  ;;  %v2301_v16 = vsel %vm2294_vm4, %v2268_v33, %v14369_v8 }
 0x147   : > { %v14379_v25 = vpop.permute.xlu1 %11356  ;;  %v2398_v2 = vsel %vm2393_vm7, %v2365_v11, %v11343_v5  ;;  %v2399_v39 = vsel %vm2393_vm7, %v2366_v0, %v11344_v26  ;;  %v2334_v17 = vsel %vm2327_vm5, %v2301_v16, %v11328_v52  ;;  %v2335_v5 = vsel %vm2327_vm5, %v2302_v10, %v11329_v15 }
 0x148   : > { %v11352_v6 = vpop.permute.xlu0 %11351  ;;  %v2368_v33 = vsel %vm2360_vm6, %v2335_v5, %v11339_v34 }
 0x149   : > { %v11354_v44 = vunpack.i.h.bf16 %v11352_v6  ;;  %v11353_v56 = vunpack.i.l.bf16 %v11352_v6  ;;  %11646 = vrot.lane.b32.xlu1 %v14337_v58, %s20159_s22  ;;  %v2401_v11 = vsel %vm2393_vm7, %v2368_v33, %v11349_v18  ;;  %v1103_v33 = vld [vmem:[#allocation2 + $0x719] sm:$0xff] }
 0x14a   : > { %11641 = vrot.lane.b32.xlu0 %v14313_v48, %s20159_s22  ;;  %v2367_v48 = vsel %vm2360_vm6, %v2334_v17, %v11338_v23 }
 0x14b   : > { %v2431_v31 = vsel %vm2426_vm8, %v2398_v2, %v11353_v56  ;;  %v2432_v62 = vsel %vm2426_vm8, %v2399_v39, %v11354_v44  ;;  %v14399_v61 = vpop.permute.xlu1 %11366  ;;  %v2400_v6 = vsel %vm2393_vm7, %v2367_v48, %v11348_v24  ;;  %v1162_v56 = vld [vmem:[#allocation2 + $0x6a3] sm:$0xff]  ;;  %v1005_v2 = vld [vmem:[#allocation2 + $0x6d9] sm:$0xff]  ;;  %v1102_v48 = vld [vmem:[#allocation2 + $0x711] sm:$0xff] }
 0x14c   : > { %v11362_v26 = vpop.permute.xlu0 %11361  ;;  %v2461_v36 = vpack.c.bf16 %v2432_v62, %v2431_v31  ;;  %v1006_v39 = vld [vmem:[#allocation2 + $0x6e1] sm:$0xff]  ;;  %v11369_v17 = vunpack.i.h.bf16 %v14399_v61  ;;  %v11368_v5 = vunpack.i.l.bf16 %v14399_v61  ;;  %v891_v61 = vld [vmem:[#allocation2 + $0x4a9] sm:$0xff] }
 0x14d   : > { %v11364_v14 = vunpack.i.h.bf16 %v11362_v26  ;;  %v11363_v30 = vunpack.i.l.bf16 %v11362_v26  ;;  %11656 = vrot.lane.b32.xlu1 %v14339_v12, %s19812_s20  ;;  %v1038_v31 = vld [vmem:[#allocation2 + $0x6e2] sm:$0xff]  ;;  %v14441_v26 = vpack.i.bf16 %v1006_v39, %v1005_v2 }
 0x14e   : > { %11651 = vrot.lane.b32.xlu0 %v14325_v32, %s19812_s20  ;;  %10656 = vmatprep.mubr.msk.bf16.mxu0 %vm2478_vm9, %v2461_v36  ;;  %v1163_v32 = vld [vmem:[#allocation2 + $0x6ab] sm:$0xff]  ;;  %v1069_v62 = vld [vmem:[#allocation2 + $0x6db] sm:$0xff]  ;;  %v1070_v36 = vld [vmem:[#allocation2 + $0x6e3] sm:$0xff] }
 0x14f   : > { %v2434_v15 = vsel %vm2426_vm8, %v2401_v11, %v11364_v14  ;;  %v2433_v52 = vsel %vm2426_vm8, %v2400_v6, %v11363_v30  ;;  %v11377_v23 = vpop.permute.xlu1 %11376  ;;  %v14427_v57 = vpack.i.bf16 %v1163_v32, %v1162_v56  ;;  %v11359_v14 = vunpack.i.h.bf16 %v14379_v25  ;;  %v893_v6 = vld [vmem:[#allocation2 + $0x4e1] sm:$0xff]  ;;  %v894_v11 = vld [vmem:[#allocation2 + $0x4e9] sm:$0xff] }
 0x150   : > { %v11372_v34 = vpop.permute.xlu0 %11371  ;;  %v2462_v0 = vpack.c.bf16 %v2434_v15, %v2433_v52  ;;  %v11358_v30 = vunpack.i.l.bf16 %v14379_v25  ;;  %v11379_v15 = vunpack.i.h.bf16 %v11377_v23  ;;  %v11378_v52 = vunpack.i.l.bf16 %v11377_v23 }
 0x151   : > { %11666 = vrot.lane.b32.xlu1 %v14403_v47, %s19810_s30  ;;  %v11374_v56 = vunpack.i.h.bf16 %v11372_v34  ;;  %v11373_v32 = vunpack.i.l.bf16 %v11372_v34  ;;  %v14451_v22 = vpack.i.bf16 %v1070_v36, %v1069_v62  ;;  %v14453_v25 = vpack.i.bf16 %v1103_v33, %v1102_v48 }
 0x152   : > { %11661 = vrot.lane.b32.xlu0 %v14335_v9, %s19810_s30  ;;  %10657 = vmatmul.mubr.msk.bf16.gmra.mrb[4].mxu0 %vm2478_vm9, %v2462_v0  ;;  %v892_v0 = vld [vmem:[#allocation2 + $0x4b1] sm:$0xff]  ;;  %v2207_v23 = vsel %vm446_vm0, %v894_v11, %v11369_v17  ;;  %v2206_v3 = vsel %vm446_vm0, %v893_v6, %v11368_v5 }
 0x153   : > { %v11387_v44 = vpop.permute.xlu1 %11386  ;;  %v2205_v34 = vsel %vm446_vm0, %v892_v0, %v11359_v14 }
 0x154   : > { %v14421_v7 = vpop.permute.xlu0 %11381  ;;  %v11389_v13 = vunpack.i.h.bf16 %v11387_v44  ;;  %v11388_v53 = vunpack.i.l.bf16 %v11387_v44  ;;  %v2204_v44 = vsel %vm446_vm0, %v891_v61, %v11358_v30  ;;  %v2238_v62 = vsel %vm2228_vm2, %v2205_v34, %v11374_v56 }
 0x155   : > { %11676 = vrot.lane.b32.xlu1 %v14335_v9, %s20149_s0  ;;  %v1037_v9 = vld [vmem:[#allocation2 + $0x6da] sm:$0xff]  ;;  %v11383_v4 = vunpack.i.l.bf16 %v14421_v7  ;;  %v2237_v17 = vsel %vm2228_vm2, %v2204_v44, %v11373_v32 }
 0x156   : > { %11671 = vrot.lane.b32.xlu0 %v14337_v58, %s19808_s17  ;;  %v14449_v39 = vpack.i.bf16 %v1038_v31, %v1037_v9  ;;  %v2239_v9 = vsel %vm2228_vm2, %v2206_v3, %v11378_v52  ;;  %v2240_v31 = vsel %vm2228_vm2, %v2207_v23, %v11379_v15 }
 0x157   : > { %v11397_v18 = vpop.permute.xlu1 %11396  ;;  %v2272_v48 = vsel %vm2261_vm3, %v2239_v9, %v11388_v53  ;;  %v2273_v33 = vsel %vm2261_vm3, %v2240_v31, %v11389_v13  ;;  %v1135_v31 = vld [vmem:[#allocation2 + $0x71a] sm:$0xff] }
 0x158   : > { %v11392_v24 = vpop.permute.xlu0 %11391  ;;  %v14483_v52 = vunpack.i.l.bf16 %v11397_v18 }
 0x159   : > { %11686 = vrot.lane.b32.xlu1 %v14403_v47, %s20149_s0  ;;  %v14469_v5 = vunpack.i.h.bf16 %v11392_v24 }
 0x15a   : > { %11681 = vrot.lane.b32.xlu0 %v14427_v57, %s19808_s17  ;;  %20171 = vst [vmem:[#allocation45_spill] sm:$0xff] %v14483_v52 }
 0x15b   : > { %v14433_v16 = vpop.permute.xlu1 %11406  ;;  %20168 = vst [vmem:[#allocation42_spill] sm:$0xff] %v14469_v5 }
 0x15c   : > { %v14435_v10 = vpop.permute.xlu0 %11401  ;;  %v11408_v61 = vunpack.i.l.bf16 %v14433_v16 }
 0x15d   : > { %11696 = vrot.lane.b32.xlu1 %v14427_v57, %s20152_s15  ;;  %v11404_v3 = vunpack.i.h.bf16 %v14435_v10  ;;  %v11403_v14 = vunpack.i.l.bf16 %v14435_v10 }
 0x15e   : > { %11691 = vrot.lane.b32.xlu0 %v14337_v58, %s20152_s15  ;;  %v11384_v58 = vunpack.i.h.bf16 %v14421_v7  ;;  %v14471_v7 = vunpack.i.l.bf16 %v11392_v24  ;;  %v14481_v24 = vunpack.i.h.bf16 %v11397_v18 }
 0x15f   : > { %v14447_v2 = vpop.permute.xlu1 %11416 }
 0x160   : > { %v11412_v21 = vpop.permute.xlu0 %11411  ;;  %20169 = vst [vmem:[#allocation43_spill] sm:$0xff] %v14471_v7  ;;  %v2271_v6 = vsel %vm2261_vm3, %v2238_v62, %v11384_v58  ;;  %20170 = vst [vmem:[#allocation44_spill] sm:$0xff] %v14481_v24  ;;  %v11419_v32 = vunpack.i.h.bf16 %v14447_v2 }
 0x161   : > { %11706 = vrot.lane.b32.xlu1 %v14441_v26, %s20153_s16  ;;  %v11414_v11 = vunpack.i.h.bf16 %v11412_v21  ;;  %v11413_v15 = vunpack.i.l.bf16 %v11412_v21  ;;  %v11409_v21 = vunpack.i.h.bf16 %v14433_v16  ;;  %v1134_v16 = vld [vmem:[#allocation2 + $0x712] sm:$0xff] }
 0x162   : > { %11701 = vrot.lane.b32.xlu0 %v14339_v12, %s20153_s16  ;;  %v2270_v12 = vsel %vm2261_vm3, %v2237_v17, %v11383_v4  ;;  %v2304_v4 = vsel %vm2294_vm4, %v2271_v6, %v14469_v5 }
 0x163   : > { %v11427_v36 = vpop.permute.xlu1 %11426  ;;  %v2303_v10 = vsel %vm2294_vm4, %v2270_v12, %v14471_v7  ;;  %v2337_v56 = vsel %vm2327_vm5, %v2304_v4, %v11404_v3 }
 0x164   : > { %v11422_v30 = vpop.permute.xlu0 %11421  ;;  %v2336_v18 = vsel %vm2327_vm5, %v2303_v10, %v11403_v14  ;;  %v2370_v34 = vsel %vm2360_vm6, %v2337_v56, %v11414_v11  ;;  %v11429_v62 = vunpack.i.h.bf16 %v11427_v36  ;;  %v11428_v17 = vunpack.i.l.bf16 %v11427_v36 }
 0x165   : > { %11716 = vrot.lane.b32.xlu1 %v14449_v39, %s20154_s21  ;;  %v11424_v53 = vunpack.i.h.bf16 %v11422_v30  ;;  %v11423_v13 = vunpack.i.l.bf16 %v11422_v30  ;;  %v2369_v58 = vsel %vm2360_vm6, %v2336_v18, %v11413_v15  ;;  %v2306_v30 = vsel %vm2294_vm4, %v2273_v33, %v14481_v24 }
 0x166   : > { %11711 = vrot.lane.b32.xlu0 %v14403_v47, %s20154_s21  ;;  %v11418_v47 = vunpack.i.l.bf16 %v14447_v2  ;;  %v2305_v2 = vsel %vm2294_vm4, %v2272_v48, %v14483_v52  ;;  %v2339_v15 = vsel %vm2327_vm5, %v2306_v30, %v11409_v21  ;;  %v14517_v10 = vpack.i.bf16 %v1135_v31, %v1134_v16  ;;  %v1073_v30 = vld [vmem:[#allocation2 + $0x74b] sm:$0xff] }
 0x167   : > { %v14493_v0 = vpop.permute.xlu1 %11436  ;;  %v2402_v3 = vsel %vm2393_vm7, %v2369_v58, %v11423_v13  ;;  %v2403_v14 = vsel %vm2393_vm7, %v2370_v34, %v11424_v53  ;;  %v2338_v36 = vsel %vm2327_vm5, %v2305_v2, %v11408_v61  ;;  %v2372_v48 = vsel %vm2360_vm6, %v2339_v15, %v11419_v32  ;;  %v1166_v34 = vld [vmem:[#allocation2 + $0x713] sm:$0xff] }
 0x168   : > { %v11432_v23 = vpop.permute.xlu0 %11431  ;;  %v2405_v56 = vsel %vm2393_vm7, %v2372_v48, %v11429_v62  ;;  %v1009_v62 = vld [vmem:[#allocation2 + $0x749] sm:$0xff]  ;;  %v1042_v2 = vld [vmem:[#allocation2 + $0x752] sm:$0xff]  ;;  %v11438_v48 = vunpack.i.l.bf16 %v14493_v0 }
 0x169   : > { %v11434_v44 = vunpack.i.h.bf16 %v11432_v23  ;;  %v11433_v9 = vunpack.i.l.bf16 %v11432_v23  ;;  %11726 = vrot.lane.b32.xlu1 %v14451_v22, %s20159_s22  ;;  %v1074_v15 = vld [vmem:[#allocation2 + $0x753] sm:$0xff] }
 0x16a   : > { %11721 = vrot.lane.b32.xlu0 %v14427_v57, %s20159_s22  ;;  %v2371_v57 = vsel %vm2360_vm6, %v2338_v36, %v11418_v47  ;;  %v14569_v1 = vpack.i.bf16 %v1074_v15, %v1073_v30 }
 0x16b   : > { %v2435_v12 = vsel %vm2426_vm8, %v2402_v3, %v11433_v9  ;;  %v2436_v6 = vsel %vm2426_vm8, %v2403_v14, %v11434_v44  ;;  %v14513_v11 = vpop.permute.xlu1 %11446  ;;  %v2404_v18 = vsel %vm2393_vm7, %v2371_v57, %v11428_v17  ;;  %v1010_v17 = vld [vmem:[#allocation2 + $0x751] sm:$0xff]  ;;  %v11439_v57 = vunpack.i.h.bf16 %v14493_v0 }
 0x16c   : > { %v11442_v53 = vpop.permute.xlu0 %11441  ;;  %v2463_v13 = vpack.c.bf16 %v2436_v6, %v2435_v12  ;;  %v11449_v12 = vunpack.i.h.bf16 %v14513_v11  ;;  %v11448_v6 = vunpack.i.l.bf16 %v14513_v11  ;;  %v14555_v36 = vpack.i.bf16 %v1010_v17, %v1009_v62  ;;  %v895_v11 = vld [vmem:[#allocation2 + $0x519] sm:$0xff] }
 0x16d   : > { %v11444_v4 = vunpack.i.h.bf16 %v11442_v53  ;;  %v11443_v33 = vunpack.i.l.bf16 %v11442_v53  ;;  %11736 = vrot.lane.b32.xlu1 %v14453_v25, %s19812_s20  ;;  %v14557_v53 = vld [vmem:[#allocation2 + $0x781] sm:$0xff] }
 0x16e   : > { %11731 = vrot.lane.b32.xlu0 %v14441_v26, %s19812_s20  ;;  %10660 = vmatprep.mubr.msk.bf16.mxu0 %vm2478_vm9, %v2463_v13  ;;  %v1167_v26 = vld [vmem:[#allocation2 + $0x71b] sm:$0xff]  ;;  %v14559_v13 = vld [vmem:[#allocation2 + $0x789] sm:$0xff] }
 0x16f   : > { %v2438_v21 = vsel %vm2426_vm8, %v2405_v56, %v11444_v4  ;;  %v2437_v61 = vsel %vm2426_vm8, %v2404_v18, %v11443_v33  ;;  %v11457_v47 = vpop.permute.xlu1 %11456  ;;  %v14541_v9 = vpack.i.bf16 %v1167_v26, %v1166_v34  ;;  %v897_v4 = vld [vmem:[#allocation2 + $0x551] sm:$0xff]  ;;  %v898_v33 = vld [vmem:[#allocation2 + $0x559] sm:$0xff]  ;;  %v11815_v0 = vpack.i.bf16 %v14559_v13, %v14557_v53 }
 0x170   : > { %v11452_v32 = vpop.permute.xlu0 %11451  ;;  %v2464_v23 = vpack.c.bf16 %v2438_v21, %v2437_v61  ;;  %v11459_v18 = vunpack.i.h.bf16 %v11457_v47  ;;  %v11458_v56 = vunpack.i.l.bf16 %v11457_v47  ;;  %v896_v21 = vld [vmem:[#allocation2 + $0x521] sm:$0xff]  ;;  %v2211_v47 = vsel %vm446_vm0, %v898_v33, %v11449_v12 }
 0x171   : > { %11746 = vrot.lane.b32.xlu1 %v14517_v10, %s19810_s30  ;;  %v11454_v61 = vunpack.i.h.bf16 %v11452_v32 }
 0x172   : > { %11741 = vrot.lane.b32.xlu0 %v14449_v39, %s19810_s30  ;;  %10661 = vmatmul.mubr.msk.bf16.gmra.mrb[8].mxu0 %vm2478_vm9, %v2464_v23  ;;  %v11453_v23 = vunpack.i.l.bf16 %v11452_v32  ;;  %v2244_v30 = vsel %vm2228_vm2, %v2211_v47, %v11459_v18 }
 0x173   : > { %v11467_v58 = vpop.permute.xlu1 %11466 }
 0x174   : > { %v14535_v44 = vpop.permute.xlu0 %11461  ;;  %v11469_v62 = vunpack.i.h.bf16 %v11467_v58  ;;  %v11468_v17 = vunpack.i.l.bf16 %v11467_v58  ;;  %v2208_v58 = vsel %vm446_vm0, %v895_v11, %v11438_v48 }
 0x175   : > { %11756 = vrot.lane.b32.xlu1 %v14449_v39, %s20149_s0  ;;  %v1041_v39 = vld [vmem:[#allocation2 + $0x74a] sm:$0xff]  ;;  %v11464_v59 = vunpack.i.h.bf16 %v14535_v44  ;;  %v11463_v32 = vunpack.i.l.bf16 %v14535_v44 }
 0x176   : > { %11751 = vrot.lane.b32.xlu0 %v14451_v22, %s19808_s17  ;;  %v14567_v26 = vpack.i.bf16 %v1042_v2, %v1041_v39  ;;  %v2209_v39 = vsel %vm446_vm0, %v896_v21, %v11439_v57  ;;  %v2277_v48 = vsel %vm2261_vm3, %v2244_v30, %v11469_v62 }
 0x177   : > { %v11477_v16 = vpop.permute.xlu1 %11476  ;;  %v2242_v12 = vsel %vm2228_vm2, %v2209_v39, %v11454_v61 }
 0x178   : > { %v11472_v31 = vpop.permute.xlu0 %11471  ;;  %v2275_v11 = vsel %vm2261_vm3, %v2242_v12, %v11464_v59 }
 0x179   : > { %11766 = vrot.lane.b32.xlu1 %v14517_v10, %s20149_s0  ;;  %v14587_v15 = vunpack.i.h.bf16 %v11472_v31  ;;  %v14589_v44 = vunpack.i.l.bf16 %v11472_v31  ;;  %v14599_v31 = vunpack.i.h.bf16 %v11477_v16 }
 0x17a   : > { %11761 = vrot.lane.b32.xlu0 %v14541_v9, %s19808_s17 }
 0x17b   : > { %v14547_v3 = vpop.permute.xlu1 %11486  ;;  %20172 = vst [vmem:[#allocation46_spill] sm:$0xff] %v14587_v15  ;;  %20173 = vst [vmem:[#allocation47_spill] sm:$0xff] %v14589_v44  ;;  %v2308_v59 = vsel %vm2294_vm4, %v2275_v11, %v14587_v15 }
 0x17c   : > { %v14549_v14 = vpop.permute.xlu0 %11481  ;;  %20174 = vst [vmem:[#allocation48_spill] sm:$0xff] %v14599_v31  ;;  %v11488_v47 = vunpack.i.l.bf16 %v14547_v3 }
 0x17d   : > { %11776 = vrot.lane.b32.xlu1 %v14541_v9, %s20152_s15  ;;  %v11484_v33 = vunpack.i.h.bf16 %v14549_v14  ;;  %v11483_v18 = vunpack.i.l.bf16 %v14549_v14 }
 0x17e   : > { %11771 = vrot.lane.b32.xlu0 %v14451_v22, %s20152_s15  ;;  %v2210_v22 = vsel %vm446_vm0, %v897_v4, %v11448_v6  ;;  %v2241_v6 = vsel %vm2228_vm2, %v2208_v58, %v11453_v23  ;;  %v14601_v23 = vunpack.i.l.bf16 %v11477_v16 }
 0x17f   : > { %v14565_v34 = vpop.permute.xlu1 %11496  ;;  %v2243_v2 = vsel %vm2228_vm2, %v2210_v22, %v11458_v56 }
 0x180   : > { %v11492_v63 = vpop.permute.xlu0 %11491  ;;  %v2276_v57 = vsel %vm2261_vm3, %v2243_v2, %v11468_v17  ;;  %20175 = vst [vmem:[#allocation49_spill] sm:$0xff] %v14601_v23  ;;  %v11499_v39 = vunpack.i.h.bf16 %v14565_v34 }
 0x181   : > { %11786 = vrot.lane.b32.xlu1 %v14555_v36, %s20153_s16  ;;  %v11494_v21 = vunpack.i.h.bf16 %v11492_v63  ;;  %v11493_v61 = vunpack.i.l.bf16 %v11492_v63  ;;  %v11489_v63 = vunpack.i.h.bf16 %v14547_v3  ;;  %v1138_v3 = vld [vmem:[#allocation2 + $0x782] sm:$0xff] }
 0x182   : > { %11781 = vrot.lane.b32.xlu0 %v14453_v25, %s20153_s16  ;;  %v2274_v25 = vsel %vm2261_vm3, %v2241_v6, %v11463_v32  ;;  %v2341_v32 = vsel %vm2327_vm5, %v2308_v59, %v11484_v33 }
 0x183   : > { %v11507_v4 = vpop.permute.xlu1 %11506  ;;  %v2307_v14 = vsel %vm2294_vm4, %v2274_v25, %v14589_v44  ;;  %v2374_v30 = vsel %vm2360_vm6, %v2341_v32, %v11494_v21  ;;  %v2310_v21 = vsel %vm2294_vm4, %v2277_v48, %v14599_v31 }
 0x184   : > { %v11502_v56 = vpop.permute.xlu0 %11501  ;;  %v2340_v16 = vsel %vm2327_vm5, %v2307_v14, %v11483_v18  ;;  %v11509_v25 = vunpack.i.h.bf16 %v11507_v4  ;;  %v11508_v18 = vunpack.i.l.bf16 %v11507_v4 }
 0x185   : > { %11796 = vrot.lane.b32.xlu1 %v14567_v26, %s20154_s21  ;;  %v11504_v17 = vunpack.i.h.bf16 %v11502_v56  ;;  %v11503_v62 = vunpack.i.l.bf16 %v11502_v56  ;;  %v2373_v2 = vsel %vm2360_vm6, %v2340_v16, %v11493_v61  ;;  %v1139_v56 = vld [vmem:[#allocation2 + $0x78a] sm:$0xff] }
 0x186   : > { %11791 = vrot.lane.b32.xlu0 %v14517_v10, %s20154_s21  ;;  %v11498_v10 = vunpack.i.l.bf16 %v14565_v34  ;;  %v2309_v34 = vsel %vm2294_vm4, %v2276_v57, %v14601_v23  ;;  %v11825_v32 = vpack.i.bf16 %v1139_v56, %v1138_v3  ;;  %v3342_v56 = vld [vmem:[#allocation2 + $0x2b2] sm:$0xff] }
 0x187   : > { %v14611_v22 = vpop.permute.xlu1 %11516  ;;  %v2406_v33 = vsel %vm2393_vm7, %v2373_v2, %v11503_v62  ;;  %v2407_v11 = vsel %vm2393_vm7, %v2374_v30, %v11504_v17  ;;  %v2342_v4 = vsel %vm2327_vm5, %v2309_v34, %v11488_v47  ;;  %v2343_v62 = vsel %vm2327_vm5, %v2310_v21, %v11489_v63  ;;  %v1170_v63 = vld [vmem:[#allocation2 + $0x783] sm:$0xff]  ;;  %v3377_v34 = vld [vmem:[#allocation2 + $0x2f8] sm:$0xff] }
 0x188   : > { %v11512_v58 = vpop.permute.xlu0 %11511  ;;  %v2376_v57 = vsel %vm2360_vm6, %v2343_v62, %v11499_v39  ;;  %v3409_v62 = vld [vmem:[#allocation2 + $0x43c] sm:$0xff] }
 0x189   : > { %v11514_v12 = vunpack.i.h.bf16 %v11512_v58  ;;  %v11513_v6 = vunpack.i.l.bf16 %v11512_v58  ;;  %11806 = vrot.lane.b32.xlu1 %v14569_v1, %s20159_s22  ;;  %v2409_v47 = vsel %vm2393_vm7, %v2376_v57, %v11509_v25  ;;  %v3343_v25 = vld [vmem:[#allocation2 + $0x2ba] sm:$0xff]  ;;  %v3441_v57 = vld [vmem:[#allocation2 + $0x448] sm:$0xff] }
 0x18a   : > { %11801 = vrot.lane.b32.xlu0 %v14541_v9, %s20159_s22  ;;  %v2375_v9 = vsel %vm2360_vm6, %v2342_v4, %v11498_v10  ;;  %v1171_v10 = vld [vmem:[#allocation2 + $0x78b] sm:$0xff]  ;;  %v11840_v21 = vpack.i.bf16 %v3343_v25, %v3342_v56 }
 0x18b   : > { %v2439_v61 = vsel %vm2426_vm8, %v2406_v33, %v11513_v6  ;;  %v2440_v14 = vsel %vm2426_vm8, %v2407_v11, %v11514_v12  ;;  %v14631_v59 = vpop.permute.xlu1 %11526  ;;  %v2408_v48 = vsel %vm2393_vm7, %v2375_v9, %v11508_v18  ;;  %v11835_v13 = vpack.i.bf16 %v1171_v10, %v1170_v63  ;;  %v3376_v11 = vld [vmem:[#allocation2 + $0x2f0] sm:$0xff]  ;;  %v3440_v9 = vld [vmem:[#allocation2 + $0x440] sm:$0xff] }
 0x18c   : > { %v11522_v17 = vpop.permute.xlu0 %11521  ;;  %v2465_v16 = vpack.c.bf16 %v2440_v14, %v2439_v61  ;;  %v3375_v61 = vld [vmem:[#allocation2 + $0x2c0] sm:$0xff]  ;;  %v3408_v14 = vld [vmem:[#allocation2 + $0x434] sm:$0xff]  ;;  %v3471_v10 = vld [vmem:[#allocation2 + $0x54c] sm:$0xff]  ;;  %v11528_v60 = vunpack.i.l.bf16 %v14631_v59 }
 0x18d   : > { %v11524_v58 = vunpack.i.h.bf16 %v11522_v17  ;;  %v11523_v2 = vunpack.i.l.bf16 %v11522_v17  ;;  %11816 = vrot.lane.b32.xlu1 %v11815_v0, %s19812_s20  ;;  %v3345_v0 = vld [vmem:[#allocation2 + $0x2f2] sm:$0xff]  ;;  %v3406_v17 = vld [vmem:[#allocation2 + $0x3fc] sm:$0xff] }
 0x18e   : > { %11811 = vrot.lane.b32.xlu0 %v14555_v36, %s19812_s20  ;;  %10664 = vmatprep.mubr.msk.bf16.mxu0 %vm2478_vm9, %v2465_v16  ;;  %v3344_v36 = vld [vmem:[#allocation2 + $0x2ea] sm:$0xff]  ;;  %s20187_s20 = smov 32  }
 0x18f   : > { %v2442_v39 = vsel %vm2426_vm8, %v2409_v47, %v11524_v58  ;;  %v2441_v30 = vsel %vm2426_vm8, %v2408_v48, %v11523_v2  ;;  %v14648_v12 = vpop.permute.xlu1 %11536  ;;  %v11845_v33 = vpack.i.bf16 %v3345_v0, %v3344_v36  ;;  %v3407_v16 = vld [vmem:[#allocation2 + $0x404] sm:$0xff]  ;;  %v11855_v2 = vpack.i.bf16 %v3377_v34, %v3376_v11  ;;  %v3439_v48 = vld [vmem:[#allocation2 + $0x410] sm:$0xff] }
 0x190   : > { %v14650_v6 = vpop.permute.xlu0 %11531  ;;  %v2466_v53 = vpack.c.bf16 %v2442_v39, %v2441_v30  ;;  %v3438_v58 = vld [vmem:[#allocation2 + $0x408] sm:$0xff]  ;;  %v3472_v39 = vld [vmem:[#allocation2 + $0x554] sm:$0xff]  ;;  %v11519_v30 = vunpack.i.h.bf16 %v14611_v22  ;;  %v14678_v11 = vpack.i.bf16 %v3441_v57, %v3440_v9  ;;  %v11539_v57 = vunpack.i.h.bf16 %v14648_v12 }
 0x191   : > { %11826 = vrot.lane.b32.xlu1 %v11825_v32, %s19810_s30  ;;  %v3473_v47 = vld [vmem:[#allocation2 + $0x584] sm:$0xff]  ;;  %v14674_v0 = vld [vmem:[#allocation2 + $0x592] sm:$0xff]  ;;  %v14680_v34 = vpack.i.bf16 %v3439_v48, %v3438_v58  ;;  %v14692_v54 = vpack.i.bf16 %v3472_v39, %v3471_v10  ;;  %v11538_v58 = vunpack.i.l.bf16 %v14648_v12  ;;  %v11534_v48 = vunpack.i.h.bf16 %v14650_v6 }
 0x192   : > { %11821 = vrot.lane.b32.xlu0 %v14567_v26, %s19810_s30  ;;  %10665 = vmatmul.mubr.msk.bf16.gmra.mrb[12].mxu0 %vm2478_vm9, %v2466_v53  ;;  %v3374_v26 = vld [vmem:[#allocation2 + $0x2b8] sm:$0xff]  ;;  %v14672_v36 = vld [vmem:[#allocation2 + $0x58a] sm:$0xff] }
 0x193   : > { %v14656_v3 = vpop.permute.xlu1 %11546  ;;  %v11850_v63 = vpack.i.bf16 %v3375_v61, %v3374_v26  ;;  %v900_v56 = vld [vmem:[#allocation2 + $0x591] sm:$0xff]  ;;  %v14686_v61 = vld [vmem:[#allocation2 + $0x55a] sm:$0xff]  ;;  %v902_v9 = vld [vmem:[#allocation2 + $0x5c9] sm:$0xff] }
 0x194   : > { %v14658_v18 = vpop.permute.xlu0 %11541  ;;  %v14684_v26 = vld [vmem:[#allocation2 + $0x552] sm:$0xff]  ;;  %v10339_v12 = vld [vmem:[%s19770_s1 + $0x28] sm:$0xff]  ;;  %v11549_v39 = vunpack.i.h.bf16 %v14656_v3 }
 0x195   : > { %11836 = vrot.lane.b32.xlu1 %v11835_v13, %s19808_s17  ;;  %v11865_v13 = vpack.i.bf16 %v3409_v62, %v3408_v14  ;;  %v11518_v14 = vunpack.i.l.bf16 %v14611_v22  ;;  %v11529_v62 = vunpack.i.h.bf16 %v14631_v59  ;;  %v2213_v59 = vsel %vm446_vm0, %v900_v56, %v11519_v30 }
 0x196   : > { %11831 = vrot.lane.b32.xlu0 %v14569_v1, %s19808_s17  ;;  %v3474_v1 = vld [vmem:[#allocation2 + $0x58c] sm:$0xff]  ;;  %v11544_v30 = vunpack.i.h.bf16 %v14658_v18  ;;  %s20182_s17 = smov 24  }
 0x197   : > { %v14663_v4 = vpop.permute.xlu1 %11556  ;;  %v2215_v10 = vsel %vm446_vm0, %v902_v9, %v11529_v62 }
 0x198   : > { %v14665_v32 = vpop.permute.xlu0 %11551  ;;  %v14722_v51 = vunpack.i.l.bf16 %v14663_v4  ;;  %v2248_v45 = vsel %vm2228_vm2, %v2215_v10, %v11539_v57  ;;  %v14747_v57 = vunpack.i.h.bf16 %v14663_v4 }
 0x199   : > { %11846 = vrot.lane.b32.xlu1 %v11845_v33, %s20149_s0  ;;  %v11860_v33 = vpack.i.bf16 %v3407_v16, %v3406_v17  ;;  %v899_v17 = vld [vmem:[#allocation2 + $0x589] sm:$0xff]  ;;  %v901_v16 = vld [vmem:[#allocation2 + $0x5c1] sm:$0xff]  ;;  %v14736_v62 = vunpack.i.h.bf16 %v14665_v32 }
 0x19a   : > { %11841 = vrot.lane.b32.xlu0 %v11840_v21, %s20149_s0  ;;  %v14682_v21 = vpack.i.bf16 %v3474_v1, %v3473_v47  ;;  %v11548_v47 = vunpack.i.l.bf16 %v14656_v3  ;;  %v2212_v55 = vsel %vm446_vm0, %v899_v17, %v11518_v14  ;;  %v2214_v50 = vsel %vm446_vm0, %v901_v16, %v11528_v60  ;;  %20176 = vst [vmem:[#allocation50_spill] sm:$0xff] %v14722_v51 }
 0x19b   : > { %v14670_v53 = vpop.permute.xlu1 %11566  ;;  %v2247_v3 = vsel %vm2228_vm2, %v2214_v50, %v11538_v58  ;;  %20178 = vst [vmem:[#allocation52_spill] sm:$0xff] %v14736_v62  ;;  %v2281_v17 = vsel %vm2261_vm3, %v2248_v45, %v11549_v39  ;;  %20179 = vst [vmem:[#allocation53_spill] sm:$0xff] %v14747_v57  ;;  %v10341_v45 = vld [vmem:[%s19770_s1 + $0x38] sm:$0xff] }
 0x19c   : > { %v14676_v25 = vpop.permute.xlu0 %11561  ;;  %v2280_v14 = vsel %vm2261_vm3, %v2247_v3, %v11548_v47  ;;  %v11568_v39 = vunpack.i.l.bf16 %v14670_v53 }
 0x19d   : > { %11856 = vrot.lane.b32.xlu1 %v11855_v2, %s20152_s15  ;;  %v11533_v2 = vunpack.i.l.bf16 %v14650_v6  ;;  %v11543_v6 = vunpack.i.l.bf16 %v14658_v18  ;;  %v2246_v18 = vsel %vm2228_vm2, %v2213_v59, %v11534_v48  ;;  %v11563_v50 = vunpack.i.l.bf16 %v14676_v25 }
 0x19e   : > { %11851 = vrot.lane.b32.xlu0 %v11850_v63, %s20152_s15  ;;  %v10340_v63 = vld [vmem:[%s19770_s1 + $0x30] sm:$0xff]  ;;  %v11564_v9 = vunpack.i.h.bf16 %v14676_v25  ;;  %v10342_v25 = vld [vmem:[%s19770_s1 + $0x40] sm:$0xff] }
 0x19f   : > { %v14703_v1 = vpop.permute.xlu1 %11576  ;;  %v14716_v22 = vpack.c.bf16 %v10340_v63, %v10339_v12  ;;  %v14729_v12 = vunpack.i.l.bf16 %v14665_v32  ;;  %v2245_v60 = vsel %vm2228_vm2, %v2212_v55, %v11533_v2  ;;  %v2313_v32 = vsel %vm2294_vm4, %v2280_v14, %v14722_v51 }
 0x1a0   : > { %v11572_v56 = vpop.permute.xlu0 %11571  ;;  %v2278_v16 = vsel %vm2261_vm3, %v2245_v60, %v11543_v6  ;;  %v14763_v47 = vpack.c.bf16 %v10342_v25, %v10341_v45  ;;  %v11569_v63 = vunpack.i.h.bf16 %v14670_v53  ;;  %v11578_v60 = vunpack.i.l.bf16 %v14703_v1  ;;  %v3346_v45 = vld [vmem:[#allocation2 + $0x322] sm:$0xff] }
 0x1a1   : > { %11866 = vrot.lane.b32.xlu1 %v11865_v13, %s20153_s16  ;;  %20177 = vst [vmem:[#allocation51_spill] sm:$0xff] %v14729_v12  ;;  %10720 = vmatprep.subr.bf16.mxu0 %v14716_v22  ;;  %v11574_v58 = vunpack.i.h.bf16 %v11572_v56  ;;  %v11573_v48 = vunpack.i.l.bf16 %v11572_v56  ;;  %v2311_v4 = vsel %vm2294_vm4, %v2278_v16, %v14729_v12  ;;  %v10343_v56 = vld [vmem:[%s19770_s1 + $0x48] sm:$0xf] }
 0x1a2   : > { %11861 = vrot.lane.b32.xlu0 %v11860_v33, %s20153_s16  ;;  %10721 = vmatpush3.bf16.msra.mxu0 %v14716_v22  ;;  %v2279_v33 = vsel %vm2261_vm3, %v2246_v18, %v11544_v30  ;;  %20180 = vst [vmem:[#allocation54_spill] sm:$0xff] %v14763_v47  ;;  %v2344_v30 = vsel %vm2327_vm5, %v2311_v4, %v11563_v50  ;;  %v11579_v18 = vunpack.i.h.bf16 %v14703_v1 }
 0x1a3   : > { %v14739_v13 = vpop.permute.xlu1 %11586  ;;  %v2312_v10 = vsel %vm2294_vm4, %v2279_v33, %v14736_v62  ;;  %10722 = vmatprep.subr.bf16.mxu0 %v14763_v47  ;;  %v14779_v16 = vpack.c.bf16 %v10343_v56, %v10343_v56  ;;  %v2377_v53 = vsel %vm2360_vm6, %v2344_v30, %v11573_v48 }
 0x1a4   : > { %v11582_v55 = vpop.permute.xlu0 %11581  ;;  %v2345_v3 = vsel %vm2327_vm5, %v2312_v10, %v11564_v9  ;;  %v3347_v9 = vld [vmem:[#allocation2 + $0x32a] sm:$0xff]  ;;  %v11589_v1 = vunpack.i.h.bf16 %v14739_v13  ;;  %v11588_v25 = vunpack.i.l.bf16 %v14739_v13  ;;  %v3535_v13 = vld [vmem:[#allocation2 + $0x558] sm:$0xff] }
 0x1a5   : > { %11876 = vrot.lane.b32.xlu1 %v14678_v11, %s20159_s22  ;;  %v11584_v59 = vunpack.i.h.bf16 %v11582_v55  ;;  %v11583_v2 = vunpack.i.l.bf16 %v11582_v55  ;;  %20181 = vst [vmem:[#allocation55_spill] sm:$0xff] %v14779_v16  ;;  %v2378_v50 = vsel %vm2360_vm6, %v2345_v3, %v11574_v58  ;;  %v2314_v58 = vsel %vm2294_vm4, %v2281_v17, %v14747_v57  ;;  %v3536_v3 = vld [vmem:[#allocation2 + $0x560] sm:$0xff] }
 0x1a6   : > { %11871 = vrot.lane.b32.xlu0 %v14680_v34, %s20159_s22  ;;  %10723 = vmatpush3.bf16.msra.mxu0 %v14763_v47  ;;  %v11905_v46 = vpack.i.bf16 %v3347_v9, %v3346_v45  ;;  %v3349_v45 = vld [vmem:[#allocation2 + $0x362] sm:$0xff] }
 0x1a7   : > { %v14770_v6 = vpop.permute.xlu1 %11596  ;;  %v2410_v4 = vsel %vm2393_vm7, %v2377_v53, %v11583_v2  ;;  %v2411_v10 = vsel %vm2393_vm7, %v2378_v50, %v11584_v59  ;;  %11142 = vmatprep.subr.msk.bf16.mxu0 %vm2527_vm1, %v14779_v16  ;;  %v14802_v59 = vsel %vm2527_vm1, %v14779_v16, 0  ;;  %v2346_v2 = vsel %vm2327_vm5, %v2313_v32, %v11568_v39 }
 0x1a8   : > { %v11592_v14 = vpop.permute.xlu0 %11591  ;;  %20183 = vst [vmem:[#allocation56_spill] sm:$0xff] %v14802_v59  ;;  %v2379_v17 = vsel %vm2360_vm6, %v2346_v2, %v11578_v60  ;;  %v20186_v39 = vpack.i.bf16 %v14686_v61, %v14684_v26  ;;  %v3348_v60 = vld [vmem:[#allocation2 + $0x35a] sm:$0xff]  ;;  %v3378_v2 = vld [vmem:[#allocation2 + $0x328] sm:$0xff]  ;;  %v11598_v38 = vunpack.i.l.bf16 %v14770_v6 }
 0x1a9   : > { %v11594_v33 = vunpack.i.h.bf16 %v11592_v14  ;;  %v11593_v55 = vunpack.i.l.bf16 %v11592_v14  ;;  %11886 = vrot.lane.b32.xlu1 %v14682_v21, %s20182_s17  ;;  %v2347_v14 = vsel %vm2327_vm5, %v2314_v58, %v11569_v63  ;;  %v2412_v32 = vsel %vm2393_vm7, %v2379_v17, %v11588_v25  ;;  %v3537_v25 = vld [vmem:[#allocation2 + $0x590] sm:$0xff]  ;;  %v3538_v58 = vld [vmem:[#allocation2 + $0x598] sm:$0xff]  ;;  %v3412_v17 = vld [vmem:[#allocation2 + $0x4a4] sm:$0xff] }
 0x1aa   : > { %11881 = vrot.lane.b32.xlu0 %v14692_v54, %s20182_s17  ;;  %10725 = vmatpush3.bf16.msra.mxu0 %v14802_v59  ;;  %v11915_v26 = vpack.i.bf16 %v3349_v45, %v3348_v60  ;;  %v14832_v61 = vpack.i.bf16 %v3538_v58, %v3537_v25  ;;  %v3442_v45 = vld [vmem:[#allocation2 + $0x478] sm:$0xff] }
 0x1ab   : > { %v2443_v48 = vsel %vm2426_vm8, %v2410_v4, %v11593_v55  ;;  %v2444_v30 = vsel %vm2426_vm8, %v2411_v10, %v11594_v33  ;;  %v14798_v56 = vpop.permute.xlu1 %11606  ;;  %v2380_v55 = vsel %vm2360_vm6, %v2347_v14, %v11579_v18  ;;  %v20185_v10 = vpack.i.bf16 %v14674_v0, %v14672_v36  ;;  %v3379_v14 = vld [vmem:[#allocation2 + $0x330] sm:$0xff]  ;;  %v3478_v58 = vld [vmem:[#allocation2 + $0x5fc] sm:$0xff] }
 0x1ac   : > { %v11602_v53 = vpop.permute.xlu0 %11601  ;;  %v2467_v50 = vpack.c.bf16 %v2444_v30, %v2443_v48  ;;  %v2413_v63 = vsel %vm2393_vm7, %v2380_v55, %v11589_v1  ;;  %v14820_v18 = vpack.i.bf16 %v3536_v3, %v3535_v13  ;;  %v3380_v30 = vld [vmem:[#allocation2 + $0x360] sm:$0xff]  ;;  %v3381_v13 = vld [vmem:[#allocation2 + $0x368] sm:$0xff] }
 0x1ad   : > { %v11604_v33 = vunpack.i.h.bf16 %v11602_v53  ;;  %v11603_v4 = vunpack.i.l.bf16 %v11602_v53  ;;  %11896 = vrot.lane.b32.xlu1 %v20185_v10, %s20184_s23  ;;  %v3413_v55 = vld [vmem:[#allocation2 + $0x4ac] sm:$0xff]  ;;  %v3411_v10 = vld [vmem:[#allocation2 + $0x474] sm:$0xff] }
 0x1ae   : > { %11891 = vrot.lane.b32.xlu0 %v20186_v39, %s20184_s23  ;;  %10668 = vmatprep.mubr.msk.bf16.mxu0 %vm2478_vm9, %v2467_v50  ;;  %v11925_v50 = vpack.i.bf16 %v3381_v13, %v3380_v30  ;;  %v3445_v39 = vld [vmem:[#allocation2 + $0x4b8] sm:$0xff]  ;;  %v11935_v60 = vpack.i.bf16 %v3413_v55, %v3412_v17  ;;  %v14857_v17 = vld [vmem:[#allocation2 + $0x5c2] sm:$0xff]  ;;  %v14859_v55 = vld [vmem:[#allocation2 + $0x5ca] sm:$0xff] }
 0x1af   : > { %v2446_v36 = vsel %vm2426_vm8, %v2413_v63, %v11604_v33  ;;  %v2445_v0 = vsel %vm2426_vm8, %v2412_v32, %v11603_v4  ;;  %v14824_v9 = vpop.permute.xlu1 %11616  ;;  %v3410_v4 = vld [vmem:[#allocation2 + $0x46c] sm:$0xff]  ;;  %v14847_v13 = vld [vmem:[#allocation2 + $0x5fa] sm:$0xff] }
 0x1b0   : > { %v14826_v1 = vpop.permute.xlu0 %11611  ;;  %v2468_v48 = vpack.c.bf16 %v2446_v36, %v2445_v0  ;;  %v3444_v63 = vld [vmem:[#allocation2 + $0x4b0] sm:$0xff]  ;;  %v3443_v36 = vld [vmem:[#allocation2 + $0x480] sm:$0xff]  ;;  %v11930_v25 = vpack.i.bf16 %v3411_v10, %v3410_v4  ;;  %v11609_v4 = vunpack.i.h.bf16 %v14798_v56  ;;  %v11608_v10 = vunpack.i.l.bf16 %v14798_v56 }
 0x1b1   : > { %11906 = vrot.lane.b32.xlu1 %v11905_v46, %s20149_s0  ;;  %v11920_v46 = vpack.i.bf16 %v3379_v14, %v3378_v2  ;;  %v3477_v0 = vld [vmem:[#allocation2 + $0x5f4] sm:$0xff]  ;;  %v14849_v2 = vld [vmem:[#allocation2 + $0x602] sm:$0xff]  ;;  %v14853_v41 = vpack.i.bf16 %v3445_v39, %v3444_v63  ;;  %v11619_v59 = vunpack.i.h.bf16 %v14824_v9  ;;  %v11618_v56 = vunpack.i.l.bf16 %v14824_v9 }
 0x1b2   : > { %11901 = vrot.lane.b32.xlu0 %v14820_v18, %s20187_s20  ;;  %10669 = vmatmul.mubr.msk.bf16.gmra.mrb[16].mxu0 %vm2478_vm9, %v2468_v48  ;;  %v3475_v48 = vld [vmem:[#allocation2 + $0x5bc] sm:$0xff]  ;;  %v14866_v42 = vpack.i.bf16 %v3478_v58, %v3477_v0  ;;  %v3539_v39 = vld [vmem:[#allocation2 + $0x5c8] sm:$0xff]  ;;  %v11614_v58 = vunpack.i.h.bf16 %v14826_v1  ;;  %v11965_v16 = vpack.i.bf16 %v14849_v2, %v14847_v13  ;;  %v2218_v57 = vsel %vm446_vm0, %v905_v27, %v11608_v10 }
 0x1b3   : > { %v14834_v3 = vpop.permute.xlu1 %11626  ;;  %v14870_v63 = vld [vmem:[#allocation2 + $0x39a] sm:$0xff] }
 0x1b4   : > { %v14836_v53 = vpop.permute.xlu0 %11621  ;;  %v904_v0 = vld [vmem:[#allocation2 + $0x601] sm:$0xff]  ;;  %v11629_v47 = vunpack.i.h.bf16 %v14834_v3  ;;  %v11628_v9 = vunpack.i.l.bf16 %v14834_v3 }
 0x1b5   : > { %11916 = vrot.lane.b32.xlu1 %v11915_v26, %s20149_s0  ;;  %v3476_v26 = vld [vmem:[#allocation2 + $0x5c4] sm:$0xff]  ;;  %v11624_v51 = vunpack.i.h.bf16 %v14836_v53  ;;  %v11623_v13 = vunpack.i.l.bf16 %v14836_v53 }
 0x1b6   : > { %11911 = vrot.lane.b32.xlu0 %v14832_v61, %s20187_s20  ;;  %v14868_v37 = vpack.i.bf16 %v3476_v26, %v3475_v48  ;;  %v11613_v48 = vunpack.i.l.bf16 %v14826_v1  ;;  %v2219_v1 = vsel %vm446_vm0, %v906_v29, %v11609_v4 }
 0x1b7   : > { %v14841_v33 = vpop.permute.xlu1 %11636 }
 0x1b8   : > { %v11632_v32 = vpop.permute.xlu0 %11631 }
 0x1b9   : > { %11926 = vrot.lane.b32.xlu1 %v11925_v50, %s20152_s15  ;;  %v14855_v50 = vpack.i.bf16 %v3443_v36, %v3442_v45  ;;  %v3540_v45 = vld [vmem:[#allocation2 + $0x5d0] sm:$0xff]  ;;  %v11599_v36 = vunpack.i.h.bf16 %v14770_v6  ;;  %v11960_v6 = vpack.i.bf16 %v14859_v55, %v14857_v17  ;;  %v2251_v17 = vsel %vm2228_vm2, %v2218_v57, %v11618_v56 }
 0x1ba   : > { %11921 = vrot.lane.b32.xlu0 %v11920_v46, %s20152_s15  ;;  %v14861_v46 = vld [vmem:[#allocation2 + $0x392] sm:$0xff]  ;;  %v14889_v12 = vpack.i.bf16 %v3540_v45, %v3539_v39  ;;  %v2252_v55 = vsel %vm2228_vm2, %v2219_v1, %v11619_v59  ;;  %v14905_v4 = vunpack.i.h.bf16 %v11632_v32  ;;  %v14907_v53 = vunpack.i.l.bf16 %v11632_v32 }
 0x1bb   : > { %v14845_v30 = vpop.permute.xlu1 %11646  ;;  %v2217_v2 = vsel %vm446_vm0, %v904_v0, %v11599_v36  ;;  %v2284_v39 = vsel %vm2261_vm3, %v2251_v17, %v11628_v9  ;;  %v14918_v32 = vunpack.i.h.bf16 %v14841_v33 }
 0x1bc   : > { %v14851_v14 = vpop.permute.xlu0 %11641  ;;  %v2250_v27 = vsel %vm2228_vm2, %v2217_v2, %v11614_v58  ;;  %20188 = vst [vmem:[#allocation57_spill] sm:$0xff] %v14905_v4  ;;  %20189 = vst [vmem:[#allocation58_spill] sm:$0xff] %v14907_v53  ;;  %v14921_v58 = vunpack.i.l.bf16 %v14841_v33  ;;  %v11648_v9 = vunpack.i.l.bf16 %v14845_v30 }
 0x1bd   : > { %11936 = vrot.lane.b32.xlu1 %v11935_v60, %s20153_s16  ;;  %v903_v60 = vld [vmem:[#allocation2 + $0x5f9] sm:$0xff]  ;;  %v11644_v57 = vunpack.i.h.bf16 %v14851_v14  ;;  %v11643_v59 = vunpack.i.l.bf16 %v14851_v14  ;;  %v2283_v56 = vsel %vm2261_vm3, %v2250_v27, %v11624_v51  ;;  %20190 = vst [vmem:[#allocation59_spill] sm:$0xff] %v14918_v32 }
 0x1be   : > { %11931 = vrot.lane.b32.xlu0 %v11930_v25, %s20153_s16  ;;  %v2216_v3 = vsel %vm446_vm0, %v903_v60, %v11598_v38  ;;  %v2285_v38 = vsel %vm2261_vm3, %v2252_v55, %v11629_v47  ;;  %20191 = vst [vmem:[#allocation60_spill] sm:$0xff] %v14921_v58  ;;  %v2316_v51 = vsel %vm2294_vm4, %v2283_v56, %v14905_v4 }
 0x1bf   : > { %v14879_v26 = vpop.permute.xlu1 %11656  ;;  %v2249_v29 = vsel %vm2228_vm2, %v2216_v3, %v11613_v48 }
 0x1c0   : > { %v11652_v62 = vpop.permute.xlu0 %11651  ;;  %v2282_v36 = vsel %vm2261_vm3, %v2249_v29, %v11623_v13  ;;  %v2349_v13 = vsel %vm2327_vm5, %v2316_v51, %v11644_v57  ;;  %v11659_v2 = vunpack.i.h.bf16 %v14879_v26  ;;  %v11658_v3 = vunpack.i.l.bf16 %v14879_v26  ;;  %v3541_v51 = vld [vmem:[#allocation2 + $0x600] sm:$0xff] }
 0x1c1   : > { %11946 = vrot.lane.b32.xlu1 %v14853_v41, %s20159_s22  ;;  %v11654_v60 = vunpack.i.h.bf16 %v11652_v62  ;;  %v11653_v0 = vunpack.i.l.bf16 %v11652_v62  ;;  %v2315_v14 = vsel %vm2294_vm4, %v2282_v36, %v14907_v53  ;;  %v11649_v62 = vunpack.i.h.bf16 %v14845_v30  ;;  %v3352_v30 = vld [vmem:[#allocation2 + $0x3ca] sm:$0xff]  ;;  %v3353_v36 = vld [vmem:[#allocation2 + $0x3d2] sm:$0xff]  ;;  %v909_v53 = vld [vmem:[#allocation2 + $0x6a1] sm:$0xff] }
 0x1c2   : > { %11941 = vrot.lane.b32.xlu0 %v14855_v50, %s20159_s22  ;;  %v2348_v33 = vsel %vm2327_vm5, %v2315_v14, %v11643_v59  ;;  %v2317_v26 = vsel %vm2294_vm4, %v2284_v39, %v14921_v58 }
 0x1c3   : > { %v11667_v10 = vpop.permute.xlu1 %11666  ;;  %v2381_v55 = vsel %vm2360_vm6, %v2348_v33, %v11653_v0  ;;  %v2382_v27 = vsel %vm2360_vm6, %v2349_v13, %v11654_v60  ;;  %v2318_v60 = vsel %vm2294_vm4, %v2285_v38, %v14918_v32  ;;  %v11985_v13 = vpack.i.bf16 %v3353_v36, %v3352_v30  ;;  %v910_v32 = vld [vmem:[#allocation2 + $0x6a9] sm:$0xff] }
 0x1c4   : > { %v11662_v45 = vpop.permute.xlu0 %11661  ;;  %v11669_v56 = vunpack.i.h.bf16 %v11667_v10  ;;  %v11668_v25 = vunpack.i.l.bf16 %v11667_v10  ;;  %v3542_v10 = vld [vmem:[#allocation2 + $0x608] sm:$0xff] }
 0x1c5   : > { %11956 = vrot.lane.b32.xlu1 %v14866_v42, %s20182_s17  ;;  %v11664_v47 = vunpack.i.h.bf16 %v11662_v45  ;;  %v11663_v48 = vunpack.i.l.bf16 %v11662_v45 }
 0x1c6   : > { %11951 = vrot.lane.b32.xlu0 %v14868_v37, %s20182_s17 }
 0x1c7   : > { %v14931_v1 = vpop.permute.xlu1 %11676  ;;  %v2414_v59 = vsel %vm2393_vm7, %v2381_v55, %v11663_v48  ;;  %v2415_v57 = vsel %vm2393_vm7, %v2382_v27, %v11664_v47  ;;  %v2350_v48 = vsel %vm2327_vm5, %v2317_v26, %v11648_v9  ;;  %v2351_v47 = vsel %vm2327_vm5, %v2318_v60, %v11649_v62  ;;  %v3416_v26 = vld [vmem:[#allocation2 + $0x514] sm:$0xff]  ;;  %v3417_v60 = vld [vmem:[#allocation2 + $0x51c] sm:$0xff] }
 0x1c8   : > { %v11672_v17 = vpop.permute.xlu0 %11671  ;;  %v2383_v39 = vsel %vm2360_vm6, %v2350_v48, %v11658_v3  ;;  %v20192_v27 = vpack.i.bf16 %v14870_v63, %v14861_v46  ;;  %v14964_v62 = vpack.i.bf16 %v3542_v10, %v3541_v51  ;;  %v3384_v3 = vld [vmem:[#allocation2 + $0x3d0] sm:$0xff]  ;;  %v3382_v46 = vld [vmem:[#allocation2 + $0x398] sm:$0xff]  ;;  %v3383_v63 = vld [vmem:[#allocation2 + $0x3a0] sm:$0xff]  ;;  %v12005_v48 = vpack.i.bf16 %v3417_v60, %v3416_v26 }
 0x1c9   : > { %v11674_v29 = vunpack.i.h.bf16 %v11672_v17  ;;  %v11673_v45 = vunpack.i.l.bf16 %v11672_v17  ;;  %11966 = vrot.lane.b32.xlu1 %v11965_v16, %s20184_s23  ;;  %v2384_v17 = vsel %vm2360_vm6, %v2351_v47, %v11659_v2  ;;  %v3385_v2 = vld [vmem:[#allocation2 + $0x3d8] sm:$0xff]  ;;  %v3415_v51 = vld [vmem:[#allocation2 + $0x4e4] sm:$0xff]  ;;  %v11678_v4 = vunpack.i.l.bf16 %v14931_v1 }
 0x1ca   : > { %11961 = vrot.lane.b32.xlu0 %v11960_v6, %s20184_s23  ;;  %v2417_v9 = vsel %vm2393_vm7, %v2384_v17, %v11669_v56  ;;  %v3447_v17 = vld [vmem:[#allocation2 + $0x4f0] sm:$0xff] }
 0x1cb   : > { %v2447_v0 = vsel %vm2426_vm8, %v2414_v59, %v11673_v45  ;;  %v2448_v16 = vsel %vm2426_vm8, %v2415_v57, %v11674_v29  ;;  %v14949_v14 = vpop.permute.xlu1 %11686  ;;  %v2416_v29 = vsel %vm2393_vm7, %v2383_v39, %v11668_v25  ;;  %v11995_v59 = vpack.i.bf16 %v3385_v2, %v3384_v3  ;;  %v3446_v39 = vld [vmem:[#allocation2 + $0x4e8] sm:$0xff]  ;;  %v3480_v3 = vld [vmem:[#allocation2 + $0x634] sm:$0xff] }
 0x1cc   : > { %v11682_v33 = vpop.permute.xlu0 %11681  ;;  %v2469_v6 = vpack.c.bf16 %v2448_v16, %v2447_v0  ;;  %v11990_v57 = vpack.i.bf16 %v3383_v63, %v3382_v46  ;;  %v3414_v16 = vld [vmem:[#allocation2 + $0x4dc] sm:$0xff]  ;;  %v14987_v2 = vld [vmem:[#allocation2 + $0x66a] sm:$0xff]  ;;  %v14994_v46 = vld [vmem:[#allocation2 + $0x632] sm:$0xff] }
 0x1cd   : > { %v11684_v38 = vunpack.i.h.bf16 %v11682_v33  ;;  %v11683_v55 = vunpack.i.l.bf16 %v11682_v33  ;;  %11976 = vrot.lane.b32.xlu1 %v20192_v27, %s20149_s0  ;;  %v12000_v47 = vpack.i.bf16 %v3415_v51, %v3414_v16  ;;  %v3448_v33 = vld [vmem:[#allocation2 + $0x520] sm:$0xff]  ;;  %v3482_v27 = vld [vmem:[#allocation2 + $0x66c] sm:$0xff]  ;;  %v3543_v51 = vld [vmem:[#allocation2 + $0x638] sm:$0xff] }
 0x1ce   : > { %11971 = vrot.lane.b32.xlu0 %v14889_v12, %s20187_s20  ;;  %10672 = vmatprep.mubr.msk.bf16.mxu0 %vm2478_vm9, %v2469_v6  ;;  %v3449_v6 = vld [vmem:[#allocation2 + $0x528] sm:$0xff]  ;;  %v14996_v63 = vld [vmem:[#allocation2 + $0x63a] sm:$0xff] }
 0x1cf   : > { %v2450_v45 = vsel %vm2426_vm8, %v2417_v9, %v11684_v38  ;;  %v2449_v30 = vsel %vm2426_vm8, %v2416_v29, %v11683_v55  ;;  %v14968_v36 = vpop.permute.xlu1 %11696  ;;  %v3481_v55 = vld [vmem:[#allocation2 + $0x664] sm:$0xff]  ;;  %v14985_v29 = vpack.i.bf16 %v3449_v6, %v3448_v33  ;;  %v3479_v9 = vld [vmem:[#allocation2 + $0x62c] sm:$0xff]  ;;  %v11689_v33 = vunpack.i.h.bf16 %v14949_v14 }
 0x1d0   : > { %v14970_v25 = vpop.permute.xlu0 %11691  ;;  %v2470_v56 = vpack.c.bf16 %v2450_v45, %v2449_v30  ;;  %v14990_v45 = vpack.i.bf16 %v3447_v17, %v3446_v39  ;;  %v14992_v30 = vld [vmem:[#allocation2 + $0x672] sm:$0xff]  ;;  %v15006_v60 = vpack.i.bf16 %v3482_v27, %v3481_v55  ;;  %v15008_v16 = vpack.i.bf16 %v3480_v3, %v3479_v9  ;;  %v15020_v55 = vld [vmem:[#allocation2 + $0x442] sm:$0xff] }
 0x1d1   : > { %11986 = vrot.lane.b32.xlu1 %v11985_v13, %s20149_s0  ;;  %v11688_v6 = vunpack.i.l.bf16 %v14949_v14  ;;  %v12035_v39 = vpack.i.bf16 %v14992_v30, %v14987_v2  ;;  %v12030_v17 = vpack.i.bf16 %v14996_v63, %v14994_v46  ;;  %v3545_v27 = vld [vmem:[#allocation2 + $0x670] sm:$0xff]  ;;  %v3546_v9 = vld [vmem:[#allocation2 + $0x678] sm:$0xff]  ;;  %v11679_v3 = vunpack.i.h.bf16 %v14931_v1 }
 0x1d2   : > { %11981 = vrot.lane.b32.xlu0 %v14964_v62, %s20187_s20  ;;  %10673 = vmatmul.mubr.msk.bf16.gmra.mrb[20].mxu0 %vm2478_vm9, %v2470_v56  ;;  %v11699_v14 = vunpack.i.h.bf16 %v14968_v36  ;;  %v11698_v58 = vunpack.i.l.bf16 %v14968_v36  ;;  %v907_v2 = vld [vmem:[#allocation2 + $0x669] sm:$0xff]  ;;  %v908_v30 = vld [vmem:[#allocation2 + $0x671] sm:$0xff]  ;;  %v11694_v46 = vunpack.i.h.bf16 %v14970_v25  ;;  %v11693_v63 = vunpack.i.l.bf16 %v14970_v25 }
 0x1d3   : > { %v14976_v0 = vpop.permute.xlu1 %11706  ;;  %v15040_v7 = vpack.i.bf16 %v3546_v9, %v3545_v27  ;;  %v2223_v24 = vsel %vm446_vm0, %v910_v32, %v11689_v33  ;;  %v2222_v25 = vsel %vm446_vm0, %v909_v53, %v11688_v6 }
 0x1d4   : > { %v14978_v10 = vpop.permute.xlu0 %11701  ;;  %v11709_v31 = vunpack.i.h.bf16 %v14976_v0  ;;  %v11708_v36 = vunpack.i.l.bf16 %v14976_v0  ;;  %v2220_v0 = vsel %vm446_vm0, %v907_v2, %v11678_v4 }
 0x1d5   : > { %11996 = vrot.lane.b32.xlu1 %v11995_v59, %s20152_s15  ;;  %v15000_v59 = vld [vmem:[#allocation2 + $0x402] sm:$0xff]  ;;  %v11704_v52 = vunpack.i.h.bf16 %v14978_v10  ;;  %v2253_v32 = vsel %vm2228_vm2, %v2220_v0, %v11693_v63 }
 0x1d6   : > { %11991 = vrot.lane.b32.xlu0 %v11990_v57, %s20152_s15  ;;  %v15002_v57 = vld [vmem:[#allocation2 + $0x40a] sm:$0xff] }
 0x1d7   : > { %v14982_v13 = vpop.permute.xlu1 %11716  ;;  %v12045_v1 = vpack.i.bf16 %v15002_v57, %v15000_v59  ;;  %v11703_v59 = vunpack.i.l.bf16 %v14978_v10  ;;  %v2221_v57 = vsel %vm446_vm0, %v908_v30, %v11679_v3 }
 0x1d8   : > { %v11712_v38 = vpop.permute.xlu0 %11711  ;;  %v2254_v53 = vsel %vm2228_vm2, %v2221_v57, %v11694_v46  ;;  %v15071_v46 = vunpack.i.l.bf16 %v14982_v13 }
 0x1d9   : > { %12006 = vrot.lane.b32.xlu1 %v12005_v48, %s20153_s16  ;;  %v3544_v48 = vld [vmem:[#allocation2 + $0x640] sm:$0xff]  ;;  %v15056_v33 = vunpack.i.h.bf16 %v11712_v38  ;;  %v15058_v10 = vunpack.i.l.bf16 %v11712_v38  ;;  %v2286_v3 = vsel %vm2261_vm3, %v2253_v32, %v11703_v59  ;;  %v15068_v38 = vunpack.i.h.bf16 %v14982_v13 }
 0x1da   : > { %12001 = vrot.lane.b32.xlu0 %v12000_v47, %s20153_s16  ;;  %v15010_v47 = vld [vmem:[#allocation2 + $0x43a] sm:$0xff]  ;;  %v15034_v44 = vpack.i.bf16 %v3544_v48, %v3543_v51  ;;  %v2255_v51 = vsel %vm2228_vm2, %v2222_v25, %v11698_v58  ;;  %v2256_v48 = vsel %vm2228_vm2, %v2223_v24, %v11699_v14  ;;  %v2287_v14 = vsel %vm2261_vm3, %v2254_v53, %v11704_v52 }
 0x1db   : > { %v14998_v56 = vpop.permute.xlu1 %11726  ;;  %v12055_v5 = vpack.i.bf16 %v15020_v55, %v15010_v47  ;;  %20193 = vst [vmem:[#allocation61_spill] sm:$0xff] %v15056_v33  ;;  %20194 = vst [vmem:[#allocation62_spill] sm:$0xff] %v15058_v10  ;;  %v2288_v27 = vsel %vm2261_vm3, %v2255_v51, %v11708_v36  ;;  %v2289_v4 = vsel %vm2261_vm3, %v2256_v48, %v11709_v31  ;;  %v3485_v55 = vld [vmem:[#allocation2 + $0x6d4] sm:$0xff] }
 0x1dc   : > { %v15004_v26 = vpop.permute.xlu0 %11721  ;;  %20195 = vst [vmem:[#allocation63_spill] sm:$0xff] %v15068_v38  ;;  %20196 = vst [vmem:[#allocation64_spill] sm:$0xff] %v15071_v46  ;;  %v2320_v52 = vsel %vm2294_vm4, %v2287_v14, %v15056_v33 }
 0x1dd   : > { %12016 = vrot.lane.b32.xlu1 %v14985_v29, %s20159_s22  ;;  %v11724_v58 = vunpack.i.h.bf16 %v15004_v26  ;;  %v11723_v24 = vunpack.i.l.bf16 %v15004_v26  ;;  %v2319_v26 = vsel %vm2294_vm4, %v2286_v3, %v15058_v10  ;;  %v5733_v10 = vld [vmem:[#allocation2 + $0x6ce] sm:$0xff] }
 0x1de   : > { %12011 = vrot.lane.b32.xlu0 %v14990_v45, %s20159_s22 }
 0x1df   : > { %v15030_v15 = vpop.permute.xlu1 %11736  ;;  %v2352_v25 = vsel %vm2327_vm5, %v2319_v26, %v11723_v24  ;;  %v2353_v13 = vsel %vm2327_vm5, %v2320_v52, %v11724_v58  ;;  %v2322_v58 = vsel %vm2294_vm4, %v2289_v4, %v15068_v38  ;;  %v5734_v38 = vld [vmem:[#allocation2 + $0x6d6] sm:$0xff] }
 0x1e0   : > { %v11732_v23 = vpop.permute.xlu0 %11731  ;;  %v11739_v59 = vunpack.i.h.bf16 %v15030_v15 }
 0x1e1   : > { %12026 = vrot.lane.b32.xlu1 %v15006_v60, %s20182_s17  ;;  %v11734_v2 = vunpack.i.h.bf16 %v11732_v23  ;;  %v11733_v30 = vunpack.i.l.bf16 %v11732_v23  ;;  %v11729_v23 = vunpack.i.h.bf16 %v14998_v56 }
 0x1e2   : > { %12021 = vrot.lane.b32.xlu0 %v15008_v16, %s20182_s17 }
 0x1e3   : > { %v11747_v6 = vpop.permute.xlu1 %11746  ;;  %v2385_v0 = vsel %vm2360_vm6, %v2352_v25, %v11733_v30  ;;  %v2386_v51 = vsel %vm2360_vm6, %v2353_v13, %v11734_v2  ;;  %v2355_v2 = vsel %vm2327_vm5, %v2322_v58, %v11729_v23  ;;  %v3547_v58 = vld [vmem:[#allocation2 + $0x6a8] sm:$0xff] }
 0x1e4   : > { %v11742_v9 = vpop.permute.xlu0 %11741  ;;  %v11748_v32 = vunpack.i.l.bf16 %v11747_v6  ;;  %v2388_v26 = vsel %vm2360_vm6, %v2355_v2, %v11739_v59  ;;  %v3548_v2 = vld [vmem:[#allocation2 + $0x6b0] sm:$0xff] }
 0x1e5   : > { %12036 = vrot.lane.b32.xlu1 %v12035_v39, %s20184_s23  ;;  %v11744_v31 = vunpack.i.h.bf16 %v11742_v9  ;;  %v11743_v63 = vunpack.i.l.bf16 %v11742_v9  ;;  %v11728_v39 = vunpack.i.l.bf16 %v14998_v56  ;;  %v11749_v56 = vunpack.i.h.bf16 %v11747_v6 }
 0x1e6   : > { %12031 = vrot.lane.b32.xlu0 %v12030_v17, %s20184_s23  ;;  %v11738_v17 = vunpack.i.l.bf16 %v15030_v15  ;;  %v2321_v15 = vsel %vm2294_vm4, %v2288_v27, %v15071_v46 }
 0x1e7   : > { %v15080_v36 = vpop.permute.xlu1 %11756  ;;  %v2418_v9 = vsel %vm2393_vm7, %v2385_v0, %v11743_v63  ;;  %v2419_v24 = vsel %vm2393_vm7, %v2386_v51, %v11744_v31  ;;  %v2354_v6 = vsel %vm2327_vm5, %v2321_v15, %v11728_v39  ;;  %v2421_v25 = vsel %vm2393_vm7, %v2388_v26, %v11749_v56  ;;  %v3483_v0 = vld [vmem:[#allocation2 + $0x69c] sm:$0xff]  ;;  %v3484_v51 = vld [vmem:[#allocation2 + $0x6a4] sm:$0xff]  ;;  %v913_v26 = vld [vmem:[#allocation2 + $0x711] sm:$0xff] }
 0x1e8   : > { %v11752_v57 = vpop.permute.xlu0 %11751  ;;  %v2387_v63 = vsel %vm2360_vm6, %v2354_v6, %v11738_v17  ;;  %v15137_v56 = vld [vmem:[#allocation2 + $0x6aa] sm:$0xff]  ;;  %v15143_v15 = vld [vmem:[#allocation2 + $0x47a] sm:$0xff] }
 0x1e9   : > { %v11754_v48 = vunpack.i.h.bf16 %v11752_v57  ;;  %v11753_v53 = vunpack.i.l.bf16 %v11752_v57  ;;  %12046 = vrot.lane.b32.xlu1 %v12045_v1, %s20149_s0  ;;  %v2420_v4 = vsel %vm2393_vm7, %v2387_v63, %v11748_v32  ;;  %v3486_v57 = vld [vmem:[#allocation2 + $0x6dc] sm:$0xff]  ;;  %v11758_v63 = vunpack.i.l.bf16 %v15080_v36 }
 0x1ea   : > { %12041 = vrot.lane.b32.xlu0 %v15034_v44, %s20187_s20  ;;  %v912_v32 = vld [vmem:[#allocation2 + $0x6e1] sm:$0xff] }
 0x1eb   : > { %v2451_v3 = vsel %vm2426_vm8, %v2418_v9, %v11753_v53  ;;  %v2452_v14 = vsel %vm2426_vm8, %v2419_v24, %v11754_v48  ;;  %v15099_v1 = vpop.permute.xlu1 %11766  ;;  %v3518_v48 = vld [vmem:[#allocation2 + $0x6e2] sm:$0xff]  ;;  %v15139_v24 = vpack.i.bf16 %v3486_v57, %v3485_v55 }
 0x1ec   : > { %v11762_v30 = vpop.permute.xlu0 %11761  ;;  %v2471_v31 = vpack.c.bf16 %v2452_v14, %v2451_v3  ;;  %v15135_v53 = vld [vmem:[#allocation2 + $0x6a2] sm:$0xff]  ;;  %v11768_v3 = vunpack.i.l.bf16 %v15099_v1  ;;  %v15149_v14 = vpack.i.bf16 %v3484_v51, %v3483_v0 }
 0x1ed   : > { %v11764_v27 = vunpack.i.h.bf16 %v11762_v30  ;;  %v11763_v52 = vunpack.i.l.bf16 %v11762_v30  ;;  %12056 = vrot.lane.b32.xlu1 %v12055_v5, %s20149_s0  ;;  %v15152_v30 = vld [vmem:[#allocation2 + $0x4aa] sm:$0xff] }
 0x1ee   : > { %12051 = vrot.lane.b32.xlu0 %v15040_v7, %s20187_s20  ;;  %10676 = vmatprep.mubr.msk.bf16.mxu0 %vm2478_vm9, %v2471_v31  ;;  %v15154_v31 = vld [vmem:[#allocation2 + $0x4b2] sm:$0xff] }
 0x1ef   : > { %v2454_v23 = vsel %vm2426_vm8, %v2421_v25, %v11764_v27  ;;  %v2453_v39 = vsel %vm2426_vm8, %v2420_v4, %v11763_v52  ;;  %v15116_v13 = vpop.permute.xlu1 %11776  ;;  %v11769_v27 = vunpack.i.h.bf16 %v15099_v1  ;;  %v3549_v4 = vld [vmem:[#allocation2 + $0x6e0] sm:$0xff]  ;;  %v3550_v25 = vld [vmem:[#allocation2 + $0x6e8] sm:$0xff] }
 0x1f0   : > { %v15118_v59 = vpop.permute.xlu0 %11771  ;;  %v2472_v17 = vpack.c.bf16 %v2454_v23, %v2453_v39  ;;  %v11778_v52 = vunpack.i.l.bf16 %v15116_v13  ;;  %v911_v23 = vld [vmem:[#allocation2 + $0x6d9] sm:$0xff] }
 0x1f1   : > { %12066 = vrot.lane.b32.xlu1 %v14678_v11, %s20152_s15  ;;  %v15133_v11 = vld [vmem:[#allocation2 + $0x6da] sm:$0xff]  ;;  %v11774_v55 = vunpack.i.h.bf16 %v15118_v59 }
 0x1f2   : > { %12061 = vrot.lane.b32.xlu0 %v14680_v34, %s20152_s15  ;;  %10677 = vmatmul.mubr.msk.bf16.gmra.mrb[24].mxu0 %vm2478_vm9, %v2472_v17  ;;  %v12105_v6 = vpack.i.bf16 %v3518_v48, %v15133_v11  ;;  %v914_v39 = vld [vmem:[#allocation2 + $0x719] sm:$0xff]  ;;  %v11779_v17 = vunpack.i.h.bf16 %v15116_v13  ;;  %v15170_v11 = vpack.i.bf16 %v3548_v2, %v3547_v58  ;;  %v12125_v48 = vpack.i.bf16 %v15154_v31, %v15152_v30 }
 0x1f3   : > { %v15125_v5 = vpop.permute.xlu1 %11786 }
 0x1f4   : > { %v15127_v47 = vpop.permute.xlu0 %11781  ;;  %v11789_v0 = vunpack.i.h.bf16 %v15125_v5 }
 0x1f5   : > { %12076 = vrot.lane.b32.xlu1 %v14682_v21, %s20153_s16  ;;  %v15141_v21 = vld [vmem:[#allocation2 + $0x472] sm:$0xff]  ;;  %v11784_v58 = vunpack.i.h.bf16 %v15127_v47 }
 0x1f6   : > { %12071 = vrot.lane.b32.xlu0 %v14692_v54, %s20153_s16  ;;  %v11759_v54 = vunpack.i.h.bf16 %v15080_v36  ;;  %v11773_v36 = vunpack.i.l.bf16 %v15118_v59  ;;  %v12115_v1 = vpack.i.bf16 %v15143_v15, %v15141_v21  ;;  %v11783_v59 = vunpack.i.l.bf16 %v15127_v47 }
 0x1f7   : > { %v11797_v34 = vpop.permute.xlu1 %11796  ;;  %v2224_v21 = vsel %vm446_vm0, %v911_v23, %v11758_v63 }
 0x1f8   : > { %v11792_v9 = vpop.permute.xlu0 %11791  ;;  %v2225_v13 = vsel %vm446_vm0, %v912_v32, %v11759_v54  ;;  %v15190_v2 = vunpack.i.l.bf16 %v11797_v34 }
 0x1f9   : > { %12086 = vrot.lane.b32.xlu1 %v14832_v61, %s20159_s22  ;;  %v12100_v61 = vpack.i.bf16 %v15137_v56, %v15135_v53  ;;  %v2226_v53 = vsel %vm446_vm0, %v913_v26, %v11768_v3  ;;  %v15179_v56 = vpack.i.bf16 %v3550_v25, %v3549_v4  ;;  %v2258_v54 = vsel %vm2228_vm2, %v2225_v13, %v11774_v55 }
 0x1fa   : > { %12081 = vrot.lane.b32.xlu0 %v14820_v18, %s20159_s22  ;;  %v11788_v18 = vunpack.i.l.bf16 %v15125_v5  ;;  %v2227_v5 = vsel %vm446_vm0, %v914_v39, %v11769_v27  ;;  %v2259_v15 = vsel %vm2228_vm2, %v2226_v53, %v11778_v52  ;;  %v2257_v3 = vsel %vm2228_vm2, %v2224_v21, %v11773_v36  ;;  %20197 = vst [vmem:[#allocation65_spill] sm:$0xff] %v15190_v2 }
 0x1fb   : > { %v11807_v57 = vpop.permute.xlu1 %11806  ;;  %v2260_v32 = vsel %vm2228_vm2, %v2227_v5, %v11779_v17  ;;  %v15194_v4 = vunpack.i.h.bf16 %v11797_v34  ;;  %v15196_v52 = vunpack.i.l.bf16 %v11792_v9  ;;  %v2290_v25 = vsel %vm2261_vm3, %v2257_v3, %v11783_v59 }
 0x1fc   : > { %v11802_v51 = vpop.permute.xlu0 %11801  ;;  %v2292_v63 = vsel %vm2261_vm3, %v2259_v15, %v11788_v18  ;;  %v2293_v27 = vsel %vm2261_vm3, %v2260_v32, %v11789_v0  ;;  %v15199_v23 = vunpack.i.h.bf16 %v11792_v9  ;;  %v11809_v39 = vunpack.i.h.bf16 %v11807_v57 }
 0x1fd   : > { %12096 = vrot.lane.b32.xlu1 %v15139_v24, %s20182_s17  ;;  %20198 = vst [vmem:[#allocation66_spill] sm:$0xff] %v15194_v4  ;;  %20199 = vst [vmem:[#allocation67_spill] sm:$0xff] %v15196_v52  ;;  %v11808_v17 = vunpack.i.l.bf16 %v11807_v57  ;;  %v2291_v55 = vsel %vm2261_vm3, %v2258_v54, %v11784_v58  ;;  %v11804_v36 = vunpack.i.h.bf16 %v11802_v51  ;;  %v11803_v13 = vunpack.i.l.bf16 %v11802_v51 }
 0x1fe   : > { %12091 = vrot.lane.b32.xlu0 %v15149_v14, %s20182_s17  ;;  %20200 = vst [vmem:[#allocation68_spill] sm:$0xff] %v15199_v23  ;;  %v2325_v34 = vsel %vm2294_vm4, %v2292_v63, %v15190_v2  ;;  %v2326_v9 = vsel %vm2294_vm4, %v2293_v27, %v15194_v4  ;;  %v2324_v51 = vsel %vm2294_vm4, %v2291_v55, %v15199_v23  ;;  %v3365_v23 = vld [vmem:[#allocation2 + $0x522] sm:$0xff]  ;;  %v5699_v2 = vld [vmem:[#allocation2 + $0x416] sm:$0xff] }
 0x1ff   : > { %v11817_v26 = vpop.permute.xlu1 %11816  ;;  %v2359_v58 = vsel %vm2327_vm5, %v2326_v9, %v11809_v39 }
 0x200   : > { %v11812_v47 = vpop.permute.xlu0 %11811  ;;  %v11818_v18 = vunpack.i.l.bf16 %v11817_v26  ;;  %v11819_v0 = vunpack.i.h.bf16 %v11817_v26  ;;  %v2357_v26 = vsel %vm2327_vm5, %v2324_v51, %v11804_v36 }
 0x201   : > { %12106 = vrot.lane.b32.xlu1 %v12105_v6, %s20184_s23  ;;  %v11814_v53 = vunpack.i.h.bf16 %v11812_v47  ;;  %v11813_v21 = vunpack.i.l.bf16 %v11812_v47  ;;  %v2323_v6 = vsel %vm2294_vm4, %v2290_v25, %v15196_v52  ;;  %v3553_v52 = vld [vmem:[#allocation2 + $0x750] sm:$0xff] }
 0x202   : > { %12101 = vrot.lane.b32.xlu0 %v12100_v61, %s20184_s23  ;;  %v2358_v61 = vsel %vm2327_vm5, %v2325_v34, %v11808_v17  ;;  %v2356_v3 = vsel %vm2327_vm5, %v2323_v6, %v11803_v13  ;;  %v2392_v25 = vsel %vm2360_vm6, %v2359_v58, %v11819_v0 }
 0x203   : > { %v11827_v59 = vpop.permute.xlu1 %11826  ;;  %v2391_v63 = vsel %vm2360_vm6, %v2358_v61, %v11818_v18  ;;  %v2389_v39 = vsel %vm2360_vm6, %v2356_v3, %v11813_v21  ;;  %v2390_v17 = vsel %vm2360_vm6, %v2357_v26, %v11814_v53 }
 0x204   : > { %v11829_v57 = vunpack.i.h.bf16 %v11827_v59  ;;  %v11828_v5 = vunpack.i.l.bf16 %v11827_v59  ;;  %v11822_v15 = vpop.permute.xlu0 %11821 }
 0x205   : > { %v11823_v32 = vunpack.i.l.bf16 %v11822_v15  ;;  %v15214_v54 = vpop.f32.mrb[0].mxu0  ;;  %12116 = vrot.lane.b32.xlu1 %v12115_v1, %s20149_s0  ;;  %v11824_v27 = vunpack.i.h.bf16 %v11822_v15 }
 0x206   : > { %12111 = vrot.lane.b32.xlu0 %v15170_v11, %s20187_s20  ;;  %v15222_v47 = vpop.f32.mrb[1].mxu0  ;;  %v2424_v1 = vsel %vm2393_vm7, %v2391_v63, %v11828_v5  ;;  %v2425_v36 = vsel %vm2393_vm7, %v2392_v25, %v11829_v57  ;;  %v2697_v58 = vsel %vm2426_vm8, %v15214_v54, 0.0 }
 0x207   : > { %v15228_v55 = vpop.f32.mrb[2].mxu0  ;;  %v11837_v13 = vpop.permute.xlu1 %11836  ;;  %v2422_v18 = vsel %vm2393_vm7, %v2389_v39, %v11823_v32  ;;  %v2694_v0 = vsel %vm2426_vm8, %v15222_v47, 0.0  ;;  %v2423_v57 = vsel %vm2393_vm7, %v2390_v17, %v11824_v27 }
 0x208   : > { %v11839_v34 = vunpack.i.h.bf16 %v11837_v13  ;;  %v11838_v59 = vunpack.i.l.bf16 %v11837_v13  ;;  %v11832_v9 = vpop.permute.xlu0 %11831  ;;  %v15232_v6 = vpop.f32.mrb[3].mxu0  ;;  %v2699_v27 = vsel %vm2426_vm8, %v15228_v55, 0.0  ;;  %v3490_v13 = vld [vmem:[#allocation2 + $0x74c] sm:$0xff] }
 0x209   : > { %v11834_v21 = vunpack.i.h.bf16 %v11832_v9  ;;  %v11833_v15 = vunpack.i.l.bf16 %v11832_v9  ;;  %v2695_v53 = vsel %vm2426_vm8, %v15232_v6, 0.0  ;;  %12126 = vrot.lane.b32.xlu1 %v12125_v48, %s20149_s0 }
 0x20a   : > { %v2457_v5 = vsel %vm2426_vm8, %v2424_v1, %v11838_v59  ;;  %v2458_v51 = vsel %vm2426_vm8, %v2425_v36, %v11839_v34  ;;  %v2696_v61 = vadd.f32 %v2695_v53, %v2694_v0  ;;  %12121 = vrot.lane.b32.xlu0 %v15179_v56, %s20187_s20  ;;  %v3489_v1 = vld [vmem:[#allocation2 + $0x744] sm:$0xff]  ;;  %v3487_v36 = vld [vmem:[#allocation2 + $0x70c] sm:$0xff] }
 0x20b   : > { %v2455_v32 = vsel %vm2426_vm8, %v2422_v18, %v11833_v15  ;;  %v2456_v3 = vsel %vm2426_vm8, %v2423_v57, %v11834_v21  ;;  %v11847_v26 = vpop.permute.xlu1 %11846  ;;  %v2474_v30 = vpack.c.bf16 %v2458_v51, %v2457_v5  ;;  %v3488_v18 = vld [vmem:[#allocation2 + $0x714] sm:$0xff]  ;;  %v15267_v9 = vpack.i.bf16 %v3490_v13, %v3489_v1  ;;  %v3521_v0 = vld [vmem:[#allocation2 + $0x74a] sm:$0xff] }
 0x20c   : > { %v2698_v31 = vadd.f32 %v2697_v58, %v2696_v61  ;;  %v11842_v48 = vpop.permute.xlu0 %11841  ;;  %v2473_v63 = vpack.c.bf16 %v2456_v3, %v2455_v32  ;;  %v11849_v34 = vunpack.i.h.bf16 %v11847_v26  ;;  %v11848_v59 = vunpack.i.l.bf16 %v11847_v26  ;;  %v3522_v21 = vld [vmem:[#allocation2 + $0x752] sm:$0xff]  ;;  %v3312_v15 = vld [vmem:[#allocation2 + $0x2e4] sm:$0xff]  ;;  %v3520_v32 = vld [vmem:[#allocation2 + $0x71a] sm:$0xff] }
 0x20d   : > { %12136 = vrot.lane.b32.xlu1 %v14853_v41, %s20152_s15  ;;  %v3310_v53 = vld [vmem:[#allocation2 + $0x2ac] sm:$0xff]  ;;  %v11844_v57 = vunpack.i.h.bf16 %v11842_v48  ;;  %v15271_v5 = vpack.i.bf16 %v3488_v18, %v3487_v36  ;;  %v3311_v51 = vld [vmem:[#allocation2 + $0x2b4] sm:$0xff] }
 0x20e   : > { %12131 = vrot.lane.b32.xlu0 %v14855_v50, %s20152_s15  ;;  %10680 = vmatprep.mubr.msk.bf16.mxu0 %vm2478_vm9, %v2473_v63  ;;  %v15258_v25 = vadd.f32 %v2699_v27, %v2698_v31  ;;  %v3519_v58 = vld [vmem:[#allocation2 + $0x712] sm:$0xff]  ;;  %v4465_v63 = vsel %vm446_vm0, %v3312_v15, %v11848_v59  ;;  %v3363_v36 = vld [vmem:[#allocation2 + $0x4ea] sm:$0xff] }
 0x20f   : > { %10681 = vmatmul.mubr.msk.bf16.gmra.mrb[28].mxu0 %vm2478_vm9, %v2474_v30  ;;  %v11857_v39 = vpop.permute.xlu1 %11856  ;;  %v12175_v30 = vpack.i.bf16 %v3522_v21, %v3521_v0  ;;  %v12170_v13 = vpack.i.bf16 %v3520_v32, %v3519_v58  ;;  %v3551_v59 = vld [vmem:[#allocation2 + $0x718] sm:$0xff]  ;;  %v3552_v21 = vld [vmem:[#allocation2 + $0x720] sm:$0xff] }
 0x210   : > { %v11852_v17 = vpop.permute.xlu0 %11851  ;;  %v11858_v3 = vunpack.i.l.bf16 %v11857_v39  ;;  %v3364_v32 = vld [vmem:[#allocation2 + $0x51a] sm:$0xff] }
 0x211   : > { %12146 = vrot.lane.b32.xlu1 %v14866_v42, %s20153_s16  ;;  %v3313_v42 = vld [vmem:[#allocation2 + $0x2ec] sm:$0xff]  ;;  %v11854_v27 = vunpack.i.h.bf16 %v11852_v17 }
 0x212   : > { %12141 = vrot.lane.b32.xlu0 %v14868_v37, %s20153_s16  ;;  %v11843_v37 = vunpack.i.l.bf16 %v11842_v48  ;;  %v4466_v31 = vsel %vm446_vm0, %v3313_v42, %v11849_v34  ;;  %v11853_v48 = vunpack.i.l.bf16 %v11852_v17  ;;  %v4497_v17 = vsel %vm2228_vm2, %v4465_v63, %v11858_v3  ;;  %v3554_v3 = vld [vmem:[#allocation2 + $0x758] sm:$0xff] }
 0x213   : > { %v11867_v41 = vpop.permute.xlu1 %11866 }
 0x214   : > { %v11862_v50 = vpop.permute.xlu0 %11861  ;;  %v4463_v1 = vsel %vm446_vm0, %v3310_v53, %v11843_v37  ;;  %v11869_v18 = vunpack.i.h.bf16 %v11867_v41  ;;  %v11868_v0 = vunpack.i.l.bf16 %v11867_v41  ;;  %v15291_v41 = vpack.i.bf16 %v3552_v21, %v3551_v59 }
 0x215   : > { %12156 = vrot.lane.b32.xlu1 %v14964_v62, %s20159_s22  ;;  %v11859_v62 = vunpack.i.h.bf16 %v11857_v39  ;;  %v3362_v39 = vld [vmem:[#allocation2 + $0x4e2] sm:$0xff]  ;;  %v11864_v42 = vunpack.i.h.bf16 %v11862_v50  ;;  %v4495_v53 = vsel %vm2228_vm2, %v4463_v1, %v11853_v48  ;;  %v15299_v59 = vpack.i.bf16 %v3554_v3, %v3553_v52 }
 0x216   : > { %12151 = vrot.lane.b32.xlu0 %v14889_v12, %s20159_s22  ;;  %v4464_v12 = vsel %vm446_vm0, %v3311_v51, %v11844_v57  ;;  %v11863_v57 = vunpack.i.l.bf16 %v11862_v50  ;;  %v12185_v58 = vpack.i.bf16 %v3363_v36, %v3362_v39  ;;  %v12195_v36 = vpack.i.bf16 %v3365_v23, %v3364_v32 }
 0x217   : > { %v15273_v61 = vpop.permute.xlu1 %11876  ;;  %v4498_v15 = vsel %vm2228_vm2, %v4466_v31, %v11859_v62  ;;  %v4496_v37 = vsel %vm2228_vm2, %v4464_v12, %v11854_v27  ;;  %v4529_v62 = vsel %vm2261_vm3, %v4497_v17, %v11868_v0 }
 0x218   : > { %v11872_v26 = vpop.permute.xlu0 %11871  ;;  %v4530_v50 = vsel %vm2261_vm3, %v4498_v15, %v11869_v18  ;;  %v11878_v31 = vunpack.i.l.bf16 %v15273_v61  ;;  %v4527_v27 = vsel %vm2261_vm3, %v4495_v53, %v11863_v57  ;;  %v4561_v18 = vsel %vm2294_vm4, %v4529_v62, %v14255_v20 }
 0x219   : > { %12166 = vrot.lane.b32.xlu1 %v15267_v9, %s20182_s17  ;;  %v11874_v48 = vunpack.i.h.bf16 %v11872_v26  ;;  %v11873_v12 = vunpack.i.l.bf16 %v11872_v26  ;;  %v4562_v0 = vsel %vm2294_vm4, %v4530_v50, %v14252_v19  ;;  %v11879_v26 = vunpack.i.h.bf16 %v15273_v61  ;;  %v3399_v19 = vld [vmem:[#allocation2 + $0x560] sm:$0xff] }
 0x21a   : > { %12161 = vrot.lane.b32.xlu0 %v15271_v5, %s20182_s17  ;;  %v4593_v15 = vsel %vm2327_vm5, %v4561_v18, %v11878_v31  ;;  %v4559_v23 = vsel %vm2294_vm4, %v4527_v27, %v14241_v35  ;;  %v3400_v35 = vld [vmem:[#allocation2 + $0x590] sm:$0xff] }
 0x21b   : > { %v15283_v34 = vpop.permute.xlu1 %11886  ;;  %v4591_v57 = vsel %vm2327_vm5, %v4559_v23, %v11873_v12  ;;  %v4594_v12 = vsel %vm2327_vm5, %v4562_v0, %v11879_v26 }
 0x21c   : > { %v11882_v51 = vpop.permute.xlu0 %11881  ;;  %v11889_v53 = vunpack.i.h.bf16 %v15283_v34 }
 0x21d   : > { %12176 = vrot.lane.b32.xlu1 %v12175_v30, %s20184_s23  ;;  %v4528_v30 = vsel %vm2261_vm3, %v4496_v37, %v11864_v42  ;;  %v11883_v39 = vunpack.i.l.bf16 %v11882_v51  ;;  %v11888_v37 = vunpack.i.l.bf16 %v15283_v34 }
 0x21e   : > { %12171 = vrot.lane.b32.xlu0 %v12170_v13, %s20184_s23  ;;  %v11884_v13 = vunpack.i.h.bf16 %v11882_v51  ;;  %v4560_v52 = vsel %vm2294_vm4, %v4528_v30, %v14239_v40  ;;  %v3368_v40 = vld [vmem:[#allocation2 + $0x58a] sm:$0xff] }
 0x21f   : > { %v11897_v63 = vpop.permute.xlu1 %11896  ;;  %v4592_v51 = vsel %vm2327_vm5, %v4560_v52, %v11874_v48  ;;  %v4623_v61 = vsel %vm2360_vm6, %v4591_v57, %v11883_v39  ;;  %v4625_v18 = vsel %vm2360_vm6, %v4593_v15, %v11888_v37 }
 0x220   : > { %v11892_v1 = vpop.permute.xlu0 %11891  ;;  %v4624_v32 = vsel %vm2360_vm6, %v4592_v51, %v11884_v13  ;;  %v11899_v31 = vunpack.i.h.bf16 %v11897_v63  ;;  %v11898_v27 = vunpack.i.l.bf16 %v11897_v63 }
 0x221   : > { %12186 = vrot.lane.b32.xlu1 %v12185_v58, %s20149_s0  ;;  %v11894_v21 = vunpack.i.h.bf16 %v11892_v1  ;;  %v11893_v17 = vunpack.i.l.bf16 %v11892_v1 }
 0x222   : > { %12181 = vrot.lane.b32.xlu0 %v15291_v41, %s20187_s20 }
 0x223   : > { %v15313_v42 = vpop.permute.xlu1 %11906  ;;  %v4655_v30 = vsel %vm2393_vm7, %v4623_v61, %v11893_v17  ;;  %v4656_v48 = vsel %vm2393_vm7, %v4624_v32, %v11894_v21  ;;  %v4626_v21 = vsel %vm2360_vm6, %v4594_v12, %v11889_v53  ;;  %v3491_v12 = vld [vmem:[#allocation2 + $0x77c] sm:$0xff] }
 0x224   : > { %v11902_v58 = vpop.permute.xlu0 %11901  ;;  %v4658_v15 = vsel %vm2393_vm7, %v4626_v21, %v11899_v31 }
 0x225   : > { %v11904_v3 = vunpack.i.h.bf16 %v11902_v58  ;;  %v11903_v62 = vunpack.i.l.bf16 %v11902_v58  ;;  %v15321_v50 = vpop.f32.mrb[4].mxu0  ;;  %12196 = vrot.lane.b32.xlu1 %v12195_v36, %s20149_s0  ;;  %v4657_v58 = vsel %vm2393_vm7, %v4625_v18, %v11898_v27  ;;  %v3494_v27 = vld [vmem:[#allocation2 + $0x7bc] sm:$0xff]  ;;  %v11909_v18 = vunpack.i.h.bf16 %v15313_v42 }
 0x226   : > { %12191 = vrot.lane.b32.xlu0 %v15299_v59, %s20187_s20  ;;  %v15328_v34 = vpop.f32.mrb[5].mxu0 }
 0x227   : > { %v4687_v1 = vsel %vm2426_vm8, %v4655_v30, %v11903_v62  ;;  %v4688_v13 = vsel %vm2426_vm8, %v4656_v48, %v11904_v3  ;;  %v2701_v39 = vsel %vm2426_vm8, %v15328_v34, 0.0  ;;  %v15335_v36 = vpop.f32.mrb[6].mxu0  ;;  %v15337_v63 = vpop.permute.xlu1 %11916 }
 0x228   : > { %v2702_v17 = vadd.f32 %v2701_v39, %v15258_v25  ;;  %v11912_v23 = vpop.permute.xlu0 %11911  ;;  %v15342_v52 = vpop.f32.mrb[7].mxu0  ;;  %v4719_v51 = vpack.c.bf16 %v4688_v13, %v4687_v1  ;;  %v2705_v25 = vsel %vm2426_vm8, %v15321_v50, 0.0  ;;  %v2707_v31 = vsel %vm2426_vm8, %v15335_v36, 0.0  ;;  %v3492_v1 = vld [vmem:[#allocation2 + $0x784] sm:$0xff] }
 0x229   : > { %v11914_v0 = vunpack.i.h.bf16 %v11912_v23  ;;  %v11913_v26 = vunpack.i.l.bf16 %v11912_v23  ;;  %v2703_v57 = vsel %vm2426_vm8, %v15342_v52, 0.0  ;;  %12206 = vrot.lane.b32.xlu1 %v14985_v29, %s20152_s15  ;;  %v12230_v21 = vpack.i.bf16 %v3492_v1, %v3491_v12  ;;  %v3526_v23 = vld [vmem:[#allocation2 + $0x7c2] sm:$0xff] }
 0x22a   : > { %v2704_v37 = vadd.f32 %v2703_v57, %v2702_v17  ;;  %12201 = vrot.lane.b32.xlu0 %v14990_v45, %s20152_s15  ;;  %10726 = vmatprep.mubr.msk.bf16.mxu0 %vm2478_vm9, %v4719_v51  ;;  %v3493_v45 = vld [vmem:[#allocation2 + $0x7b4] sm:$0xff]  ;;  %v3523_v57 = vld [vmem:[#allocation2 + $0x782] sm:$0xff]  ;;  %v3524_v51 = vld [vmem:[#allocation2 + $0x78a] sm:$0xff] }
 0x22b   : > { %v4690_v53 = vsel %vm2426_vm8, %v4658_v15, %v11914_v0  ;;  %v4689_v61 = vsel %vm2426_vm8, %v4657_v58, %v11913_v26  ;;  %v15357_v32 = vpop.permute.xlu1 %11926  ;;  %v12235_v39 = vpack.i.bf16 %v3494_v27, %v3493_v45  ;;  %v3525_v17 = vld [vmem:[#allocation2 + $0x7ba] sm:$0xff]  ;;  %v3315_v0 = vld [vmem:[#allocation2 + $0x324] sm:$0xff]  ;;  %v11919_v58 = vunpack.i.h.bf16 %v15337_v63 }
 0x22c   : > { %v4720_v29 = vpack.c.bf16 %v4690_v53, %v4689_v61  ;;  %v2706_v3 = vadd.f32 %v2705_v25, %v2704_v37  ;;  %v11922_v62 = vpop.permute.xlu0 %11921  ;;  %v3316_v37 = vld [vmem:[#allocation2 + $0x354] sm:$0xff]  ;;  %v3317_v25 = vld [vmem:[#allocation2 + $0x35c] sm:$0xff]  ;;  %v4468_v61 = vsel %vm446_vm0, %v3315_v0, %v11909_v18  ;;  %v11928_v27 = vunpack.i.l.bf16 %v15357_v32  ;;  %v3555_v1 = vld [vmem:[#allocation2 + $0x788] sm:$0xff] }
 0x22d   : > { %12216 = vrot.lane.b32.xlu1 %v15006_v60, %s20153_s16  ;;  %v3314_v60 = vld [vmem:[#allocation2 + $0x31c] sm:$0xff]  ;;  %v11923_v53 = vunpack.i.l.bf16 %v11922_v62  ;;  %v3558_v0 = vld [vmem:[#allocation2 + $0x7c8] sm:$0xff] }
 0x22e   : > { %12211 = vrot.lane.b32.xlu0 %v15008_v16, %s20153_s16  ;;  %10727 = vmatmul.mubr.msk.bf16.vlgmr.msra.gmra.mrb[32].mxu0 %vm2478_vm9, %v4720_v29  ;;  %v15366_v30 = vadd.f32 %v2707_v31, %v2706_v3  ;;  %v11908_v16 = vunpack.i.l.bf16 %v15313_v42  ;;  %v11924_v42 = vunpack.i.h.bf16 %v11922_v62  ;;  %v12240_v3 = vpack.i.bf16 %v3524_v51, %v3523_v57  ;;  %v3366_v31 = vld [vmem:[#allocation2 + $0x552] sm:$0xff]  ;;  %v3367_v45 = vld [vmem:[#allocation2 + $0x55a] sm:$0xff] }
 0x22f   : > { %v15368_v48 = vpop.permute.xlu1 %11936  ;;  %v3556_v62 = vld [vmem:[#allocation2 + $0x790] sm:$0xff]  ;;  %v12255_v51 = vpack.i.bf16 %v3367_v45, %v3366_v31 }
 0x230   : > { %v15370_v13 = vpop.permute.xlu0 %11931  ;;  %v4467_v29 = vsel %vm446_vm0, %v3314_v60, %v11908_v16  ;;  %v4500_v57 = vsel %vm2228_vm2, %v4468_v61, %v11924_v42 }
 0x231   : > { %12226 = vrot.lane.b32.xlu1 %v15040_v7, %s20159_s22  ;;  %v11918_v7 = vunpack.i.l.bf16 %v15337_v63  ;;  %v11929_v63 = vunpack.i.h.bf16 %v15357_v32  ;;  %v11934_v60 = vunpack.i.h.bf16 %v15370_v13  ;;  %v11933_v16 = vunpack.i.l.bf16 %v15370_v13  ;;  %v3401_v13 = vld [vmem:[#allocation2 + $0x598] sm:$0xff] }
 0x232   : > { %12221 = vrot.lane.b32.xlu0 %v15034_v44, %s20159_s22  ;;  %v12245_v44 = vpack.i.bf16 %v3526_v23, %v3525_v17  ;;  %v3369_v17 = vld [vmem:[#allocation2 + $0x592] sm:$0xff]  ;;  %v3557_v23 = vld [vmem:[#allocation2 + $0x7c0] sm:$0xff]  ;;  %v4499_v32 = vsel %vm2228_vm2, %v4467_v29, %v11923_v53  ;;  %v12275_v4 = vpack.i.bf16 %v3401_v13, %v3400_v35 }
 0x233   : > { %v15378_v26 = vpop.permute.xlu1 %11946  ;;  %v4469_v18 = vsel %vm446_vm0, %v3316_v37, %v11918_v7  ;;  %v11938_v7 = vunpack.i.l.bf16 %v15368_v48  ;;  %v12250_v37 = vpack.i.bf16 %v3556_v62, %v3555_v1  ;;  %v12265_v53 = vpack.i.bf16 %v3369_v17, %v3368_v40 }
 0x234   : > { %v15382_v15 = vpop.permute.xlu0 %11941  ;;  %v4501_v20 = vsel %vm2228_vm2, %v4469_v18, %v11928_v27  ;;  %v12260_v29 = vpack.i.bf16 %v3558_v0, %v3557_v23  ;;  %v4532_v31 = vsel %vm2261_vm3, %v4500_v57, %v11934_v60  ;;  %v11949_v60 = vunpack.i.h.bf16 %v15378_v26 }
 0x235   : > { %12236 = vrot.lane.b32.xlu1 %v12235_v39, %s20182_s17  ;;  %v4470_v39 = vsel %vm446_vm0, %v3317_v25, %v11919_v58  ;;  %v11939_v58 = vunpack.i.h.bf16 %v15368_v48  ;;  %v3398_v25 = vld [vmem:[#allocation2 + $0x558] sm:$0xff]  ;;  %v11944_v45 = vunpack.i.h.bf16 %v15382_v15  ;;  %v11943_v48 = vunpack.i.l.bf16 %v15382_v15 }
 0x236   : > { %12231 = vrot.lane.b32.xlu0 %v12230_v21, %s20182_s17  ;;  %v4502_v42 = vsel %vm2228_vm2, %v4470_v39, %v11929_v63  ;;  %v12270_v27 = vpack.i.bf16 %v3399_v19, %v3398_v25  ;;  %v4533_v63 = vsel %vm2261_vm3, %v4501_v20, %v11938_v7 }
 0x237   : > { %v15390_v12 = vpop.permute.xlu1 %11956  ;;  %v4534_v40 = vsel %vm2261_vm3, %v4502_v42, %v11939_v58 }
 0x238   : > { %v11952_v21 = vpop.permute.xlu0 %11951  ;;  %v11959_v17 = vunpack.i.h.bf16 %v15390_v12  ;;  %v11958_v23 = vunpack.i.l.bf16 %v15390_v12  ;;  %v4565_v12 = vsel %vm2294_vm4, %v4533_v63, %v14369_v8  ;;  %v4566_v25 = vsel %vm2294_vm4, %v4534_v40, %v14367_v28  ;;  %v5667_v28 = vld [vmem:[#allocation2 + $0x3fe] sm:$0xff]  ;;  %v5698_v8 = vld [vmem:[#allocation2 + $0x40e] sm:$0xff] }
 0x239   : > { %12246 = vrot.lane.b32.xlu1 %v12245_v44, %s20184_s23  ;;  %v4531_v44 = vsel %vm2261_vm3, %v4499_v32, %v11933_v16  ;;  %v11954_v1 = vunpack.i.h.bf16 %v11952_v21  ;;  %v11953_v62 = vunpack.i.l.bf16 %v11952_v21  ;;  %v11948_v16 = vunpack.i.l.bf16 %v15378_v26 }
 0x23a   : > { %12241 = vrot.lane.b32.xlu0 %v12240_v3, %s20184_s23  ;;  %v4563_v15 = vsel %vm2294_vm4, %v4531_v44, %v14359_v43  ;;  %v4564_v21 = vsel %vm2294_vm4, %v4532_v31, %v14357_v49  ;;  %v5666_v43 = vld [vmem:[#allocation2 + $0x3f6] sm:$0xff] }
 0x23b   : > { %v11967_v61 = vpop.permute.xlu1 %11966  ;;  %v4595_v19 = vsel %vm2327_vm5, %v4563_v15, %v11943_v48  ;;  %v4596_v20 = vsel %vm2327_vm5, %v4564_v21, %v11944_v45 }
 0x23c   : > { %v11962_v3 = vpop.permute.xlu0 %11961  ;;  %v4627_v57 = vsel %vm2360_vm6, %v4595_v19, %v11953_v62  ;;  %v4628_v26 = vsel %vm2360_vm6, %v4596_v20, %v11954_v1  ;;  %v11969_v58 = vunpack.i.h.bf16 %v11967_v61  ;;  %v11968_v7 = vunpack.i.l.bf16 %v11967_v61 }
 0x23d   : > { %12256 = vrot.lane.b32.xlu1 %v12255_v51, %s20149_s0  ;;  %v11964_v39 = vunpack.i.h.bf16 %v11962_v3  ;;  %v11963_v18 = vunpack.i.l.bf16 %v11962_v3  ;;  %v4597_v61 = vsel %vm2327_vm5, %v4565_v12, %v11948_v16  ;;  %v3529_v12 = vld [vmem:[#allocation2 + $0x82a] sm:$0xff] }
 0x23e   : > { %12251 = vrot.lane.b32.xlu0 %v12250_v37, %s20187_s20 }
 0x23f   : > { %v15418_v35 = vpop.permute.xlu1 %11976  ;;  %v4659_v37 = vsel %vm2393_vm7, %v4627_v57, %v11963_v18  ;;  %v4660_v13 = vsel %vm2393_vm7, %v4628_v26, %v11964_v39  ;;  %v3497_v57 = vld [vmem:[#allocation2 + $0x824] sm:$0xff]  ;;  %v3498_v26 = vld [vmem:[#allocation2 + $0x82c] sm:$0xff] }
 0x240   : > { %v11972_v0 = vpop.permute.xlu0 %11971 }
 0x241   : > { %v11974_v32 = vunpack.i.h.bf16 %v11972_v0  ;;  %v11973_v51 = vunpack.i.l.bf16 %v11972_v0  ;;  %12266 = vrot.lane.b32.xlu1 %v12265_v53, %s20149_s0  ;;  %v4598_v53 = vsel %vm2327_vm5, %v4566_v25, %v11949_v60  ;;  %v3530_v25 = vld [vmem:[#allocation2 + $0x832] sm:$0xff] }
 0x242   : > { %12261 = vrot.lane.b32.xlu0 %v12260_v29, %s20187_s20  ;;  %v4629_v29 = vsel %vm2360_vm6, %v4597_v61, %v11958_v23  ;;  %v4630_v3 = vsel %vm2360_vm6, %v4598_v53, %v11959_v17  ;;  %v3527_v61 = vld [vmem:[#allocation2 + $0x7f2] sm:$0xff]  ;;  %v3528_v53 = vld [vmem:[#allocation2 + $0x7fa] sm:$0xff] }
 0x243   : > { %v4691_v42 = vsel %vm2426_vm8, %v4659_v37, %v11973_v51  ;;  %v4692_v44 = vsel %vm2426_vm8, %v4660_v13, %v11974_v32  ;;  %v15436_v31 = vpop.permute.xlu1 %11986  ;;  %v4661_v40 = vsel %vm2393_vm7, %v4629_v29, %v11968_v7  ;;  %v4662_v39 = vsel %vm2393_vm7, %v4630_v3, %v11969_v58  ;;  %v3495_v51 = vld [vmem:[#allocation2 + $0x7ec] sm:$0xff]  ;;  %v3496_v58 = vld [vmem:[#allocation2 + $0x7f4] sm:$0xff]  ;;  %v3370_v29 = vld [vmem:[#allocation2 + $0x5c2] sm:$0xff] }
 0x244   : > { %v11982_v45 = vpop.permute.xlu0 %11981  ;;  %v4721_v48 = vpack.c.bf16 %v4692_v44, %v4691_v42  ;;  %v12300_v13 = vpack.i.bf16 %v3496_v58, %v3495_v51  ;;  %v3371_v3 = vld [vmem:[#allocation2 + $0x5ca] sm:$0xff] }
 0x245   : > { %v11984_v1 = vunpack.i.h.bf16 %v11982_v45  ;;  %v11983_v62 = vunpack.i.l.bf16 %v11982_v45  ;;  %v15442_v63 = vpop.f32.mrb[8].mxu0  ;;  %12276 = vrot.lane.b32.xlu1 %v12275_v4, %s20152_s15  ;;  %v3405_v51 = vld [vmem:[#allocation2 + $0x608] sm:$0xff] }
 0x246   : > { %12271 = vrot.lane.b32.xlu0 %v12270_v27, %s20152_s15  ;;  %v15448_v18 = vpop.f32.mrb[9].mxu0  ;;  %10730 = vmatprep.mubr.msk.bf16.mxu0 %vm2478_vm9, %v4721_v48  ;;  %v12315_v48 = vpack.i.bf16 %v3530_v25, %v3529_v12 }
 0x247   : > { %v4694_v60 = vsel %vm2426_vm8, %v4662_v39, %v11984_v1  ;;  %v4693_v16 = vsel %vm2426_vm8, %v4661_v40, %v11983_v62  ;;  %v2709_v15 = vsel %vm2426_vm8, %v15448_v18, 0.0  ;;  %v15455_v21 = vpop.f32.mrb[10].mxu0  ;;  %v15457_v4 = vpop.permute.xlu1 %11996  ;;  %v3560_v62 = vld [vmem:[#allocation2 + $0x800] sm:$0xff]  ;;  %v12325_v39 = vpack.i.bf16 %v3371_v3, %v3370_v29  ;;  %v3501_v3 = vld [vmem:[#allocation2 + $0x894] sm:$0xff] }
 0x248   : > { %v2710_v19 = vadd.f32 %v2709_v15, %v15366_v30  ;;  %v15460_v20 = vpop.permute.xlu0 %11991  ;;  %v15462_v27 = vpop.f32.mrb[11].mxu0  ;;  %v4722_v23 = vpack.c.bf16 %v4694_v60, %v4693_v16  ;;  %v2713_v30 = vsel %vm2426_vm8, %v15442_v63, 0.0  ;;  %v3372_v16 = vld [vmem:[#allocation2 + $0x5fa] sm:$0xff]  ;;  %v3373_v15 = vld [vmem:[#allocation2 + $0x602] sm:$0xff] }
 0x249   : > { %v2711_v17 = vsel %vm2426_vm8, %v15462_v27, 0.0  ;;  %12286 = vrot.lane.b32.xlu1 %v15139_v24, %s20153_s16  ;;  %v2715_v24 = vsel %vm2426_vm8, %v15455_v21, 0.0 }
 0x24a   : > { %v2712_v0 = vadd.f32 %v2711_v17, %v2710_v19  ;;  %12281 = vrot.lane.b32.xlu0 %v15149_v14, %s20153_s16  ;;  %10731 = vmatmul.mubr.msk.bf16.gmra.mrb[36].mxu0 %vm2478_vm9, %v4722_v23  ;;  %v12305_v14 = vpack.i.bf16 %v3498_v26, %v3497_v57  ;;  %v3561_v17 = vld [vmem:[#allocation2 + $0x830] sm:$0xff]  ;;  %v3562_v23 = vld [vmem:[#allocation2 + $0x838] sm:$0xff]  ;;  %v12335_v57 = vpack.i.bf16 %v3373_v15, %v3372_v16  ;;  %v3500_v16 = vld [vmem:[#allocation2 + $0x864] sm:$0xff] }
 0x24b   : > { %v15473_v32 = vpop.permute.xlu1 %12006  ;;  %v12330_v26 = vpack.i.bf16 %v3562_v23, %v3561_v17 }
 0x24c   : > { %v2714_v7 = vadd.f32 %v2713_v30, %v2712_v0  ;;  %v15475_v37 = vpop.permute.xlu0 %12001  ;;  %v3404_v30 = vld [vmem:[#allocation2 + $0x600] sm:$0xff] }
 0x24d   : > { %12296 = vrot.lane.b32.xlu1 %v15179_v56, %s20159_s22  ;;  %v12310_v56 = vpack.i.bf16 %v3528_v53, %v3527_v61 }
 0x24e   : > { %12291 = vrot.lane.b32.xlu0 %v15170_v11, %s20159_s22  ;;  %v2716_v42 = vadd.f32 %v2715_v24, %v2714_v7  ;;  %v3559_v11 = vld [vmem:[#allocation2 + $0x7f8] sm:$0xff]  ;;  %v3402_v7 = vld [vmem:[#allocation2 + $0x5c8] sm:$0xff]  ;;  %v3403_v24 = vld [vmem:[#allocation2 + $0x5d0] sm:$0xff] }
 0x24f   : > { %v15483_v44 = vpop.permute.xlu1 %12016  ;;  %v12320_v60 = vpack.i.bf16 %v3560_v62, %v3559_v11  ;;  %v12340_v12 = vpack.i.bf16 %v3403_v24, %v3402_v7  ;;  %v3502_v11 = vld [vmem:[#allocation2 + $0x89c] sm:$0xff]  ;;  %v3532_v24 = vld [vmem:[#allocation2 + $0x86a] sm:$0xff] }
 0x250   : > { %20201 = vst [vmem:[#allocation69_spill] sm:$0xff] %v15483_v44  ;;  %v15485_v45 = vpop.permute.xlu0 %12011  ;;  %v3531_v7 = vld [vmem:[#allocation2 + $0x862] sm:$0xff] }
 0x251   : > { %20202 = vst [vmem:[#allocation70_spill] sm:$0xff] %v15485_v45  ;;  %12306 = vrot.lane.b32.xlu1 %v12305_v14, %s20182_s17  ;;  %v5687_v45 = vld [vmem:[#allocation2 + $0x62e] sm:$0xff] }
 0x252   : > { %12301 = vrot.lane.b32.xlu0 %v12300_v13, %s20182_s17  ;;  %v12345_v13 = vpack.i.bf16 %v3405_v51, %v3404_v30  ;;  %v3534_v30 = vld [vmem:[#allocation2 + $0x8a2] sm:$0xff] }
 0x253   : > { %v15489_v1 = vpop.permute.xlu1 %12026 }
 0x254   : > { %20203 = vst [vmem:[#allocation71_spill] sm:$0xff] %v15489_v1  ;;  %v15491_v40 = vpop.permute.xlu0 %12021 }
 0x255   : > { %20204 = vst [vmem:[#allocation72_spill] sm:$0xff] %v15491_v40  ;;  %12316 = vrot.lane.b32.xlu1 %v12315_v48, %s20184_s23  ;;  %v5651_v40 = vld [vmem:[#allocation2 + $0x336] sm:$0xff] }
 0x256   : > { %12311 = vrot.lane.b32.xlu0 %v12310_v56, %s20184_s23 }
 0x257   : > { %v15495_v19 = vpop.permute.xlu1 %12036 }
 0x258   : > { %20205 = vst [vmem:[#allocation73_spill] sm:$0xff] %v15495_v19  ;;  %v15497_v0 = vpop.permute.xlu0 %12031  ;;  %v5650_v19 = vld [vmem:[#allocation2 + $0x32e] sm:$0xff] }
 0x259   : > { %20206 = vst [vmem:[#allocation74_spill] sm:$0xff] %v15497_v0  ;;  %12326 = vrot.lane.b32.xlu1 %v12325_v39, %s20149_s0 }
 0x25a   : > { %12321 = vrot.lane.b32.xlu0 %v12320_v60, %s20187_s20  ;;  %v3499_v60 = vld [vmem:[#allocation2 + $0x85c] sm:$0xff] }
 0x25b   : > { %v15501_v58 = vpop.permute.xlu1 %12046 }
 0x25c   : > { %20207 = vst [vmem:[#allocation75_spill] sm:$0xff] %v15501_v58  ;;  %v15503_v14 = vpop.permute.xlu0 %12041  ;;  %v5683_v58 = vld [vmem:[#allocation2 + $0x5be] sm:$0xff] }
 0x25d   : > { %20208 = vst [vmem:[#allocation76_spill] sm:$0xff] %v15503_v14  ;;  %12336 = vrot.lane.b32.xlu1 %v12335_v57, %s20149_s0  ;;  %v12370_v57 = vpack.i.bf16 %v3500_v16, %v3499_v60  ;;  %v3563_v16 = vld [vmem:[#allocation2 + $0x868] sm:$0xff] }
 0x25e   : > { %12331 = vrot.lane.b32.xlu0 %v12330_v26, %s20187_s20  ;;  %v3533_v26 = vld [vmem:[#allocation2 + $0x89a] sm:$0xff] }
 0x25f   : > { %v15507_v25 = vpop.permute.xlu1 %12056 }
 0x260   : > { %20209 = vst [vmem:[#allocation77_spill] sm:$0xff] %v15507_v25  ;;  %v15509_v61 = vpop.permute.xlu0 %12051 }
 0x261   : > { %20210 = vst [vmem:[#allocation78_spill] sm:$0xff] %v15509_v61  ;;  %12346 = vrot.lane.b32.xlu1 %v12345_v13, %s20152_s15 }
 0x262   : > { %12341 = vrot.lane.b32.xlu0 %v12340_v12, %s20152_s15 }
 0x263   : > { %v15513_v53 = vpop.permute.xlu1 %12066 }
 0x264   : > { %20211 = vst [vmem:[#allocation79_spill] sm:$0xff] %v15513_v53  ;;  %v15519_v56 = vpop.permute.xlu0 %12061 }
 0x265   : > { %v15515_v48 = vpop.f32.mrb[12].mxu0  ;;  %12356 = vrot.lane.b32.xlu1 %v15267_v9, %s20153_s16  ;;  %20212 = vst [vmem:[#allocation80_spill] sm:$0xff] %v15519_v56 }
 0x266   : > { %12351 = vrot.lane.b32.xlu0 %v15271_v5, %s20153_s16  ;;  %v15523_v29 = vpop.f32.mrb[13].mxu0  ;;  %v12375_v5 = vpack.i.bf16 %v3502_v11, %v3501_v3  ;;  %v2721_v51 = vsel %vm2426_vm8, %v15515_v48, 0.0  ;;  %v12385_v3 = vpack.i.bf16 %v3534_v30, %v3533_v26  ;;  %v3565_v11 = vld [vmem:[#allocation2 + $0x8a0] sm:$0xff]  ;;  %v441_v30 = vld [vmem:[%s19780_s11 + $0x8] sm:$0xff] }
 0x267   : > { %v2717_v62 = vsel %vm2426_vm8, %v15523_v29, 0.0  ;;  %v15527_v39 = vpop.f32.mrb[14].mxu0  ;;  %v5605_v26 = vld [vmem:[#allocation2 + $0x1a2] sm:$0xff] }
 0x268   : > { %v2718_v15 = vadd.f32 %v2717_v62, %v2716_v42  ;;  %v15529_v17 = vpop.f32.mrb[15].mxu0  ;;  %v15539_v42 = vpop.permute.xlu1 %12076  ;;  %v3566_v62 = vld [vmem:[#allocation2 + $0x8a8] sm:$0xff] }
 0x269   : > { %v2719_v9 = vsel %vm2426_vm8, %v15529_v17, 0.0  ;;  %12366 = vrot.lane.b32.xlu1 %v15299_v59, %s20159_s22  ;;  %20213 = vst [vmem:[#allocation81_spill] sm:$0xff] %v15539_v42  ;;  %v15541_v13 = vpop.permute.xlu0 %12071  ;;  %v2723_v59 = vsel %vm2426_vm8, %v15527_v39, 0.0 }
 0x26a   : > { %v2720_v23 = vadd.f32 %v2719_v9, %v2718_v15  ;;  %12361 = vrot.lane.b32.xlu0 %v15291_v41, %s20159_s22  ;;  %20214 = vst [vmem:[#allocation82_spill] sm:$0xff] %v15541_v13  ;;  %v12380_v41 = vpack.i.bf16 %v3532_v24, %v3531_v7  ;;  %v3564_v15 = vld [vmem:[#allocation2 + $0x870] sm:$0xff]  ;;  %v5602_v7 = vld [vmem:[#allocation2 + $0x162] sm:$0xff] }
 0x26b   : > { %v5603_v24 = vld [vmem:[#allocation2 + $0x16a] sm:$0xff]  ;;  %v5801_v13 = vld [vmem:[#allocation2 + $0x756] sm:$0xff] }
 0x26c   : > { %v2722_v12 = vadd.f32 %v2721_v51, %v2720_v23  ;;  %v15549_v9 = vpop.permute.xlu1 %12086  ;;  %v12395_v23 = vpack.i.bf16 %v3566_v62, %v3565_v11  ;;  %v5604_v51 = vld [vmem:[#allocation2 + $0x19a] sm:$0xff]  ;;  %v12400_v62 = vpack.i.bf16 %v5603_v24, %v5602_v7  ;;  %v5668_v24 = vld [vmem:[#allocation2 + $0x42e] sm:$0xff] }
 0x26d   : > { %12376 = vrot.lane.b32.xlu1 %v12375_v5, %s20182_s17  ;;  %20215 = vst [vmem:[#allocation83_spill] sm:$0xff] %v15549_v9  ;;  %v15552_v49 = vpop.permute.xlu0 %12081  ;;  %v12390_v5 = vpack.i.bf16 %v3564_v15, %v3563_v16  ;;  %v443_v11 = vld [vmem:[%s19780_s11 + $0x18] sm:$0xff]  ;;  %v5636_v16 = vld [vmem:[#allocation2 + $0x1a6] sm:$0xff]  ;;  %v5637_v15 = vld [vmem:[#allocation2 + $0x1ae] sm:$0xff] }
 0x26e   : > { %12371 = vrot.lane.b32.xlu0 %v12370_v57, %s20182_s17  ;;  %v15547_v60 = vadd.f32 %v2723_v59, %v2722_v12  ;;  %20216 = vst [vmem:[#allocation84_spill] sm:$0xff] %v15552_v49  ;;  %v440_v57 = vld [vmem:[%s19780_s11] sm:$0xff]  ;;  %v19883_v12 = vmov 0.0|0.0  }
 0x26f   : > { %11021 = vmatprep.subr.bf16.mxu1 %v19883_v12  ;;  %v15562_v59 = vpack.c.bf16 %v441_v30, %v440_v57  ;;  %11039 = vmatprep.subr.bf16.mxu0 %v19883_v12  ;;  %v5613_v9 = vld [vmem:[#allocation2 + $0x282] sm:$0xff] }
 0x271   : > { %12386 = vrot.lane.b32.xlu1 %v12385_v3, %s20184_s23  ;;  %20217 = vst [vmem:[#allocation85_spill] sm:$0xff] %v15562_v59  ;;  %v12405_v3 = vpack.i.bf16 %v5605_v26, %v5604_v51  ;;  %11023 = vmatpush3.bf16.msra.mxu1 %v15562_v59  ;;  %v5634_v51 = vld [vmem:[#allocation2 + $0x16e] sm:$0xff]  ;;  %v5635_v26 = vld [vmem:[#allocation2 + $0x176] sm:$0xff]  ;;  %v15580_v30 = vpop.permute.xlu0 %12091 }
 0x272   : > { %12381 = vrot.lane.b32.xlu0 %v12380_v41, %s20184_s23  ;;  %v442_v41 = vld [vmem:[%s19780_s11 + $0x10] sm:$0xff]  ;;  %11024 = vmatprep.subr.bf16.mxu1 %v19883_v12  ;;  %20220 = vst [vmem:[#allocation88_spill] sm:$0xff] %v15580_v30  ;;  %v12410_v7 = vpack.i.bf16 %v5635_v26, %v5634_v51  ;;  %v5700_v51 = vld [vmem:[#allocation2 + $0x446] sm:$0xff] }
 0x273   : > { %v15575_v57 = vpack.c.bf16 %v443_v11, %v442_v41  ;;  %11041 = vmatpush3.bf16.msra.mxu0 %v15562_v59  ;;  %v5669_v41 = vld [vmem:[#allocation2 + $0x436] sm:$0xff]  ;;  %v20221_v11 = vmov 0.0   ;;  %v5701_v26 = vld [vmem:[#allocation2 + $0x44e] sm:$0xff] }
 0x274   : > { %11042 = vmatprep.subr.bf16.mxu0 %v19883_v12  ;;  %10692 = vmatprep.mubr.msk.f32.mxu1 %vm13307_vm10, %v20221_v11  ;;  %v12435_v33 = vpack.i.bf16 %v5701_v26, %v5700_v51  ;;  %v5763_v26 = vld [vmem:[#allocation2 + $0x6a2] sm:$0xff] }
 0x275   : > { %12396 = vrot.lane.b32.xlu1 %v12395_v23, %s20187_s20  ;;  %20218 = vst [vmem:[#allocation86_spill] sm:$0xff] %v15575_v57  ;;  %v15577_v23 = vpop.permute.xlu1 %12096  ;;  %11026 = vmatpush3.bf16.msra.mxu1 %v15575_v57 }
 0x276   : > { %12391 = vrot.lane.b32.xlu0 %v12390_v5, %s20187_s20  ;;  %20219 = vst [vmem:[#allocation87_spill] sm:$0xff] %v15577_v23  ;;  %v12415_v5 = vpack.i.bf16 %v5637_v15, %v5636_v16  ;;  %11027 = vmatprep.subr.bf16.mxu1 %v19883_v12  ;;  %v15596_v16 = vpop.permute.xlu0 %12101  ;;  %v12420_v15 = vpack.i.bf16 %v5667_v28, %v5666_v43  ;;  %v5795_v23 = vld [vmem:[#allocation2 + $0x6ae] sm:$0xff] }
 0x277   : > { %11044 = vmatpush3.bf16.msra.mxu0 %v15575_v57  ;;  %10766 = vmatprep.mubr.msk.f32.mxu0 %vm13307_vm10, %v20221_v11  ;;  %20223 = vst [vmem:[#allocation90_spill] sm:$0xff] %v15596_v16  ;;  %v12445_v43 = vpack.i.bf16 %v5734_v38, %v5733_v10  ;;  %v5607_v16 = vld [vmem:[#allocation2 + $0x1da] sm:$0xff] }
 0x278   : > { %11045 = vmatprep.subr.bf16.mxu0 %v19883_v12  ;;  %v12430_v12 = vpack.i.bf16 %v5699_v2, %v5698_v8  ;;  %v5766_v8 = vld [vmem:[#allocation2 + $0x6e2] sm:$0xff] }
 0x279   : > { %12406 = vrot.lane.b32.xlu1 %v12405_v3, %s20149_s0  ;;  %v15593_v3 = vpop.permute.xlu1 %12106 }
 0x27a   : > { %12401 = vrot.lane.b32.xlu0 %v12400_v62, %s20149_s0  ;;  %20222 = vst [vmem:[#allocation89_spill] sm:$0xff] %v15593_v3  ;;  %v12425_v62 = vpack.i.bf16 %v5669_v41, %v5668_v24  ;;  %v5732_v24 = vld [vmem:[#allocation2 + $0x69e] sm:$0xff]  ;;  %v15603_v41 = vpop.permute.xlu0 %12111  ;;  %v5764_v3 = vld [vmem:[#allocation2 + $0x6aa] sm:$0xff] }
 0x27b   : > { %20225 = vst [vmem:[#allocation92_spill] sm:$0xff] %v15603_v41 }
 0x27d   : > { %12416 = vrot.lane.b32.xlu1 %v12415_v5, %s20152_s15  ;;  %v15601_v46 = vpop.permute.xlu1 %12116  ;;  %v5731_v5 = vld [vmem:[#allocation2 + $0x696] sm:$0xff] }
 0x27e   : > { %12411 = vrot.lane.b32.xlu0 %v12410_v7, %s20152_s15  ;;  %20224 = vst [vmem:[#allocation91_spill] sm:$0xff] %v15601_v46  ;;  %v15621_v38 = vpop.permute.xlu0 %12121 }
 0x27f   : > { %20227 = vst [vmem:[#allocation94_spill] sm:$0xff] %v15621_v38 }
 0x281   : > { %12426 = vrot.lane.b32.xlu1 %v12425_v62, %s20153_s16  ;;  %v12440_v62 = vpack.i.bf16 %v5732_v24, %v5731_v5  ;;  %v12450_v5 = vpack.i.bf16 %v5764_v3, %v5763_v26  ;;  %v5606_v24 = vld [vmem:[#allocation2 + $0x1d2] sm:$0xff] }
 0x282   : > { %12421 = vrot.lane.b32.xlu0 %v12420_v15, %s20153_s16  ;;  %v5765_v15 = vld [vmem:[#allocation2 + $0x6da] sm:$0xff]  ;;  %v5609_v3 = vld [vmem:[#allocation2 + $0x212] sm:$0xff]  ;;  %v15634_v49 = vpop.permute.xlu0 %12131 }
 0x283   : > { %v12455_v10 = vpack.i.bf16 %v5766_v8, %v5765_v15  ;;  %20229 = vst [vmem:[#allocation96_spill] sm:$0xff] %v15634_v49 }
 0x285   : > { %v15605_v7 = vpop.f32.mrb[16].mxu0  ;;  %12436 = vrot.lane.b32.xlu1 %v12435_v33, %s20159_s22  ;;  %v15618_v33 = vpop.permute.xlu1 %12126 }
 0x286   : > { %12431 = vrot.lane.b32.xlu0 %v12430_v12, %s20159_s22  ;;  %v15609_v28 = vpop.f32.mrb[17].mxu0  ;;  %20226 = vst [vmem:[#allocation93_spill] sm:$0xff] %v15618_v33 }
 0x287   : > { %v2725_v2 = vsel %vm2426_vm8, %v15609_v28, 0.0  ;;  %v15613_v51 = vpop.f32.mrb[18].mxu0 }
 0x288   : > { %v2726_v41 = vadd.f32 %v2725_v2, %v15547_v60  ;;  %v15616_v46 = vpop.f32.mrb[19].mxu0  ;;  %v5796_v60 = vld [vmem:[#allocation2 + $0x6b6] sm:$0xff]  ;;  %v2729_v2 = vsel %vm2426_vm8, %v15605_v7, 0.0  ;;  %v2731_v15 = vsel %vm2426_vm8, %v15613_v51, 0.0 }
 0x289   : > { %12446 = vrot.lane.b32.xlu1 %v12445_v43, %s20182_s17  ;;  %v2727_v12 = vsel %vm2426_vm8, %v15616_v46, 0.0  ;;  %v12465_v43 = vpack.i.bf16 %v5607_v16, %v5606_v24  ;;  %v12460_v8 = vpack.i.bf16 %v5796_v60, %v5795_v23  ;;  %v15632_v26 = vpop.permute.xlu1 %12136  ;;  %v5641_v24 = vld [vmem:[#allocation2 + $0x21e] sm:$0xff] }
 0x28a   : > { %12441 = vrot.lane.b32.xlu0 %v12440_v62, %s20182_s17  ;;  %v2728_v30 = vadd.f32 %v2727_v12, %v2726_v41  ;;  %v5608_v62 = vld [vmem:[#allocation2 + $0x20a] sm:$0xff]  ;;  %20228 = vst [vmem:[#allocation95_spill] sm:$0xff] %v15632_v26  ;;  %v15641_v26 = vpop.permute.xlu0 %12141 }
 0x28b   : > { %v5797_v41 = vld [vmem:[#allocation2 + $0x6e6] sm:$0xff]  ;;  %v5798_v12 = vld [vmem:[#allocation2 + $0x6ee] sm:$0xff]  ;;  %20231 = vst [vmem:[#allocation98_spill] sm:$0xff] %v15641_v26 }
 0x28c   : > { %v2730_v33 = vadd.f32 %v2729_v2, %v2728_v30  ;;  %v12475_v30 = vpack.i.bf16 %v5609_v3, %v5608_v62  ;;  %v12470_v16 = vpack.i.bf16 %v5798_v12, %v5797_v41  ;;  %v5638_v2 = vld [vmem:[#allocation2 + $0x1de] sm:$0xff]  ;;  %v5670_v62 = vld [vmem:[#allocation2 + $0x466] sm:$0xff]  ;;  %v5671_v3 = vld [vmem:[#allocation2 + $0x46e] sm:$0xff] }
 0x28d   : > { %12456 = vrot.lane.b32.xlu1 %v12455_v10, %s20184_s23  ;;  %v5640_v10 = vld [vmem:[#allocation2 + $0x216] sm:$0xff]  ;;  %v15638_v23 = vpop.permute.xlu1 %12146  ;;  %v12490_v41 = vpack.i.bf16 %v5671_v3, %v5670_v62 }
 0x28e   : > { %12451 = vrot.lane.b32.xlu0 %v12450_v5, %s20184_s23  ;;  %v2732_v38 = vadd.f32 %v2731_v15, %v2730_v33  ;;  %v5639_v5 = vld [vmem:[#allocation2 + $0x1e6] sm:$0xff]  ;;  %20230 = vst [vmem:[#allocation97_spill] sm:$0xff] %v15638_v23  ;;  %v12485_v60 = vpack.i.bf16 %v5641_v24, %v5640_v10  ;;  %v5672_v15 = vld [vmem:[#allocation2 + $0x49e] sm:$0xff]  ;;  %v5704_v12 = vld [vmem:[#allocation2 + $0x4b6] sm:$0xff]  ;;  %v15648_v24 = vpop.permute.xlu0 %12151 }
 0x28f   : > { %v12480_v33 = vpack.i.bf16 %v5639_v5, %v5638_v2  ;;  %v5705_v23 = vld [vmem:[#allocation2 + $0x4be] sm:$0xff]  ;;  %v5703_v10 = vld [vmem:[#allocation2 + $0x486] sm:$0xff]  ;;  %20233 = vst [vmem:[#allocation100_spill] sm:$0xff] %v15648_v24 }
 0x290   : > { %v5737_v5 = vld [vmem:[#allocation2 + $0x73e] sm:$0xff] }
 0x291   : > { %12466 = vrot.lane.b32.xlu1 %v12465_v43, %s20149_s0  ;;  %v5673_v43 = vld [vmem:[#allocation2 + $0x4a6] sm:$0xff]  ;;  %v15646_v49 = vpop.permute.xlu1 %12156 }
 0x292   : > { %12461 = vrot.lane.b32.xlu0 %v12460_v8, %s20187_s20  ;;  %v12495_v8 = vpack.i.bf16 %v5673_v43, %v5672_v15  ;;  %20232 = vst [vmem:[#allocation99_spill] sm:$0xff] %v15646_v49  ;;  %v5735_v15 = vld [vmem:[#allocation2 + $0x706] sm:$0xff]  ;;  %v5736_v43 = vld [vmem:[#allocation2 + $0x70e] sm:$0xff]  ;;  %v15655_v3 = vpop.permute.xlu0 %12161 }
 0x293   : > { %20235 = vst [vmem:[#allocation102_spill] sm:$0xff] %v15655_v3  ;;  %v12510_v24 = vpack.i.bf16 %v5736_v43, %v5735_v15  ;;  %v5769_v49 = vld [vmem:[#allocation2 + $0x74a] sm:$0xff]  ;;  %v5799_v43 = vld [vmem:[#allocation2 + $0x71e] sm:$0xff] }
 0x295   : > { %12476 = vrot.lane.b32.xlu1 %v12475_v30, %s20149_s0  ;;  %v5702_v30 = vld [vmem:[#allocation2 + $0x47e] sm:$0xff] }
 0x296   : > { %12471 = vrot.lane.b32.xlu0 %v12470_v16, %s20187_s20  ;;  %v12505_v16 = vpack.i.bf16 %v5705_v23, %v5704_v12  ;;  %v12500_v2 = vpack.i.bf16 %v5703_v10, %v5702_v30  ;;  %v5767_v23 = vld [vmem:[#allocation2 + $0x712] sm:$0xff]  ;;  %v5768_v12 = vld [vmem:[#allocation2 + $0x71a] sm:$0xff]  ;;  %v15670_v26 = vpop.permute.xlu0 %12171 }
 0x297   : > { %20237 = vst [vmem:[#allocation104_spill] sm:$0xff] %v15670_v26  ;;  %v5802_v26 = vld [vmem:[#allocation2 + $0x75e] sm:$0xff] }
 0x299   : > { %12486 = vrot.lane.b32.xlu1 %v12485_v60, %s20152_s15  ;;  %v5738_v60 = vld [vmem:[#allocation2 + $0x746] sm:$0xff] }
 0x29a   : > { %12481 = vrot.lane.b32.xlu0 %v12480_v33, %s20152_s15  ;;  %v15652_v33 = vpop.permute.xlu1 %12166  ;;  %v12515_v62 = vpack.i.bf16 %v5738_v60, %v5737_v5  ;;  %v5610_v5 = vld [vmem:[#allocation2 + $0x242] sm:$0xff]  ;;  %v5611_v60 = vld [vmem:[#allocation2 + $0x24a] sm:$0xff] }
 0x29b   : > { %20234 = vst [vmem:[#allocation101_spill] sm:$0xff] %v15652_v33  ;;  %v5800_v33 = vld [vmem:[#allocation2 + $0x726] sm:$0xff] }
 0x29d   : > { %12496 = vrot.lane.b32.xlu1 %v12495_v8, %s20153_s16  ;;  %v5770_v8 = vld [vmem:[#allocation2 + $0x752] sm:$0xff] }
 0x29e   : > { %12491 = vrot.lane.b32.xlu0 %v12490_v41, %s20153_s16  ;;  %v12525_v30 = vpack.i.bf16 %v5770_v8, %v5769_v49  ;;  %v15664_v3 = vpop.permute.xlu1 %12176  ;;  %v12535_v8 = vpack.i.bf16 %v5611_v60, %v5610_v5  ;;  %v15685_v5 = vpop.permute.xlu0 %12181  ;;  %v5645_v60 = vld [vmem:[#allocation2 + $0x28e] sm:$0xff] }
 0x29f   : > { %20236 = vst [vmem:[#allocation103_spill] sm:$0xff] %v15664_v3  ;;  %v5612_v3 = vld [vmem:[#allocation2 + $0x27a] sm:$0xff]  ;;  %20239 = vst [vmem:[#allocation106_spill] sm:$0xff] %v15685_v5 }
 0x2a0   : > { %v5675_v5 = vld [vmem:[#allocation2 + $0x4de] sm:$0xff] }
 0x2a1   : > { %12506 = vrot.lane.b32.xlu1 %v12505_v16, %s20159_s22  ;;  %v12520_v16 = vpack.i.bf16 %v5768_v12, %v5767_v23  ;;  %v12530_v12 = vpack.i.bf16 %v5800_v33, %v5799_v43  ;;  %v12540_v33 = vpack.i.bf16 %v5802_v26, %v5801_v13  ;;  %v5708_v26 = vld [vmem:[#allocation2 + $0x526] sm:$0xff] }
 0x2a2   : > { %12501 = vrot.lane.b32.xlu0 %v12500_v2, %s20159_s22 }
 0x2a5   : > { %v15658_v41 = vpop.f32.mrb[20].mxu0  ;;  %12516 = vrot.lane.b32.xlu1 %v12515_v62, %s20182_s17 }
 0x2a6   : > { %12511 = vrot.lane.b32.xlu0 %v12510_v24, %s20182_s17  ;;  %v15662_v10 = vpop.f32.mrb[21].mxu0  ;;  %v2737_v61 = vsel %vm2426_vm8, %v15658_v41, 0.0 }
 0x2a7   : > { %v2733_v2 = vsel %vm2426_vm8, %v15662_v10, 0.0  ;;  %v15668_v15 = vpop.f32.mrb[22].mxu0 }
 0x2a8   : > { %v2734_v62 = vadd.f32 %v2733_v2, %v2732_v38  ;;  %v15672_v49 = vpop.f32.mrb[23].mxu0  ;;  %v15680_v2 = vpop.permute.xlu1 %12186  ;;  %v2739_v42 = vsel %vm2426_vm8, %v15668_v15, 0.0 }
 0x2a9   : > { %v2735_v24 = vsel %vm2426_vm8, %v15672_v49, 0.0  ;;  %12526 = vrot.lane.b32.xlu1 %v12525_v30, %s20184_s23  ;;  %20238 = vst [vmem:[#allocation105_spill] sm:$0xff] %v15680_v2  ;;  %v12545_v30 = vpack.i.bf16 %v5613_v9, %v5612_v3  ;;  %v5676_v2 = vld [vmem:[#allocation2 + $0x50e] sm:$0xff]  ;;  %v5674_v3 = vld [vmem:[#allocation2 + $0x4d6] sm:$0xff] }
 0x2aa   : > { %v2736_v23 = vadd.f32 %v2735_v24, %v2734_v62  ;;  %12521 = vrot.lane.b32.xlu0 %v12520_v16, %s20184_s23  ;;  %v5644_v16 = vld [vmem:[#allocation2 + $0x286] sm:$0xff]  ;;  %v5642_v62 = vld [vmem:[#allocation2 + $0x24e] sm:$0xff]  ;;  %v5643_v24 = vld [vmem:[#allocation2 + $0x256] sm:$0xff]  ;;  %v12560_v13 = vpack.i.bf16 %v5675_v5, %v5674_v3 }
 0x2ab   : > { %v5773_v3 = vld [vmem:[#allocation2 + $0x7ba] sm:$0xff] }
 0x2ac   : > { %v2738_v38 = vadd.f32 %v2737_v61, %v2736_v23  ;;  %v12555_v61 = vpack.i.bf16 %v5645_v60, %v5644_v16  ;;  %v12550_v23 = vpack.i.bf16 %v5643_v24, %v5642_v62  ;;  %v15692_v9 = vpop.permute.xlu1 %12196  ;;  %v5707_v16 = vld [vmem:[#allocation2 + $0x4f6] sm:$0xff] }
 0x2ad   : > { %12536 = vrot.lane.b32.xlu1 %v12535_v8, %s20149_s0  ;;  %v5677_v8 = vld [vmem:[#allocation2 + $0x516] sm:$0xff]  ;;  %20240 = vst [vmem:[#allocation107_spill] sm:$0xff] %v15692_v9 }
 0x2ae   : > { %12531 = vrot.lane.b32.xlu0 %v12530_v12, %s20187_s20  ;;  %v15688_v43 = vadd.f32 %v2739_v42, %v2738_v38  ;;  %v15694_v12 = vpop.permute.xlu0 %12191  ;;  %v12565_v42 = vpack.i.bf16 %v5677_v8, %v5676_v2  ;;  %v5709_v38 = vld [vmem:[#allocation2 + $0x52e] sm:$0xff]  ;;  %v5739_v2 = vld [vmem:[#allocation2 + $0x776] sm:$0xff]  ;;  %v5740_v8 = vld [vmem:[#allocation2 + $0x77e] sm:$0xff] }
 0x2af   : > { %20241 = vst [vmem:[#allocation108_spill] sm:$0xff] %v15694_v12  ;;  %v12575_v60 = vpack.i.bf16 %v5709_v38, %v5708_v26  ;;  %v5741_v12 = vld [vmem:[#allocation2 + $0x7ae] sm:$0xff] }
 0x2b0   : > { %v5772_v26 = vld [vmem:[#allocation2 + $0x78a] sm:$0xff] }
 0x2b1   : > { %12546 = vrot.lane.b32.xlu1 %v12545_v30, %s20149_s0  ;;  %v5706_v30 = vld [vmem:[#allocation2 + $0x4ee] sm:$0xff] }
 0x2b2   : > { %12541 = vrot.lane.b32.xlu0 %v12540_v33, %s20187_s20  ;;  %v15698_v33 = vpop.permute.xlu1 %12206  ;;  %v15701_v62 = vpop.permute.xlu0 %12201  ;;  %v12570_v24 = vpack.i.bf16 %v5707_v16, %v5706_v30  ;;  %v5614_v16 = vld [vmem:[#allocation2 + $0x2b2] sm:$0xff] }
 0x2b3   : > { %20242 = vst [vmem:[#allocation109_spill] sm:$0xff] %v15698_v33  ;;  %20243 = vst [vmem:[#allocation110_spill] sm:$0xff] %v15701_v62  ;;  %v5774_v33 = vld [vmem:[#allocation2 + $0x7c2] sm:$0xff] }
 0x2b5   : > { %12556 = vrot.lane.b32.xlu1 %v12555_v61, %s20152_s15  ;;  %v5742_v61 = vld [vmem:[#allocation2 + $0x7b6] sm:$0xff] }
 0x2b6   : > { %12551 = vrot.lane.b32.xlu0 %v12550_v23, %s20152_s15  ;;  %v12585_v5 = vpack.i.bf16 %v5742_v61, %v5741_v12  ;;  %v12580_v23 = vpack.i.bf16 %v5740_v8, %v5739_v2  ;;  %v15706_v9 = vpop.permute.xlu1 %12216  ;;  %v15708_v38 = vpop.permute.xlu0 %12211  ;;  %v5803_v12 = vld [vmem:[#allocation2 + $0x78e] sm:$0xff]  ;;  %v5804_v61 = vld [vmem:[#allocation2 + $0x796] sm:$0xff] }
 0x2b7   : > { %20244 = vst [vmem:[#allocation111_spill] sm:$0xff] %v15706_v9  ;;  %20245 = vst [vmem:[#allocation112_spill] sm:$0xff] %v15708_v38  ;;  %v5806_v38 = vld [vmem:[#allocation2 + $0x7ce] sm:$0xff] }
 0x2b9   : > { %12566 = vrot.lane.b32.xlu1 %v12565_v42, %s20153_s16  ;;  %v5771_v42 = vld [vmem:[#allocation2 + $0x782] sm:$0xff] }
 0x2ba   : > { %12561 = vrot.lane.b32.xlu0 %v12560_v13, %s20153_s16  ;;  %v12595_v13 = vpack.i.bf16 %v5774_v33, %v5773_v3  ;;  %v12590_v30 = vpack.i.bf16 %v5772_v26, %v5771_v42  ;;  %v15717_v9 = vpop.permute.xlu0 %12221  ;;  %v12600_v33 = vpack.i.bf16 %v5804_v61, %v5803_v12  ;;  %v5617_v3 = vld [vmem:[#allocation2 + $0x2f2] sm:$0xff] }
 0x2bb   : > { %20247 = vst [vmem:[#allocation114_spill] sm:$0xff] %v15717_v9  ;;  %v5648_v61 = vld [vmem:[#allocation2 + $0x2f6] sm:$0xff]  ;;  %v5649_v9 = vld [vmem:[#allocation2 + $0x2fe] sm:$0xff] }
 0x2bd   : > { %12576 = vrot.lane.b32.xlu1 %v12575_v60, %s20159_s22  ;;  %v5615_v60 = vld [vmem:[#allocation2 + $0x2ba] sm:$0xff] }
 0x2be   : > { %12571 = vrot.lane.b32.xlu0 %v12570_v24, %s20159_s22  ;;  %v15712_v24 = vpop.permute.xlu1 %12226  ;;  %v12605_v8 = vpack.i.bf16 %v5615_v60, %v5614_v16  ;;  %v15737_v53 = vpop.permute.xlu0 %12231 }
 0x2bf   : > { %20246 = vst [vmem:[#allocation113_spill] sm:$0xff] %v15712_v24  ;;  %v5805_v24 = vld [vmem:[#allocation2 + $0x7c6] sm:$0xff]  ;;  %20249 = vst [vmem:[#allocation116_spill] sm:$0xff] %v15737_v53 }
 0x2c0   : > { %v12610_v12 = vpack.i.bf16 %v5806_v38, %v5805_v24  ;;  %v5680_v24 = vld [vmem:[#allocation2 + $0x57e] sm:$0xff] }
 0x2c1   : > { %12586 = vrot.lane.b32.xlu1 %v12585_v5, %s20182_s17 }
 0x2c2   : > { %12581 = vrot.lane.b32.xlu0 %v12580_v23, %s20182_s17  ;;  %v5616_v23 = vld [vmem:[#allocation2 + $0x2ea] sm:$0xff]  ;;  %v15733_v14 = vpop.permute.xlu1 %12236 }
 0x2c3   : > { %20248 = vst [vmem:[#allocation115_spill] sm:$0xff] %v15733_v14 }
 0x2c5   : > { %v15714_v2 = vpop.f32.mrb[24].mxu0  ;;  %12596 = vrot.lane.b32.xlu1 %v12595_v13, %s20184_s23 }
 0x2c6   : > { %12591 = vrot.lane.b32.xlu0 %v12590_v30, %s20184_s23  ;;  %v15720_v5 = vpop.f32.mrb[25].mxu0  ;;  %v12615_v30 = vpack.i.bf16 %v5617_v3, %v5616_v23  ;;  %v2745_v56 = vsel %vm2426_vm8, %v15714_v2, 0.0  ;;  %v5678_v3 = vld [vmem:[#allocation2 + $0x546] sm:$0xff]  ;;  %v15743_v14 = vpop.permute.xlu1 %12246 }
 0x2c7   : > { %v2741_v42 = vsel %vm2426_vm8, %v15720_v5, 0.0  ;;  %v15724_v26 = vpop.f32.mrb[26].mxu0  ;;  %20250 = vst [vmem:[#allocation117_spill] sm:$0xff] %v15743_v14 }
 0x2c8   : > { %v2742_v62 = vadd.f32 %v2741_v42, %v15688_v43  ;;  %v15727_v13 = vpop.f32.mrb[27].mxu0  ;;  %v5646_v43 = vld [vmem:[#allocation2 + $0x2be] sm:$0xff]  ;;  %v5647_v42 = vld [vmem:[#allocation2 + $0x2c6] sm:$0xff] }
 0x2c9   : > { %v2743_v16 = vsel %vm2426_vm8, %v15727_v13, 0.0  ;;  %12606 = vrot.lane.b32.xlu1 %v12605_v8, %s20149_s0  ;;  %v2747_v8 = vsel %vm2426_vm8, %v15724_v26, 0.0  ;;  %v12620_v38 = vpack.i.bf16 %v5647_v42, %v5646_v43  ;;  %v5745_v42 = vld [vmem:[#allocation2 + $0x81e] sm:$0xff] }
 0x2ca   : > { %v2744_v60 = vadd.f32 %v2743_v16, %v2742_v62  ;;  %12601 = vrot.lane.b32.xlu0 %v12600_v33, %s20187_s20  ;;  %v12625_v62 = vpack.i.bf16 %v5649_v9, %v5648_v61  ;;  %v5681_v33 = vld [vmem:[#allocation2 + $0x586] sm:$0xff]  ;;  %v5679_v16 = vld [vmem:[#allocation2 + $0x54e] sm:$0xff]  ;;  %v5713_v9 = vld [vmem:[#allocation2 + $0x59e] sm:$0xff]  ;;  %v15751_v14 = vpop.permute.xlu1 %12256 }
 0x2cb   : > { %v12635_v53 = vpack.i.bf16 %v5681_v33, %v5680_v24  ;;  %v5710_v61 = vld [vmem:[#allocation2 + $0x55e] sm:$0xff]  ;;  %20252 = vst [vmem:[#allocation119_spill] sm:$0xff] %v15751_v14  ;;  %v5744_v24 = vld [vmem:[#allocation2 + $0x7ee] sm:$0xff] }
 0x2cc   : > { %v2746_v0 = vadd.f32 %v2745_v56, %v2744_v60  ;;  %v15746_v56 = vpop.permute.xlu0 %12241  ;;  %v12630_v60 = vpack.i.bf16 %v5679_v16, %v5678_v3  ;;  %v5777_v16 = vld [vmem:[#allocation2 + $0x82a] sm:$0xff]  ;;  %v5618_v14 = vld [vmem:[#allocation2 + $0x322] sm:$0xff] }
 0x2cd   : > { %12616 = vrot.lane.b32.xlu1 %v12615_v30, %s20149_s0  ;;  %20251 = vst [vmem:[#allocation118_spill] sm:$0xff] %v15746_v56  ;;  %v5712_v30 = vld [vmem:[#allocation2 + $0x596] sm:$0xff]  ;;  %v5653_v56 = vld [vmem:[#allocation2 + $0x36e] sm:$0xff] }
 0x2ce   : > { %12611 = vrot.lane.b32.xlu0 %v12610_v12, %s20187_s20  ;;  %v2748_v23 = vadd.f32 %v2747_v8, %v2746_v0  ;;  %v5711_v12 = vld [vmem:[#allocation2 + $0x566] sm:$0xff]  ;;  %v12645_v43 = vpack.i.bf16 %v5713_v9, %v5712_v30  ;;  %v5775_v30 = vld [vmem:[#allocation2 + $0x7f2] sm:$0xff]  ;;  %v5776_v9 = vld [vmem:[#allocation2 + $0x7fa] sm:$0xff] }
 0x2cf   : > { %v12640_v0 = vpack.i.bf16 %v5711_v12, %v5710_v61  ;;  %v5746_v8 = vld [vmem:[#allocation2 + $0x826] sm:$0xff] }
 0x2d0   : > { %v15753_v33 = vpop.permute.xlu0 %12251 }
 0x2d1   : > { %12626 = vrot.lane.b32.xlu1 %v12625_v62, %s20152_s15  ;;  %v5743_v62 = vld [vmem:[#allocation2 + $0x7e6] sm:$0xff]  ;;  %20253 = vst [vmem:[#allocation120_spill] sm:$0xff] %v15753_v33  ;;  %v12660_v33 = vpack.i.bf16 %v5776_v9, %v5775_v30  ;;  %v5810_v30 = vld [vmem:[#allocation2 + $0x83e] sm:$0xff] }
 0x2d2   : > { %12621 = vrot.lane.b32.xlu0 %v12620_v38, %s20152_s15  ;;  %v12655_v38 = vpack.i.bf16 %v5746_v8, %v5745_v42  ;;  %v12650_v3 = vpack.i.bf16 %v5744_v24, %v5743_v62  ;;  %v5807_v42 = vld [vmem:[#allocation2 + $0x7fe] sm:$0xff]  ;;  %v5808_v8 = vld [vmem:[#allocation2 + $0x806] sm:$0xff] }
 0x2d3   : > { %v12670_v24 = vpack.i.bf16 %v5808_v8, %v5807_v42 }
 0x2d4   : > { %v15760_v12 = vpop.permute.xlu0 %12261 }
 0x2d5   : > { %12636 = vrot.lane.b32.xlu1 %v12635_v53, %s20153_s16  ;;  %v5778_v53 = vld [vmem:[#allocation2 + $0x832] sm:$0xff]  ;;  %20255 = vst [vmem:[#allocation122_spill] sm:$0xff] %v15760_v12 }
 0x2d6   : > { %12631 = vrot.lane.b32.xlu0 %v12630_v60, %s20153_s16  ;;  %v15757_v60 = vpop.permute.xlu1 %12266  ;;  %v12665_v61 = vpack.i.bf16 %v5778_v53, %v5777_v16 }
 0x2d7   : > { %20254 = vst [vmem:[#allocation121_spill] sm:$0xff] %v15757_v60  ;;  %v5620_v60 = vld [vmem:[#allocation2 + $0x35a] sm:$0xff] }
 0x2d8   : > { %v15771_v9 = vpop.permute.xlu0 %12271 }
 0x2d9   : > { %12646 = vrot.lane.b32.xlu1 %v12645_v43, %s20159_s22  ;;  %v5619_v43 = vld [vmem:[#allocation2 + $0x32a] sm:$0xff]  ;;  %20257 = vst [vmem:[#allocation124_spill] sm:$0xff] %v15771_v9 }
 0x2da   : > { %12641 = vrot.lane.b32.xlu0 %v12640_v0, %s20159_s22  ;;  %v12675_v0 = vpack.i.bf16 %v5619_v43, %v5618_v14  ;;  %v15767_v16 = vpop.permute.xlu1 %12276 }
 0x2db   : > { %20256 = vst [vmem:[#allocation123_spill] sm:$0xff] %v15767_v16  ;;  %v5652_v16 = vld [vmem:[#allocation2 + $0x366] sm:$0xff] }
 0x2dd   : > { %12656 = vrot.lane.b32.xlu1 %v12655_v38, %s20182_s17  ;;  %v5621_v38 = vld [vmem:[#allocation2 + $0x362] sm:$0xff] }
 0x2de   : > { %12651 = vrot.lane.b32.xlu0 %v12650_v3, %s20182_s17  ;;  %v5809_v3 = vld [vmem:[#allocation2 + $0x836] sm:$0xff]  ;;  %v12685_v43 = vpack.i.bf16 %v5621_v38, %v5620_v60  ;;  %v12695_v60 = vpack.i.bf16 %v5653_v56, %v5652_v16  ;;  %v12690_v38 = vpack.i.bf16 %v5651_v40, %v5650_v19  ;;  %v5716_v16 = vld [vmem:[#allocation2 + $0x606] sm:$0xff] }
 0x2df   : > { %v12680_v8 = vpack.i.bf16 %v5810_v30, %v5809_v3  ;;  %v5684_v3 = vld [vmem:[#allocation2 + $0x5ee] sm:$0xff]  ;;  %v5685_v30 = vld [vmem:[#allocation2 + $0x5f6] sm:$0xff] }
 0x2e1   : > { %12666 = vrot.lane.b32.xlu1 %v12665_v61, %s20184_s23 }
 0x2e2   : > { %12661 = vrot.lane.b32.xlu0 %v12660_v33, %s20184_s23  ;;  %v15765_v62 = vpop.f32.mrb[28].mxu0 }
 0x2e3   : > { %v15769_v53 = vpop.f32.mrb[29].mxu0  ;;  %v2753_v25 = vsel %vm2426_vm8, %v15765_v62, 0.0 }
 0x2e4   : > { %v2749_v12 = vsel %vm2426_vm8, %v15769_v53, 0.0  ;;  %v15775_v61 = vpop.f32.mrb[30].mxu0 }
 0x2e5   : > { %v2750_v14 = vadd.f32 %v2749_v12, %v2748_v23  ;;  %v15777_v33 = vpop.f32.mrb[31].mxu0  ;;  %12676 = vrot.lane.b32.xlu1 %v12675_v0, %s20149_s0  ;;  %v15785_v23 = vpop.permute.xlu1 %12286 }
 0x2e6   : > { %v2751_v42 = vsel %vm2426_vm8, %v15777_v33, 0.0  ;;  %12671 = vrot.lane.b32.xlu0 %v12670_v24, %s20187_s20  ;;  %20258 = vst [vmem:[#allocation125_spill] sm:$0xff] %v15785_v23  ;;  %v15788_v0 = vpop.permute.xlu0 %12281  ;;  %v2755_v24 = vsel %vm2426_vm8, %v15775_v61, 0.0  ;;  %v5714_v23 = vld [vmem:[#allocation2 + $0x5ce] sm:$0xff] }
 0x2e7   : > { %v2752_v9 = vadd.f32 %v2751_v42, %v2750_v14  ;;  %20259 = vst [vmem:[#allocation126_spill] sm:$0xff] %v15788_v0  ;;  %v5682_v42 = vld [vmem:[#allocation2 + $0x5b6] sm:$0xff] }
 0x2e8   : > { %v12700_v56 = vpack.i.bf16 %v5683_v58, %v5682_v42  ;;  %v5747_v58 = vld [vmem:[#allocation2 + $0x856] sm:$0xff] }
 0x2e9   : > { %v2754_v12 = vadd.f32 %v2753_v25, %v2752_v9  ;;  %12686 = vrot.lane.b32.xlu1 %v12685_v43, %s20149_s0  ;;  %v12705_v25 = vpack.i.bf16 %v5685_v30, %v5684_v3  ;;  %v5717_v9 = vld [vmem:[#allocation2 + $0x60e] sm:$0xff]  ;;  %v15795_v43 = vpop.permute.xlu1 %12296  ;;  %v5750_v3 = vld [vmem:[#allocation2 + $0x896] sm:$0xff]  ;;  %v5748_v30 = vld [vmem:[#allocation2 + $0x85e] sm:$0xff] }
 0x2ea   : > { %12681 = vrot.lane.b32.xlu0 %v12680_v8, %s20187_s20  ;;  %20260 = vst [vmem:[#allocation127_spill] sm:$0xff] %v15795_v43  ;;  %v5715_v8 = vld [vmem:[#allocation2 + $0x5d6] sm:$0xff]  ;;  %v15797_v40 = vpop.permute.xlu0 %12291 }
 0x2eb   : > { %v2756_v14 = vadd.f32 %v2755_v24, %v2754_v12  ;;  %20261 = vst [vmem:[#allocation128_spill] sm:$0xff] %v15797_v40  ;;  %v12715_v12 = vpack.i.bf16 %v5717_v9, %v5716_v16  ;;  %v5749_v24 = vld [vmem:[#allocation2 + $0x88e] sm:$0xff]  ;;  %v5781_v16 = vld [vmem:[#allocation2 + $0x89a] sm:$0xff]  ;;  %v5782_v9 = vld [vmem:[#allocation2 + $0x8a2] sm:$0xff] }
 0x2ed   : > { %v2757_v1 = vrot.slane %v2756_v14, 4  ;;  %12696 = vrot.lane.b32.xlu1 %v12695_v60, %s20152_s15  ;;  %v12710_v60 = vpack.i.bf16 %v5715_v8, %v5714_v23  ;;  %v15801_v42 = vpop.permute.xlu1 %12306  ;;  %v5780_v23 = vld [vmem:[#allocation2 + $0x86a] sm:$0xff] }
 0x2ee   : > { %12691 = vrot.lane.b32.xlu0 %v12690_v38, %s20152_s15  ;;  %20262 = vst [vmem:[#allocation129_spill] sm:$0xff] %v15801_v42  ;;  %v15804_v43 = vpop.permute.xlu0 %12301  ;;  %v5622_v42 = vld [vmem:[#allocation2 + $0x392] sm:$0xff] }
 0x2ef   : > { %v2758_v0 = vadd.f32 %v2757_v1, %v2756_v14  ;;  %v12725_v14 = vpack.i.bf16 %v5750_v3, %v5749_v24  ;;  %20263 = vst [vmem:[#allocation130_spill] sm:$0xff] %v15804_v43  ;;  %v5811_v24 = vld [vmem:[#allocation2 + $0x86e] sm:$0xff]  ;;  %v5686_v43 = vld [vmem:[#allocation2 + $0x626] sm:$0xff] }
 0x2f1   : > { %v2759_v19 = vrot.slane %v2758_v0, 2  ;;  %12706 = vrot.lane.b32.xlu1 %v12705_v25, %s20153_s16  ;;  %v12720_v25 = vpack.i.bf16 %v5748_v30, %v5747_v58  ;;  %v15809_v40 = vpop.permute.xlu1 %12316  ;;  %v5624_v30 = vld [vmem:[#allocation2 + $0x3ca] sm:$0xff] }
 0x2f2   : > { %12701 = vrot.lane.b32.xlu0 %v12700_v56, %s20153_s16  ;;  %v5779_v56 = vld [vmem:[#allocation2 + $0x862] sm:$0xff]  ;;  %20264 = vst [vmem:[#allocation131_spill] sm:$0xff] %v15809_v40  ;;  %v15812_v3 = vpop.permute.xlu0 %12311 }
 0x2f3   : > { %v2760_v38 = vadd.f32 %v2759_v19, %v2758_v0  ;;  %v12735_v0 = vpack.i.bf16 %v5782_v9, %v5781_v16  ;;  %v12730_v19 = vpack.i.bf16 %v5780_v23, %v5779_v56  ;;  %20265 = vst [vmem:[#allocation132_spill] sm:$0xff] %v15812_v3 }
 0x2f5   : > { %12716 = vrot.lane.b32.xlu1 %v12715_v12, %s20159_s22  ;;  %v2761_v1 = vrot.slane %v2760_v38, 1  ;;  %v5623_v12 = vld [vmem:[#allocation2 + $0x39a] sm:$0xff]  ;;  %v15818_v16 = vpop.permute.xlu1 %12326 }
 0x2f6   : > { %12711 = vrot.lane.b32.xlu0 %v12710_v60, %s20159_s22  ;;  %v5812_v60 = vld [vmem:[#allocation2 + $0x876] sm:$0xff]  ;;  %20266 = vst [vmem:[#allocation133_spill] sm:$0xff] %v15818_v16  ;;  %v15823_v23 = vpop.permute.xlu0 %12321 }
 0x2f7   : > { %v2762_v8 = vadd.f32 %v2761_v1, %v2760_v38  ;;  %v12745_v38 = vpack.i.bf16 %v5623_v12, %v5622_v42  ;;  %v12740_v58 = vpack.i.bf16 %v5812_v60, %v5811_v24  ;;  %v5625_v1 = vld [vmem:[#allocation2 + $0x3d2] sm:$0xff]  ;;  %20268 = vst [vmem:[#allocation135_spill] sm:$0xff] %v15823_v23  ;;  %v5654_v24 = vld [vmem:[#allocation2 + $0x39e] sm:$0xff]  ;;  %v5655_v60 = vld [vmem:[#allocation2 + $0x3a6] sm:$0xff] }
 0x2f8   : > { %v12755_v56 = vpack.i.bf16 %v5625_v1, %v5624_v30  ;;  %v12760_v1 = vpack.i.bf16 %v5655_v60, %v5654_v24  ;;  %v5718_v60 = vld [vmem:[#allocation2 + $0x63e] sm:$0xff] }
 0x2f9   : > { %12726 = vrot.lane.b32.xlu1 %v12725_v14, %s20182_s17  ;;  %10693 = vmatmul.mubr.msk.f32.vlgmr.msra.gmra.mrb[0].mxu1 %vm2426_vm8, %v2762_v8  ;;  %v5813_v14 = vld [vmem:[#allocation2 + $0x8a6] sm:$0xff]  ;;  %v15838_v23 = vpop.permute.xlu1 %12336 }
 0x2fa   : > { %12721 = vrot.lane.b32.xlu0 %v12720_v25, %s20182_s17  ;;  %10699 = vmatprep.mubr.msk.f32.mxu1 %vm13307_vm10, %v20221_v11  ;;  %v5814_v25 = vld [vmem:[#allocation2 + $0x8ae] sm:$0xff] }
 0x2fb   : > { %v12750_v42 = vpack.i.bf16 %v5814_v25, %v5813_v14  ;;  %v5688_v14 = vld [vmem:[#allocation2 + $0x65e] sm:$0xff]  ;;  %v5689_v25 = vld [vmem:[#allocation2 + $0x666] sm:$0xff] }
 0x2fd   : > { %12736 = vrot.lane.b32.xlu1 %v12735_v0, %s20184_s23  ;;  %v5656_v0 = vld [vmem:[#allocation2 + $0x3d6] sm:$0xff] }
 0x2fe   : > { %12731 = vrot.lane.b32.xlu0 %v12730_v19, %s20184_s23  ;;  %v5657_v19 = vld [vmem:[#allocation2 + $0x3de] sm:$0xff] }
 0x301   : > { %v15820_v9 = vpop.f32.mrb[32].mxu0  ;;  %12746 = vrot.lane.b32.xlu1 %v12745_v38, %s20149_s0 }
 0x302   : > { %20267 = vst [vmem:[#allocation134_spill] sm:$0xff] %v15820_v9  ;;  %12741 = vrot.lane.b32.xlu0 %v12740_v58, %s20187_s20  ;;  %v15826_v8 = vpop.f32.mrb[33].mxu0  ;;  %v12765_v58 = vpack.i.bf16 %v5657_v19, %v5656_v0  ;;  %v4957_v16 = vsel %vm2426_vm8, %v15820_v9, 0.0  ;;  %v5720_v0 = vld [vmem:[#allocation2 + $0x676] sm:$0xff]  ;;  %v5721_v19 = vld [vmem:[#allocation2 + $0x67e] sm:$0xff]  ;;  %v15848_v9 = vpop.permute.xlu1 %12346 }
 0x303   : > { %20269 = vst [vmem:[#allocation136_spill] sm:$0xff] %v15826_v8  ;;  %v15828_v12 = vpop.f32.mrb[34].mxu0  ;;  %v4954_v40 = vsel %vm2426_vm8, %v15826_v8, 0.0  ;;  %v15842_v8 = vpop.permute.xlu0 %12331  ;;  %20273 = vst [vmem:[#allocation140_spill] sm:$0xff] %v15848_v9  ;;  %v5691_v9 = vld [vmem:[#allocation2 + $0x69e] sm:$0xff] }
 0x304   : > { %20270 = vst [vmem:[#allocation137_spill] sm:$0xff] %v15828_v12  ;;  %v15830_v3 = vpop.f32.mrb[35].mxu0  ;;  %20272 = vst [vmem:[#allocation139_spill] sm:$0xff] %v15842_v8 }
 0x305   : > { %20271 = vst [vmem:[#allocation138_spill] sm:$0xff] %v15830_v3  ;;  %v4955_v38 = vsel %vm2426_vm8, %v15830_v3, 0.0  ;;  %12756 = vrot.lane.b32.xlu1 %v12755_v56, %s20149_s0  ;;  %v4959_v56 = vsel %vm2426_vm8, %v15828_v12, 0.0  ;;  %v12785_v3 = vpack.i.bf16 %v5721_v19, %v5720_v0  ;;  %v5784_v0 = vld [vmem:[#allocation2 + $0x8da] sm:$0xff] }
 0x306   : > { %v4956_v30 = vadd.f32 %v4955_v38, %v4954_v40  ;;  %12751 = vrot.lane.b32.xlu0 %v12750_v42, %s20187_s20  ;;  %v12775_v40 = vpack.i.bf16 %v5689_v25, %v5688_v14  ;;  %v12770_v42 = vpack.i.bf16 %v5687_v45, %v5686_v43  ;;  %v5719_v38 = vld [vmem:[#allocation2 + $0x646] sm:$0xff]  ;;  %v15856_v12 = vpop.permute.xlu1 %12356 }
 0x307   : > { %v5754_v14 = vld [vmem:[#allocation2 + $0x906] sm:$0xff]  ;;  %20275 = vst [vmem:[#allocation142_spill] sm:$0xff] %v15856_v12  ;;  %v5693_v12 = vld [vmem:[#allocation2 + $0x6d6] sm:$0xff] }
 0x308   : > { %v4958_v44 = vadd.f32 %v4957_v16, %v4956_v30  ;;  %v15851_v16 = vpop.permute.xlu0 %12341  ;;  %v12780_v30 = vpack.i.bf16 %v5719_v38, %v5718_v60  ;;  %v5751_v25 = vld [vmem:[#allocation2 + $0x8c6] sm:$0xff] }
 0x309   : > { %12766 = vrot.lane.b32.xlu1 %v12765_v58, %s20152_s15  ;;  %20274 = vst [vmem:[#allocation141_spill] sm:$0xff] %v15851_v16  ;;  %v5753_v58 = vld [vmem:[#allocation2 + $0x8fe] sm:$0xff]  ;;  %v5785_v43 = vld [vmem:[#allocation2 + $0x90a] sm:$0xff]  ;;  %v5690_v16 = vld [vmem:[#allocation2 + $0x696] sm:$0xff] }
 0x30a   : > { %12761 = vrot.lane.b32.xlu0 %v12760_v1, %s20152_s15  ;;  %v4960_v24 = vadd.f32 %v4959_v56, %v4958_v44  ;;  %v5752_v1 = vld [vmem:[#allocation2 + $0x8ce] sm:$0xff]  ;;  %v12795_v45 = vpack.i.bf16 %v5754_v14, %v5753_v58  ;;  %v5626_v38 = vld [vmem:[#allocation2 + $0x402] sm:$0xff] }
 0x30b   : > { %v12790_v44 = vpack.i.bf16 %v5752_v1, %v5751_v25  ;;  %v5786_v56 = vld [vmem:[#allocation2 + $0x912] sm:$0xff]  ;;  %v5815_v58 = vld [vmem:[#allocation2 + $0x8de] sm:$0xff]  ;;  %v5816_v14 = vld [vmem:[#allocation2 + $0x8e6] sm:$0xff] }
 0x30c   : > { %v15858_v19 = vpop.permute.xlu0 %12351  ;;  %v12810_v8 = vpack.i.bf16 %v5816_v14, %v5815_v58  ;;  %v5659_v58 = vld [vmem:[#allocation2 + $0x416] sm:$0xff] }
 0x30d   : > { %12776 = vrot.lane.b32.xlu1 %v12775_v40, %s20153_s16  ;;  %v5783_v40 = vld [vmem:[#allocation2 + $0x8d2] sm:$0xff]  ;;  %20276 = vst [vmem:[#allocation143_spill] sm:$0xff] %v15858_v19  ;;  %v5628_v19 = vld [vmem:[#allocation2 + $0x43a] sm:$0xff] }
 0x30e   : > { %12771 = vrot.lane.b32.xlu0 %v12770_v42, %s20153_s16  ;;  %v12805_v42 = vpack.i.bf16 %v5786_v56, %v5785_v43  ;;  %v12800_v60 = vpack.i.bf16 %v5784_v0, %v5783_v40  ;;  %v5817_v43 = vld [vmem:[#allocation2 + $0x916] sm:$0xff]  ;;  %v5818_v56 = vld [vmem:[#allocation2 + $0x91e] sm:$0xff] }
 0x30f   : > { %v12820_v0 = vpack.i.bf16 %v5818_v56, %v5817_v43 }
 0x310   : > { %v15865_v1 = vpop.permute.xlu0 %12361 }
 0x311   : > { %12786 = vrot.lane.b32.xlu1 %v12785_v3, %s20159_s22  ;;  %v5627_v3 = vld [vmem:[#allocation2 + $0x40a] sm:$0xff]  ;;  %20278 = vst [vmem:[#allocation145_spill] sm:$0xff] %v15865_v1 }
 0x312   : > { %12781 = vrot.lane.b32.xlu0 %v12780_v30, %s20159_s22  ;;  %v15862_v30 = vpop.permute.xlu1 %12366  ;;  %v12815_v25 = vpack.i.bf16 %v5627_v3, %v5626_v38 }
 0x313   : > { %20277 = vst [vmem:[#allocation144_spill] sm:$0xff] %v15862_v30  ;;  %v5660_v30 = vld [vmem:[#allocation2 + $0x446] sm:$0xff] }
 0x314   : > { %v15876_v14 = vpop.permute.xlu0 %12371 }
 0x315   : > { %12796 = vrot.lane.b32.xlu1 %v12795_v45, %s20182_s17  ;;  %v5629_v45 = vld [vmem:[#allocation2 + $0x442] sm:$0xff]  ;;  %20282 = vst [vmem:[#allocation149_spill] sm:$0xff] %v15876_v14 }
 0x316   : > { %12791 = vrot.lane.b32.xlu0 %v12790_v44, %s20182_s17  ;;  %v12825_v44 = vpack.i.bf16 %v5629_v45, %v5628_v19  ;;  %v15872_v38 = vpop.permute.xlu1 %12376 }
 0x317   : > { %20280 = vst [vmem:[#allocation147_spill] sm:$0xff] %v15872_v38  ;;  %v5692_v38 = vld [vmem:[#allocation2 + $0x6ce] sm:$0xff] }
 0x319   : > { %12806 = vrot.lane.b32.xlu1 %v12805_v42, %s20184_s23  ;;  %v5661_v42 = vld [vmem:[#allocation2 + $0x44e] sm:$0xff] }
 0x31a   : > { %12801 = vrot.lane.b32.xlu0 %v12800_v60, %s20184_s23  ;;  %v5658_v60 = vld [vmem:[#allocation2 + $0x40e] sm:$0xff] }
 0x31b   : > { %v12830_v56 = vpack.i.bf16 %v5659_v58, %v5658_v60  ;;  %v5724_v60 = vld [vmem:[#allocation2 + $0x6e6] sm:$0xff]  ;;  %v5725_v58 = vld [vmem:[#allocation2 + $0x6ee] sm:$0xff] }
 0x31d   : > { %12816 = vrot.lane.b32.xlu1 %v12815_v25, %s20149_s0  ;;  %v15869_v40 = vpop.f32.mrb[36].mxu0 }
 0x31e   : > { %20279 = vst [vmem:[#allocation146_spill] sm:$0xff] %v15869_v40  ;;  %12811 = vrot.lane.b32.xlu0 %v12810_v8, %s20187_s20  ;;  %v15874_v3 = vpop.f32.mrb[37].mxu0  ;;  %v12835_v8 = vpack.i.bf16 %v5661_v42, %v5660_v30  ;;  %v12845_v30 = vpack.i.bf16 %v5693_v12, %v5692_v38  ;;  %v12840_v42 = vpack.i.bf16 %v5691_v9, %v5690_v16  ;;  %v5757_v38 = vld [vmem:[#allocation2 + $0x96e] sm:$0xff] }
 0x31f   : > { %20281 = vst [vmem:[#allocation148_spill] sm:$0xff] %v15874_v3  ;;  %v4961_v1 = vsel %vm2426_vm8, %v15874_v3, 0.0  ;;  %v15880_v25 = vpop.f32.mrb[38].mxu0  ;;  %v4965_v3 = vsel %vm2426_vm8, %v15869_v40, 0.0  ;;  %v5756_v40 = vld [vmem:[#allocation2 + $0x93e] sm:$0xff] }
 0x320   : > { %20283 = vst [vmem:[#allocation150_spill] sm:$0xff] %v15880_v25  ;;  %v4962_v19 = vadd.f32 %v4961_v1, %v4960_v24  ;;  %v15882_v45 = vpop.f32.mrb[39].mxu0  ;;  %v15890_v24 = vpop.permute.xlu1 %12386 }
 0x321   : > { %20284 = vst [vmem:[#allocation151_spill] sm:$0xff] %v15882_v45  ;;  %12826 = vrot.lane.b32.xlu1 %v12825_v44, %s20149_s0  ;;  %v4963_v43 = vsel %vm2426_vm8, %v15882_v45, 0.0  ;;  %v15893_v44 = vpop.permute.xlu0 %12381 }
 0x322   : > { %12821 = vrot.lane.b32.xlu0 %v12820_v0, %s20187_s20  ;;  %v4964_v14 = vadd.f32 %v4963_v43, %v4962_v19  ;;  %20285 = vst [vmem:[#allocation152_spill] sm:$0xff] %v15893_v44  ;;  %v4967_v0 = vsel %vm2426_vm8, %v15880_v25, 0.0  ;;  %v5722_v19 = vld [vmem:[#allocation2 + $0x6ae] sm:$0xff]  ;;  %v5723_v43 = vld [vmem:[#allocation2 + $0x6b6] sm:$0xff] }
 0x323   : > { %v12850_v12 = vpack.i.bf16 %v5723_v43, %v5722_v19  ;;  %v5755_v25 = vld [vmem:[#allocation2 + $0x936] sm:$0xff] }
 0x324   : > { %v4966_v1 = vadd.f32 %v4965_v3, %v4964_v14  ;;  %v12855_v3 = vpack.i.bf16 %v5725_v58, %v5724_v60  ;;  %v5758_v14 = vld [vmem:[#allocation2 + $0x976] sm:$0xff]  ;;  %v12860_v16 = vpack.i.bf16 %v5756_v40, %v5755_v25  ;;  %v5788_v60 = vld [vmem:[#allocation2 + $0x94a] sm:$0xff] }
 0x325   : > { %12836 = vrot.lane.b32.xlu1 %v12835_v8, %s20152_s15  ;;  %v15902_v8 = vpop.permute.xlu1 %12396  ;;  %v12865_v9 = vpack.i.bf16 %v5758_v14, %v5757_v38  ;;  %v5819_v38 = vld [vmem:[#allocation2 + $0x94e] sm:$0xff]  ;;  %v5820_v14 = vld [vmem:[#allocation2 + $0x956] sm:$0xff] }
 0x326   : > { %12831 = vrot.lane.b32.xlu0 %v12830_v56, %s20152_s15  ;;  %v15898_v45 = vadd.f32 %v4967_v0, %v4966_v1  ;;  %20287 = vst [vmem:[#allocation154_spill] sm:$0xff] %v15902_v8  ;;  %v15904_v56 = vpop.permute.xlu0 %12391  ;;  %v5789_v1 = vld [vmem:[#allocation2 + $0x97a] sm:$0xff]  ;;  %v5787_v0 = vld [vmem:[#allocation2 + $0x942] sm:$0xff]  ;;  %v12880_v25 = vpack.i.bf16 %v5820_v14, %v5819_v38 }
 0x327   : > { %20288 = vst [vmem:[#allocation155_spill] sm:$0xff] %v15904_v56  ;;  %v12870_v43 = vpack.i.bf16 %v5788_v60, %v5787_v0  ;;  %v5633_v56 = vld [vmem:[#allocation2 + $0x4b2] sm:$0xff] }
 0x328   : > { %20286 = vst [vmem:[#allocation153_spill] sm:$0xff] %v15898_v45  ;;  %v5630_v45 = vld [vmem:[#allocation2 + $0x472] sm:$0xff] }
 0x329   : > { %12846 = vrot.lane.b32.xlu1 %v12845_v30, %s20153_s16  ;;  %v5790_v30 = vld [vmem:[#allocation2 + $0x982] sm:$0xff]  ;;  %v5664_v60 = vld [vmem:[#allocation2 + $0x4b6] sm:$0xff] }
 0x32a   : > { %12841 = vrot.lane.b32.xlu0 %v12840_v42, %s20153_s16  ;;  %v15908_v42 = vpop.permute.xlu1 %12406  ;;  %v12875_v58 = vpack.i.bf16 %v5790_v30, %v5789_v1  ;;  %v15911_v19 = vpop.permute.xlu0 %12401  ;;  %v5822_v1 = vld [vmem:[#allocation2 + $0x98e] sm:$0xff] }
 0x32d   : > { %12856 = vrot.lane.b32.xlu1 %v12855_v3, %s20159_s22  ;;  %v5631_v3 = vld [vmem:[#allocation2 + $0x47a] sm:$0xff] }
 0x32e   : > { %12851 = vrot.lane.b32.xlu0 %v12850_v12, %s20159_s22  ;;  %v12885_v40 = vpack.i.bf16 %v5631_v3, %v5630_v45  ;;  %v5632_v12 = vld [vmem:[#allocation2 + $0x4aa] sm:$0xff]  ;;  %v15916_v8 = vpop.permute.xlu1 %12416  ;;  %v15918_v30 = vpop.permute.xlu0 %12411  ;;  %v5662_v45 = vld [vmem:[#allocation2 + $0x47e] sm:$0xff] }
 0x32f   : > { %20289 = vst [vmem:[#allocation156_spill] sm:$0xff] %v15916_v8  ;;  %20290 = vst [vmem:[#allocation157_spill] sm:$0xff] %v15918_v30  ;;  %v5663_v3 = vld [vmem:[#allocation2 + $0x486] sm:$0xff]  ;;  %v5696_v8 = vld [vmem:[#allocation2 + $0x73e] sm:$0xff] }
 0x330   : > { %v12900_v30 = vpack.i.bf16 %v5663_v3, %v5662_v45  ;;  %v5761_v3 = vld [vmem:[#allocation2 + $0x9de] sm:$0xff] }
 0x331   : > { %12866 = vrot.lane.b32.xlu1 %v12865_v9, %s20182_s17  ;;  %v5821_v9 = vld [vmem:[#allocation2 + $0x986] sm:$0xff] }
 0x332   : > { %12861 = vrot.lane.b32.xlu0 %v12860_v16, %s20182_s17  ;;  %v12895_v16 = vpack.i.bf16 %v5633_v56, %v5632_v12  ;;  %v12890_v0 = vpack.i.bf16 %v5822_v1, %v5821_v9  ;;  %v15925_v14 = vpop.permute.xlu0 %12421  ;;  %v5694_v56 = vld [vmem:[#allocation2 + $0x706] sm:$0xff]  ;;  %v5695_v12 = vld [vmem:[#allocation2 + $0x70e] sm:$0xff]  ;;  %v5728_v1 = vld [vmem:[#allocation2 + $0x756] sm:$0xff] }
 0x333   : > { %20292 = vst [vmem:[#allocation159_spill] sm:$0xff] %v15925_v14  ;;  %v12910_v9 = vpack.i.bf16 %v5695_v12, %v5694_v56  ;;  %v20298_v14 = vmov 0.0|0.0  }
 0x335   : > { %12876 = vrot.lane.b32.xlu1 %v12875_v58, %s20184_s23  ;;  %v5665_v58 = vld [vmem:[#allocation2 + $0x4be] sm:$0xff] }
 0x336   : > { %12871 = vrot.lane.b32.xlu0 %v12870_v43, %s20184_s23  ;;  %v15922_v43 = vpop.permute.xlu1 %12426  ;;  %v12905_v38 = vpack.i.bf16 %v5665_v58, %v5664_v60  ;;  %v5727_v60 = vld [vmem:[#allocation2 + $0x726] sm:$0xff]  ;;  %v15932_v58 = vpop.permute.xlu0 %12431 }
 0x337   : > { %20291 = vst [vmem:[#allocation158_spill] sm:$0xff] %v15922_v43  ;;  %v5729_v43 = vld [vmem:[#allocation2 + $0x75e] sm:$0xff]  ;;  %20294 = vst [vmem:[#allocation161_spill] sm:$0xff] %v15932_v58 }
 0x339   : > { %12886 = vrot.lane.b32.xlu1 %v12885_v40, %s20149_s0  ;;  %v5697_v40 = vld [vmem:[#allocation2 + $0x746] sm:$0xff] }
 0x33a   : > { %12881 = vrot.lane.b32.xlu0 %v12880_v25, %s20187_s20  ;;  %v12915_v25 = vpack.i.bf16 %v5697_v40, %v5696_v8  ;;  %v15930_v44 = vpop.permute.xlu1 %12436  ;;  %v5759_v8 = vld [vmem:[#allocation2 + $0x9a6] sm:$0xff]  ;;  %v5760_v40 = vld [vmem:[#allocation2 + $0x9ae] sm:$0xff]  ;;  %v15939_v12 = vpop.permute.xlu0 %12441 }
 0x33b   : > { %20293 = vst [vmem:[#allocation160_spill] sm:$0xff] %v15930_v44  ;;  %20296 = vst [vmem:[#allocation163_spill] sm:$0xff] %v15939_v12  ;;  %v12930_v58 = vpack.i.bf16 %v5760_v40, %v5759_v8  ;;  %v5793_v44 = vld [vmem:[#allocation2 + $0x9ea] sm:$0xff]  ;;  %v5823_v40 = vld [vmem:[#allocation2 + $0x9be] sm:$0xff] }
 0x33c   : > { %v5824_v12 = vld [vmem:[#allocation2 + $0x9c6] sm:$0xff] }
 0x33d   : > { %12896 = vrot.lane.b32.xlu1 %v12895_v16, %s20149_s0  ;;  %v5726_v16 = vld [vmem:[#allocation2 + $0x71e] sm:$0xff]  ;;  %s13311_s0 = smov [#allocation3]  }
 0x33e   : > { %12891 = vrot.lane.b32.xlu0 %v12890_v0, %s20187_s20  ;;  %v12925_v0 = vpack.i.bf16 %v5729_v43, %v5728_v1  ;;  %v12920_v45 = vpack.i.bf16 %v5727_v60, %v5726_v16  ;;  %v5791_v43 = vld [vmem:[#allocation2 + $0x9b2] sm:$0xff]  ;;  %v5792_v1 = vld [vmem:[#allocation2 + $0x9ba] sm:$0xff]  ;;  %v445_v16 = vld [vmem:[%s19781_s12 + $0x8] sm:$0xff] }
 0x341   : > { %12906 = vrot.lane.b32.xlu1 %v12905_v38, %s20152_s15  ;;  %v5762_v38 = vld [vmem:[#allocation2 + $0x9e6] sm:$0xff] }
 0x342   : > { %12901 = vrot.lane.b32.xlu0 %v12900_v30, %s20152_s15  ;;  %v15936_v30 = vpop.permute.xlu1 %12446  ;;  %v12935_v56 = vpack.i.bf16 %v5762_v38, %v5761_v3  ;;  %v5825_v3 = vld [vmem:[#allocation2 + $0x9f6] sm:$0xff]  ;;  %v5826_v38 = vld [vmem:[#allocation2 + $0x9fe] sm:$0xff]  ;;  %s13237_s15 = sshll.u32 %s13311_s0, 4  ;;  %s13238_s15 = int_to_ptr.vmem [resolvable:$false] %s13237_s15 }
 0x343   : > { %20295 = vst [vmem:[#allocation162_spill] sm:$0xff] %v15936_v30  ;;  %v15955_v30 = vpop.permute.xlu0 %12451 }
 0x345   : > { %12916 = vrot.lane.b32.xlu1 %v12915_v25, %s20153_s16  ;;  %v5794_v25 = vld [vmem:[#allocation2 + $0x9f2] sm:$0xff] }
 0x346   : > { %12911 = vrot.lane.b32.xlu0 %v12910_v9, %s20153_s16  ;;  %v444_v9 = vld [vmem:[%s19781_s12] sm:$0xff]  ;;  %v12945_v60 = vpack.i.bf16 %v5794_v25, %v5793_v44  ;;  %v15952_v8 = vpop.permute.xlu1 %12456  ;;  %v12955_v44 = vpack.i.bf16 %v5826_v38, %v5825_v3  ;;  %s13239_s16 = scalar_lea.vmem %s13238_s15, 2048 }
 0x347   : > { %v15963_v25 = vpop.permute.xlu0 %12461 }
 0x349   : > { %12926 = vrot.lane.b32.xlu1 %v12925_v0, %s20159_s22  ;;  %v15949_v0 = vpack.c.bf16 %v445_v16, %v444_v9 }
 0x34a   : > { %12921 = vrot.lane.b32.xlu0 %v12920_v45, %s20159_s22  ;;  %v12940_v45 = vpack.i.bf16 %v5792_v1, %v5791_v43  ;;  %s13309_s22 = smov 96  }
 0x34b   : > { %20297 = vst [vmem:[#allocation164_spill] sm:$0xff] %v15949_v0  ;;  %11029 = vmatpush3.bf16.msra.mxu1 %v15949_v0 }
 0x34c   : > { %11030 = vmatprep.subr.bf16.mxu1 %v20298_v14 }
 0x34d   : > { %12936 = vrot.lane.b32.xlu1 %v12935_v56, %s20182_s17  ;;  %v12950_v56 = vpack.i.bf16 %v5824_v12, %v5823_v40  ;;  %v2910_v12 = vlaneseq }
 0x34e   : > { %12931 = vrot.lane.b32.xlu0 %v12930_v58, %s20182_s17  ;;  %v15960_v58 = vpop.permute.xlu1 %12466  ;;  %s10445_s17 = sshll.u32 %s13404_s29, 10  ;;  %s19727_s29 = scalar_lea.sflag [#allocation4], %s431_s27 }
 0x34f   : > { %v2911_v16 = vshrl.u32 %v2910_v12, 7 }
 0x351   : > { %12946 = vrot.lane.b32.xlu1 %v12945_v60, %s20184_s23  ;;  %v15973_v60 = vsub.s32 0, %v2911_v16 }
 0x352   : > { %12941 = vrot.lane.b32.xlu0 %v12940_v45, %s20184_s23 }
 0x353   : > { %20299 = vst [vmem:[#allocation165_spill] sm:$0xff] %v15973_v60 }
 0x355   : > { %12956 = vrot.lane.b32.xlu1 %v12955_v44, %s20187_s20 }
 0x356   : > { %12951 = vrot.lane.b32.xlu0 %v12950_v56, %s20187_s20 }
 0x3cc   : > { %v2832_v43 = vpop.f32.mrb[0].mxu1 }
 0x3cd   : > { %v2836_v1 = vmul.f32 0.001953125, %v2832_v43  ;;  %v10694_v9 = vpop.f32.mrb[1].mxu1 }
 0x3cf   : > { %10700 = vmatmul.mubr.msk.f32.vlgmr.msra.gmra.mrb[2].mxu1 %vm2294_vm4, %v2836_v1 }
 0x3d0   : > { %11032 = vmatpush3.bf16.msra.mxu1 %v15562_v59  ;;  %10710 = vmatprep.mubr.msk.f32.mxu1 %vm13307_vm10, %v20221_v11 }
 0x3d1   : > { %11033 = vmatprep.subr.bf16.mxu1 %v20298_v14 }
 0x3d4   : > { %11035 = vmatpush3.bf16.msra.mxu1 %v15575_v57  ;;  %v20355_v57 = vld [vmem:[#allocation75_spill] sm:$0xff] }
 0x3d5   : > { %11036 = vmatprep.subr.bf16.mxu1 %v20298_v14  ;;  %v12049_v59 = vunpack.i.h.bf16 %v20355_v57 }
 0x4a2   : > { %v2906_v45 = vpop.f32.mrb[2].mxu1 }
 0x4a3   : > { %v2913_v3 = vrot.slane %v2906_v45, %v15973_v60  ;;  %v10701_v38 = vpop.f32.mrb[3].mxu1 }
 0x4a5   : > { %v15977_v40 = vsub.f32 %v15222_v47, %v2913_v3  ;;  %v15980_v44 = vsub.f32 %v15232_v6, %v2913_v3  ;;  %v15983_v56 = vsub.f32 %v15214_v54, %v2913_v3  ;;  %v15986_v43 = vsub.f32 %v15228_v55, %v2913_v3 }
 0x4a6   : > { %v15989_v1 = vsub.f32 %v15328_v34, %v2913_v3  ;;  %v15992_v9 = vsub.f32 %v15342_v52, %v2913_v3  ;;  %v15995_v12 = vsub.f32 %v15321_v50, %v2913_v3  ;;  %v15998_v47 = vsub.f32 %v15335_v36, %v2913_v3 }
 0x4a7   : > { %20300 = vst [vmem:[#allocation166_spill] sm:$0xff] %v15977_v40  ;;  %20301 = vst [vmem:[#allocation167_spill] sm:$0xff] %v15980_v44  ;;  %v16001_v6 = vsub.f32 %v15448_v18, %v2913_v3  ;;  %v16004_v54 = vsub.f32 %v15462_v27, %v2913_v3  ;;  %v16007_v55 = vsub.f32 %v15442_v63, %v2913_v3 }
 0x4a8   : > { %20302 = vst [vmem:[#allocation168_spill] sm:$0xff] %v15983_v56  ;;  %20303 = vst [vmem:[#allocation169_spill] sm:$0xff] %v15986_v43  ;;  %v16010_v34 = vsub.f32 %v15455_v21, %v2913_v3  ;;  %v16013_v52 = vsub.f32 %v15523_v29, %v2913_v3  ;;  %v16016_v50 = vsub.f32 %v15529_v17, %v2913_v3 }
 0x4a9   : > { %20304 = vst [vmem:[#allocation170_spill] sm:$0xff] %v15989_v1  ;;  %20305 = vst [vmem:[#allocation171_spill] sm:$0xff] %v15992_v9  ;;  %v16019_v36 = vsub.f32 %v15515_v48, %v2913_v3  ;;  %v16022_v18 = vsub.f32 %v15527_v39, %v2913_v3  ;;  %v16025_v27 = vsub.f32 %v15609_v28, %v2913_v3 }
 0x4aa   : > { %20306 = vst [vmem:[#allocation172_spill] sm:$0xff] %v15995_v12  ;;  %20307 = vst [vmem:[#allocation173_spill] sm:$0xff] %v15998_v47  ;;  %v16028_v63 = vsub.f32 %v15616_v46, %v2913_v3  ;;  %v16031_v21 = vsub.f32 %v15605_v7, %v2913_v3  ;;  %v16034_v29 = vsub.f32 %v15613_v51, %v2913_v3 }
 0x4ab   : > { %20308 = vst [vmem:[#allocation174_spill] sm:$0xff] %v16001_v6  ;;  %20309 = vst [vmem:[#allocation175_spill] sm:$0xff] %v16004_v54  ;;  %v16037_v17 = vsub.f32 %v15662_v10, %v2913_v3  ;;  %v16040_v48 = vsub.f32 %v15672_v49, %v2913_v3  ;;  %v16043_v39 = vsub.f32 %v15658_v41, %v2913_v3 }
 0x4ac   : > { %20310 = vst [vmem:[#allocation176_spill] sm:$0xff] %v16007_v55  ;;  %20311 = vst [vmem:[#allocation177_spill] sm:$0xff] %v16010_v34  ;;  %v16046_v28 = vsub.f32 %v15668_v15, %v2913_v3  ;;  %v16049_v46 = vsub.f32 %v15720_v5, %v2913_v3  ;;  %v16052_v7 = vsub.f32 %v15727_v13, %v2913_v3 }
 0x4ad   : > { %20312 = vst [vmem:[#allocation178_spill] sm:$0xff] %v16013_v52  ;;  %20313 = vst [vmem:[#allocation179_spill] sm:$0xff] %v16016_v50  ;;  %v16055_v51 = vsub.f32 %v15714_v2, %v2913_v3  ;;  %v16058_v10 = vsub.f32 %v15724_v26, %v2913_v3  ;;  %v16061_v49 = vsub.f32 %v15769_v53, %v2913_v3 }
 0x4ae   : > { %20314 = vst [vmem:[#allocation180_spill] sm:$0xff] %v16019_v36  ;;  %20315 = vst [vmem:[#allocation181_spill] sm:$0xff] %v16022_v18  ;;  %v16064_v41 = vsub.f32 %v15777_v33, %v2913_v3  ;;  %v16067_v15 = vsub.f32 %v15765_v62, %v2913_v3  ;;  %v16070_v5 = vsub.f32 %v15775_v61, %v2913_v3 }
 0x4af   : > { %20316 = vst [vmem:[#allocation182_spill] sm:$0xff] %v16025_v27  ;;  %20317 = vst [vmem:[#allocation183_spill] sm:$0xff] %v16028_v63  ;;  %v2946_v13 = vmul.f32 %v15977_v40, %v15977_v40  ;;  %v2947_v2 = vmul.f32 %v15980_v44, %v15980_v44  ;;  %v2948_v26 = vmul.f32 %v15983_v56, %v15983_v56 }
 0x4b0   : > { %20318 = vst [vmem:[#allocation184_spill] sm:$0xff] %v16031_v21  ;;  %20319 = vst [vmem:[#allocation185_spill] sm:$0xff] %v16034_v29  ;;  %v2949_v53 = vmul.f32 %v15986_v43, %v15986_v43  ;;  %v2950_v61 = vmul.f32 %v15989_v1, %v15989_v1  ;;  %v2951_v38 = vmul.f32 %v15992_v9, %v15992_v9  ;;  %v20350_v1 = vld [vmem:[#allocation45_spill] sm:$0xff] }
 0x4b1   : > { %20320 = vst [vmem:[#allocation186_spill] sm:$0xff] %v16037_v17  ;;  %20321 = vst [vmem:[#allocation187_spill] sm:$0xff] %v16040_v48  ;;  %v2978_v33 = vsel %vm2426_vm8, %v2946_v13, 0.0  ;;  %v2979_v62 = vsel %vm2426_vm8, %v2947_v2, 0.0  ;;  %v2981_v45 = vsel %vm2426_vm8, %v2948_v26, 0.0  ;;  %v2952_v43 = vmul.f32 %v15995_v12, %v15995_v12 }
 0x4b2   : > { %20322 = vst [vmem:[#allocation188_spill] sm:$0xff] %v16043_v39  ;;  %20323 = vst [vmem:[#allocation189_spill] sm:$0xff] %v16046_v28  ;;  %v2980_v16 = vadd.f32 %v2979_v62, %v2978_v33  ;;  %v2983_v44 = vsel %vm2426_vm8, %v2949_v53, 0.0  ;;  %v2985_v13 = vsel %vm2426_vm8, %v2950_v61, 0.0  ;;  %v2953_v2 = vmul.f32 %v15998_v47, %v15998_v47 }
 0x4b3   : > { %20324 = vst [vmem:[#allocation190_spill] sm:$0xff] %v16049_v46  ;;  %20325 = vst [vmem:[#allocation191_spill] sm:$0xff] %v16052_v7  ;;  %v2987_v33 = vsel %vm2426_vm8, %v2951_v38, 0.0  ;;  %v2954_v26 = vmul.f32 %v16001_v6, %v16001_v6  ;;  %v11994_v47 = vunpack.i.h.bf16 %v15460_v20  ;;  %v12009_v12 = vunpack.i.h.bf16 %v15473_v32 }
 0x4b4   : > { %20326 = vst [vmem:[#allocation192_spill] sm:$0xff] %v16055_v51  ;;  %20327 = vst [vmem:[#allocation193_spill] sm:$0xff] %v16058_v10  ;;  %v2982_v3 = vadd.f32 %v2981_v45, %v2980_v16  ;;  %v2989_v16 = vsel %vm2426_vm8, %v2952_v43, 0.0  ;;  %v2991_v53 = vsel %vm2426_vm8, %v2953_v2, 0.0  ;;  %v2958_v43 = vmul.f32 %v16013_v52, %v16013_v52 }
 0x4b5   : > { %20328 = vst [vmem:[#allocation194_spill] sm:$0xff] %v16061_v49  ;;  %20329 = vst [vmem:[#allocation195_spill] sm:$0xff] %v16064_v41  ;;  %v2993_v61 = vsel %vm2426_vm8, %v2954_v26, 0.0  ;;  %v2959_v2 = vmul.f32 %v16016_v50, %v16016_v50  ;;  %v2960_v26 = vmul.f32 %v16019_v36, %v16019_v36  ;;  %v11999_v36 = vunpack.i.h.bf16 %v15457_v4 }
 0x4b6   : > { %20330 = vst [vmem:[#allocation196_spill] sm:$0xff] %v16067_v15  ;;  %20331 = vst [vmem:[#allocation197_spill] sm:$0xff] %v16070_v5  ;;  %v2984_v56 = vadd.f32 %v2983_v44, %v2982_v3  ;;  %v2955_v44 = vmul.f32 %v16004_v54, %v16004_v54  ;;  %v11998_v50 = vunpack.i.l.bf16 %v15457_v4  ;;  %v12008_v4 = vunpack.i.l.bf16 %v15473_v32 }
 0x4b8   : > { %v2986_v40 = vadd.f32 %v2985_v13, %v2984_v56  ;;  %v2956_v56 = vmul.f32 %v16007_v55, %v16007_v55  ;;  %v2995_v38 = vsel %vm2426_vm8, %v2955_v44, 0.0  ;;  %v2961_v44 = vmul.f32 %v16022_v18, %v16022_v18  ;;  %v3319_v18 = vld [vmem:[#allocation2 + $0x394] sm:$0xff] }
 0x4ba   : > { %v2988_v62 = vadd.f32 %v2987_v33, %v2986_v40  ;;  %v2957_v40 = vmul.f32 %v16010_v34, %v16010_v34 }
 0x4bc   : > { %v2990_v45 = vadd.f32 %v2989_v16, %v2988_v62  ;;  %v2997_v62 = vsel %vm2426_vm8, %v2956_v56, 0.0  ;;  %v2962_v56 = vmul.f32 %v16025_v27, %v16025_v27 }
 0x4be   : > { %v2992_v3 = vadd.f32 %v2991_v53, %v2990_v45  ;;  %v2999_v45 = vsel %vm2426_vm8, %v2957_v40, 0.0  ;;  %v2963_v40 = vmul.f32 %v16028_v63, %v16028_v63 }
 0x4c0   : > { %v2994_v13 = vadd.f32 %v2993_v61, %v2992_v3  ;;  %v3001_v3 = vsel %vm2426_vm8, %v2958_v43, 0.0  ;;  %v2964_v43 = vmul.f32 %v16031_v21, %v16031_v21  ;;  %v11979_v21 = vunpack.i.h.bf16 %v15418_v35 }
 0x4c2   : > { %v2996_v33 = vadd.f32 %v2995_v38, %v2994_v13  ;;  %v3003_v13 = vsel %vm2426_vm8, %v2959_v2, 0.0  ;;  %v2965_v2 = vmul.f32 %v16034_v29, %v16034_v29  ;;  %v3318_v29 = vld [vmem:[#allocation2 + $0x38c] sm:$0xff] }
 0x4c4   : > { %v2998_v16 = vadd.f32 %v2997_v62, %v2996_v33  ;;  %v3005_v33 = vsel %vm2426_vm8, %v2960_v26, 0.0  ;;  %v2966_v26 = vmul.f32 %v16037_v17, %v16037_v17  ;;  %v3321_v17 = vld [vmem:[#allocation2 + $0x3cc] sm:$0xff] }
 0x4c6   : > { %v3000_v53 = vadd.f32 %v2999_v45, %v2998_v16  ;;  %v3007_v16 = vsel %vm2426_vm8, %v2961_v44, 0.0  ;;  %v2967_v44 = vmul.f32 %v16040_v48, %v16040_v48  ;;  %v3320_v48 = vld [vmem:[#allocation2 + $0x3c4] sm:$0xff] }
 0x4c8   : > { %v3002_v61 = vadd.f32 %v3001_v3, %v3000_v53  ;;  %v3009_v53 = vsel %vm2426_vm8, %v2962_v56, 0.0  ;;  %v2968_v56 = vmul.f32 %v16043_v39, %v16043_v39  ;;  %v11978_v39 = vunpack.i.l.bf16 %v15418_v35 }
 0x4c9   : > { %v4472_v35 = vsel %vm446_vm0, %v3319_v18, %v11979_v21 }
 0x4ca   : > { %v3004_v38 = vadd.f32 %v3003_v13, %v3002_v61  ;;  %v3011_v61 = vsel %vm2426_vm8, %v2963_v40, 0.0  ;;  %v2969_v40 = vmul.f32 %v16046_v28, %v16046_v28  ;;  %v11988_v28 = vunpack.i.l.bf16 %v15436_v31 }
 0x4cb   : > { %v4471_v6 = vsel %vm446_vm0, %v3318_v29, %v11978_v39  ;;  %v4504_v29 = vsel %vm2228_vm2, %v4472_v35, %v11994_v47 }
 0x4cc   : > { %v3006_v62 = vadd.f32 %v3005_v33, %v3004_v38  ;;  %v3013_v38 = vsel %vm2426_vm8, %v2964_v43, 0.0  ;;  %v2970_v43 = vmul.f32 %v16049_v46, %v16049_v46  ;;  %v11989_v46 = vunpack.i.h.bf16 %v15436_v31 }
 0x4cd   : > { %v4473_v55 = vsel %vm446_vm0, %v3320_v48, %v11988_v28  ;;  %v11993_v31 = vunpack.i.l.bf16 %v15460_v20  ;;  %v12003_v48 = vunpack.i.l.bf16 %v15475_v37 }
 0x4ce   : > { %v3008_v45 = vadd.f32 %v3007_v16, %v3006_v62  ;;  %v3015_v62 = vsel %vm2426_vm8, %v2965_v2, 0.0  ;;  %v2971_v2 = vmul.f32 %v16052_v7, %v16052_v7  ;;  %v4474_v34 = vsel %vm446_vm0, %v3321_v17, %v11989_v46 }
 0x4cf   : > { %v4505_v9 = vsel %vm2228_vm2, %v4473_v55, %v11998_v50  ;;  %v4506_v17 = vsel %vm2228_vm2, %v4474_v34, %v11999_v36  ;;  %v4503_v28 = vsel %vm2228_vm2, %v4471_v6, %v11993_v31  ;;  %v12004_v46 = vunpack.i.h.bf16 %v15475_v37  ;;  %v20347_v55 = vld [vmem:[#allocation69_spill] sm:$0xff]  ;;  %v20348_v36 = vld [vmem:[#allocation70_spill] sm:$0xff]  ;;  %v20349_v31 = vld [vmem:[#allocation71_spill] sm:$0xff] }
 0x4d0   : > { %v3010_v3 = vadd.f32 %v3009_v53, %v3008_v45  ;;  %v3017_v45 = vsel %vm2426_vm8, %v2966_v26, 0.0  ;;  %v2972_v26 = vmul.f32 %v16055_v51, %v16055_v51  ;;  %v4537_v20 = vsel %vm2261_vm3, %v4505_v9, %v12008_v4 }
 0x4d1   : > { %v4538_v18 = vsel %vm2261_vm3, %v4506_v17, %v12009_v12  ;;  %v4535_v32 = vsel %vm2261_vm3, %v4503_v28, %v12003_v48  ;;  %v12019_v34 = vunpack.i.h.bf16 %v20347_v55  ;;  %v12018_v50 = vunpack.i.l.bf16 %v20347_v55  ;;  %v20351_v12 = vld [vmem:[#allocation44_spill] sm:$0xff]  ;;  %v20352_v17 = vld [vmem:[#allocation43_spill] sm:$0xff] }
 0x4d2   : > { %v3012_v13 = vadd.f32 %v3011_v61, %v3010_v3  ;;  %v3019_v3 = vsel %vm2426_vm8, %v2967_v44, 0.0  ;;  %v2973_v44 = vmul.f32 %v16058_v10, %v16058_v10  ;;  %v12013_v6 = vunpack.i.l.bf16 %v20348_v36 }
 0x4d3   : > { %v4536_v37 = vsel %vm2261_vm3, %v4504_v29, %v12004_v46  ;;  %v12014_v47 = vunpack.i.h.bf16 %v20348_v36  ;;  %v12028_v35 = vunpack.i.l.bf16 %v20349_v31  ;;  %v4569_v9 = vsel %vm2294_vm4, %v4537_v20, %v20350_v1  ;;  %v20353_v46 = vld [vmem:[#allocation42_spill] sm:$0xff] }
 0x4d4   : > { %v3014_v33 = vadd.f32 %v3013_v38, %v3012_v13  ;;  %v3021_v13 = vsel %vm2426_vm8, %v2968_v56, 0.0  ;;  %v2974_v56 = vmul.f32 %v16061_v49, %v16061_v49  ;;  %v4570_v4 = vsel %vm2294_vm4, %v4538_v18, %v20351_v12  ;;  %v3322_v20 = vld [vmem:[#allocation2 + $0x3fc] sm:$0xff] }
 0x4d5   : > { %v4567_v48 = vsel %vm2294_vm4, %v4535_v32, %v20352_v17  ;;  %v12029_v28 = vunpack.i.h.bf16 %v20349_v31  ;;  %v4601_v55 = vsel %vm2327_vm5, %v4569_v9, %v12018_v50  ;;  %v4602_v60 = vsel %vm2327_vm5, %v4570_v4, %v12019_v34  ;;  %v3323_v4 = vld [vmem:[#allocation2 + $0x404] sm:$0xff] }
 0x4d6   : > { %v3016_v16 = vadd.f32 %v3015_v62, %v3014_v33  ;;  %v3023_v33 = vsel %vm2426_vm8, %v2969_v40, 0.0  ;;  %v2975_v40 = vmul.f32 %v16064_v41, %v16064_v41  ;;  %v4568_v29 = vsel %vm2294_vm4, %v4536_v37, %v20353_v46  ;;  %v20358_v37 = vld [vmem:[#allocation72_spill] sm:$0xff] }
 0x4d7   : > { %v4599_v36 = vsel %vm2327_vm5, %v4567_v48, %v12013_v6  ;;  %v12048_v18 = vunpack.i.l.bf16 %v20355_v57  ;;  %v4600_v34 = vsel %vm2327_vm5, %v4568_v29, %v12014_v47  ;;  %v4633_v50 = vsel %vm2360_vm6, %v4601_v55, %v12028_v35  ;;  %v3324_v48 = vld [vmem:[#allocation2 + $0x434] sm:$0xff] }
 0x4d8   : > { %v3018_v53 = vadd.f32 %v3017_v45, %v3016_v16  ;;  %v3025_v16 = vsel %vm2426_vm8, %v2970_v43, 0.0  ;;  %v2976_v43 = vmul.f32 %v16067_v15, %v16067_v15  ;;  %v12024_v9 = vunpack.i.h.bf16 %v20358_v37  ;;  %v20359_v57 = vld [vmem:[#allocation73_spill] sm:$0xff]  ;;  %v20362_v35 = vld [vmem:[#allocation80_spill] sm:$0xff] }
 0x4d9   : > { %v12023_v6 = vunpack.i.l.bf16 %v20358_v37  ;;  %v12064_v55 = vunpack.i.h.bf16 %v20362_v35  ;;  %v12063_v29 = vunpack.i.l.bf16 %v20362_v35  ;;  %v4476_v37 = vsel %vm446_vm0, %v3323_v4, %v12049_v59  ;;  %v20366_v4 = vld [vmem:[#allocation82_spill] sm:$0xff] }
 0x4da   : > { %v3020_v61 = vadd.f32 %v3019_v3, %v3018_v53  ;;  %v3027_v53 = vsel %vm2426_vm8, %v2971_v2, 0.0  ;;  %v2977_v2 = vmul.f32 %v16070_v5, %v16070_v5  ;;  %v4475_v12 = vsel %vm446_vm0, %v3322_v20, %v12048_v18 }
 0x4db   : > { %v4631_v1 = vsel %vm2360_vm6, %v4599_v36, %v12023_v6  ;;  %v12074_v20 = vunpack.i.h.bf16 %v20366_v4 }
 0x4dc   : > { %v3022_v38 = vadd.f32 %v3021_v13, %v3020_v61  ;;  %v3029_v61 = vsel %vm2426_vm8, %v2972_v26, 0.0  ;;  %v3037_v26 = vsel %vm2426_vm8, %v2976_v43, 0.0 }
 0x4de   : > { %v3024_v62 = vadd.f32 %v3023_v33, %v3022_v38  ;;  %v3031_v38 = vsel %vm2426_vm8, %v2973_v44, 0.0 }
 0x4e0   : > { %v3026_v45 = vadd.f32 %v3025_v16, %v3024_v62  ;;  %v3033_v62 = vsel %vm2426_vm8, %v2974_v56, 0.0  ;;  %v16173_v56 = vpop.permute.xlu0 %12471 }
 0x4e2   : > { %v3028_v3 = vadd.f32 %v3027_v53, %v3026_v45  ;;  %v3035_v45 = vsel %vm2426_vm8, %v2975_v40, 0.0 }
 0x4e4   : > { %v3030_v13 = vadd.f32 %v3029_v61, %v3028_v3  ;;  %v3039_v61 = vsel %vm2426_vm8, %v2977_v2, 0.0  ;;  %v16175_v40 = vpop.permute.xlu0 %12481 }
 0x4e6   : > { %v3032_v33 = vadd.f32 %v3031_v38, %v3030_v13 }
 0x4e8   : > { %v3034_v16 = vadd.f32 %v3033_v62, %v3032_v33  ;;  %v16177_v33 = vpop.permute.xlu1 %12476 }
 0x4ea   : > { %v3036_v53 = vadd.f32 %v3035_v45, %v3034_v16 }
 0x4ec   : > { %v3038_v3 = vadd.f32 %v3037_v26, %v3036_v53  ;;  %v16181_v43 = vpop.permute.xlu1 %12486 }
 0x4ee   : > { %v3040_v63 = vadd.f32 %v3039_v61, %v3038_v3 }
 0x4f0   : > { %v3041_v44 = vrot.slane %v3040_v63, 4 }
 0x4f2   : > { %v3042_v13 = vadd.f32 %v3041_v44, %v3040_v63  ;;  %v16179_v63 = vpop.permute.xlu0 %12491 }
 0x4f4   : > { %v3043_v38 = vrot.slane %v3042_v13, 2 }
 0x4f6   : > { %v3044_v27 = vadd.f32 %v3043_v38, %v3042_v13 }
 0x4f8   : > { %v3045_v15 = vrot.slane %v3044_v27, 1 }
 0x4fa   : > { %v3046_v41 = vadd.f32 %v3045_v15, %v3044_v27  ;;  %v16183_v27 = vpop.permute.xlu0 %12501 }
 0x4fc   : > { %10711 = vmatmul.mubr.msk.f32.vlgmr.msra.gmra.mrb[4].mxu1 %vm2426_vm8, %v3046_v41  ;;  %v16185_v41 = vpop.permute.xlu1 %12496 }
 0x4fd   : > { %11038 = vmatpush3.bf16.msra.mxu1 %v15949_v0  ;;  %10717 = vmatprep.mubr.msk.f32.mxu1 %vm13307_vm10, %v20221_v11 }
 0x4fe   : > { %11135 = vmatprep.subr.bf16.mxu1 %v14716_v22  ;;  %v16187_v15 = vpop.permute.xlu0 %12511 }
 0x500   : > { %v16189_v62 = vpop.permute.xlu1 %12506 }
 0x502   : > { %v16191_v16 = vpop.permute.xlu0 %12521 }
 0x503   : > { %20332 = vst [vmem:[#allocation198_spill] sm:$0xff] %v16191_v16  ;;  %v20436_v16 = vld [vmem:[#allocation124_spill] sm:$0xff] }
 0x504   : > { %v16193_v2 = vpop.permute.xlu1 %12516 }
 0x506   : > { %v16195_v45 = vpop.permute.xlu0 %12531 }
 0x507   : > { %20333 = vst [vmem:[#allocation199_spill] sm:$0xff] %v16195_v45 }
 0x508   : > { %v16197_v53 = vpop.permute.xlu1 %12526 }
 0x50a   : > { %v16199_v26 = vpop.permute.xlu0 %12541 }
 0x50b   : > { %20334 = vst [vmem:[#allocation200_spill] sm:$0xff] %v16199_v26 }
 0x50c   : > { %v16201_v3 = vpop.permute.xlu1 %12536 }
 0x50e   : > { %v16203_v61 = vpop.permute.xlu0 %12551 }
 0x50f   : > { %20335 = vst [vmem:[#allocation201_spill] sm:$0xff] %v16203_v61  ;;  %v20437_v61 = vld [vmem:[#allocation122_spill] sm:$0xff] }
 0x510   : > { %v16205_v44 = vpop.permute.xlu1 %12546 }
 0x512   : > { %v16207_v13 = vpop.permute.xlu0 %12561 }
 0x513   : > { %20336 = vst [vmem:[#allocation202_spill] sm:$0xff] %v16207_v13  ;;  %v20412_v13 = vld [vmem:[#allocation106_spill] sm:$0xff] }
 0x514   : > { %v16209_v38 = vpop.permute.xlu1 %12556 }
 0x516   : > { %v16211_v0 = vpop.permute.xlu0 %12571 }
 0x517   : > { %20337 = vst [vmem:[#allocation203_spill] sm:$0xff] %v16211_v0  ;;  %v20365_v0 = vld [vmem:[#allocation81_spill] sm:$0xff] }
 0x518   : > { %v16213_v5 = vpop.permute.xlu1 %12566  ;;  %v12079_v35 = vunpack.i.h.bf16 %v20365_v0  ;;  %v12078_v59 = vunpack.i.l.bf16 %v20365_v0 }
 0x519   : > { %20338 = vst [vmem:[#allocation204_spill] sm:$0xff] %v16213_v5  ;;  %v12183_v5 = vunpack.i.l.bf16 %v20412_v13 }
 0x51a   : > { %v16215_v49 = vpop.permute.xlu0 %12581 }
 0x51b   : > { %20339 = vst [vmem:[#allocation205_spill] sm:$0xff] %v16215_v49  ;;  %v20363_v49 = vld [vmem:[#allocation76_spill] sm:$0xff] }
 0x51c   : > { %v16217_v10 = vpop.permute.xlu1 %12576 }
 0x51d   : > { %20340 = vst [vmem:[#allocation206_spill] sm:$0xff] %v16217_v10 }
 0x51e   : > { %v16219_v51 = vpop.permute.xlu0 %12591 }
 0x51f   : > { %20341 = vst [vmem:[#allocation207_spill] sm:$0xff] %v16219_v51  ;;  %v4634_v51 = vsel %vm2360_vm6, %v4602_v60, %v12029_v28 }
 0x520   : > { %v16221_v7 = vpop.permute.xlu1 %12586 }
 0x521   : > { %20342 = vst [vmem:[#allocation208_spill] sm:$0xff] %v16221_v7  ;;  %v12044_v7 = vunpack.i.h.bf16 %v20363_v49 }
 0x522   : > { %v16229_v52 = vpop.permute.xlu0 %12601 }
 0x523   : > { %20343 = vst [vmem:[#allocation209_spill] sm:$0xff] %v16229_v52 }
 0x524   : > { %v16234_v54 = vpop.permute.xlu1 %12596 }
 0x525   : > { %20344 = vst [vmem:[#allocation210_spill] sm:$0xff] %v16234_v54  ;;  %v12038_v54 = vunpack.i.l.bf16 %v20359_v57 }
 0x526   : > { %v16247_v39 = vpop.permute.xlu0 %12611 }
 0x527   : > { %20345 = vst [vmem:[#allocation211_spill] sm:$0xff] %v16247_v39  ;;  %v20356_v39 = vld [vmem:[#allocation77_spill] sm:$0xff] }
 0x528   : > { %v16251_v21 = vpop.permute.xlu1 %12606  ;;  %v12059_v32 = vunpack.i.h.bf16 %v20356_v39  ;;  %v12058_v31 = vunpack.i.l.bf16 %v20356_v39 }
 0x529   : > { %20346 = vst [vmem:[#allocation212_spill] sm:$0xff] %v16251_v21  ;;  %v20360_v21 = vld [vmem:[#allocation74_spill] sm:$0xff] }
 0x52a   : > { %v16272_v11 = vpop.permute.xlu0 %12621  ;;  %v12034_v46 = vunpack.i.h.bf16 %v20360_v21  ;;  %v12033_v39 = vunpack.i.l.bf16 %v20360_v21  ;;  %v4477_v28 = vsel %vm446_vm0, %v3324_v48, %v12058_v31  ;;  %v4632_v21 = vsel %vm2360_vm6, %v4600_v34, %v12024_v9 }
 0x52b   : > { %20354 = vst [vmem:[#allocation69_spill] sm:$0xff] %v16272_v11  ;;  %v3325_v11 = vld [vmem:[#allocation2 + $0x43c] sm:$0xff]  ;;  %v4508_v31 = vsel %vm2228_vm2, %v4476_v37, %v12064_v55  ;;  %v12039_v34 = vunpack.i.h.bf16 %v20359_v57  ;;  %v4665_v9 = vsel %vm2393_vm7, %v4633_v50, %v12038_v54  ;;  %v20369_v50 = vld [vmem:[#allocation83_spill] sm:$0xff] }
 0x52c   : > { %v16278_v52 = vpop.permute.xlu1 %12616  ;;  %v4478_v60 = vsel %vm446_vm0, %v3325_v11, %v12059_v32  ;;  %v12073_v11 = vunpack.i.l.bf16 %v20366_v4  ;;  %v4663_v0 = vsel %vm2393_vm7, %v4631_v1, %v12033_v39  ;;  %v4664_v6 = vsel %vm2393_vm7, %v4632_v21, %v12034_v46  ;;  %v20372_v21 = vld [vmem:[#allocation87_spill] sm:$0xff] }
 0x52d   : > { %20357 = vst [vmem:[#allocation70_spill] sm:$0xff] %v16278_v52  ;;  %v20361_v52 = vld [vmem:[#allocation79_spill] sm:$0xff]  ;;  %v16320_v4 = vsel %vm2426_vm8, %v4664_v6, %v12044_v7  ;;  %v4540_v1 = vsel %vm2261_vm3, %v4508_v31, %v12074_v20  ;;  %v12089_v46 = vunpack.i.h.bf16 %v20369_v50  ;;  %v12088_v39 = vunpack.i.l.bf16 %v20369_v50  ;;  %v20377_v6 = vld [vmem:[#allocation46_spill] sm:$0xff]  ;;  %v20378_v50 = vld [vmem:[#allocation88_spill] sm:$0xff] }
 0x52e   : > { %v12069_v17 = vunpack.i.h.bf16 %v20361_v52  ;;  %v12068_v47 = vunpack.i.l.bf16 %v20361_v52  ;;  %v12043_v52 = vunpack.i.l.bf16 %v20363_v49  ;;  %v16300_v14 = vpop.permute.xlu0 %12631  ;;  %v4507_v49 = vsel %vm2228_vm2, %v4475_v12, %v12063_v29  ;;  %v20370_v29 = vld [vmem:[#allocation84_spill] sm:$0xff] }
 0x52f   : > { %20364 = vst [vmem:[#allocation71_spill] sm:$0xff] %v16300_v14  ;;  %v4539_v54 = vsel %vm2261_vm3, %v4507_v49, %v12073_v11  ;;  %v12084_v37 = vunpack.i.h.bf16 %v20370_v29  ;;  %v12083_v7 = vunpack.i.l.bf16 %v20370_v29  ;;  %v20375_v49 = vld [vmem:[#allocation48_spill] sm:$0xff]  ;;  %v12094_v29 = vunpack.i.h.bf16 %v20378_v50 }
 0x530   : > { %v16306_v18 = vpop.permute.xlu1 %12626  ;;  %v4509_v36 = vsel %vm2228_vm2, %v4477_v28, %v12068_v47  ;;  %v4510_v32 = vsel %vm2228_vm2, %v4478_v60, %v12069_v17  ;;  %v16317_v48 = vsel %vm2426_vm8, %v4663_v0, %v12043_v52  ;;  %v20368_v47 = vld [vmem:[#allocation78_spill] sm:$0xff]  ;;  %v4666_v28 = vsel %vm2393_vm7, %v4634_v51, %v12039_v34  ;;  %v20376_v34 = vld [vmem:[#allocation47_spill] sm:$0xff] }
 0x531   : > { %20367 = vst [vmem:[#allocation75_spill] sm:$0xff] %v16306_v18  ;;  %v12054_v17 = vunpack.i.h.bf16 %v20368_v47  ;;  %v12053_v55 = vunpack.i.l.bf16 %v20368_v47  ;;  %v4541_v12 = vsel %vm2261_vm3, %v4509_v36, %v12078_v59  ;;  %v4542_v57 = vsel %vm2261_vm3, %v4510_v32, %v12079_v35  ;;  %v20374_v32 = vld [vmem:[#allocation49_spill] sm:$0xff] }
 0x532   : > { %v16332_v60 = vpop.permute.xlu0 %12641  ;;  %v12099_v52 = vunpack.i.h.bf16 %v20372_v21  ;;  %v12098_v35 = vunpack.i.l.bf16 %v20372_v21  ;;  %v4573_v31 = vsel %vm2294_vm4, %v4541_v12, %v20374_v32  ;;  %v4574_v51 = vsel %vm2294_vm4, %v4542_v57, %v20375_v49  ;;  %v20381_v49 = vld [vmem:[#allocation91_spill] sm:$0xff] }
 0x533   : > { %20371 = vst [vmem:[#allocation77_spill] sm:$0xff] %v16332_v60  ;;  %v16342_v11 = vsel %vm2426_vm8, %v4666_v28, %v12054_v17  ;;  %v16345_v36 = vsel %vm2426_vm8, %v4665_v9, %v12053_v55  ;;  %v4571_v0 = vsel %vm2294_vm4, %v4539_v54, %v20376_v34  ;;  %v4572_v47 = vsel %vm2294_vm4, %v4540_v1, %v20377_v6  ;;  %v20379_v54 = vld [vmem:[#allocation93_spill] sm:$0xff]  ;;  %v20380_v6 = vld [vmem:[#allocation90_spill] sm:$0xff]  ;;  %v20386_v60 = vld [vmem:[#allocation95_spill] sm:$0xff] }
 0x534   : > { %v16337_v59 = vpop.permute.xlu1 %12636  ;;  %v12093_v17 = vunpack.i.l.bf16 %v20378_v50  ;;  %v4605_v28 = vsel %vm2327_vm5, %v4573_v31, %v12088_v39  ;;  %v4606_v9 = vsel %vm2327_vm5, %v4574_v51, %v12089_v46  ;;  %v4603_v55 = vsel %vm2327_vm5, %v4571_v0, %v12083_v7  ;;  %v3328_v31 = vld [vmem:[#allocation2 + $0x4a4] sm:$0xff]  ;;  %v3329_v7 = vld [vmem:[#allocation2 + $0x4ac] sm:$0xff]  ;;  %v3327_v0 = vld [vmem:[#allocation2 + $0x474] sm:$0xff] }
 0x535   : > { %20373 = vst [vmem:[#allocation72_spill] sm:$0xff] %v16337_v59  ;;  %v4604_v12 = vsel %vm2327_vm5, %v4572_v47, %v12084_v37  ;;  %v4637_v57 = vsel %vm2360_vm6, %v4605_v28, %v12098_v35  ;;  %v4638_v21 = vsel %vm2360_vm6, %v4606_v9, %v12099_v52  ;;  %v12129_v20 = vunpack.i.h.bf16 %v20379_v54  ;;  %v3326_v35 = vld [vmem:[#allocation2 + $0x46c] sm:$0xff] }
 0x536   : > { %v12128_v1 = vunpack.i.l.bf16 %v20379_v54  ;;  %v12104_v34 = vunpack.i.h.bf16 %v20380_v6  ;;  %v12103_v50 = vunpack.i.l.bf16 %v20380_v6  ;;  %v12119_v39 = vunpack.i.h.bf16 %v20381_v49  ;;  %v16369_v51 = vpop.permute.xlu0 %12651  ;;  %v20383_v47 = vld [vmem:[#allocation92_spill] sm:$0xff]  ;;  %v20385_v6 = vld [vmem:[#allocation89_spill] sm:$0xff] }
 0x537   : > { %v12118_v46 = vunpack.i.l.bf16 %v20381_v49  ;;  %20382 = vst [vmem:[#allocation73_spill] sm:$0xff] %v16369_v51  ;;  %v4635_v37 = vsel %vm2360_vm6, %v4603_v55, %v12093_v17  ;;  %v4636_v52 = vsel %vm2360_vm6, %v4604_v12, %v12094_v29  ;;  %v12114_v28 = vunpack.i.h.bf16 %v20383_v47  ;;  %v20387_v55 = vld [vmem:[#allocation96_spill] sm:$0xff] }
 0x538   : > { %v12113_v9 = vunpack.i.l.bf16 %v20383_v47  ;;  %v16375_v54 = vpop.permute.xlu1 %12646  ;;  %v12109_v32 = vunpack.i.h.bf16 %v20385_v6  ;;  %v12108_v49 = vunpack.i.l.bf16 %v20385_v6  ;;  %v12139_v14 = vunpack.i.h.bf16 %v20386_v60 }
 0x539   : > { %20384 = vst [vmem:[#allocation74_spill] sm:$0xff] %v16375_v54  ;;  %v12138_v51 = vunpack.i.l.bf16 %v20386_v60  ;;  %v4482_v17 = vsel %vm446_vm0, %v3329_v7, %v12129_v20  ;;  %v4481_v29 = vsel %vm446_vm0, %v3328_v31, %v12128_v1  ;;  %v12134_v12 = vunpack.i.h.bf16 %v20387_v55  ;;  %v20390_v20 = vld [vmem:[#allocation97_spill] sm:$0xff] }
 0x53a   : > { %v12133_v59 = vunpack.i.l.bf16 %v20387_v55  ;;  %v4667_v47 = vsel %vm2393_vm7, %v4635_v37, %v12103_v50  ;;  %v4668_v54 = vsel %vm2393_vm7, %v4636_v52, %v12104_v34  ;;  %v4480_v18 = vsel %vm446_vm0, %v3327_v0, %v12119_v39  ;;  %v20391_v37 = vld [vmem:[#allocation98_spill] sm:$0xff]  ;;  %v16401_v52 = vpop.permute.xlu0 %12661 }
 0x53b   : > { %v4479_v6 = vsel %vm446_vm0, %v3326_v35, %v12118_v46  ;;  %v16390_v10 = vsel %vm2426_vm8, %v4667_v47, %v12113_v9  ;;  %v16393_v60 = vsel %vm2426_vm8, %v4668_v54, %v12114_v28  ;;  %v12149_v1 = vunpack.i.h.bf16 %v20390_v20  ;;  %20392 = vst [vmem:[#allocation76_spill] sm:$0xff] %v16401_v52  ;;  %v20393_v46 = vld [vmem:[#allocation94_spill] sm:$0xff]  ;;  %v20408_v52 = vld [vmem:[#allocation103_spill] sm:$0xff] }
 0x53c   : > { %20388 = vst [vmem:[#allocation79_spill] sm:$0xff] %v16390_v10  ;;  %20389 = vst [vmem:[#allocation80_spill] sm:$0xff] %v16393_v60  ;;  %v12148_v31 = vunpack.i.l.bf16 %v20390_v20  ;;  %v4513_v7 = vsel %vm2228_vm2, %v4481_v29, %v12138_v51  ;;  %v4514_v50 = vsel %vm2228_vm2, %v4482_v17, %v12139_v14  ;;  %v12144_v34 = vunpack.i.h.bf16 %v20391_v37  ;;  %v16407_v54 = vpop.permute.xlu1 %12656  ;;  %v20395_v20 = vld [vmem:[#allocation99_spill] sm:$0xff] }
 0x53d   : > { %v12143_v39 = vunpack.i.l.bf16 %v20391_v37  ;;  %v12124_v35 = vunpack.i.h.bf16 %v20393_v46  ;;  %v12123_v0 = vunpack.i.l.bf16 %v20393_v46  ;;  %v4512_v28 = vsel %vm2228_vm2, %v4480_v18, %v12134_v12  ;;  %20394 = vst [vmem:[#allocation81_spill] sm:$0xff] %v16407_v54  ;;  %v20396_v37 = vld [vmem:[#allocation100_spill] sm:$0xff] }
 0x53e   : > { %v4511_v9 = vsel %vm2228_vm2, %v4479_v6, %v12133_v59  ;;  %v4669_v14 = vsel %vm2393_vm7, %v4637_v57, %v12108_v49  ;;  %v4670_v17 = vsel %vm2393_vm7, %v4638_v21, %v12109_v32  ;;  %v4545_v55 = vsel %vm2261_vm3, %v4513_v7, %v12148_v31  ;;  %v20397_v49 = vld [vmem:[#allocation101_spill] sm:$0xff]  ;;  %v20398_v7 = vld [vmem:[#allocation50_spill] sm:$0xff] }
 0x53f   : > { %v4546_v47 = vsel %vm2261_vm3, %v4514_v50, %v12149_v1  ;;  %v12159_v18 = vunpack.i.h.bf16 %v20395_v20  ;;  %v12158_v59 = vunpack.i.l.bf16 %v20395_v20  ;;  %v4543_v12 = vsel %vm2261_vm3, %v4511_v9, %v12143_v39  ;;  %v20399_v39 = vld [vmem:[#allocation53_spill] sm:$0xff] }
 0x540   : > { %v4544_v6 = vsel %vm2261_vm3, %v4512_v28, %v12144_v34  ;;  %v12154_v46 = vunpack.i.h.bf16 %v20396_v37  ;;  %v12153_v57 = vunpack.i.l.bf16 %v20396_v37  ;;  %v16424_v32 = vsel %vm2426_vm8, %v4670_v17, %v12124_v35  ;;  %v20400_v28 = vld [vmem:[#allocation102_spill] sm:$0xff]  ;;  %v16437_v37 = vpop.permute.xlu0 %12671 }
 0x541   : > { %v16427_v21 = vsel %vm2426_vm8, %v4669_v14, %v12123_v0  ;;  %v12169_v1 = vunpack.i.h.bf16 %v20397_v49  ;;  %v12168_v31 = vunpack.i.l.bf16 %v20397_v49  ;;  %v4577_v50 = vsel %vm2294_vm4, %v4545_v55, %v20398_v7  ;;  %20401 = vst [vmem:[#allocation82_spill] sm:$0xff] %v16437_v37  ;;  %v20402_v14 = vld [vmem:[#allocation51_spill] sm:$0xff]  ;;  %v20403_v49 = vld [vmem:[#allocation52_spill] sm:$0xff]  ;;  %v16445_v55 = vpop.permute.xlu1 %12666  ;;  %v3330_v37 = vld [vmem:[#allocation2 + $0x4dc] sm:$0xff] }
 0x542   : > { %v4578_v34 = vsel %vm2294_vm4, %v4546_v47, %v20399_v39  ;;  %v12164_v9 = vunpack.i.h.bf16 %v20400_v28  ;;  %v12163_v20 = vunpack.i.l.bf16 %v20400_v28  ;;  %v4609_v35 = vsel %vm2327_vm5, %v4577_v50, %v12158_v59  ;;  %20404 = vst [vmem:[#allocation78_spill] sm:$0xff] %v16445_v55  ;;  %v20405_v39 = vld [vmem:[#allocation107_spill] sm:$0xff]  ;;  %v20406_v50 = vld [vmem:[#allocation105_spill] sm:$0xff] }
 0x543   : > { %v4610_v0 = vsel %vm2327_vm5, %v4578_v34, %v12159_v18  ;;  %v4575_v17 = vsel %vm2294_vm4, %v4543_v12, %v20402_v14  ;;  %v4576_v29 = vsel %vm2294_vm4, %v4544_v6, %v20403_v49  ;;  %v12199_v28 = vunpack.i.h.bf16 %v20405_v39  ;;  %v3332_v14 = vld [vmem:[#allocation2 + $0x514] sm:$0xff]  ;;  %v3333_v6 = vld [vmem:[#allocation2 + $0x51c] sm:$0xff] }
 0x544   : > { %v4607_v47 = vsel %vm2327_vm5, %v4575_v17, %v12153_v57  ;;  %v4608_v51 = vsel %vm2327_vm5, %v4576_v29, %v12154_v46  ;;  %v12198_v7 = vunpack.i.l.bf16 %v20405_v39  ;;  %v4641_v59 = vsel %vm2360_vm6, %v4609_v35, %v12168_v31  ;;  %v20407_v17 = vld [vmem:[#allocation104_spill] sm:$0xff]  ;;  %v3331_v39 = vld [vmem:[#allocation2 + $0x4e4] sm:$0xff]  ;;  %v20409_v35 = vld [vmem:[#allocation109_spill] sm:$0xff]  ;;  %v16467_v54 = vpop.permute.xlu0 %12681 }
 0x545   : > { %v4642_v18 = vsel %vm2360_vm6, %v4610_v0, %v12169_v1  ;;  %v12189_v34 = vunpack.i.h.bf16 %v20406_v50  ;;  %v12188_v12 = vunpack.i.l.bf16 %v20406_v50  ;;  %v4639_v49 = vsel %vm2360_vm6, %v4607_v47, %v12163_v20  ;;  %v20410_v47 = vld [vmem:[#allocation110_spill] sm:$0xff]  ;;  %20411 = vst [vmem:[#allocation83_spill] sm:$0xff] %v16467_v54  ;;  %v16473_v45 = vpop.permute.xlu1 %12676  ;;  %v20416_v54 = vld [vmem:[#allocation108_spill] sm:$0xff] }
 0x546   : > { %v4640_v57 = vsel %vm2360_vm6, %v4608_v51, %v12164_v9  ;;  %v12174_v29 = vunpack.i.h.bf16 %v20407_v17  ;;  %v12173_v46 = vunpack.i.l.bf16 %v20407_v17  ;;  %v12179_v31 = vunpack.i.h.bf16 %v20408_v52  ;;  %20413 = vst [vmem:[#allocation84_spill] sm:$0xff] %v16473_v45 }
 0x547   : > { %v12178_v1 = vunpack.i.l.bf16 %v20408_v52  ;;  %v12209_v0 = vunpack.i.h.bf16 %v20409_v35  ;;  %v12208_v50 = vunpack.i.l.bf16 %v20409_v35  ;;  %v4486_v55 = vsel %vm446_vm0, %v3333_v6, %v12199_v28 }
 0x548   : > { %v4485_v20 = vsel %vm446_vm0, %v3332_v14, %v12198_v7  ;;  %v12204_v51 = vunpack.i.h.bf16 %v20410_v47  ;;  %v12203_v9 = vunpack.i.l.bf16 %v20410_v47  ;;  %v4484_v17 = vsel %vm446_vm0, %v3331_v39, %v12189_v34  ;;  %v20414_v14 = vld [vmem:[#allocation111_spill] sm:$0xff]  ;;  %v20415_v39 = vld [vmem:[#allocation112_spill] sm:$0xff] }
 0x549   : > { %v4483_v26 = vsel %vm446_vm0, %v3330_v37, %v12188_v12  ;;  %v12184_v52 = vunpack.i.h.bf16 %v20412_v13  ;;  %v4671_v28 = vsel %vm2393_vm7, %v4639_v49, %v12173_v46  ;;  %v4672_v7 = vsel %vm2393_vm7, %v4640_v57, %v12174_v29 }
 0x54a   : > { %v12219_v6 = vunpack.i.h.bf16 %v20414_v14  ;;  %v12218_v35 = vunpack.i.l.bf16 %v20414_v14  ;;  %v4517_v47 = vsel %vm2228_vm2, %v4485_v20, %v12208_v50  ;;  %v4518_v34 = vsel %vm2228_vm2, %v4486_v55, %v12209_v0  ;;  %v20417_v14 = vld [vmem:[#allocation113_spill] sm:$0xff] }
 0x54b   : > { %v12214_v37 = vunpack.i.h.bf16 %v20415_v39  ;;  %v12213_v12 = vunpack.i.l.bf16 %v20415_v39  ;;  %v12194_v13 = vunpack.i.h.bf16 %v20416_v54  ;;  %v12193_v45 = vunpack.i.l.bf16 %v20416_v54 }
 0x54c   : > { %v4516_v49 = vsel %vm2228_vm2, %v4484_v17, %v12204_v51  ;;  %v4515_v57 = vsel %vm2228_vm2, %v4483_v26, %v12203_v9  ;;  %v4673_v29 = vsel %vm2393_vm7, %v4641_v59, %v12178_v1  ;;  %v4674_v46 = vsel %vm2393_vm7, %v4642_v18, %v12179_v31  ;;  %v16499_v17 = vpop.permute.xlu0 %12691  ;;  %v20419_v18 = vld [vmem:[#allocation114_spill] sm:$0xff]  ;;  %v16505_v1 = vpop.permute.xlu1 %12686 }
 0x54d   : > { %v16490_v50 = vsel %vm2426_vm8, %v4671_v28, %v12183_v5  ;;  %v16493_v55 = vsel %vm2426_vm8, %v4672_v7, %v12184_v52  ;;  %v4549_v0 = vsel %vm2261_vm3, %v4517_v47, %v12218_v35  ;;  %v4550_v20 = vsel %vm2261_vm3, %v4518_v34, %v12219_v6  ;;  %20418 = vst [vmem:[#allocation87_spill] sm:$0xff] %v16499_v17  ;;  %v20422_v28 = vld [vmem:[#allocation115_spill] sm:$0xff]  ;;  %v20423_v35 = vld [vmem:[#allocation60_spill] sm:$0xff] }
 0x54e   : > { %v12229_v54 = vunpack.i.h.bf16 %v20417_v14  ;;  %v12228_v51 = vunpack.i.l.bf16 %v20417_v14  ;;  %v4547_v26 = vsel %vm2261_vm3, %v4515_v57, %v12213_v12  ;;  %v4548_v59 = vsel %vm2261_vm3, %v4516_v49, %v12214_v37  ;;  %20420 = vst [vmem:[#allocation88_spill] sm:$0xff] %v16505_v1  ;;  %v20424_v34 = vld [vmem:[#allocation59_spill] sm:$0xff]  ;;  %v20425_v37 = vld [vmem:[#allocation116_spill] sm:$0xff] }
 0x54f   : > { %v12224_v5 = vunpack.i.h.bf16 %v20419_v18  ;;  %v12223_v31 = vunpack.i.l.bf16 %v20419_v18  ;;  %v16508_v9 = vsel %vm2426_vm8, %v4674_v46, %v12194_v13  ;;  %v16511_v52 = vsel %vm2426_vm8, %v4673_v29, %v12193_v45  ;;  %v20426_v45 = vld [vmem:[#allocation58_spill] sm:$0xff]  ;;  %v20427_v46 = vld [vmem:[#allocation57_spill] sm:$0xff] }
 0x550   : > { %20421 = vst [vmem:[#allocation93_spill] sm:$0xff] %v16511_v52  ;;  %v12239_v7 = vunpack.i.h.bf16 %v20422_v28  ;;  %v12238_v6 = vunpack.i.l.bf16 %v20422_v28  ;;  %v4581_v47 = vsel %vm2294_vm4, %v4549_v0, %v20423_v35  ;;  %v4582_v39 = vsel %vm2294_vm4, %v4550_v20, %v20424_v34  ;;  %v20428_v28 = vld [vmem:[#allocation118_spill] sm:$0xff]  ;;  %v20434_v35 = vld [vmem:[#allocation120_spill] sm:$0xff] }
 0x551   : > { %v12234_v12 = vunpack.i.h.bf16 %v20425_v37  ;;  %v12233_v49 = vunpack.i.l.bf16 %v20425_v37  ;;  %v4613_v13 = vsel %vm2327_vm5, %v4581_v47, %v12228_v51  ;;  %v4614_v57 = vsel %vm2327_vm5, %v4582_v39, %v12229_v54  ;;  %v20429_v47 = vld [vmem:[#allocation121_spill] sm:$0xff] }
 0x552   : > { %v4579_v29 = vsel %vm2294_vm4, %v4547_v26, %v20426_v45  ;;  %v4580_v14 = vsel %vm2294_vm4, %v4548_v59, %v20427_v46  ;;  %v12244_v20 = vunpack.i.h.bf16 %v20428_v28  ;;  %v12243_v34 = vunpack.i.l.bf16 %v20428_v28  ;;  %v16535_v26 = vpop.permute.xlu0 %12701  ;;  %v3336_v46 = vld [vmem:[#allocation2 + $0x584] sm:$0xff]  ;;  %v3337_v28 = vld [vmem:[#allocation2 + $0x58c] sm:$0xff]  ;;  %v16541_v45 = vpop.permute.xlu1 %12696 }
 0x553   : > { %v4611_v18 = vsel %vm2327_vm5, %v4579_v29, %v12223_v31  ;;  %v4612_v0 = vsel %vm2327_vm5, %v4580_v14, %v12224_v5  ;;  %v4645_v37 = vsel %vm2360_vm6, %v4613_v13, %v12238_v6  ;;  %v4646_v51 = vsel %vm2360_vm6, %v4614_v57, %v12239_v7  ;;  %20430 = vst [vmem:[#allocation90_spill] sm:$0xff] %v16535_v26  ;;  %v20431_v29 = vld [vmem:[#allocation119_spill] sm:$0xff]  ;;  %v20433_v6 = vld [vmem:[#allocation117_spill] sm:$0xff] }
 0x554   : > { %v12269_v54 = vunpack.i.h.bf16 %v20429_v47  ;;  %v12268_v39 = vunpack.i.l.bf16 %v20429_v47  ;;  %v4643_v59 = vsel %vm2360_vm6, %v4611_v18, %v12233_v49  ;;  %v4644_v31 = vsel %vm2360_vm6, %v4612_v0, %v12234_v12  ;;  %20432 = vst [vmem:[#allocation91_spill] sm:$0xff] %v16541_v45  ;;  %v3334_v57 = vld [vmem:[#allocation2 + $0x54c] sm:$0xff]  ;;  %v3335_v47 = vld [vmem:[#allocation2 + $0x554] sm:$0xff] }
 0x555   : > { %v12259_v5 = vunpack.i.h.bf16 %v20431_v29  ;;  %v12258_v14 = vunpack.i.l.bf16 %v20431_v29  ;;  %v12249_v7 = vunpack.i.h.bf16 %v20433_v6  ;;  %v12248_v13 = vunpack.i.l.bf16 %v20433_v6  ;;  %v20435_v0 = vld [vmem:[#allocation123_spill] sm:$0xff] }
 0x556   : > { %v12254_v26 = vunpack.i.h.bf16 %v20434_v35  ;;  %v12253_v49 = vunpack.i.l.bf16 %v20434_v35  ;;  %v4675_v12 = vsel %vm2393_vm7, %v4643_v59, %v12243_v34  ;;  %v4676_v18 = vsel %vm2393_vm7, %v4644_v31, %v12244_v20 }
 0x557   : > { %v12279_v29 = vunpack.i.h.bf16 %v20435_v0  ;;  %v12278_v17 = vunpack.i.l.bf16 %v20435_v0  ;;  %v4490_v45 = vsel %vm446_vm0, %v3337_v28, %v12269_v54  ;;  %v4489_v1 = vsel %vm446_vm0, %v3336_v46, %v12268_v39  ;;  %v20440_v54 = vld [vmem:[#allocation125_spill] sm:$0xff]  ;;  %v16567_v28 = vpop.permute.xlu0 %12711 }
 0x558   : > { %v12274_v6 = vunpack.i.h.bf16 %v20436_v16  ;;  %v12273_v10 = vunpack.i.l.bf16 %v20436_v16  ;;  %v4488_v60 = vsel %vm446_vm0, %v3335_v47, %v12259_v5  ;;  %v4487_v35 = vsel %vm446_vm0, %v3334_v57, %v12258_v14  ;;  %20441 = vst [vmem:[#allocation95_spill] sm:$0xff] %v16567_v28  ;;  %v20442_v14 = vld [vmem:[#allocation126_spill] sm:$0xff]  ;;  %v16573_v47 = vpop.permute.xlu1 %12706 }
 0x559   : > { %v12264_v34 = vunpack.i.h.bf16 %v20437_v61  ;;  %v12263_v20 = vunpack.i.l.bf16 %v20437_v61  ;;  %v16560_v59 = vsel %vm2426_vm8, %v4675_v12, %v12253_v49  ;;  %v16563_v31 = vsel %vm2426_vm8, %v4676_v18, %v12254_v26  ;;  %20443 = vst [vmem:[#allocation96_spill] sm:$0xff] %v16573_v47 }
 0x55a   : > { %20438 = vst [vmem:[#allocation92_spill] sm:$0xff] %v16560_v59  ;;  %20439 = vst [vmem:[#allocation89_spill] sm:$0xff] %v16563_v31  ;;  %v12289_v46 = vunpack.i.h.bf16 %v20440_v54  ;;  %v12288_v39 = vunpack.i.l.bf16 %v20440_v54  ;;  %v4521_v16 = vsel %vm2228_vm2, %v4489_v1, %v12278_v17  ;;  %v4522_v5 = vsel %vm2228_vm2, %v4490_v45, %v12279_v29  ;;  %v20446_v29 = vld [vmem:[#allocation127_spill] sm:$0xff]  ;;  %v20455_v45 = vld [vmem:[#allocation61_spill] sm:$0xff] }
 0x55b   : > { %v12284_v57 = vunpack.i.h.bf16 %v20442_v14  ;;  %v12283_v61 = vunpack.i.l.bf16 %v20442_v14  ;;  %v4677_v49 = vsel %vm2393_vm7, %v4645_v37, %v12248_v13  ;;  %v4678_v26 = vsel %vm2393_vm7, %v4646_v51, %v12249_v7  ;;  %v20450_v14 = vld [vmem:[#allocation64_spill] sm:$0xff] }
 0x55c   : > { %v4520_v12 = vsel %vm2228_vm2, %v4488_v60, %v12274_v6  ;;  %v4519_v18 = vsel %vm2228_vm2, %v4487_v35, %v12273_v10  ;;  %v16580_v0 = vsel %vm2426_vm8, %v4678_v26, %v12264_v34  ;;  %v16583_v17 = vsel %vm2426_vm8, %v4677_v49, %v12263_v20  ;;  %v20447_v34 = vld [vmem:[#allocation128_spill] sm:$0xff]  ;;  %v20451_v49 = vld [vmem:[#allocation130_spill] sm:$0xff] }
 0x55d   : > { %20444 = vst [vmem:[#allocation97_spill] sm:$0xff] %v16580_v0  ;;  %20445 = vst [vmem:[#allocation98_spill] sm:$0xff] %v16583_v17  ;;  %v4553_v37 = vsel %vm2261_vm3, %v4521_v16, %v12288_v39  ;;  %v4554_v51 = vsel %vm2261_vm3, %v4522_v5, %v12289_v46  ;;  %v4551_v7 = vsel %vm2261_vm3, %v4519_v18, %v12283_v61  ;;  %v12299_v6 = vunpack.i.h.bf16 %v20446_v29  ;;  %v20448_v39 = vld [vmem:[#allocation129_spill] sm:$0xff]  ;;  %v16602_v16 = vpop.permute.xlu0 %12721  ;;  %v16611_v18 = vpop.permute.xlu1 %12716  ;;  %v20454_v10 = vld [vmem:[#allocation62_spill] sm:$0xff] }
 0x55e   : > { %v4552_v13 = vsel %vm2261_vm3, %v4520_v12, %v12284_v57  ;;  %v12298_v35 = vunpack.i.l.bf16 %v20446_v29  ;;  %v12294_v20 = vunpack.i.h.bf16 %v20447_v34  ;;  %v12293_v54 = vunpack.i.l.bf16 %v20447_v34  ;;  %20449 = vst [vmem:[#allocation94_spill] sm:$0xff] %v16602_v16  ;;  %20452 = vst [vmem:[#allocation99_spill] sm:$0xff] %v16611_v18  ;;  %v20453_v29 = vld [vmem:[#allocation63_spill] sm:$0xff] }
 0x55f   : > { %v12308_v46 = vunpack.i.l.bf16 %v20448_v39  ;;  %v4585_v61 = vsel %vm2294_vm4, %v4553_v37, %v20450_v14  ;;  %v12309_v57 = vunpack.i.h.bf16 %v20448_v39  ;;  %v12304_v26 = vunpack.i.h.bf16 %v20451_v49  ;;  %v20456_v14 = vld [vmem:[#allocation133_spill] sm:$0xff]  ;;  %v20464_v0 = vld [vmem:[#allocation135_spill] sm:$0xff] }
 0x560   : > { %v12303_v12 = vunpack.i.l.bf16 %v20451_v49  ;;  %v4586_v34 = vsel %vm2294_vm4, %v4554_v51, %v20453_v29  ;;  %v4583_v60 = vsel %vm2294_vm4, %v4551_v7, %v20454_v10  ;;  %v4584_v5 = vsel %vm2294_vm4, %v4552_v13, %v20455_v45  ;;  %v3340_v49 = vld [vmem:[#allocation2 + $0x5f4] sm:$0xff]  ;;  %v3338_v10 = vld [vmem:[#allocation2 + $0x5bc] sm:$0xff] }
 0x561   : > { %v12338_v1 = vunpack.i.l.bf16 %v15838_v23  ;;  %v4617_v37 = vsel %vm2327_vm5, %v4585_v61, %v12298_v35  ;;  %v4618_v39 = vsel %vm2327_vm5, %v4586_v34, %v12299_v6  ;;  %v12328_v16 = vunpack.i.l.bf16 %v20456_v14  ;;  %v3341_v45 = vld [vmem:[#allocation2 + $0x5fc] sm:$0xff]  ;;  %v3339_v61 = vld [vmem:[#allocation2 + $0x5c4] sm:$0xff]  ;;  %v20457_v34 = vld [vmem:[#allocation140_spill] sm:$0xff] }
 0x562   : > { %v12339_v28 = vunpack.i.h.bf16 %v15838_v23  ;;  %v4615_v18 = vsel %vm2327_vm5, %v4583_v60, %v12293_v54  ;;  %v4616_v51 = vsel %vm2327_vm5, %v4584_v5, %v12294_v20  ;;  %v4649_v7 = vsel %vm2360_vm6, %v4617_v37, %v12308_v46  ;;  %v20458_v23 = vld [vmem:[#allocation131_spill] sm:$0xff]  ;;  %v20459_v54 = vld [vmem:[#allocation141_spill] sm:$0xff]  ;;  %v16636_v5 = vpop.permute.xlu0 %12731  ;;  %v20462_v37 = vld [vmem:[#allocation132_spill] sm:$0xff] }
 0x563   : > { %v12329_v13 = vunpack.i.h.bf16 %v20456_v14  ;;  %v4650_v29 = vsel %vm2360_vm6, %v4618_v39, %v12309_v57  ;;  %v4647_v35 = vsel %vm2360_vm6, %v4615_v18, %v12303_v12  ;;  %v4648_v6 = vsel %vm2360_vm6, %v4616_v51, %v12304_v26  ;;  %20460 = vst [vmem:[#allocation100_spill] sm:$0xff] %v16636_v5  ;;  %v16642_v18 = vpop.permute.xlu1 %12726  ;;  %v20463_v51 = vld [vmem:[#allocation142_spill] sm:$0xff] }
 0x564   : > { %v12348_v47 = vunpack.i.l.bf16 %v20457_v34  ;;  %v12318_v17 = vunpack.i.l.bf16 %v20458_v23  ;;  %v4493_v60 = vsel %vm446_vm0, %v3340_v49, %v12338_v1  ;;  %v12349_v20 = vunpack.i.h.bf16 %v20457_v34  ;;  %20461 = vst [vmem:[#allocation101_spill] sm:$0xff] %v16642_v18 }
 0x565   : > { %v12343_v46 = vunpack.i.l.bf16 %v20459_v54  ;;  %v12319_v14 = vunpack.i.h.bf16 %v20458_v23  ;;  %v4491_v57 = vsel %vm446_vm0, %v3338_v10, %v12328_v16  ;;  %v4494_v12 = vsel %vm446_vm0, %v3341_v45, %v12339_v28  ;;  %v20465_v16 = vld [vmem:[#allocation143_spill] sm:$0xff] }
 0x566   : > { %v12344_v26 = vunpack.i.h.bf16 %v20459_v54  ;;  %v12314_v39 = vunpack.i.h.bf16 %v20462_v37  ;;  %v12313_v1 = vunpack.i.l.bf16 %v20462_v37  ;;  %v4492_v49 = vsel %vm446_vm0, %v3339_v61, %v12329_v13  ;;  %v20466_v61 = vld [vmem:[#allocation139_spill] sm:$0xff] }
 0x567   : > { %v12358_v34 = vunpack.i.l.bf16 %v20463_v51  ;;  %v12323_v5 = vunpack.i.l.bf16 %v20464_v0  ;;  %v4525_v23 = vsel %vm2228_vm2, %v4493_v60, %v12348_v47  ;;  %v12359_v10 = vunpack.i.h.bf16 %v20463_v51 }
 0x568   : > { %v12353_v28 = vunpack.i.l.bf16 %v20465_v16  ;;  %v4681_v45 = vsel %vm2393_vm7, %v4649_v7, %v12318_v17  ;;  %v4526_v54 = vsel %vm2228_vm2, %v4494_v12, %v12349_v20  ;;  %v4523_v18 = vsel %vm2228_vm2, %v4491_v57, %v12343_v46  ;;  %v16664_v20 = vpop.permute.xlu0 %12741  ;;  %v20468_v12 = vld [vmem:[#allocation144_spill] sm:$0xff] }
 0x569   : > { %v12354_v37 = vunpack.i.h.bf16 %v20465_v16  ;;  %v12324_v13 = vunpack.i.h.bf16 %v20464_v0  ;;  %v12334_v59 = vunpack.i.h.bf16 %v20466_v61  ;;  %v12333_v31 = vunpack.i.l.bf16 %v20466_v61  ;;  %20467 = vst [vmem:[#allocation102_spill] sm:$0xff] %v16664_v20  ;;  %v20474_v61 = vld [vmem:[#allocation149_spill] sm:$0xff] }
 0x56a   : > { %v4524_v47 = vsel %vm2228_vm2, %v4492_v49, %v12344_v26  ;;  %v4682_v60 = vsel %vm2393_vm7, %v4650_v29, %v12319_v14  ;;  %v4679_v51 = vsel %vm2393_vm7, %v4647_v35, %v12313_v1  ;;  %v4680_v17 = vsel %vm2393_vm7, %v4648_v6, %v12314_v39  ;;  %v16672_v26 = vpop.permute.xlu1 %12736  ;;  %v20470_v6 = vld [vmem:[#allocation145_spill] sm:$0xff] }
 0x56b   : > { %v4557_v7 = vsel %vm2261_vm3, %v4525_v23, %v12358_v34  ;;  %v16667_v46 = vsel %vm2426_vm8, %v4679_v51, %v12323_v5  ;;  %v4558_v0 = vsel %vm2261_vm3, %v4526_v54, %v12359_v10  ;;  %v4555_v57 = vsel %vm2261_vm3, %v4523_v18, %v12353_v28  ;;  %20469 = vst [vmem:[#allocation107_spill] sm:$0xff] %v16672_v26  ;;  %v20471_v49 = vld [vmem:[#allocation65_spill] sm:$0xff]  ;;  %v20472_v23 = vld [vmem:[#allocation66_spill] sm:$0xff]  ;;  %v20473_v28 = vld [vmem:[#allocation147_spill] sm:$0xff] }
 0x56c   : > { %v12368_v16 = vunpack.i.l.bf16 %v20468_v12  ;;  %v4556_v29 = vsel %vm2261_vm3, %v4524_v47, %v12354_v37  ;;  %v12369_v35 = vunpack.i.h.bf16 %v20468_v12  ;;  %v12364_v14 = vunpack.i.h.bf16 %v20470_v6  ;;  %v20475_v51 = vld [vmem:[#allocation67_spill] sm:$0xff] }
 0x56d   : > { %v12363_v39 = vunpack.i.l.bf16 %v20470_v6  ;;  %v16679_v1 = vsel %vm2426_vm8, %v4680_v17, %v12324_v13  ;;  %v16682_v5 = vsel %vm2426_vm8, %v4682_v60, %v12334_v59  ;;  %v16685_v18 = vsel %vm2426_vm8, %v4681_v45, %v12333_v31  ;;  %v20476_v60 = vld [vmem:[#allocation68_spill] sm:$0xff]  ;;  %v16704_v6 = vpop.permute.xlu0 %12751 }
 0x56e   : > { %v4589_v34 = vsel %vm2294_vm4, %v4557_v7, %v20471_v49  ;;  %v4590_v10 = vsel %vm2294_vm4, %v4558_v0, %v20472_v23  ;;  %v12379_v54 = vunpack.i.h.bf16 %v20473_v28  ;;  %v12378_v37 = vunpack.i.l.bf16 %v20473_v28  ;;  %20477 = vst [vmem:[#allocation105_spill] sm:$0xff] %v16704_v6  ;;  %v5571_v23 = vld [vmem:[#allocation2 + $0x15e] sm:$0xff] }
 0x56f   : > { %v12373_v47 = vunpack.i.l.bf16 %v20474_v61  ;;  %v4621_v13 = vsel %vm2327_vm5, %v4589_v34, %v12368_v16  ;;  %v4587_v59 = vsel %vm2294_vm4, %v4555_v57, %v20475_v51  ;;  %v4588_v31 = vsel %vm2294_vm4, %v4556_v29, %v20476_v60  ;;  %v5572_v34 = vld [vmem:[#allocation2 + $0x18e] sm:$0xff] }
 0x570   : > { %v12374_v45 = vunpack.i.h.bf16 %v20474_v61  ;;  %v4622_v17 = vsel %vm2327_vm5, %v4590_v10, %v12369_v35  ;;  %v4619_v7 = vsel %vm2327_vm5, %v4587_v59, %v12363_v39  ;;  %v4620_v0 = vsel %vm2327_vm5, %v4588_v31, %v12364_v14  ;;  %v16710_v61 = vpop.permute.xlu1 %12746  ;;  %v5573_v59 = vld [vmem:[#allocation2 + $0x196] sm:$0xff] }
 0x571   : > { %v12408_v12 = vunpack.i.l.bf16 %v15908_v42  ;;  %v12388_v16 = vunpack.i.l.bf16 %v15890_v24  ;;  %v12409_v57 = vunpack.i.h.bf16 %v15908_v42  ;;  %v12404_v28 = vunpack.i.h.bf16 %v15911_v19  ;;  %20478 = vst [vmem:[#allocation104_spill] sm:$0xff] %v16710_v61  ;;  %v5570_v31 = vld [vmem:[#allocation2 + $0x156] sm:$0xff]  ;;  %v16732_v61 = vpop.permute.xlu0 %12761 }
 0x572   : > { %v12403_v29 = vunpack.i.l.bf16 %v15911_v19  ;;  %v4653_v35 = vsel %vm2360_vm6, %v4621_v13, %v12378_v37  ;;  %v4654_v39 = vsel %vm2360_vm6, %v4622_v17, %v12379_v54  ;;  %v4651_v14 = vsel %vm2360_vm6, %v4619_v7, %v12373_v47  ;;  %v20479_v42 = vld [vmem:[#allocation152_spill] sm:$0xff]  ;;  %v20481_v54 = vld [vmem:[#allocation157_spill] sm:$0xff]  ;;  %20484 = vst [vmem:[#allocation103_spill] sm:$0xff] %v16732_v61 }
 0x573   : > { %v12389_v10 = vunpack.i.h.bf16 %v15890_v24  ;;  %v4652_v49 = vsel %vm2360_vm6, %v4620_v0, %v12374_v45  ;;  %v12384_v60 = vunpack.i.h.bf16 %v20479_v42  ;;  %v12383_v51 = vunpack.i.l.bf16 %v20479_v42  ;;  %v20480_v19 = vld [vmem:[#allocation156_spill] sm:$0xff]  ;;  %v20482_v42 = vld [vmem:[#allocation154_spill] sm:$0xff] }
 0x574   : > { %v12418_v6 = vunpack.i.l.bf16 %v20480_v19  ;;  %v6725_v20 = vsel %vm446_vm0, %v5572_v34, %v12408_v12  ;;  %v12419_v37 = vunpack.i.h.bf16 %v20480_v19  ;;  %v12414_v13 = vunpack.i.h.bf16 %v20481_v54  ;;  %v20483_v34 = vld [vmem:[#allocation158_spill] sm:$0xff] }
 0x575   : > { %v12413_v47 = vunpack.i.l.bf16 %v20481_v54  ;;  %v4685_v24 = vsel %vm2393_vm7, %v4653_v35, %v12388_v16  ;;  %v6726_v17 = vsel %vm446_vm0, %v5573_v59, %v12409_v57  ;;  %v6724_v45 = vsel %vm446_vm0, %v5571_v23, %v12404_v28  ;;  %v20485_v35 = vld [vmem:[#allocation159_spill] sm:$0xff]  ;;  %v16738_v28 = vpop.permute.xlu1 %12756 }
 0x576   : > { %v6723_v7 = vsel %vm446_vm0, %v5570_v31, %v12403_v29  ;;  %v4686_v0 = vsel %vm2393_vm7, %v4654_v39, %v12389_v10  ;;  %v12399_v26 = vunpack.i.h.bf16 %v20482_v42  ;;  %v12398_v12 = vunpack.i.l.bf16 %v20482_v42  ;;  %20486 = vst [vmem:[#allocation109_spill] sm:$0xff] %v16738_v28 }
 0x577   : > { %v12428_v19 = vunpack.i.l.bf16 %v20483_v34  ;;  %v6757_v54 = vsel %vm2228_vm2, %v6725_v20, %v12418_v6  ;;  %v12429_v16 = vunpack.i.h.bf16 %v20483_v34  ;;  %v12424_v57 = vunpack.i.h.bf16 %v20485_v35  ;;  %v20487_v6 = vld [vmem:[#allocation155_spill] sm:$0xff] }
 0x578   : > { %v12423_v23 = vunpack.i.l.bf16 %v20485_v35  ;;  %v6758_v39 = vsel %vm2228_vm2, %v6726_v17, %v12419_v37  ;;  %v6755_v10 = vsel %vm2228_vm2, %v6723_v7, %v12413_v47  ;;  %v6756_v59 = vsel %vm2228_vm2, %v6724_v45, %v12414_v13  ;;  %v20489_v45 = vld [vmem:[#allocation161_spill] sm:$0xff] }
 0x579   : > { %v4683_v61 = vsel %vm2393_vm7, %v4651_v14, %v12383_v51  ;;  %v4684_v20 = vsel %vm2393_vm7, %v4652_v49, %v12384_v60  ;;  %v12394_v34 = vunpack.i.h.bf16 %v20487_v6  ;;  %v12393_v52 = vunpack.i.l.bf16 %v20487_v6  ;;  %v20488_v49 = vld [vmem:[#allocation160_spill] sm:$0xff]  ;;  %v20495_v6 = vld [vmem:[#allocation34_spill] sm:$0xff] }
 0x57a   : > { %v16748_v35 = vsel %vm2426_vm8, %v4685_v24, %v12398_v12  ;;  %v16751_v28 = vsel %vm2426_vm8, %v4686_v0, %v12399_v26  ;;  %v6789_v37 = vsel %vm2261_vm3, %v6757_v54, %v12428_v19  ;;  %v6790_v13 = vsel %vm2261_vm3, %v6758_v39, %v12429_v16  ;;  %v16761_v12 = vpop.permute.xlu0 %12771  ;;  %v20490_v19 = vld [vmem:[#allocation162_spill] sm:$0xff]  ;;  %v20492_v39 = vld [vmem:[#allocation36_spill] sm:$0xff] }
 0x57b   : > { %v6787_v17 = vsel %vm2261_vm3, %v6755_v10, %v12423_v23  ;;  %v6788_v51 = vsel %vm2261_vm3, %v6756_v59, %v12424_v57  ;;  %v12438_v60 = vunpack.i.l.bf16 %v20488_v49  ;;  %v12439_v14 = vunpack.i.h.bf16 %v20488_v49  ;;  %v16771_v57 = vpop.permute.xlu1 %12766  ;;  %v20491_v23 = vld [vmem:[#allocation37_spill] sm:$0xff]  ;;  %v20493_v59 = vld [vmem:[#allocation163_spill] sm:$0xff] }
 0x57c   : > { %v12434_v7 = vunpack.i.h.bf16 %v20489_v45  ;;  %v12433_v24 = vunpack.i.l.bf16 %v20489_v45  ;;  %v16764_v26 = vsel %vm2426_vm8, %v4683_v61, %v12393_v52  ;;  %v16767_v0 = vsel %vm2426_vm8, %v4684_v20, %v12394_v34 }
 0x57d   : > { %v12449_v54 = vunpack.i.h.bf16 %v20490_v19  ;;  %v12448_v16 = vunpack.i.l.bf16 %v20490_v19  ;;  %v6822_v10 = vsel %vm2294_vm4, %v6790_v13, %v20492_v39  ;;  %v12443_v52 = vunpack.i.l.bf16 %v20493_v59 }
 0x57e   : > { %v6820_v34 = vsel %vm2294_vm4, %v6788_v51, %v20495_v6  ;;  %v6854_v49 = vsel %vm2327_vm5, %v6822_v10, %v12439_v14  ;;  %v12478_v45 = vunpack.i.l.bf16 %v16177_v33  ;;  %v12454_v14 = vunpack.i.h.bf16 %v15955_v30 }
 0x57f   : > { %v6852_v13 = vsel %vm2327_vm5, %v6820_v34, %v12434_v7  ;;  %v16797_v7 = vpop.permute.xlu0 %12781 }
 0x5cf   : > { %v3116_v29 = vpop.f32.mrb[4].mxu1 }
 0x5d0   : > { %v3120_v31 = vmul.f32 0.001953125, %v3116_v29  ;;  %v10712_v42 = vpop.f32.mrb[5].mxu1  ;;  %v6821_v29 = vsel %vm2294_vm4, %v6789_v37, %v20491_v23  ;;  %v12459_v23 = vunpack.i.h.bf16 %v15952_v8 }
 0x5d1   : > { %v6853_v61 = vsel %vm2327_vm5, %v6821_v29, %v12438_v60  ;;  %v20494_v42 = vld [vmem:[#allocation35_spill] sm:$0xff]  ;;  %v6886_v60 = vsel %vm2360_vm6, %v6854_v49, %v12449_v54  ;;  %v5576_v29 = vld [vmem:[#allocation2 + $0x1fe] sm:$0xff]  ;;  %v12468_v54 = vunpack.i.l.bf16 %v15960_v58 }
 0x5d2   : > { %v3121_v47 = vadd.f32 1e-05, %v3120_v31  ;;  %v12444_v31 = vunpack.i.h.bf16 %v20493_v59  ;;  %v6819_v20 = vsel %vm2294_vm4, %v6787_v17, %v20494_v42  ;;  %v6885_v19 = vsel %vm2360_vm6, %v6853_v61, %v12448_v16  ;;  %v16803_v61 = vpop.permute.xlu1 %12776  ;;  %v5575_v42 = vld [vmem:[#allocation2 + $0x1ce] sm:$0xff] }
 0x5d3   : > { %v6851_v37 = vsel %vm2327_vm5, %v6819_v20, %v12433_v24  ;;  %v12453_v17 = vunpack.i.l.bf16 %v15955_v30  ;;  %v12479_v24 = vunpack.i.h.bf16 %v16177_v33  ;;  %v12469_v16 = vunpack.i.h.bf16 %v15960_v58 }
 0x5d4   : > { %13204 = vrsqrt.f32 %v3121_v47  ;;  %v12458_v47 = vunpack.i.l.bf16 %v15952_v8  ;;  %v6883_v51 = vsel %vm2360_vm6, %v6851_v37, %v12443_v52  ;;  %v6884_v39 = vsel %vm2360_vm6, %v6852_v13, %v12444_v31  ;;  %v5577_v8 = vld [vmem:[#allocation2 + $0x206] sm:$0xff] }
 0x5d5   : > { %v12488_v59 = vunpack.i.l.bf16 %v16181_v43  ;;  %v5574_v52 = vld [vmem:[#allocation2 + $0x1c6] sm:$0xff]  ;;  %v12464_v31 = vunpack.i.h.bf16 %v15963_v25  ;;  %v12463_v30 = vunpack.i.l.bf16 %v15963_v25  ;;  %v6729_v33 = vsel %vm446_vm0, %v5576_v29, %v12478_v45 }
 0x5d6   : > { %v6917_v10 = vsel %vm2393_vm7, %v6885_v19, %v12458_v47  ;;  %v12474_v20 = vunpack.i.h.bf16 %v16173_v56  ;;  %v6918_v6 = vsel %vm2393_vm7, %v6886_v60, %v12459_v23  ;;  %v6915_v34 = vsel %vm2393_vm7, %v6883_v51, %v12453_v17  ;;  %v16832_v51 = vpop.permute.xlu0 %12791 }
 0x5d7   : > { %v12473_v58 = vunpack.i.l.bf16 %v16173_v56  ;;  %v12489_v47 = vunpack.i.h.bf16 %v16181_v43  ;;  %v6730_v37 = vsel %vm446_vm0, %v5577_v8, %v12479_v24  ;;  %v12484_v13 = vunpack.i.h.bf16 %v16175_v40  ;;  %v16845_v8 = vpop.permute.xlu1 %12786 }
 0x5d8   : > { %v12483_v19 = vunpack.i.l.bf16 %v16175_v40  ;;  %v12498_v25 = vunpack.i.l.bf16 %v16185_v41  ;;  %v6916_v45 = vsel %vm2393_vm7, %v6884_v39, %v12454_v14  ;;  %v6728_v29 = vsel %vm446_vm0, %v5575_v42, %v12469_v16 }
 0x5d9   : > { %v6727_v60 = vsel %vm446_vm0, %v5574_v52, %v12468_v54  ;;  %v6761_v23 = vsel %vm2228_vm2, %v6729_v33, %v12488_v59  ;;  %v16823_v56 = vsel %vm2426_vm8, %v6915_v34, %v12463_v30  ;;  %v16826_v43 = vsel %vm2426_vm8, %v6916_v45, %v12464_v31  ;;  %v20539_v52 = vld [vmem:[#allocation211_spill] sm:$0xff] }
 0x5da   : > { %v16829_v40 = vsel %vm2426_vm8, %v6918_v6, %v12474_v20  ;;  %v12499_v17 = vunpack.i.h.bf16 %v16185_v41  ;;  %v20496_v39 = vpack.c.bf16 %v16320_v4, %v16317_v48  ;;  %v16840_v14 = vsel %vm2426_vm8, %v6917_v10, %v12473_v58  ;;  %v20497_v41 = vld [vmem:[#allocation54_spill] sm:$0xff]  ;;  %v10367_v10 = vld [vmem:[%s19770_s1 + $0x50] sm:$0xff] }
 0x5db   : > { %v6762_v24 = vsel %vm2228_vm2, %v6730_v37, %v12489_v47  ;;  %v12494_v16 = vunpack.i.h.bf16 %v16179_v63  ;;  %v12493_v54 = vunpack.i.l.bf16 %v16179_v63  ;;  %v6759_v59 = vsel %vm2228_vm2, %v6727_v60, %v12483_v19  ;;  %v10368_v63 = vld [vmem:[%s19770_s1 + $0x58] sm:$0xff]  ;;  %v16883_v60 = vpop.permute.xlu0 %12801 }
 0x5dc   : > { %v6793_v48 = vsel %vm2261_vm3, %v6761_v23, %v12498_v25  ;;  %v6794_v20 = vsel %vm2261_vm3, %v6762_v24, %v12499_v17  ;;  %v12509_v6 = vunpack.i.h.bf16 %v16189_v62  ;;  %v12508_v34 = vunpack.i.l.bf16 %v16189_v62  ;;  %v10369_v23 = vld [vmem:[%s19770_s1 + $0x60] sm:$0xff]  ;;  %v10370_v17 = vld [vmem:[%s19770_s1 + $0x68] sm:$0xff] }
 0x5dd   : > { %v6791_v58 = vsel %vm2261_vm3, %v6759_v59, %v12493_v54  ;;  %v6995_v19 = vpack.c.bf16 %v10368_v63, %v10367_v10  ;;  %v12504_v25 = vunpack.i.h.bf16 %v16183_v27  ;;  %v12503_v45 = vunpack.i.l.bf16 %v16183_v27  ;;  %v20501_v59 = vld [vmem:[#allocation39_spill] sm:$0xff]  ;;  %v20502_v10 = vld [vmem:[#allocation38_spill] sm:$0xff] }
 0x5de   : > { %v13205_v49 = vpop.eup %13204  ;;  %v12518_v62 = vunpack.i.l.bf16 %v16193_v2  ;;  %v12513_v27 = vunpack.i.l.bf16 %v16187_v15  ;;  %v12539_v54 = vunpack.i.h.bf16 %v16201_v3  ;;  %v12548_v33 = vunpack.i.l.bf16 %v16205_v44 }
 0x5df   : > { %10718 = vmatmul.mubr.msk.f32.vlgmr.msra.gmra.mrb[6].mxu1 %vm2294_vm4, %v13205_v49  ;;  %v20498_v49 = vld [vmem:[#allocation41_spill] sm:$0xff]  ;;  %v12614_v4 = vunpack.i.h.bf16 %v20539_v52 }
 0x5e0   : > { %11138 = vmatpush3.bf16.msra.mxu1 %v14716_v22  ;;  %10734 = vmatprep.mubr.msk.bf16.mxu1 %vm2478_vm9, %v20496_v39  ;;  %v6760_v22 = vsel %vm2228_vm2, %v6728_v29, %v12484_v13  ;;  %v6825_v37 = vsel %vm2294_vm4, %v6793_v48, %v20498_v49  ;;  %v20499_v13 = vld [vmem:[#allocation55_spill] sm:$0xff]  ;;  %v12519_v29 = vunpack.i.h.bf16 %v16193_v2  ;;  %v20500_v39 = vld [vmem:[#allocation40_spill] sm:$0xff]  ;;  %v16896_v2 = vpop.permute.xlu1 %12796  ;;  %v6823_v48 = vsel %vm2294_vm4, %v6791_v58, %v20501_v59  ;;  %v5579_v49 = vld [vmem:[#allocation2 + $0x23e] sm:$0xff] }
 0x5e1   : > { %11136 = vmatprep.subr.bf16.mxu1 %v20497_v41  ;;  %v6792_v47 = vsel %vm2261_vm3, %v6760_v22, %v12494_v16  ;;  %v6826_v24 = vsel %vm2294_vm4, %v6794_v20, %v20500_v39  ;;  %v12514_v16 = vunpack.i.h.bf16 %v16187_v15  ;;  %v20503_v20 = vld [vmem:[#allocation56_spill] sm:$0xff]  ;;  %v12538_v15 = vunpack.i.l.bf16 %v16201_v3 }
 0x5e2   : > { %v6858_v22 = vsel %vm2327_vm5, %v6826_v24, %v12509_v6  ;;  %v6824_v63 = vsel %vm2294_vm4, %v6792_v47, %v20502_v10  ;;  %v12549_v39 = vunpack.i.h.bf16 %v16205_v44  ;;  %v6855_v6 = vsel %vm2327_vm5, %v6823_v48, %v12503_v45  ;;  %v5580_v24 = vld [vmem:[#allocation2 + $0x26e] sm:$0xff]  ;;  %v5581_v59 = vld [vmem:[#allocation2 + $0x276] sm:$0xff] }
 0x5e3   : > { %v6890_v47 = vsel %vm2360_vm6, %v6858_v22, %v12519_v29  ;;  %v10371_v3 = vld [vmem:[%s19770_s1 + $0x70] sm:$0xf]  ;;  %v6887_v10 = vsel %vm2360_vm6, %v6855_v6, %v12513_v27  ;;  %v6732_v45 = vsel %vm446_vm0, %v5579_v49, %v12539_v54  ;;  %v12559_v29 = vunpack.i.h.bf16 %v16209_v38  ;;  %v16927_v27 = vpop.permute.xlu0 %12811  ;;  %v20507_v48 = vld [vmem:[#allocation79_spill] sm:$0xff]  ;;  %v20509_v6 = vld [vmem:[#allocation198_spill] sm:$0xff] }
 0x5e4   : > { %11139 = vmatpush3.bf16.msra.mxu1 %v20497_v41  ;;  %v6857_v41 = vsel %vm2327_vm5, %v6825_v37, %v12508_v34  ;;  %v6996_v34 = vpack.c.bf16 %v10370_v17, %v10369_v23  ;;  %v6856_v37 = vsel %vm2327_vm5, %v6824_v63, %v12504_v25  ;;  %v12529_v23 = vunpack.i.h.bf16 %v16197_v53  ;;  %v20505_v17 = vld [vmem:[#allocation201_spill] sm:$0xff]  ;;  %v16936_v49 = vpop.permute.xlu1 %12806 }
 0x5e5   : > { %11143 = vmatprep.subr.msk.bf16.mxu1 %vm2527_vm1, %v20499_v13  ;;  %v5578_v13 = vld [vmem:[#allocation2 + $0x236] sm:$0xff]  ;;  %v6889_v58 = vsel %vm2360_vm6, %v6857_v41, %v12518_v62  ;;  %v6888_v44 = vsel %vm2360_vm6, %v6856_v37, %v12514_v16  ;;  %v20504_v25 = vpack.c.bf16 %v16342_v11, %v16345_v36  ;;  %v12558_v62 = vunpack.i.l.bf16 %v16209_v38 }
 0x5e6   : > { %v12554_v41 = vunpack.i.h.bf16 %v20505_v17  ;;  %v12553_v22 = vunpack.i.l.bf16 %v20505_v17  ;;  %v20506_v16 = vld [vmem:[#allocation80_spill] sm:$0xff]  ;;  %v6731_v11 = vsel %vm446_vm0, %v5578_v13, %v12538_v15  ;;  %v6734_v36 = vsel %vm446_vm0, %v5581_v59, %v12549_v39  ;;  %v20510_v17 = vld [vmem:[#allocation199_spill] sm:$0xff]  ;;  %v20512_v15 = vld [vmem:[#allocation202_spill] sm:$0xff] }
 0x5e7   : > { %v20508_v63 = vpack.c.bf16 %v20506_v16, %v20507_v48  ;;  %v6733_v54 = vsel %vm446_vm0, %v5580_v24, %v12548_v33  ;;  %v6997_v38 = vpack.c.bf16 %v10371_v3, %v10371_v3  ;;  %v12524_v37 = vunpack.i.h.bf16 %v20509_v6  ;;  %v20511_v48 = vld [vmem:[#allocation204_spill] sm:$0xff] }
 0x5e8   : > { %11140 = vmatpush3.bf16.msra.mxu1 %v20503_v20  ;;  %v12528_v20 = vunpack.i.l.bf16 %v16197_v53  ;;  %v12534_v16 = vunpack.i.h.bf16 %v20510_v17  ;;  %v12568_v13 = vunpack.i.l.bf16 %v20511_v48  ;;  %v12564_v39 = vunpack.i.h.bf16 %v20512_v15 }
 0x5e9   : > { %10794 = vmatprep.subr.bf16.mxu1 %v6995_v19  ;;  %v12563_v33 = vunpack.i.l.bf16 %v20512_v15  ;;  %v6765_v24 = vsel %vm2228_vm2, %v6733_v54, %v12558_v62  ;;  %v6766_v59 = vsel %vm2228_vm2, %v6734_v36, %v12559_v29  ;;  %v6764_v53 = vsel %vm2228_vm2, %v6732_v45, %v12554_v41  ;;  %v16959_v41 = vpop.permute.xlu0 %12821  ;;  %v16965_v54 = vpop.permute.xlu1 %12816 }
 0x5ea   : > { %v6763_v3 = vsel %vm2228_vm2, %v6731_v11, %v12553_v22  ;;  %v6921_v15 = vsel %vm2393_vm7, %v6889_v58, %v12528_v20  ;;  %v6922_v62 = vsel %vm2393_vm7, %v6890_v47, %v12529_v23  ;;  %v6920_v45 = vsel %vm2393_vm7, %v6888_v44, %v12524_v37  ;;  %20514 = vst [vmem:[#allocation110_spill] sm:$0xff] %v16959_v41  ;;  %v20516_v47 = vld [vmem:[#allocation206_spill] sm:$0xff]  ;;  %v20517_v23 = vld [vmem:[#allocation203_spill] sm:$0xff] }
 0x5eb   : > { %10735 = vmatmul.mubr.msk.bf16.vlgmr.msra.gmra.mrb[8].mxu1 %vm2478_vm9, %v20504_v25  ;;  %v12523_v25 = vunpack.i.l.bf16 %v20509_v6  ;;  %v20513_v6 = vld [vmem:[#allocation200_spill] sm:$0xff]  ;;  %v6795_v11 = vsel %vm2261_vm3, %v6763_v3, %v12563_v33  ;;  %v6796_v36 = vsel %vm2261_vm3, %v6764_v53, %v12564_v39  ;;  %v20515_v58 = vpack.c.bf16 %v16424_v32, %v16427_v21  ;;  %v20524_v3 = vld [vmem:[#allocation43_spill] sm:$0xff] }
 0x5ec   : > { %10738 = vmatprep.mubr.msk.bf16.mxu1 %vm2478_vm9, %v20508_v63  ;;  %10795 = vmatpush3.bf16.msra.mxu1 %v6995_v19  ;;  %v12569_v19 = vunpack.i.h.bf16 %v20511_v48  ;;  %v12533_v63 = vunpack.i.l.bf16 %v20510_v17  ;;  %v12544_v30 = vunpack.i.h.bf16 %v20513_v6  ;;  %v12543_v31 = vunpack.i.l.bf16 %v20513_v6  ;;  %v20523_v53 = vld [vmem:[#allocation44_spill] sm:$0xff] }
 0x5ed   : > { %10796 = vmatprep.subr.bf16.mxu1 %v6996_v34  ;;  %v7047_v48 = vsel %vm2527_vm1, %v6997_v38, 0  ;;  %v6919_v29 = vsel %vm2393_vm7, %v6887_v10, %v12523_v25  ;;  %v12579_v10 = vunpack.i.h.bf16 %v20516_v47  ;;  %v12578_v44 = vunpack.i.l.bf16 %v20516_v47 }
 0x5ee   : > { %v6798_v22 = vsel %vm2261_vm3, %v6766_v59, %v12569_v19  ;;  %v12573_v20 = vunpack.i.l.bf16 %v20517_v23  ;;  %v20518_v37 = vpack.c.bf16 %v16493_v55, %v16490_v50  ;;  %v16980_v25 = vsel %vm2426_vm8, %v6919_v29, %v12533_v63  ;;  %v20521_v55 = vld [vmem:[#allocation205_spill] sm:$0xff]  ;;  %v20525_v63 = vld [vmem:[#allocation42_spill] sm:$0xff] }
 0x5ef   : > { %v16983_v32 = vsel %vm2426_vm8, %v6920_v45, %v12534_v16  ;;  %v16986_v21 = vsel %vm2426_vm8, %v6922_v62, %v12544_v30  ;;  %v16989_v17 = vsel %vm2426_vm8, %v6921_v15, %v12543_v31  ;;  %v20519_v19 = vmov 0.0|0.0   ;;  %v20522_v59 = vld [vmem:[#allocation45_spill] sm:$0xff]  ;;  %v17008_v45 = vpop.permute.xlu0 %12831 }
 0x5f0   : > { %10797 = vmatpush3.bf16.msra.mxu1 %v6996_v34  ;;  %v6797_v34 = vsel %vm2261_vm3, %v6765_v24, %v12568_v13  ;;  %v20520_v13 = vld [vmem:[#allocation208_spill] sm:$0xff]  ;;  %v12584_v33 = vunpack.i.h.bf16 %v20521_v55  ;;  %v12583_v24 = vunpack.i.l.bf16 %v20521_v55  ;;  %v6830_v30 = vsel %vm2294_vm4, %v6798_v22, %v20523_v53  ;;  %20526 = vst [vmem:[#allocation106_spill] sm:$0xff] %v17008_v45  ;;  %v5584_v55 = vld [vmem:[#allocation2 + $0x2de] sm:$0xff] }
 0x5f1   : > { %11144 = vmatprep.subr.msk.bf16.mxu1 %vm2527_vm1, %v6997_v38  ;;  %v12574_v38 = vunpack.i.h.bf16 %v20517_v23  ;;  %v12589_v39 = vunpack.i.h.bf16 %v20520_v13  ;;  %v12588_v50 = vunpack.i.l.bf16 %v20520_v13  ;;  %v6829_v16 = vsel %vm2294_vm4, %v6797_v34, %v20522_v59  ;;  %v5582_v34 = vld [vmem:[#allocation2 + $0x2a6] sm:$0xff]  ;;  %v5583_v13 = vld [vmem:[#allocation2 + $0x2ae] sm:$0xff] }
 0x5f2   : > { %v6827_v31 = vsel %vm2294_vm4, %v6795_v11, %v20524_v3  ;;  %v6828_v6 = vsel %vm2294_vm4, %v6796_v36, %v20525_v63  ;;  %v6862_v15 = vsel %vm2327_vm5, %v6830_v30, %v12579_v10  ;;  %v20528_v23 = vld [vmem:[#allocation70_spill] sm:$0xff]  ;;  %v17014_v36 = vpop.permute.xlu1 %12826  ;;  %v20530_v3 = vld [vmem:[#allocation207_spill] sm:$0xff] }
 0x5f3   : > { %10739 = vmatmul.mubr.msk.bf16.gmra.mrb[12].mxu1 %vm2478_vm9, %v20515_v58  ;;  %v6859_v62 = vsel %vm2327_vm5, %v6827_v31, %v12573_v20  ;;  %v6860_v29 = vsel %vm2327_vm5, %v6828_v6, %v12574_v38  ;;  %v20527_v58 = vld [vmem:[#allocation212_spill] sm:$0xff]  ;;  %v12619_v11 = vunpack.i.h.bf16 %v20528_v23  ;;  %v6894_v10 = vsel %vm2360_vm6, %v6862_v15, %v12589_v39  ;;  %v5585_v59 = vld [vmem:[#allocation2 + $0x2e6] sm:$0xff]  ;;  %v20531_v6 = vld [vmem:[#allocation93_spill] sm:$0xff]  ;;  %v17044_v41 = vpop.permute.xlu0 %12841 }
 0x5f4   : > { %10742 = vmatprep.mubr.msk.bf16.mxu1 %vm2478_vm9, %v20518_v37  ;;  %10799 = vmatpush3.bf16.msra.mxu1 %v7047_v48  ;;  %v6861_v48 = vsel %vm2327_vm5, %v6829_v16, %v12578_v44  ;;  %v12609_v47 = vunpack.i.h.bf16 %v20527_v58  ;;  %v12608_v22 = vunpack.i.l.bf16 %v20527_v58  ;;  %v12618_v37 = vunpack.i.l.bf16 %v20528_v23  ;;  %v20529_v16 = vld [vmem:[#allocation210_spill] sm:$0xff]  ;;  %v20533_v39 = vld [vmem:[#allocation75_spill] sm:$0xff]  ;;  %v20536_v58 = vld [vmem:[#allocation92_spill] sm:$0xff]  ;;  %20540 = vst [vmem:[#allocation111_spill] sm:$0xff] %v17044_v41 }
 0x5f5   : > { %11075 = vmatprep.subr.bf16.mxu1 %v20519_v19  ;;  %v6893_v44 = vsel %vm2360_vm6, %v6861_v48, %v12588_v50  ;;  %v6891_v20 = vsel %vm2360_vm6, %v6859_v62, %v12583_v24  ;;  %v6892_v38 = vsel %vm2360_vm6, %v6860_v29, %v12584_v33  ;;  %v12599_v53 = vunpack.i.h.bf16 %v20529_v16  ;;  %v20534_v48 = vld [vmem:[#allocation69_spill] sm:$0xff] }
 0x5f6   : > { %v12598_v30 = vunpack.i.l.bf16 %v20529_v16  ;;  %v12594_v31 = vunpack.i.h.bf16 %v20530_v3  ;;  %v12593_v63 = vunpack.i.l.bf16 %v20530_v3  ;;  %v20532_v50 = vpack.c.bf16 %v16508_v9, %v20531_v6  ;;  %v20535_v29 = vld [vmem:[#allocation89_spill] sm:$0xff] }
 0x5f7   : > { %v12629_v24 = vunpack.i.h.bf16 %v20533_v39  ;;  %v12628_v33 = vunpack.i.l.bf16 %v20533_v39  ;;  %v12624_v15 = vunpack.i.h.bf16 %v20534_v48  ;;  %v12623_v62 = vunpack.i.l.bf16 %v20534_v48 }
 0x5f8   : > { %v20537_v23 = vpack.c.bf16 %v20535_v29, %v20536_v58  ;;  %v6736_v16 = vsel %vm446_vm0, %v5583_v13, %v12609_v47  ;;  %v6735_v3 = vsel %vm446_vm0, %v5582_v34, %v12608_v22  ;;  %v6738_v9 = vsel %vm446_vm0, %v5585_v59, %v12619_v11  ;;  %v20541_v29 = vld [vmem:[#allocation72_spill] sm:$0xff]  ;;  %v20542_v13 = vld [vmem:[#allocation71_spill] sm:$0xff]  ;;  %v17050_v11 = vpop.permute.xlu1 %12836 }
 0x5f9   : > { %v6737_v6 = vsel %vm446_vm0, %v5584_v55, %v12618_v37  ;;  %v12613_v48 = vunpack.i.l.bf16 %v20539_v52  ;;  %v12639_v58 = vunpack.i.h.bf16 %v20541_v29  ;;  %v12638_v47 = vunpack.i.l.bf16 %v20541_v29 }
 0x5fa   : > { %v12634_v34 = vunpack.i.h.bf16 %v20542_v13  ;;  %v12633_v22 = vunpack.i.l.bf16 %v20542_v13  ;;  %v6769_v37 = vsel %vm2228_vm2, %v6737_v6, %v12628_v33  ;;  %v6770_v55 = vsel %vm2228_vm2, %v6738_v9, %v12629_v24  ;;  %v20549_v9 = vld [vmem:[#allocation81_spill] sm:$0xff] }
 0x5fb   : > { %10743 = vmatmul.mubr.msk.bf16.gmra.mrb[16].mxu1 %vm2478_vm9, %v20532_v50  ;;  %v20538_v50 = vld [vmem:[#allocation209_spill] sm:$0xff]  ;;  %v6768_v59 = vsel %vm2228_vm2, %v6736_v16, %v12624_v15  ;;  %v6767_v52 = vsel %vm2228_vm2, %v6735_v3, %v12623_v62  ;;  %v6923_v29 = vsel %vm2393_vm7, %v6891_v20, %v12593_v63  ;;  %v6924_v41 = vsel %vm2393_vm7, %v6892_v38, %v12594_v31  ;;  %v17084_v16 = vpop.permute.xlu0 %12851 }
 0x5fc   : > { %10746 = vmatprep.mubr.msk.bf16.mxu1 %vm2478_vm9, %v20537_v23  ;;  %v12604_v42 = vunpack.i.h.bf16 %v20538_v50  ;;  %v12603_v39 = vunpack.i.l.bf16 %v20538_v50  ;;  %v6925_v23 = vsel %vm2393_vm7, %v6893_v44, %v12598_v30  ;;  %v6926_v50 = vsel %vm2393_vm7, %v6894_v10, %v12599_v53  ;;  %v20543_v53 = vld [vmem:[#allocation97_spill] sm:$0xff]  ;;  %v20544_v30 = vld [vmem:[#allocation98_spill] sm:$0xff] }
 0x5fd   : > { %v17067_v24 = vsel %vm2426_vm8, %v6926_v50, %v12614_v4  ;;  %v17070_v33 = vsel %vm2426_vm8, %v6925_v23, %v12613_v48  ;;  %v6801_v44 = vsel %vm2261_vm3, %v6769_v37, %v12638_v47  ;;  %v6802_v10 = vsel %vm2261_vm3, %v6770_v55, %v12639_v58  ;;  %v20547_v63 = vld [vmem:[#allocation77_spill] sm:$0xff]  ;;  %v17092_v48 = vpop.permute.xlu1 %12846  ;;  %v20553_v50 = vld [vmem:[#allocation47_spill] sm:$0xff] }
 0x5fe   : > { %v17061_v13 = vsel %vm2426_vm8, %v6923_v29, %v12603_v39  ;;  %v17064_v45 = vsel %vm2426_vm8, %v6924_v41, %v12604_v42  ;;  %v6799_v20 = vsel %vm2261_vm3, %v6767_v52, %v12633_v22  ;;  %v6800_v38 = vsel %vm2261_vm3, %v6768_v59, %v12634_v34  ;;  %v20546_v42 = vld [vmem:[#allocation74_spill] sm:$0xff]  ;;  %v20550_v34 = vld [vmem:[#allocation73_spill] sm:$0xff]  ;;  %v20552_v52 = vld [vmem:[#allocation48_spill] sm:$0xff] }
 0x5ff   : > { %v20545_v31 = vpack.c.bf16 %v20543_v53, %v20544_v30  ;;  %v12649_v41 = vunpack.i.h.bf16 %v20546_v42  ;;  %v12648_v4 = vunpack.i.l.bf16 %v20546_v42  ;;  %v12644_v15 = vunpack.i.h.bf16 %v20547_v63  ;;  %v20551_v55 = vld [vmem:[#allocation49_spill] sm:$0xff]  ;;  %v20554_v53 = vld [vmem:[#allocation46_spill] sm:$0xff]  ;;  %v20565_v58 = vld [vmem:[#allocation83_spill] sm:$0xff] }
 0x600   : > { %v12643_v62 = vunpack.i.l.bf16 %v20547_v63  ;;  %v20548_v3 = vpack.c.bf16 %v16679_v1, %v16667_v46  ;;  %v12659_v6 = vunpack.i.h.bf16 %v20549_v9  ;;  %v12658_v39 = vunpack.i.l.bf16 %v20549_v9 }
 0x601   : > { %v12654_v22 = vunpack.i.h.bf16 %v20550_v34  ;;  %v12653_v37 = vunpack.i.l.bf16 %v20550_v34  ;;  %v6833_v59 = vsel %vm2294_vm4, %v6801_v44, %v20551_v55  ;;  %v6834_v23 = vsel %vm2294_vm4, %v6802_v10, %v20552_v52  ;;  %v20555_v34 = vld [vmem:[#allocation88_spill] sm:$0xff] }
 0x602   : > { %v6831_v29 = vsel %vm2294_vm4, %v6799_v20, %v20553_v50  ;;  %v6832_v30 = vsel %vm2294_vm4, %v6800_v38, %v20554_v53  ;;  %v6866_v42 = vsel %vm2327_vm5, %v6834_v23, %v12649_v41  ;;  %v12689_v10 = vunpack.i.h.bf16 %v20555_v34  ;;  %v20556_v52 = vld [vmem:[#allocation84_spill] sm:$0xff]  ;;  %v17124_v23 = vpop.permute.xlu0 %12861 }
 0x603   : > { %10747 = vmatmul.mubr.msk.bf16.gmra.mrb[20].mxu1 %vm2478_vm9, %v20545_v31  ;;  %v6865_v31 = vsel %vm2327_vm5, %v6833_v59, %v12648_v4  ;;  %v6863_v63 = vsel %vm2327_vm5, %v6831_v29, %v12643_v62  ;;  %v6898_v44 = vsel %vm2360_vm6, %v6866_v42, %v12659_v6  ;;  %v12688_v55 = vunpack.i.l.bf16 %v20555_v34  ;;  %v5588_v59 = vld [vmem:[#allocation2 + $0x34e] sm:$0xff]  ;;  %v5589_v62 = vld [vmem:[#allocation2 + $0x356] sm:$0xff]  ;;  %20557 = vst [vmem:[#allocation112_spill] sm:$0xff] %v17124_v23  ;;  %v20561_v42 = vld [vmem:[#allocation82_spill] sm:$0xff] }
 0x604   : > { %10750 = vmatprep.mubr.msk.bf16.mxu1 %vm2478_vm9, %v20548_v3  ;;  %v6864_v3 = vsel %vm2327_vm5, %v6832_v30, %v12644_v15  ;;  %v6897_v9 = vsel %vm2360_vm6, %v6865_v31, %v12658_v39  ;;  %v6895_v20 = vsel %vm2360_vm6, %v6863_v63, %v12653_v37  ;;  %v12679_v4 = vunpack.i.h.bf16 %v20556_v52  ;;  %v20558_v15 = vld [vmem:[#allocation78_spill] sm:$0xff]  ;;  %v20559_v50 = vld [vmem:[#allocation76_spill] sm:$0xff]  ;;  %v17130_v31 = vpop.permute.xlu1 %12856  ;;  %v20562_v34 = vld [vmem:[#allocation91_spill] sm:$0xff] }
 0x605   : > { %v6896_v38 = vsel %vm2360_vm6, %v6864_v3, %v12654_v22  ;;  %v12678_v41 = vunpack.i.l.bf16 %v20556_v52  ;;  %v12669_v39 = vunpack.i.h.bf16 %v20558_v15  ;;  %v12668_v6 = vunpack.i.l.bf16 %v20558_v15  ;;  %v5586_v30 = vld [vmem:[#allocation2 + $0x316] sm:$0xff]  ;;  %v5587_v37 = vld [vmem:[#allocation2 + $0x31e] sm:$0xff] }
 0x606   : > { %v12664_v29 = vunpack.i.h.bf16 %v20559_v50  ;;  %v12663_v53 = vunpack.i.l.bf16 %v20559_v50  ;;  %v20560_v22 = vpack.c.bf16 %v16682_v5, %v16685_v18  ;;  %v12674_v63 = vunpack.i.h.bf16 %v20561_v42  ;;  %v20564_v5 = vld [vmem:[#allocation87_spill] sm:$0xff] }
 0x607   : > { %v12673_v3 = vunpack.i.l.bf16 %v20561_v42  ;;  %v12699_v52 = vunpack.i.h.bf16 %v20562_v34  ;;  %v12698_v15 = vunpack.i.l.bf16 %v20562_v34  ;;  %v20563_v50 = vpack.c.bf16 %v16767_v0, %v16764_v26 }
 0x608   : > { %v6742_v1 = vsel %vm446_vm0, %v5589_v62, %v12689_v10  ;;  %v6741_v46 = vsel %vm446_vm0, %v5588_v59, %v12688_v55  ;;  %v12694_v18 = vunpack.i.h.bf16 %v20564_v5  ;;  %v6740_v47 = vsel %vm446_vm0, %v5587_v37, %v12679_v4 }
 0x609   : > { %v6739_v42 = vsel %vm446_vm0, %v5586_v30, %v12678_v41  ;;  %v12684_v23 = vunpack.i.h.bf16 %v20565_v58  ;;  %v12683_v34 = vunpack.i.l.bf16 %v20565_v58  ;;  %v6929_v26 = vsel %vm2393_vm7, %v6897_v9, %v12668_v6  ;;  %v17160_v30 = vpop.permute.xlu0 %12871  ;;  %v17166_v6 = vpop.permute.xlu1 %12866 }
 0x60a   : > { %v6930_v0 = vsel %vm2393_vm7, %v6898_v44, %v12669_v39  ;;  %v6773_v59 = vsel %vm2228_vm2, %v6741_v46, %v12698_v15  ;;  %v6774_v62 = vsel %vm2228_vm2, %v6742_v1, %v12699_v52  ;;  %v6927_v58 = vsel %vm2393_vm7, %v6895_v20, %v12663_v53  ;;  %v20570_v15 = vld [vmem:[#allocation95_spill] sm:$0xff] }
 0x60b   : > { %10751 = vmatmul.mubr.msk.bf16.gmra.mrb[24].mxu1 %vm2478_vm9, %v20560_v22  ;;  %v12693_v22 = vunpack.i.l.bf16 %v20564_v5  ;;  %v20567_v5 = vld [vmem:[#allocation90_spill] sm:$0xff]  ;;  %v6928_v9 = vsel %vm2393_vm7, %v6896_v38, %v12664_v29  ;;  %v6772_v44 = vsel %vm2228_vm2, %v6740_v47, %v12694_v18  ;;  %v17169_v46 = vsel %vm2426_vm8, %v6927_v58, %v12673_v3  ;;  %v20568_v38 = vld [vmem:[#allocation99_spill] sm:$0xff] }
 0x60c   : > { %10754 = vmatprep.mubr.msk.bf16.mxu1 %vm2478_vm9, %v20563_v50  ;;  %v20566_v50 = vld [vmem:[#allocation96_spill] sm:$0xff]  ;;  %v12704_v4 = vunpack.i.h.bf16 %v20567_v5  ;;  %v12703_v41 = vunpack.i.l.bf16 %v20567_v5  ;;  %v17172_v1 = vsel %vm2426_vm8, %v6928_v9, %v12674_v63  ;;  %v17175_v37 = vsel %vm2426_vm8, %v6930_v0, %v12684_v23  ;;  %v20576_v58 = vld [vmem:[#allocation51_spill] sm:$0xff] }
 0x60d   : > { %v12709_v10 = vunpack.i.h.bf16 %v20566_v50  ;;  %v12708_v55 = vunpack.i.l.bf16 %v20566_v50  ;;  %v6771_v39 = vsel %vm2228_vm2, %v6739_v42, %v12693_v22  ;;  %v17178_v52 = vsel %vm2426_vm8, %v6929_v26, %v12683_v34  ;;  %v20572_v34 = vld [vmem:[#allocation101_spill] sm:$0xff]  ;;  %v20573_v50 = vld [vmem:[#allocation50_spill] sm:$0xff]  ;;  %v17208_v5 = vpop.permute.xlu0 %12881 }
 0x60e   : > { %v12719_v29 = vunpack.i.h.bf16 %v20568_v38  ;;  %v12718_v53 = vunpack.i.l.bf16 %v20568_v38  ;;  %v20569_v3 = vpack.c.bf16 %v16751_v28, %v16748_v35  ;;  %v6803_v63 = vsel %vm2261_vm3, %v6771_v39, %v12703_v41 }
 0x60f   : > { %v6805_v20 = vsel %vm2261_vm3, %v6773_v59, %v12708_v55  ;;  %v6806_v47 = vsel %vm2261_vm3, %v6774_v62, %v12709_v10  ;;  %v6804_v23 = vsel %vm2261_vm3, %v6772_v44, %v12704_v4  ;;  %v12714_v18 = vunpack.i.h.bf16 %v20570_v15  ;;  %v20574_v55 = vld [vmem:[#allocation53_spill] sm:$0xff]  ;;  %v20575_v62 = vld [vmem:[#allocation94_spill] sm:$0xff]  ;;  %v20577_v44 = vld [vmem:[#allocation52_spill] sm:$0xff] }
 0x610   : > { %v12713_v22 = vunpack.i.l.bf16 %v20570_v15  ;;  %v20571_v42 = vpack.c.bf16 %v16826_v43, %v16823_v56  ;;  %v12729_v26 = vunpack.i.h.bf16 %v20572_v34  ;;  %v12728_v0 = vunpack.i.l.bf16 %v20572_v34  ;;  %v20579_v34 = vld [vmem:[#allocation104_spill] sm:$0xff] }
 0x611   : > { %v6985_v28 = vpack.c.bf16 %v17172_v1, %v17169_v46  ;;  %v6986_v35 = vpack.c.bf16 %v17175_v37, %v17178_v52  ;;  %v6837_v10 = vsel %vm2294_vm4, %v6805_v20, %v20573_v50  ;;  %v6838_v59 = vsel %vm2294_vm4, %v6806_v47, %v20574_v55  ;;  %v17216_v20 = vpop.permute.xlu1 %12876  ;;  %v20601_v52 = vld [vmem:[#allocation62_spill] sm:$0xff] }
 0x612   : > { %v12724_v56 = vunpack.i.h.bf16 %v20575_v62  ;;  %v12723_v43 = vunpack.i.l.bf16 %v20575_v62  ;;  %v6869_v4 = vsel %vm2327_vm5, %v6837_v10, %v12718_v53  ;;  %v6870_v41 = vsel %vm2327_vm5, %v6838_v59, %v12719_v29  ;;  %v5592_v10 = vld [vmem:[#allocation2 + $0x3be] sm:$0xff]  ;;  %v20580_v59 = vld [vmem:[#allocation100_spill] sm:$0xff] }
 0x613   : > { %10755 = vmatmul.mubr.msk.bf16.gmra.mrb[28].mxu1 %vm2478_vm9, %v20569_v3  ;;  %v6835_v9 = vsel %vm2294_vm4, %v6803_v63, %v20576_v58  ;;  %v6836_v39 = vsel %vm2294_vm4, %v6804_v23, %v20577_v44  ;;  %v20578_v3 = vld [vmem:[#allocation109_spill] sm:$0xff]  ;;  %v6901_v53 = vsel %vm2360_vm6, %v6869_v4, %v12728_v0  ;;  %v6902_v29 = vsel %vm2360_vm6, %v6870_v41, %v12729_v26  ;;  %v5593_v23 = vld [vmem:[#allocation2 + $0x3c6] sm:$0xff] }
 0x614   : > { %10800 = vmatprep.mubr.msk.bf16.mxu1 %vm2478_vm9, %v20571_v42  ;;  %v6867_v47 = vsel %vm2327_vm5, %v6835_v9, %v12713_v22  ;;  %v6868_v38 = vsel %vm2327_vm5, %v6836_v39, %v12714_v18  ;;  %v12759_v15 = vunpack.i.h.bf16 %v20578_v3  ;;  %v12758_v42 = vunpack.i.l.bf16 %v20578_v3  ;;  %v5590_v58 = vld [vmem:[#allocation2 + $0x386] sm:$0xff]  ;;  %v5591_v9 = vld [vmem:[#allocation2 + $0x38e] sm:$0xff] }
 0x615   : > { %v12749_v50 = vunpack.i.h.bf16 %v20579_v34  ;;  %v12748_v63 = vunpack.i.l.bf16 %v20579_v34  ;;  %v6899_v55 = vsel %vm2360_vm6, %v6867_v47, %v12723_v43  ;;  %v6900_v22 = vsel %vm2360_vm6, %v6868_v38, %v12724_v56  ;;  %v20581_v44 = vld [vmem:[#allocation107_spill] sm:$0xff]  ;;  %v17242_v34 = vpop.permute.xlu0 %12891 }
 0x616   : > { %v12734_v18 = vunpack.i.h.bf16 %v20580_v59  ;;  %v12733_v62 = vunpack.i.l.bf16 %v20580_v59  ;;  %v12739_v0 = vunpack.i.h.bf16 %v20581_v44  ;;  %v12738_v26 = vunpack.i.l.bf16 %v20581_v44  ;;  %v20583_v47 = vld [vmem:[#allocation103_spill] sm:$0xff] }
 0x617   : > { %v12769_v4 = vunpack.i.h.bf16 %v16771_v57  ;;  %v12768_v41 = vunpack.i.l.bf16 %v16771_v57  ;;  %v20582_v39 = vpack.c.bf16 %v16829_v40, %v16840_v14  ;;  %v6746_v56 = vsel %vm446_vm0, %v5593_v23, %v12759_v15  ;;  %v20585_v57 = vld [vmem:[#allocation85_spill] sm:$0xff]  ;;  %v20586_v15 = vld [vmem:[#allocation102_spill] sm:$0xff] }
 0x618   : > { %v6745_v43 = vsel %vm446_vm0, %v5592_v10, %v12758_v42  ;;  %v12764_v38 = vunpack.i.h.bf16 %v20583_v47  ;;  %v12763_v3 = vunpack.i.l.bf16 %v20583_v47  ;;  %v20584_v59 = vpack.c.bf16 %v16983_v32, %v16980_v25  ;;  %v17253_v10 = vpop.permute.xlu1 %12886  ;;  %v20587_v47 = vld [vmem:[#allocation105_spill] sm:$0xff] }
 0x619   : > { %v6744_v40 = vsel %vm446_vm0, %v5591_v9, %v12749_v50  ;;  %v6743_v14 = vsel %vm446_vm0, %v5590_v58, %v12748_v63  ;;  %v12744_v23 = vunpack.i.h.bf16 %v20586_v15  ;;  %v12743_v42 = vunpack.i.l.bf16 %v20586_v15 }
 0x61a   : > { %v6931_v44 = vsel %vm2393_vm7, %v6899_v55, %v12733_v62  ;;  %v6932_v25 = vsel %vm2393_vm7, %v6900_v22, %v12734_v18  ;;  %v12779_v32 = vunpack.i.h.bf16 %v16803_v61  ;;  %v6777_v50 = vsel %vm2228_vm2, %v6745_v43, %v12768_v41  ;;  %v20588_v18 = vld [vmem:[#allocation86_spill] sm:$0xff] }
 0x61b   : > { %10801 = vmatmul.mubr.msk.bf16.vlgmr.msra.gmra.mrb[32].mxu1 %vm2478_vm9, %v20582_v39  ;;  %v12778_v39 = vunpack.i.l.bf16 %v16803_v61  ;;  %v6778_v63 = vsel %vm2228_vm2, %v6746_v56, %v12769_v4  ;;  %v12774_v58 = vunpack.i.h.bf16 %v16761_v12  ;;  %v12773_v9 = vunpack.i.l.bf16 %v16761_v12 }
 0x61c   : > { %10804 = vmatprep.mubr.msk.bf16.mxu1 %vm2478_vm9, %v20584_v59  ;;  %11077 = vmatpush3.bf16.msra.mxu1 %v20585_v57  ;;  %v12754_v59 = vunpack.i.h.bf16 %v20587_v47  ;;  %v12753_v15 = vunpack.i.l.bf16 %v20587_v47  ;;  %v6776_v55 = vsel %vm2228_vm2, %v6744_v40, %v12764_v38  ;;  %v6775_v22 = vsel %vm2228_vm2, %v6743_v14, %v12763_v3  ;;  %v17282_v3 = vpop.permute.xlu0 %12901  ;;  %v17288_v40 = vpop.permute.xlu1 %12896 }
 0x61d   : > { %11078 = vmatprep.subr.bf16.mxu1 %v20519_v19  ;;  %v6933_v61 = vsel %vm2393_vm7, %v6901_v53, %v12738_v26  ;;  %v6934_v62 = vsel %vm2393_vm7, %v6902_v29, %v12739_v0  ;;  %v17272_v4 = vsel %vm2426_vm8, %v6931_v44, %v12743_v42  ;;  %v17275_v41 = vsel %vm2426_vm8, %v6932_v25, %v12744_v23  ;;  %v20591_v25 = vld [vmem:[#allocation60_spill] sm:$0xff] }
 0x61e   : > { %v6809_v12 = vsel %vm2261_vm3, %v6777_v50, %v12778_v39  ;;  %v6810_v56 = vsel %vm2261_vm3, %v6778_v63, %v12779_v32  ;;  %v12789_v43 = vunpack.i.h.bf16 %v16845_v8  ;;  %v12788_v38 = vunpack.i.l.bf16 %v16845_v8 }
 0x61f   : > { %v6807_v53 = vsel %vm2261_vm3, %v6775_v22, %v12773_v9  ;;  %v6808_v29 = vsel %vm2261_vm3, %v6776_v55, %v12774_v58  ;;  %v12784_v0 = vunpack.i.h.bf16 %v16797_v7  ;;  %v12783_v26 = vunpack.i.l.bf16 %v16797_v7 }
 0x620   : > { %11080 = vmatpush3.bf16.msra.mxu1 %v20588_v18  ;;  %v20589_v14 = vpack.c.bf16 %v16986_v21, %v16989_v17  ;;  %v17295_v23 = vsel %vm2426_vm8, %v6934_v62, %v12754_v59  ;;  %v17298_v8 = vsel %vm2426_vm8, %v6933_v61, %v12753_v15  ;;  %v12799_v42 = vunpack.i.h.bf16 %v16896_v2  ;;  %v20592_v17 = vld [vmem:[#allocation59_spill] sm:$0xff] }
 0x621   : > { %11081 = vmatprep.subr.bf16.mxu1 %v20519_v19  ;;  %v12798_v44 = vunpack.i.l.bf16 %v16896_v2  ;;  %v20590_v7 = vpack.c.bf16 %v17064_v45, %v17061_v13  ;;  %v6841_v21 = vsel %vm2294_vm4, %v6809_v12, %v20591_v25  ;;  %v6842_v32 = vsel %vm2294_vm4, %v6810_v56, %v20592_v17  ;;  %v20593_v2 = vld [vmem:[#allocation58_spill] sm:$0xff]  ;;  %v20594_v45 = vld [vmem:[#allocation57_spill] sm:$0xff]  ;;  %v5596_v12 = vld [vmem:[#allocation2 + $0x42e] sm:$0xff] }
 0x622   : > { %v12794_v39 = vunpack.i.h.bf16 %v16832_v51  ;;  %v12793_v50 = vunpack.i.l.bf16 %v16832_v51  ;;  %v6873_v63 = vsel %vm2327_vm5, %v6841_v21, %v12788_v38  ;;  %v6874_v58 = vsel %vm2327_vm5, %v6842_v32, %v12789_v43  ;;  %v5597_v56 = vld [vmem:[#allocation2 + $0x436] sm:$0xff]  ;;  %v17326_v43 = vpop.permute.xlu0 %12911  ;;  %v20595_v32 = vld [vmem:[#allocation106_spill] sm:$0xff] }
 0x623   : > { %10805 = vmatmul.mubr.msk.bf16.gmra.mrb[36].mxu1 %vm2478_vm9, %v20589_v14  ;;  %v6839_v9 = vsel %vm2294_vm4, %v6807_v53, %v20593_v2  ;;  %v6840_v13 = vsel %vm2294_vm4, %v6808_v29, %v20594_v45  ;;  %v12829_v15 = vunpack.i.h.bf16 %v17014_v36  ;;  %v12828_v55 = vunpack.i.l.bf16 %v17014_v36  ;;  %v17332_v14 = vpop.permute.xlu1 %12906 }
 0x624   : > { %10808 = vmatprep.mubr.msk.bf16.mxu1 %vm2478_vm9, %v20590_v7  ;;  %v6871_v47 = vsel %vm2327_vm5, %v6839_v9, %v12783_v26  ;;  %v6872_v59 = vsel %vm2327_vm5, %v6840_v13, %v12784_v0  ;;  %v6905_v51 = vsel %vm2360_vm6, %v6873_v63, %v12798_v44  ;;  %v6906_v22 = vsel %vm2360_vm6, %v6874_v58, %v12799_v42  ;;  %v5594_v0 = vld [vmem:[#allocation2 + $0x3f6] sm:$0xff]  ;;  %v5595_v26 = vld [vmem:[#allocation2 + $0x3fe] sm:$0xff] }
 0x625   : > { %v12819_v61 = vunpack.i.h.bf16 %v16965_v54  ;;  %v12818_v62 = vunpack.i.l.bf16 %v16965_v54  ;;  %v6903_v38 = vsel %vm2360_vm6, %v6871_v47, %v12793_v50  ;;  %v6904_v53 = vsel %vm2360_vm6, %v6872_v59, %v12794_v39  ;;  %v20597_v58 = vld [vmem:[#allocation110_spill] sm:$0xff]  ;;  %v20598_v47 = vld [vmem:[#allocation111_spill] sm:$0xff] }
 0x626   : > { %v12809_v29 = vunpack.i.h.bf16 %v16936_v49  ;;  %v12808_v36 = vunpack.i.l.bf16 %v16936_v49  ;;  %v12804_v42 = vunpack.i.h.bf16 %v16883_v60  ;;  %v12803_v54 = vunpack.i.l.bf16 %v16883_v60 }
 0x627   : > { %v12839_v44 = vunpack.i.h.bf16 %v17050_v11  ;;  %v12838_v7 = vunpack.i.l.bf16 %v17050_v11  ;;  %v12814_v25 = vunpack.i.h.bf16 %v16927_v27  ;;  %v6750_v21 = vsel %vm446_vm0, %v5597_v56, %v12829_v15  ;;  %v17362_v15 = vpop.permute.xlu0 %12921 }
 0x628   : > { %v6749_v17 = vsel %vm446_vm0, %v5596_v12, %v12828_v55  ;;  %v12833_v49 = vunpack.i.l.bf16 %v20595_v32  ;;  %v20596_v39 = vpack.c.bf16 %v17067_v24, %v17070_v33  ;;  %v6748_v50 = vsel %vm446_vm0, %v5595_v26, %v12819_v61  ;;  %v17368_v61 = vpop.permute.xlu1 %12916 }
 0x629   : > { %v6747_v60 = vsel %vm446_vm0, %v5594_v0, %v12818_v62  ;;  %v12813_v63 = vunpack.i.l.bf16 %v16927_v27  ;;  %v12834_v11 = vunpack.i.h.bf16 %v20595_v32  ;;  %v12824_v2 = vunpack.i.h.bf16 %v20597_v58 }
 0x62a   : > { %v12823_v9 = vunpack.i.l.bf16 %v20597_v58  ;;  %v12849_v24 = vunpack.i.h.bf16 %v17092_v48  ;;  %v12848_v33 = vunpack.i.l.bf16 %v17092_v48  ;;  %v6937_v45 = vsel %vm2393_vm7, %v6905_v51, %v12808_v36 }
 0x62b   : > { %10809 = vmatmul.mubr.msk.bf16.gmra.mrb[40].mxu1 %vm2478_vm9, %v20596_v39  ;;  %v6781_v13 = vsel %vm2228_vm2, %v6749_v17, %v12838_v7  ;;  %v6782_v27 = vsel %vm2228_vm2, %v6750_v21, %v12839_v44  ;;  %v12843_v59 = vunpack.i.l.bf16 %v20598_v47  ;;  %v6935_v46 = vsel %vm2393_vm7, %v6903_v38, %v12803_v54  ;;  %v17401_v32 = vpop.permute.xlu0 %12931 }
 0x62c   : > { %10812 = vmatprep.mubr.msk.bf16.mxu1 %vm2478_vm9, %v6985_v28  ;;  %v6936_v1 = vsel %vm2393_vm7, %v6904_v53, %v12804_v42  ;;  %v6779_v28 = vsel %vm2228_vm2, %v6747_v60, %v12833_v49  ;;  %v12844_v55 = vunpack.i.h.bf16 %v20598_v47  ;;  %v6938_v48 = vsel %vm2393_vm7, %v6906_v22, %v12809_v29  ;;  %v17409_v39 = vpop.permute.xlu1 %12926  ;;  %v20603_v60 = vld [vmem:[#allocation61_spill] sm:$0xff] }
 0x62d   : > { %v6967_v51 = vsel %vm2426_vm8, %v6935_v46, %v12813_v63  ;;  %v6968_v62 = vsel %vm2426_vm8, %v6936_v1, %v12814_v25  ;;  %v6780_v12 = vsel %vm2228_vm2, %v6748_v50, %v12834_v11  ;;  %v17375_v56 = vsel %vm2426_vm8, %v6938_v48, %v12824_v2  ;;  %v20599_v25 = vld [vmem:[#allocation64_spill] sm:$0xff] }
 0x62e   : > { %v17378_v38 = vsel %vm2426_vm8, %v6937_v45, %v12823_v9  ;;  %v6813_v53 = vsel %vm2261_vm3, %v6781_v13, %v12848_v33  ;;  %v6814_v36 = vsel %vm2261_vm3, %v6782_v27, %v12849_v24  ;;  %v6811_v0 = vsel %vm2261_vm3, %v6779_v28, %v12843_v59  ;;  %v5598_v24 = vld [vmem:[#allocation2 + $0x466] sm:$0xff]  ;;  %v5599_v33 = vld [vmem:[#allocation2 + $0x46e] sm:$0xff] }
 0x62f   : > { %v12858_v22 = vunpack.i.l.bf16 %v17130_v31  ;;  %v6987_v29 = vpack.c.bf16 %v17275_v41, %v17272_v4  ;;  %v6989_v26 = vpack.c.bf16 %v6968_v62, %v6967_v51  ;;  %v6812_v42 = vsel %vm2261_vm3, %v6780_v12, %v12844_v55  ;;  %v20600_v4 = vld [vmem:[#allocation63_spill] sm:$0xff]  ;;  %v12942_v48 = vpop.permute.xlu0 %12941 }
 0x630   : > { %v12853_v54 = vunpack.i.l.bf16 %v17084_v16  ;;  %v6988_v44 = vpack.c.bf16 %v17295_v23, %v17298_v8  ;;  %v6990_v7 = vpack.c.bf16 %v17375_v56, %v17378_v38  ;;  %v6845_v21 = vsel %vm2294_vm4, %v6813_v53, %v20599_v25  ;;  %v20602_v23 = vld [vmem:[#allocation112_spill] sm:$0xff]  ;;  %v5600_v53 = vld [vmem:[#allocation2 + $0x49e] sm:$0xff] }
 0x631   : > { %v6846_v41 = vsel %vm2294_vm4, %v6814_v36, %v20600_v4  ;;  %v12854_v17 = vunpack.i.h.bf16 %v17084_v16  ;;  %v12859_v37 = vunpack.i.h.bf16 %v17130_v31  ;;  %v12864_v8 = vunpack.i.h.bf16 %v20602_v23  ;;  %v5601_v36 = vld [vmem:[#allocation2 + $0x4a6] sm:$0xff] }
 0x632   : > { %v12863_v49 = vunpack.i.l.bf16 %v20602_v23  ;;  %v6877_v50 = vsel %vm2327_vm5, %v6845_v21, %v12858_v22  ;;  %v6844_v16 = vsel %vm2294_vm4, %v6812_v42, %v20603_v60  ;;  %v12889_v63 = vunpack.i.h.bf16 %v17253_v10 }
 0x633   : > { %10813 = vmatmul.mubr.msk.bf16.gmra.mrb[44].mxu1 %vm2478_vm9, %v6986_v35  ;;  %v6843_v35 = vsel %vm2294_vm4, %v6811_v0, %v20601_v52  ;;  %v12888_v11 = vunpack.i.l.bf16 %v17253_v10  ;;  %v12868_v58 = vunpack.i.l.bf16 %v17166_v6  ;;  %v12874_v2 = vunpack.i.h.bf16 %v17160_v30 }
 0x634   : > { %10816 = vmatprep.mubr.msk.bf16.mxu1 %vm2478_vm9, %v6987_v29  ;;  %v6875_v31 = vsel %vm2327_vm5, %v6843_v35, %v12853_v54  ;;  %v12873_v9 = vunpack.i.l.bf16 %v17160_v30  ;;  %v6876_v45 = vsel %vm2327_vm5, %v6844_v16, %v12854_v17  ;;  %v12869_v13 = vunpack.i.h.bf16 %v17166_v6 }
 0x635   : > { %v12884_v27 = vunpack.i.h.bf16 %v17208_v5  ;;  %v12883_v47 = vunpack.i.l.bf16 %v17208_v5  ;;  %v6907_v10 = vsel %vm2360_vm6, %v6875_v31, %v12863_v49  ;;  %v6908_v59 = vsel %vm2360_vm6, %v6876_v45, %v12864_v8  ;;  %v12952_v49 = vpop.permute.xlu0 %12951 }
 0x636   : > { %v12904_v46 = vunpack.i.h.bf16 %v17282_v3  ;;  %v12903_v1 = vunpack.i.l.bf16 %v17282_v3  ;;  %v6752_v30 = vsel %vm446_vm0, %v5599_v33, %v12889_v63  ;;  %v6751_v28 = vsel %vm446_vm0, %v5598_v24, %v12888_v11  ;;  %v17436_v3 = vpop.permute.xlu1 %12936 }
 0x637   : > { %v12899_v55 = vunpack.i.h.bf16 %v17288_v40  ;;  %v12898_v6 = vunpack.i.l.bf16 %v17288_v40  ;;  %v6878_v51 = vsel %vm2327_vm5, %v6846_v41, %v12859_v37  ;;  %v6909_v5 = vsel %vm2360_vm6, %v6877_v50, %v12868_v58 }
 0x638   : > { %v6939_v62 = vsel %vm2393_vm7, %v6907_v10, %v12873_v9  ;;  %v6940_v12 = vsel %vm2393_vm7, %v6908_v59, %v12874_v2  ;;  %v12914_v40 = vunpack.i.h.bf16 %v17326_v43  ;;  %v12913_v29 = vunpack.i.l.bf16 %v17326_v43  ;;  %v20604_v2 = vld [vmem:[#allocation67_spill] sm:$0xff] }
 0x639   : > { %v6971_v0 = vsel %vm2426_vm8, %v6939_v62, %v12883_v47  ;;  %v6972_v22 = vsel %vm2426_vm8, %v6940_v12, %v12884_v27  ;;  %v12909_v42 = vunpack.i.h.bf16 %v17332_v14  ;;  %v12908_v54 = vunpack.i.l.bf16 %v17332_v14  ;;  %v20606_v12 = vld [vmem:[#allocation65_spill] sm:$0xff] }
 0x63a   : > { %v6784_v25 = vsel %vm2228_vm2, %v6752_v30, %v12904_v46  ;;  %v6783_v21 = vsel %vm2228_vm2, %v6751_v28, %v12903_v1  ;;  %v12879_v4 = vunpack.i.h.bf16 %v17216_v20  ;;  %v6754_v41 = vsel %vm446_vm0, %v5601_v36, %v12899_v55  ;;  %v12947_v63 = vpop.permute.xlu1 %12946 }
 0x63b   : > { %10817 = vmatmul.mubr.msk.bf16.gmra.mrb[48].mxu1 %vm2478_vm9, %v6988_v44  ;;  %v6910_v44 = vsel %vm2360_vm6, %v6878_v51, %v12869_v13  ;;  %v6753_v17 = vsel %vm446_vm0, %v5600_v53, %v12898_v6  ;;  %v12878_v43 = vunpack.i.l.bf16 %v17216_v20  ;;  %v6991_v37 = vpack.c.bf16 %v6972_v22, %v6971_v0  ;;  %v20607_v22 = vld [vmem:[#allocation66_spill] sm:$0xff] }
 0x63c   : > { %10820 = vmatprep.mubr.msk.bf16.mxu1 %vm2478_vm9, %v6989_v26  ;;  %v12894_v26 = vunpack.i.h.bf16 %v17242_v34  ;;  %v12893_v52 = vunpack.i.l.bf16 %v17242_v34  ;;  %v6815_v14 = vsel %vm2261_vm3, %v6783_v21, %v12913_v29  ;;  %v6816_v35 = vsel %vm2261_vm3, %v6784_v25, %v12914_v40 }
 0x63d   : > { %v12924_v23 = vunpack.i.h.bf16 %v17362_v15  ;;  %v12923_v8 = vunpack.i.l.bf16 %v17362_v15  ;;  %v6785_v50 = vsel %vm2228_vm2, %v6753_v17, %v12908_v54  ;;  %v6786_v60 = vsel %vm2228_vm2, %v6754_v41, %v12909_v42  ;;  %v20605_v15 = vld [vmem:[#allocation68_spill] sm:$0xff] }
 0x63e   : > { %v12934_v20 = vunpack.i.h.bf16 %v17401_v32  ;;  %v12933_v16 = vunpack.i.l.bf16 %v17401_v32  ;;  %v12919_v34 = vunpack.i.h.bf16 %v17368_v61  ;;  %v12918_v11 = vunpack.i.l.bf16 %v17368_v61  ;;  %v12957_v55 = vpop.permute.xlu1 %12956 }
 0x63f   : > { %v12944_v31 = vunpack.i.h.bf16 %v12942_v48  ;;  %v12943_v58 = vunpack.i.l.bf16 %v12942_v48  ;;  %v6847_v9 = vsel %vm2294_vm4, %v6815_v14, %v20604_v2  ;;  %v6848_v24 = vsel %vm2294_vm4, %v6816_v35, %v20605_v15  ;;  %v20616_v2 = vld [vmem:[#allocation171_spill] sm:$0xff]  ;;  %v20617_v15 = vld [vmem:[#allocation172_spill] sm:$0xff] }
 0x640   : > { %v12954_v33 = vunpack.i.h.bf16 %v12952_v49  ;;  %v12953_v45 = vunpack.i.l.bf16 %v12952_v49  ;;  %v6941_v32 = vsel %vm2393_vm7, %v6909_v5, %v12878_v43  ;;  %v6942_v13 = vsel %vm2393_vm7, %v6910_v44, %v12879_v4  ;;  %v20611_v49 = vld [vmem:[#allocation166_spill] sm:$0xff] }
 0x641   : > { %v6879_v61 = vsel %vm2327_vm5, %v6847_v9, %v12923_v8  ;;  %v6880_v27 = vsel %vm2327_vm5, %v6848_v24, %v12924_v23  ;;  %v6974_v47 = vsel %vm2426_vm8, %v6942_v13, %v12894_v26  ;;  %v6973_v10 = vsel %vm2426_vm8, %v6941_v32, %v12893_v52  ;;  %v2692_v26 = vld [vmem:[%s19771_s2] sm:$0x1]  ;;  %v20609_v23 = vld [vmem:[#allocation165_spill] sm:$0xff] }
 0x642   : > { %v6911_v59 = vsel %vm2360_vm6, %v6879_v61, %v12933_v16  ;;  %v6912_v56 = vsel %vm2360_vm6, %v6880_v27, %v12934_v20  ;;  %v6817_v38 = vsel %vm2261_vm3, %v6785_v50, %v12918_v11  ;;  %v12929_v30 = vunpack.i.h.bf16 %v17409_v39  ;;  %v20613_v16 = vld [vmem:[#allocation168_spill] sm:$0xff]  ;;  %v20619_v32 = vld [vmem:[#allocation174_spill] sm:$0xff]  ;;  %v20620_v61 = vld [vmem:[#allocation175_spill] sm:$0xff] }
 0x643   : > { %10821 = vmatmul.mubr.msk.bf16.gmra.mrb[52].mxu1 %vm2478_vm9, %v6990_v7  ;;  %v6818_v7 = vsel %vm2261_vm3, %v6786_v60, %v12919_v34  ;;  %v6943_v46 = vsel %vm2393_vm7, %v6911_v59, %v12943_v58  ;;  %v6944_v1 = vsel %vm2393_vm7, %v6912_v56, %v12944_v31  ;;  %v12928_v28 = vunpack.i.l.bf16 %v17409_v39  ;;  %v20612_v60 = vld [vmem:[#allocation167_spill] sm:$0xff]  ;;  %v20614_v34 = vld [vmem:[#allocation169_spill] sm:$0xff]  ;;  %v20615_v31 = vld [vmem:[#allocation170_spill] sm:$0xff] }
 0x644   : > { %10824 = vmatprep.mubr.msk.bf16.mxu1 %vm2478_vm9, %v6991_v37  ;;  %v6975_v6 = vsel %vm2426_vm8, %v6943_v46, %v12953_v45  ;;  %v6976_v48 = vsel %vm2426_vm8, %v6944_v1, %v12954_v33  ;;  %v12939_v51 = vunpack.i.h.bf16 %v17436_v3  ;;  %v12938_v5 = vunpack.i.l.bf16 %v17436_v3  ;;  %v20618_v33 = vld [vmem:[#allocation173_spill] sm:$0xff]  ;;  %v20624_v46 = vld [vmem:[#allocation179_spill] sm:$0xff] }
 0x645   : > { %v6992_v62 = vpack.c.bf16 %v6974_v47, %v6973_v10  ;;  %v6849_v53 = vsel %vm2294_vm4, %v6817_v38, %v20606_v12  ;;  %v12949_v36 = vunpack.i.h.bf16 %v12947_v63  ;;  %v12948_v0 = vunpack.i.l.bf16 %v12947_v63  ;;  %v20621_v47 = vld [vmem:[#allocation176_spill] sm:$0xff]  ;;  %v20622_v59 = vld [vmem:[#allocation177_spill] sm:$0xff]  ;;  %v20623_v38 = vld [vmem:[#allocation178_spill] sm:$0xff] }
 0x646   : > { %v6850_v40 = vsel %vm2294_vm4, %v6818_v7, %v20607_v22  ;;  %v12959_v29 = vunpack.i.h.bf16 %v12957_v55  ;;  %v12958_v39 = vunpack.i.l.bf16 %v12957_v55  ;;  %v6993_v42 = vpack.c.bf16 %v6976_v48, %v6975_v6  ;;  %v20626_v55 = vld [vmem:[#allocation181_spill] sm:$0xff]  ;;  %v20627_v48 = vld [vmem:[#allocation184_spill] sm:$0xff]  ;;  %v10338_v12 = vld [vmem:[%s19772_s3] ss:$0 sm:$0xff] }
 0x647   : > { %v6881_v54 = vsel %vm2327_vm5, %v6849_v53, %v12928_v28  ;;  %v6882_v25 = vsel %vm2327_vm5, %v6850_v40, %v12929_v30  ;;  %v20608_v37 = vmov 0.0   ;;  %v20625_v30 = vld [vmem:[#allocation180_spill] sm:$0xff]  ;;  %v20629_v53 = vld [vmem:[#allocation186_spill] sm:$0xff] }
 0x648   : > { %v6913_v3 = vsel %vm2360_vm6, %v6881_v54, %v12938_v5  ;;  %v6914_v21 = vsel %vm2360_vm6, %v6882_v25, %v12939_v51  ;;  %v20628_v5 = vld [vmem:[#allocation185_spill] sm:$0xff]  ;;  %v20631_v40 = vld [vmem:[#allocation188_spill] sm:$0xff]  ;;  %v20633_v54 = vld [vmem:[#allocation190_spill] sm:$0xff] }
 0x649   : > { %v6945_v44 = vsel %vm2393_vm7, %v6913_v3, %v12948_v0  ;;  %v6946_v4 = vsel %vm2393_vm7, %v6914_v21, %v12949_v36  ;;  %v20630_v0 = vld [vmem:[#allocation187_spill] sm:$0xff] }
 0x64a   : > { %v6977_v41 = vsel %vm2426_vm8, %v6945_v44, %v12958_v39  ;;  %v6978_v17 = vsel %vm2426_vm8, %v6946_v4, %v12959_v29  ;;  %v20632_v39 = vld [vmem:[#allocation189_spill] sm:$0xff]  ;;  %v20634_v3 = vld [vmem:[#allocation191_spill] sm:$0xff]  ;;  %v20635_v44 = vld [vmem:[#allocation192_spill] sm:$0xff] }
 0x64b   : > { %10825 = vmatmul.mubr.msk.bf16.gmra.mrb[56].mxu1 %vm2478_vm9, %v6992_v62  ;;  %v6994_v43 = vpack.c.bf16 %v6978_v17, %v6977_v41  ;;  %v20636_v41 = vld [vmem:[#allocation193_spill] sm:$0xff] }
 0x64c   : > { %10828 = vmatprep.mubr.msk.bf16.mxu1 %vm2478_vm9, %v6993_v42 }
 0x653   : > { %10829 = vmatmul.mubr.msk.bf16.gmra.mrb[60].mxu1 %vm2478_vm9, %v6994_v43  ;;  %v20637_v43 = vld [vmem:[#allocation194_spill] sm:$0xff] }
 0x654   : > { %10910 = vmatprep.mubr.msk.f32.mxu1 %vm13307_vm10, %v20608_v37 }
 0x6b2   : > { %v3192_v52 = vpop.f32.mrb[6].mxu1 }
 0x6b3   : > { %v3196_v14 = vmul.f32 %v3192_v52, %v2692_v26  ;;  %v10719_v35 = vpop.f32.mrb[7].mxu1  ;;  %v20638_v52 = vld [vmem:[#allocation195_spill] sm:$0xff] }
 0x6b4   : > { %v20639_v35 = vld [vmem:[#allocation196_spill] sm:$0xff] }
 0x6b5   : > { %v17513_v8 = vrot.slane %v3196_v14, %v20609_v23 }
 0x6b7   : > { %20610 = vst [vmem:[#allocation108_spill] sm:$0xff] %v17513_v8  ;;  %v3201_v50 = vmul.f32 %v17513_v8, %v20611_v49  ;;  %v3202_v20 = vmul.f32 %v17513_v8, %v20612_v60  ;;  %v3203_v63 = vmul.f32 %v17513_v8, %v20613_v16  ;;  %v3204_v11 = vmul.f32 %v17513_v8, %v20614_v34  ;;  %v20640_v60 = vld [vmem:[#allocation197_spill] sm:$0xff] }
 0x6b8   : > { %v3205_v58 = vmul.f32 %v17513_v8, %v20615_v31  ;;  %v3206_v9 = vmul.f32 %v17513_v8, %v20616_v2  ;;  %v3207_v24 = vmul.f32 %v17513_v8, %v20617_v15  ;;  %v3208_v45 = vmul.f32 %v17513_v8, %v20618_v33 }
 0x6b9   : > { %v3209_v13 = vmul.f32 %v17513_v8, %v20619_v32  ;;  %v3210_v27 = vmul.f32 %v17513_v8, %v20620_v61  ;;  %v3211_v10 = vmul.f32 %v17513_v8, %v20621_v47  ;;  %v3212_v56 = vmul.f32 %v17513_v8, %v20622_v59 }
 0x6ba   : > { %v3213_v7 = vmul.f32 %v17513_v8, %v20623_v38  ;;  %v3214_v1 = vmul.f32 %v17513_v8, %v20624_v46  ;;  %v3215_v28 = vmul.f32 %v17513_v8, %v20625_v30  ;;  %v3216_v6 = vmul.f32 %v17513_v8, %v20626_v55 }
 0x6bb   : > { %v3219_v51 = vmul.f32 %v17513_v8, %v20627_v48  ;;  %v3220_v62 = vmul.f32 %v17513_v8, %v20628_v5  ;;  %v3221_v36 = vmul.f32 %v17513_v8, %v20629_v53  ;;  %v3222_v22 = vmul.f32 %v17513_v8, %v20630_v0 }
 0x6bc   : > { %v3223_v29 = vmul.f32 %v17513_v8, %v20631_v40  ;;  %v3224_v42 = vmul.f32 %v17513_v8, %v20632_v39  ;;  %v3225_v25 = vmul.f32 %v17513_v8, %v20633_v54  ;;  %v3226_v21 = vmul.f32 %v17513_v8, %v20634_v3 }
 0x6bd   : > { %v3227_v4 = vmul.f32 %v17513_v8, %v20635_v44  ;;  %v3228_v17 = vmul.f32 %v17513_v8, %v20636_v41  ;;  %v3229_v26 = vmul.f32 %v17513_v8, %v20637_v43  ;;  %v3230_v14 = vmul.f32 %v17513_v8, %v20638_v52 }
 0x6be   : > { %v3231_v49 = vmul.f32 %v17513_v8, %v20639_v35  ;;  %v3232_v16 = vmul.f32 %v17513_v8, %v20640_v60  ;;  %v17578_v34 = vpop.f32.mrb[8].mxu1  ;;  %v17580_v31 = vadd.f32 %v10338_v12, %v3201_v50  ;;  %v17582_v2 = vadd.f32 %v10338_v12, %v3202_v20 }
 0x6bf   : > { %v17584_v15 = vadd.f32 %v10338_v12, %v3203_v63  ;;  %v17586_v33 = vadd.f32 %v10338_v12, %v3204_v11  ;;  %v17588_v32 = vpop.f32.mrb[9].mxu1  ;;  %v17590_v61 = vadd.f32 %v10338_v12, %v3205_v58  ;;  %v17592_v47 = vadd.f32 %v10338_v12, %v3206_v9 }
 0x6c0   : > { %20641 = vst [vmem:[#allocation113_spill] sm:$0xff] %v17580_v31  ;;  %20642 = vst [vmem:[#allocation114_spill] sm:$0xff] %v17582_v2  ;;  %v17594_v59 = vadd.f32 %v10338_v12, %v3207_v24  ;;  %v17596_v38 = vadd.f32 %v10338_v12, %v3208_v45  ;;  %v17598_v46 = vpop.f32.mrb[10].mxu1  ;;  %v17600_v50 = vadd.f32 %v10338_v12, %v3209_v13  ;;  %v4969_v39 = vsel %vm2426_vm8, %v17588_v32, 0.0 }
 0x6c1   : > { %20643 = vst [vmem:[#allocation115_spill] sm:$0xff] %v17584_v15  ;;  %20644 = vst [vmem:[#allocation116_spill] sm:$0xff] %v17586_v33  ;;  %v17602_v20 = vadd.f32 %v10338_v12, %v3210_v27  ;;  %v17604_v63 = vadd.f32 %v10338_v12, %v3211_v10  ;;  %v17606_v11 = vadd.f32 %v10338_v12, %v3212_v56  ;;  %v17608_v30 = vpop.f32.mrb[11].mxu1 }
 0x6c2   : > { %20645 = vst [vmem:[#allocation118_spill] sm:$0xff] %v17590_v61  ;;  %20646 = vst [vmem:[#allocation121_spill] sm:$0xff] %v17592_v47  ;;  %v17610_v58 = vadd.f32 %v10338_v12, %v3213_v7  ;;  %v17612_v9 = vadd.f32 %v10338_v12, %v3214_v1  ;;  %v17614_v24 = vadd.f32 %v10338_v12, %v3215_v28 }
 0x6c3   : > { %20647 = vst [vmem:[#allocation119_spill] sm:$0xff] %v17594_v59  ;;  %20648 = vst [vmem:[#allocation117_spill] sm:$0xff] %v17596_v38  ;;  %v17616_v45 = vadd.f32 %v10338_v12, %v3216_v6  ;;  %v17618_v55 = vadd.f32 %v10338_v12, %v3219_v51  ;;  %v17620_v13 = vadd.f32 %v10338_v12, %v3220_v62 }
 0x6c4   : > { %20649 = vst [vmem:[#allocation120_spill] sm:$0xff] %v17600_v50  ;;  %20650 = vst [vmem:[#allocation123_spill] sm:$0xff] %v17602_v20  ;;  %v17622_v27 = vadd.f32 %v10338_v12, %v3221_v36  ;;  %v17624_v10 = vadd.f32 %v10338_v12, %v3222_v22  ;;  %v17626_v56 = vadd.f32 %v10338_v12, %v3223_v29 }
 0x6c5   : > { %20651 = vst [vmem:[#allocation124_spill] sm:$0xff] %v17604_v63  ;;  %20652 = vst [vmem:[#allocation122_spill] sm:$0xff] %v17606_v11  ;;  %v17628_v48 = vadd.f32 %v10338_v12, %v3224_v42  ;;  %v17630_v7 = vadd.f32 %v10338_v12, %v3225_v25  ;;  %v17632_v1 = vadd.f32 %v10338_v12, %v3226_v21  ;;  %v4971_v42 = vsel %vm2426_vm8, %v17608_v30, 0.0 }
 0x6c6   : > { %20653 = vst [vmem:[#allocation125_spill] sm:$0xff] %v17610_v58  ;;  %20654 = vst [vmem:[#allocation126_spill] sm:$0xff] %v17612_v9  ;;  %v17634_v28 = vadd.f32 %v10338_v12, %v3227_v4  ;;  %v17636_v6 = vadd.f32 %v10338_v12, %v3228_v17  ;;  %v17638_v51 = vadd.f32 %v10338_v12, %v3229_v26  ;;  %v17646_v36 = vpop.f32.mrb[12].mxu1  ;;  %v4973_v4 = vsel %vm2426_vm8, %v17578_v34, 0.0 }
 0x6c7   : > { %20655 = vst [vmem:[#allocation127_spill] sm:$0xff] %v17614_v24  ;;  %20656 = vst [vmem:[#allocation128_spill] sm:$0xff] %v17616_v45  ;;  %v17640_v5 = vadd.f32 %v10338_v12, %v3230_v14  ;;  %v17642_v62 = vadd.f32 %v10338_v12, %v3231_v49  ;;  %v17644_v53 = vadd.f32 %v10338_v12, %v3232_v16  ;;  %v17648_v0 = vpop.f32.mrb[13].mxu1  ;;  %v20665_v12 = vld [vmem:[#allocation153_spill] sm:$0xff]  ;;  %v4975_v17 = vsel %vm2426_vm8, %v17598_v46, 0.0 }
 0x6c8   : > { %20657 = vst [vmem:[#allocation129_spill] sm:$0xff] %v17630_v7  ;;  %20658 = vst [vmem:[#allocation130_spill] sm:$0xff] %v17632_v1  ;;  %v17650_v22 = vpop.f32.mrb[14].mxu1  ;;  %v4970_v25 = vadd.f32 %v4969_v39, %v20665_v12  ;;  %v4977_v43 = vsel %vm2426_vm8, %v17648_v0, 0.0 }
 0x6c9   : > { %20659 = vst [vmem:[#allocation133_spill] sm:$0xff] %v17634_v28  ;;  %20660 = vst [vmem:[#allocation140_spill] sm:$0xff] %v17636_v6  ;;  %v17652_v40 = vpop.f32.mrb[15].mxu1 }
 0x6ca   : > { %20661 = vst [vmem:[#allocation131_spill] sm:$0xff] %v17638_v51  ;;  %20662 = vst [vmem:[#allocation141_spill] sm:$0xff] %v17640_v5  ;;  %v4972_v44 = vadd.f32 %v4971_v42, %v4970_v25  ;;  %v4979_v14 = vsel %vm2426_vm8, %v17652_v40, 0.0  ;;  %v4981_v42 = vsel %vm2426_vm8, %v17646_v36, 0.0  ;;  %v4983_v25 = vsel %vm2426_vm8, %v17650_v22, 0.0 }
 0x6cb   : > { %20663 = vst [vmem:[#allocation132_spill] sm:$0xff] %v17642_v62  ;;  %20664 = vst [vmem:[#allocation142_spill] sm:$0xff] %v17644_v53 }
 0x6cc   : > { %v4974_v41 = vadd.f32 %v4973_v4, %v4972_v44 }
 0x6ce   : > { %v17654_v29 = vpop.f32.mrb[16].mxu1  ;;  %v4976_v26 = vadd.f32 %v4975_v17, %v4974_v41 }
 0x6cf   : > { %v17660_v54 = vpop.f32.mrb[17].mxu1 }
 0x6d0   : > { %v17663_v3 = vpop.f32.mrb[18].mxu1  ;;  %v4978_v49 = vadd.f32 %v4977_v43, %v4976_v26  ;;  %v4985_v44 = vsel %vm2426_vm8, %v17660_v54, 0.0 }
 0x6d1   : > { %v17665_v21 = vpop.f32.mrb[19].mxu1 }
 0x6d2   : > { %v4980_v39 = vadd.f32 %v4979_v14, %v4978_v49  ;;  %v4987_v17 = vsel %vm2426_vm8, %v17665_v21, 0.0 }
 0x6d4   : > { %v4982_v12 = vadd.f32 %v4981_v42, %v4980_v39  ;;  %v4989_v42 = vsel %vm2426_vm8, %v17654_v29, 0.0 }
 0x6d6   : > { %v17673_v52 = vpop.f32.mrb[20].mxu1  ;;  %v4984_v4 = vadd.f32 %v4983_v25, %v4982_v12  ;;  %v4991_v12 = vsel %vm2426_vm8, %v17663_v3, 0.0 }
 0x6d7   : > { %v17677_v35 = vpop.f32.mrb[21].mxu1 }
 0x6d8   : > { %v17679_v60 = vpop.f32.mrb[22].mxu1  ;;  %v4986_v26 = vadd.f32 %v4985_v44, %v4984_v4  ;;  %v4993_v25 = vsel %vm2426_vm8, %v17677_v35, 0.0 }
 0x6d9   : > { %v17681_v16 = vpop.f32.mrb[23].mxu1 }
 0x6da   : > { %v4988_v39 = vadd.f32 %v4987_v17, %v4986_v26  ;;  %v4995_v44 = vsel %vm2426_vm8, %v17681_v16, 0.0 }
 0x6dc   : > { %v4990_v45 = vadd.f32 %v4989_v42, %v4988_v39  ;;  %v4997_v42 = vsel %vm2426_vm8, %v17673_v52, 0.0 }
 0x6de   : > { %v17689_v41 = vpop.f32.mrb[24].mxu1  ;;  %v4992_v24 = vadd.f32 %v4991_v12, %v4990_v45  ;;  %v4999_v45 = vsel %vm2426_vm8, %v17679_v60, 0.0 }
 0x6df   : > { %v17693_v43 = vpop.f32.mrb[25].mxu1 }
 0x6e0   : > { %v17695_v14 = vpop.f32.mrb[26].mxu1  ;;  %v4994_v62 = vadd.f32 %v4993_v25, %v4992_v24  ;;  %v5001_v12 = vsel %vm2426_vm8, %v17693_v43, 0.0 }
 0x6e1   : > { %v17697_v49 = vpop.f32.mrb[27].mxu1 }
 0x6e2   : > { %v4996_v39 = vadd.f32 %v4995_v44, %v4994_v62  ;;  %v5003_v24 = vsel %vm2426_vm8, %v17697_v49, 0.0 }
 0x6e4   : > { %v4998_v58 = vadd.f32 %v4997_v42, %v4996_v39 }
 0x6e6   : > { %v17705_v53 = vpop.f32.mrb[28].mxu1  ;;  %v5000_v5 = vadd.f32 %v4999_v45, %v4998_v58  ;;  %v5005_v58 = vsel %vm2426_vm8, %v17689_v41, 0.0 }
 0x6e7   : > { %v17709_v4 = vpop.f32.mrb[29].mxu1 }
 0x6e8   : > { %v17711_v17 = vpop.f32.mrb[30].mxu1  ;;  %v5002_v9 = vadd.f32 %v5001_v12, %v5000_v5  ;;  %v5007_v5 = vsel %vm2426_vm8, %v17695_v14, 0.0 }
 0x6e9   : > { %v17713_v26 = vpop.f32.mrb[31].mxu1 }
 0x6ea   : > { %v5004_v39 = vadd.f32 %v5003_v24, %v5002_v9  ;;  %v5009_v9 = vsel %vm2426_vm8, %v17709_v4, 0.0 }
 0x6ec   : > { %v5006_v28 = vadd.f32 %v5005_v58, %v5004_v39 }
 0x6ee   : > { %v17721_v51 = vpop.f32.mrb[32].mxu1  ;;  %v5008_v24 = vadd.f32 %v5007_v5, %v5006_v28  ;;  %v5013_v5 = vsel %vm2426_vm8, %v17705_v53, 0.0 }
 0x6ef   : > { %20666 = vst [vmem:[#allocation135_spill] sm:$0xff] %v17721_v51  ;;  %v17725_v25 = vpop.f32.mrb[33].mxu1  ;;  %v7217_v11 = vsel %vm2426_vm8, %v17721_v51, 0.0 }
 0x6f0   : > { %20667 = vst [vmem:[#allocation143_spill] sm:$0xff] %v17725_v25  ;;  %v17727_v62 = vpop.f32.mrb[34].mxu1  ;;  %v7214_v42 = vsel %vm2426_vm8, %v17725_v25, 0.0  ;;  %v5010_v58 = vadd.f32 %v5009_v9, %v5008_v24  ;;  %v5015_v9 = vsel %vm2426_vm8, %v17711_v17, 0.0 }
 0x6f1   : > { %20668 = vst [vmem:[#allocation139_spill] sm:$0xff] %v17727_v62  ;;  %v17729_v44 = vpop.f32.mrb[35].mxu1  ;;  %v7219_v63 = vsel %vm2426_vm8, %v17727_v62, 0.0 }
 0x6f2   : > { %20669 = vst [vmem:[#allocation144_spill] sm:$0xff] %v17729_v44  ;;  %v7215_v6 = vsel %vm2426_vm8, %v17729_v44, 0.0 }
 0x6f3   : > { %v7216_v45 = vadd.f32 %v7215_v6, %v7214_v42  ;;  %v5011_v6 = vsel %vm2426_vm8, %v17713_v26, 0.0 }
 0x6f4   : > { %v5012_v28 = vadd.f32 %v5011_v6, %v5010_v58 }
 0x6f5   : > { %v7218_v12 = vadd.f32 %v7217_v11, %v7216_v45 }
 0x6f6   : > { %v17745_v7 = vpop.f32.mrb[36].mxu1  ;;  %v5014_v59 = vadd.f32 %v5013_v5, %v5012_v28 }
 0x6f7   : > { %20670 = vst [vmem:[#allocation145_spill] sm:$0xff] %v17745_v7  ;;  %v17749_v39 = vpop.f32.mrb[37].mxu1  ;;  %v7220_v42 = vadd.f32 %v7219_v63, %v7218_v12  ;;  %v7225_v63 = vsel %vm2426_vm8, %v17745_v7, 0.0 }
 0x6f8   : > { %20671 = vst [vmem:[#allocation147_spill] sm:$0xff] %v17749_v39  ;;  %v7221_v20 = vsel %vm2426_vm8, %v17749_v39, 0.0  ;;  %v17753_v50 = vpop.f32.mrb[38].mxu1  ;;  %v5016_v24 = vadd.f32 %v5015_v9, %v5014_v59 }
 0x6f9   : > { %20672 = vst [vmem:[#allocation149_spill] sm:$0xff] %v17753_v50  ;;  %v7222_v1 = vadd.f32 %v7221_v20, %v7220_v42  ;;  %v17755_v11 = vpop.f32.mrb[39].mxu1  ;;  %v7227_v20 = vsel %vm2426_vm8, %v17753_v50, 0.0 }
 0x6fa   : > { %20673 = vst [vmem:[#allocation152_spill] sm:$0xff] %v17755_v11  ;;  %v7223_v45 = vsel %vm2426_vm8, %v17755_v11, 0.0  ;;  %v5017_v61 = vrot.slane %v5016_v24, 4 }
 0x6fb   : > { %v7224_v38 = vadd.f32 %v7223_v45, %v7222_v1 }
 0x6fc   : > { %v5018_v47 = vadd.f32 %v5017_v61, %v5016_v24 }
 0x6fd   : > { %v7226_v12 = vadd.f32 %v7225_v63, %v7224_v38 }
 0x6fe   : > { %v17767_v6 = vpop.f32.mrb[40].mxu1  ;;  %v5019_v63 = vrot.slane %v5018_v47, 2 }
 0x6ff   : > { %20674 = vst [vmem:[#allocation156_spill] sm:$0xff] %v17767_v6  ;;  %v17769_v42 = vpop.f32.mrb[41].mxu1  ;;  %v7228_v58 = vadd.f32 %v7227_v20, %v7226_v12  ;;  %v7233_v9 = vsel %vm2426_vm8, %v17767_v6, 0.0 }
 0x700   : > { %20675 = vst [vmem:[#allocation157_spill] sm:$0xff] %v17769_v42  ;;  %v7229_v1 = vsel %vm2426_vm8, %v17769_v42, 0.0  ;;  %v17773_v28 = vpop.f32.mrb[42].mxu1  ;;  %v5020_v12 = vadd.f32 %v5019_v63, %v5018_v47 }
 0x701   : > { %20676 = vst [vmem:[#allocation154_spill] sm:$0xff] %v17773_v28  ;;  %v7230_v45 = vadd.f32 %v7229_v1, %v7228_v58  ;;  %v17775_v5 = vpop.f32.mrb[43].mxu1  ;;  %v7235_v20 = vsel %vm2426_vm8, %v17773_v28, 0.0 }
 0x702   : > { %20677 = vst [vmem:[#allocation158_spill] sm:$0xff] %v17775_v5  ;;  %v7231_v59 = vsel %vm2426_vm8, %v17775_v5, 0.0  ;;  %v5021_v1 = vrot.slane %v5020_v12, 1 }
 0x703   : > { %v7232_v38 = vadd.f32 %v7231_v59, %v7230_v45 }
 0x704   : > { %v5022_v31 = vadd.f32 %v5021_v1, %v5020_v12 }
 0x705   : > { %v7234_v33 = vadd.f32 %v7233_v9, %v7232_v38  ;;  %v20682_v9 = vld [vmem:[#allocation164_spill] sm:$0xff] }
 0x706   : > { %v17783_v15 = vpop.f32.mrb[44].mxu1  ;;  %10767 = vmatmul.mubr.msk.f32.vlgmr.msra.gmra.mrb[40].mxu0 %vm2426_vm8, %v5022_v31 }
 0x707   : > { %20678 = vst [vmem:[#allocation159_spill] sm:$0xff] %v17783_v15  ;;  %v17785_v2 = vpop.f32.mrb[45].mxu1  ;;  %v7236_v58 = vadd.f32 %v7235_v20, %v7234_v33  ;;  %v7241_v63 = vsel %vm2426_vm8, %v17783_v15, 0.0  ;;  %11047 = vmatpush3.bf16.msra.mxu0 %v20682_v9  ;;  %10773 = vmatprep.mubr.msk.f32.mxu0 %vm13307_vm10, %v20608_v37 }
 0x708   : > { %20679 = vst [vmem:[#allocation155_spill] sm:$0xff] %v17785_v2  ;;  %v7237_v61 = vsel %vm2426_vm8, %v17785_v2, 0.0  ;;  %v17789_v24 = vpop.f32.mrb[46].mxu1  ;;  %11048 = vmatprep.subr.bf16.mxu0 %v20519_v19 }
 0x709   : > { %20680 = vst [vmem:[#allocation160_spill] sm:$0xff] %v17789_v24  ;;  %v7238_v45 = vadd.f32 %v7237_v61, %v7236_v58  ;;  %v17791_v59 = vpop.f32.mrb[47].mxu1  ;;  %v7243_v20 = vsel %vm2426_vm8, %v17789_v24, 0.0 }
 0x70a   : > { %20681 = vst [vmem:[#allocation161_spill] sm:$0xff] %v17791_v59  ;;  %v7239_v47 = vsel %vm2426_vm8, %v17791_v59, 0.0 }
 0x70b   : > { %v7240_v38 = vadd.f32 %v7239_v47, %v7238_v45 }
 0x70d   : > { %v7242_v33 = vadd.f32 %v7241_v63, %v7240_v38 }
 0x70e   : > { %v17803_v58 = vpop.f32.mrb[48].mxu1 }
 0x70f   : > { %20683 = vst [vmem:[#allocation162_spill] sm:$0xff] %v17803_v58  ;;  %v17806_v12 = vpop.f32.mrb[49].mxu1  ;;  %v7244_v1 = vadd.f32 %v7243_v20, %v7242_v33  ;;  %v7249_v8 = vsel %vm2426_vm8, %v17803_v58, 0.0 }
 0x710   : > { %20684 = vst [vmem:[#allocation37_spill] sm:$0xff] %v17806_v12  ;;  %v7245_v31 = vsel %vm2426_vm8, %v17806_v12, 0.0  ;;  %v17810_v61 = vpop.f32.mrb[50].mxu1 }
 0x711   : > { %20685 = vst [vmem:[#allocation36_spill] sm:$0xff] %v17810_v61  ;;  %v7246_v45 = vadd.f32 %v7245_v31, %v7244_v1  ;;  %v17812_v47 = vpop.f32.mrb[51].mxu1  ;;  %v7251_v15 = vsel %vm2426_vm8, %v17810_v61, 0.0 }
 0x712   : > { %20686 = vst [vmem:[#allocation163_spill] sm:$0xff] %v17812_v47  ;;  %v7247_v38 = vsel %vm2426_vm8, %v17812_v47, 0.0 }
 0x713   : > { %v7248_v63 = vadd.f32 %v7247_v38, %v7246_v45 }
 0x715   : > { %v7250_v24 = vadd.f32 %v7249_v8, %v7248_v63 }
 0x716   : > { %v17820_v33 = vpop.f32.mrb[52].mxu1 }
 0x717   : > { %20687 = vst [vmem:[#allocation35_spill] sm:$0xff] %v17820_v33  ;;  %v17822_v20 = vpop.f32.mrb[53].mxu1  ;;  %v7252_v12 = vadd.f32 %v7251_v15, %v7250_v24  ;;  %v7257_v38 = vsel %vm2426_vm8, %v17820_v33, 0.0 }
 0x718   : > { %20688 = vst [vmem:[#allocation34_spill] sm:$0xff] %v17822_v20  ;;  %v7253_v1 = vsel %vm2426_vm8, %v17822_v20, 0.0  ;;  %v17826_v31 = vpop.f32.mrb[54].mxu1 }
 0x719   : > { %20689 = vst [vmem:[#allocation54_spill] sm:$0xff] %v17826_v31  ;;  %v7254_v59 = vadd.f32 %v7253_v1, %v7252_v12  ;;  %v17828_v47 = vpop.f32.mrb[55].mxu1  ;;  %v7259_v61 = vsel %vm2426_vm8, %v17826_v31, 0.0 }
 0x71a   : > { %20690 = vst [vmem:[#allocation41_spill] sm:$0xff] %v17828_v47  ;;  %v7255_v45 = vsel %vm2426_vm8, %v17828_v47, 0.0 }
 0x71b   : > { %v7256_v8 = vadd.f32 %v7255_v45, %v7254_v59 }
 0x71d   : > { %v7258_v63 = vadd.f32 %v7257_v38, %v7256_v8 }
 0x71e   : > { %v17836_v15 = vpop.f32.mrb[56].mxu1 }
 0x71f   : > { %20691 = vst [vmem:[#allocation55_spill] sm:$0xff] %v17836_v15  ;;  %v17838_v24 = vpop.f32.mrb[57].mxu1  ;;  %v7260_v20 = vadd.f32 %v7259_v61, %v7258_v63  ;;  %v7265_v8 = vsel %vm2426_vm8, %v17836_v15, 0.0 }
 0x720   : > { %20692 = vst [vmem:[#allocation40_spill] sm:$0xff] %v17838_v24  ;;  %v7261_v12 = vsel %vm2426_vm8, %v17838_v24, 0.0  ;;  %v17842_v1 = vpop.f32.mrb[58].mxu1 }
 0x721   : > { %20693 = vst [vmem:[#allocation39_spill] sm:$0xff] %v17842_v1  ;;  %v7262_v58 = vadd.f32 %v7261_v12, %v7260_v20  ;;  %v17844_v47 = vpop.f32.mrb[59].mxu1  ;;  %v7267_v31 = vsel %vm2426_vm8, %v17842_v1, 0.0 }
 0x722   : > { %20694 = vst [vmem:[#allocation38_spill] sm:$0xff] %v17844_v47  ;;  %v7263_v59 = vsel %vm2426_vm8, %v17844_v47, 0.0 }
 0x723   : > { %v7264_v45 = vadd.f32 %v7263_v59, %v7262_v58 }
 0x725   : > { %v7266_v38 = vadd.f32 %v7265_v8, %v7264_v45 }
 0x726   : > { %v17852_v61 = vpop.f32.mrb[60].mxu1 }
 0x727   : > { %20695 = vst [vmem:[#allocation56_spill] sm:$0xff] %v17852_v61  ;;  %v17854_v63 = vpop.f32.mrb[61].mxu1  ;;  %v7268_v24 = vadd.f32 %v7267_v31, %v7266_v38  ;;  %v7273_v45 = vsel %vm2426_vm8, %v17852_v61, 0.0 }
 0x728   : > { %20696 = vst [vmem:[#allocation201_spill] sm:$0xff] %v17854_v63  ;;  %v7269_v20 = vsel %vm2426_vm8, %v17854_v63, 0.0  ;;  %v17858_v12 = vpop.f32.mrb[62].mxu1 }
 0x729   : > { %20697 = vst [vmem:[#allocation80_spill] sm:$0xff] %v17858_v12  ;;  %v7270_v33 = vadd.f32 %v7269_v20, %v7268_v24  ;;  %v17860_v47 = vpop.f32.mrb[63].mxu1  ;;  %v7275_v1 = vsel %vm2426_vm8, %v17858_v12, 0.0  ;;  %v20699_v20 = vld [vmem:[#allocation136_spill] sm:$0xff] }
 0x72a   : > { %20698 = vst [vmem:[#allocation79_spill] sm:$0xff] %v17860_v47  ;;  %v7271_v58 = vsel %vm2426_vm8, %v17860_v47, 0.0  ;;  %v20703_v12 = vld [vmem:[#allocation148_spill] sm:$0xff]  ;;  %v20704_v47 = vld [vmem:[#allocation151_spill] sm:$0xff] }
 0x72b   : > { %v7272_v59 = vadd.f32 %v7271_v58, %v7270_v33 }
 0x72d   : > { %v7274_v8 = vadd.f32 %v7273_v45, %v7272_v59  ;;  %v20701_v59 = vld [vmem:[#allocation134_spill] sm:$0xff] }
 0x72f   : > { %v17868_v31 = vadd.f32 %v7275_v1, %v7274_v8  ;;  %v20702_v8 = vld [vmem:[#allocation137_spill] sm:$0xff] }
 0x7d9   : > { %v5092_v38 = vpop.f32.mrb[40].mxu0 }
 0x7da   : > { %v5096_v63 = vmul.f32 0.001953125, %v5092_v38  ;;  %v10768_v15 = vpop.f32.mrb[41].mxu0 }
 0x7db   : > { %v20700_v15 = vld [vmem:[#allocation138_spill] sm:$0xff] }
 0x7dc   : > { %10774 = vmatmul.mubr.msk.f32.vlgmr.msra.gmra.mrb[42].mxu0 %vm2294_vm4, %v5096_v63 }
 0x7dd   : > { %11050 = vmatpush3.bf16.msra.mxu0 %v20585_v57  ;;  %10784 = vmatprep.mubr.msk.f32.mxu0 %vm13307_vm10, %v20608_v37 }
 0x7de   : > { %11051 = vmatprep.subr.bf16.mxu0 %v20519_v19 }
 0x7e1   : > { %11053 = vmatpush3.bf16.msra.mxu0 %v20588_v18 }
 0x7e2   : > { %11054 = vmatprep.subr.bf16.mxu0 %v20519_v19 }
 0x8af   : > { %v5166_v33 = vpop.f32.mrb[42].mxu0 }
 0x8b0   : > { %v5173_v24 = vrot.slane %v5166_v33, %v20609_v23  ;;  %v10775_v1 = vpop.f32.mrb[43].mxu0  ;;  %v20705_v33 = vld [vmem:[#allocation146_spill] sm:$0xff] }
 0x8b2   : > { %v17879_v58 = vsub.f32 %v20699_v20, %v5173_v24  ;;  %v17882_v63 = vsub.f32 %v20700_v15, %v5173_v24  ;;  %v17885_v45 = vsub.f32 %v20701_v59, %v5173_v24  ;;  %v17888_v38 = vsub.f32 %v20702_v8, %v5173_v24  ;;  %v20706_v20 = vld [vmem:[#allocation150_spill] sm:$0xff] }
 0x8b3   : > { %v17891_v61 = vsub.f32 %v20703_v12, %v5173_v24  ;;  %v17894_v2 = vsub.f32 %v20704_v47, %v5173_v24  ;;  %v17897_v1 = vsub.f32 %v20705_v33, %v5173_v24  ;;  %v17900_v28 = vsub.f32 %v20706_v20, %v5173_v24 }
 0x8b4   : > { %v17903_v15 = vsub.f32 %v17588_v32, %v5173_v24  ;;  %v17906_v59 = vsub.f32 %v17608_v30, %v5173_v24  ;;  %v17909_v8 = vsub.f32 %v17578_v34, %v5173_v24  ;;  %v17912_v12 = vsub.f32 %v17598_v46, %v5173_v24 }
 0x8b5   : > { %v17915_v47 = vsub.f32 %v17648_v0, %v5173_v24  ;;  %v17918_v33 = vsub.f32 %v17652_v40, %v5173_v24  ;;  %v17921_v20 = vsub.f32 %v17646_v36, %v5173_v24  ;;  %v17924_v32 = vsub.f32 %v17650_v22, %v5173_v24 }
 0x8b6   : > { %v17927_v30 = vsub.f32 %v17660_v54, %v5173_v24  ;;  %v17930_v34 = vsub.f32 %v17665_v21, %v5173_v24  ;;  %v17933_v46 = vsub.f32 %v17654_v29, %v5173_v24  ;;  %v17936_v0 = vsub.f32 %v17663_v3, %v5173_v24 }
 0x8b7   : > { %v17939_v40 = vsub.f32 %v17677_v35, %v5173_v24  ;;  %v17942_v36 = vsub.f32 %v17681_v16, %v5173_v24  ;;  %v17945_v22 = vsub.f32 %v17673_v52, %v5173_v24  ;;  %v17948_v54 = vsub.f32 %v17679_v60, %v5173_v24 }
 0x8b8   : > { %v17951_v21 = vsub.f32 %v17693_v43, %v5173_v24  ;;  %v17954_v29 = vsub.f32 %v17697_v49, %v5173_v24  ;;  %v17957_v3 = vsub.f32 %v17689_v41, %v5173_v24  ;;  %v17960_v35 = vsub.f32 %v17695_v14, %v5173_v24 }
 0x8b9   : > { %v17963_v16 = vsub.f32 %v17709_v4, %v5173_v24  ;;  %v17966_v52 = vsub.f32 %v17713_v26, %v5173_v24  ;;  %v17969_v60 = vsub.f32 %v17705_v53, %v5173_v24  ;;  %v17972_v43 = vsub.f32 %v17711_v17, %v5173_v24 }
 0x8ba   : > { %v5206_v49 = vmul.f32 %v17879_v58, %v17879_v58  ;;  %v5207_v41 = vmul.f32 %v17882_v63, %v17882_v63  ;;  %v5208_v14 = vmul.f32 %v17885_v45, %v17885_v45  ;;  %v5209_v4 = vmul.f32 %v17888_v38, %v17888_v38 }
 0x8bb   : > { %v5210_v17 = vmul.f32 %v17891_v61, %v17891_v61  ;;  %v5211_v42 = vmul.f32 %v17894_v2, %v17894_v2  ;;  %v5212_v11 = vmul.f32 %v17897_v1, %v17897_v1 }
 0x8bc   : > { %v5238_v26 = vsel %vm2426_vm8, %v5206_v49, 0.0  ;;  %v5239_v53 = vsel %vm2426_vm8, %v5207_v41, 0.0  ;;  %v5241_v24 = vsel %vm2426_vm8, %v5208_v14, 0.0  ;;  %v5243_v50 = vsel %vm2426_vm8, %v5209_v4, 0.0 }
 0x8bd   : > { %v5240_v6 = vadd.f32 %v5239_v53, %v5238_v26  ;;  %v5245_v49 = vsel %vm2426_vm8, %v5210_v17, 0.0  ;;  %v5213_v41 = vmul.f32 %v17900_v28, %v17900_v28  ;;  %v5247_v26 = vsel %vm2426_vm8, %v5211_v42, 0.0 }
 0x8be   : > { %v5249_v14 = vsel %vm2426_vm8, %v5212_v11, 0.0  ;;  %v5218_v11 = vmul.f32 %v17915_v47, %v17915_v47 }
 0x8bf   : > { %v5242_v5 = vadd.f32 %v5241_v24, %v5240_v6  ;;  %v5214_v6 = vmul.f32 %v17903_v15, %v17903_v15 }
 0x8c1   : > { %v5244_v7 = vadd.f32 %v5243_v50, %v5242_v5  ;;  %v5215_v50 = vmul.f32 %v17906_v59, %v17906_v59  ;;  %v5251_v5 = vsel %vm2426_vm8, %v5213_v41, 0.0  ;;  %v5253_v17 = vsel %vm2426_vm8, %v5214_v6, 0.0 }
 0x8c2   : > { %v5219_v41 = vmul.f32 %v17918_v33, %v17918_v33  ;;  %v5220_v6 = vmul.f32 %v17921_v20, %v17921_v20 }
 0x8c3   : > { %v5246_v39 = vadd.f32 %v5245_v49, %v5244_v7  ;;  %v5216_v7 = vmul.f32 %v17909_v8, %v17909_v8  ;;  %v5255_v42 = vsel %vm2426_vm8, %v5215_v50, 0.0  ;;  %v5221_v50 = vmul.f32 %v17924_v32, %v17924_v32 }
 0x8c5   : > { %v5248_v53 = vadd.f32 %v5247_v26, %v5246_v39  ;;  %v5217_v39 = vmul.f32 %v17912_v12, %v17912_v12 }
 0x8c7   : > { %v5250_v24 = vadd.f32 %v5249_v14, %v5248_v53  ;;  %v5257_v53 = vsel %vm2426_vm8, %v5216_v7, 0.0  ;;  %v5222_v7 = vmul.f32 %v17927_v30, %v17927_v30 }
 0x8c9   : > { %v5252_v4 = vadd.f32 %v5251_v5, %v5250_v24  ;;  %v5259_v24 = vsel %vm2426_vm8, %v5217_v39, 0.0  ;;  %v5223_v39 = vmul.f32 %v17930_v34, %v17930_v34 }
 0x8cb   : > { %v5254_v49 = vadd.f32 %v5253_v17, %v5252_v4  ;;  %v5261_v4 = vsel %vm2426_vm8, %v5218_v11, 0.0  ;;  %v5224_v11 = vmul.f32 %v17933_v46, %v17933_v46 }
 0x8cd   : > { %v5256_v26 = vadd.f32 %v5255_v42, %v5254_v49  ;;  %v5263_v49 = vsel %vm2426_vm8, %v5219_v41, 0.0  ;;  %v5225_v41 = vmul.f32 %v17936_v0, %v17936_v0 }
 0x8cf   : > { %v5258_v14 = vadd.f32 %v5257_v53, %v5256_v26  ;;  %v5265_v26 = vsel %vm2426_vm8, %v5220_v6, 0.0  ;;  %v5226_v6 = vmul.f32 %v17939_v40, %v17939_v40 }
 0x8d1   : > { %v5260_v5 = vadd.f32 %v5259_v24, %v5258_v14  ;;  %v5267_v14 = vsel %vm2426_vm8, %v5221_v50, 0.0  ;;  %v5227_v50 = vmul.f32 %v17942_v36, %v17942_v36 }
 0x8d3   : > { %v5262_v17 = vadd.f32 %v5261_v4, %v5260_v5  ;;  %v5269_v5 = vsel %vm2426_vm8, %v5222_v7, 0.0  ;;  %v5228_v7 = vmul.f32 %v17945_v22, %v17945_v22 }
 0x8d5   : > { %v5264_v42 = vadd.f32 %v5263_v49, %v5262_v17  ;;  %v5271_v17 = vsel %vm2426_vm8, %v5223_v39, 0.0  ;;  %v5229_v39 = vmul.f32 %v17948_v54, %v17948_v54 }
 0x8d7   : > { %v5266_v53 = vadd.f32 %v5265_v26, %v5264_v42  ;;  %v5273_v42 = vsel %vm2426_vm8, %v5224_v11, 0.0  ;;  %v5230_v11 = vmul.f32 %v17951_v21, %v17951_v21 }
 0x8d9   : > { %v5268_v24 = vadd.f32 %v5267_v14, %v5266_v53  ;;  %v5275_v53 = vsel %vm2426_vm8, %v5225_v41, 0.0  ;;  %v5231_v41 = vmul.f32 %v17954_v29, %v17954_v29 }
 0x8db   : > { %v5270_v4 = vadd.f32 %v5269_v5, %v5268_v24  ;;  %v5277_v24 = vsel %vm2426_vm8, %v5226_v6, 0.0  ;;  %v5232_v6 = vmul.f32 %v17957_v3, %v17957_v3 }
 0x8dd   : > { %v5272_v49 = vadd.f32 %v5271_v17, %v5270_v4  ;;  %v5279_v4 = vsel %vm2426_vm8, %v5227_v50, 0.0  ;;  %v5233_v50 = vmul.f32 %v17960_v35, %v17960_v35 }
 0x8df   : > { %v5274_v26 = vadd.f32 %v5273_v42, %v5272_v49  ;;  %v5281_v49 = vsel %vm2426_vm8, %v5228_v7, 0.0  ;;  %v5234_v7 = vmul.f32 %v17963_v16, %v17963_v16 }
 0x8e1   : > { %v5276_v14 = vadd.f32 %v5275_v53, %v5274_v26  ;;  %v5283_v26 = vsel %vm2426_vm8, %v5229_v39, 0.0  ;;  %v5235_v39 = vmul.f32 %v17966_v52, %v17966_v52 }
 0x8e3   : > { %v5278_v5 = vadd.f32 %v5277_v24, %v5276_v14  ;;  %v5285_v14 = vsel %vm2426_vm8, %v5230_v11, 0.0  ;;  %v5236_v11 = vmul.f32 %v17969_v60, %v17969_v60 }
 0x8e5   : > { %v5280_v17 = vadd.f32 %v5279_v4, %v5278_v5  ;;  %v5287_v5 = vsel %vm2426_vm8, %v5231_v41, 0.0  ;;  %v5237_v41 = vmul.f32 %v17972_v43, %v17972_v43 }
 0x8e7   : > { %v5282_v42 = vadd.f32 %v5281_v49, %v5280_v17  ;;  %v5289_v17 = vsel %vm2426_vm8, %v5232_v6, 0.0  ;;  %v5297_v6 = vsel %vm2426_vm8, %v5236_v11, 0.0  ;;  %v7277_v11 = vrot.slane %v17868_v31, 4 }
 0x8e9   : > { %v5284_v53 = vadd.f32 %v5283_v26, %v5282_v42  ;;  %v5291_v42 = vsel %vm2426_vm8, %v5233_v50, 0.0 }
 0x8eb   : > { %v5286_v24 = vadd.f32 %v5285_v14, %v5284_v53  ;;  %v5293_v53 = vsel %vm2426_vm8, %v5234_v7, 0.0 }
 0x8ed   : > { %v5288_v4 = vadd.f32 %v5287_v5, %v5286_v24  ;;  %v5295_v24 = vsel %vm2426_vm8, %v5235_v39, 0.0 }
 0x8ef   : > { %v5290_v49 = vadd.f32 %v5289_v17, %v5288_v4  ;;  %v5299_v17 = vsel %vm2426_vm8, %v5237_v41, 0.0 }
 0x8f1   : > { %v5292_v26 = vadd.f32 %v5291_v42, %v5290_v49 }
 0x8f3   : > { %v5294_v14 = vadd.f32 %v5293_v53, %v5292_v26 }
 0x8f5   : > { %v5296_v5 = vadd.f32 %v5295_v24, %v5294_v14 }
 0x8f7   : > { %v5298_v4 = vadd.f32 %v5297_v6, %v5296_v5 }
 0x8f9   : > { %v5300_v62 = vadd.f32 %v5299_v17, %v5298_v4 }
 0x8fb   : > { %v5301_v50 = vrot.slane %v5300_v62, 4 }
 0x8fd   : > { %v5302_v49 = vadd.f32 %v5301_v50, %v5300_v62  ;;  %v7278_v62 = vadd.f32 %v7277_v11, %v17868_v31  ;;  %v10360_v31 = vld [vmem:[%s19771_s2 + $0x1] sm:$0x1] }
 0x8ff   : > { %v5303_v42 = vrot.slane %v5302_v49, 2  ;;  %v7279_v14 = vrot.slane %v7278_v62, 2 }
 0x901   : > { %v5304_v51 = vadd.f32 %v5303_v42, %v5302_v49 }
 0x903   : > { %v5305_v44 = vrot.slane %v5304_v51, 1 }
 0x905   : > { %v5306_v25 = vadd.f32 %v5305_v44, %v5304_v51  ;;  %v7280_v51 = vadd.f32 %v7279_v14, %v7278_v62 }
 0x907   : > { %10785 = vmatmul.mubr.msk.f32.vlgmr.msra.gmra.mrb[44].mxu0 %vm2426_vm8, %v5306_v25  ;;  %v7281_v25 = vrot.slane %v7280_v51, 1 }
 0x908   : > { %11056 = vmatpush3.bf16.msra.mxu0 %v20682_v9  ;;  %10791 = vmatprep.mubr.msk.f32.mxu0 %vm13307_vm10, %v20608_v37 }
 0x909   : > { %11057 = vmatprep.subr.bf16.mxu0 %v20519_v19  ;;  %v7282_v41 = vadd.f32 %v7281_v25, %v7280_v51 }
 0x9da   : > { %v5376_v7 = vpop.f32.mrb[44].mxu0 }
 0x9db   : > { %v5380_v39 = vmul.f32 0.001953125, %v5376_v7  ;;  %v10786_v26 = vpop.f32.mrb[45].mxu0 }
 0x9dc   : > { %v18102_v26 = vld [vmem:[%s19772_s3 + $0x1] ss:$0 sm:$0xff] }
 0x9dd   : > { %v5381_v53 = vadd.f32 1e-05, %v5380_v39 }
 0x9df   : > { %13206 = vrsqrt.f32 %v5381_v53 }
 0x9e9   : > { %v13207_v44 = vpop.eup %13206 }
 0x9ea   : > { %10792 = vmatmul.mubr.msk.f32.vlgmr.msra.gmra.mrb[46].mxu0 %vm2294_vm4, %v13207_v44 }
 0x9eb   : > { %11059 = vmatpush3.bf16.msra.mxu0 %v20585_v57  ;;  %10840 = vmatprep.mubr.msk.f32.mxu0 %vm13307_vm10, %v20608_v37 }
 0x9ec   : > { %11060 = vmatprep.subr.bf16.mxu0 %v20519_v19 }
 0x9ef   : > { %11062 = vmatpush3.bf16.msra.mxu0 %v20588_v18 }
 0x9f0   : > { %11063 = vmatprep.subr.bf16.mxu0 %v20519_v19 }
 0x9f2   : > { %10841 = vmatmul.mubr.msk.f32.vlgmr.msra.gmra.mrb[48].mxu0 %vm2426_vm8, %v7282_v41 }
 0x9f3   : > { %11065 = vmatpush3.bf16.msra.mxu0 %v20682_v9  ;;  %10847 = vmatprep.mubr.msk.f32.mxu0 %vm13307_vm10, %v20608_v37 }
 0x9f4   : > { %11066 = vmatprep.subr.bf16.mxu0 %v20519_v19 }
 0xabd   : > { %v5452_v24 = vpop.f32.mrb[46].mxu0 }
 0xabe   : > { %v10793_v5 = vpop.f32.mrb[47].mxu0  ;;  %v5456_v6 = vmul.f32 %v10360_v31, %v5452_v24 }
 0xac0   : > { %v5460_v4 = vrot.slane %v5456_v6, %v20609_v23 }
 0xac2   : > { %v5461_v49 = vmul.f32 %v5460_v4, %v17879_v58  ;;  %v5462_v42 = vmul.f32 %v5460_v4, %v17882_v63  ;;  %v5471_v7 = vmul.f32 %v5460_v4, %v17909_v8  ;;  %v5472_v39 = vmul.f32 %v5460_v4, %v17912_v12 }
 0xac3   : > { %v5473_v11 = vmul.f32 %v5460_v4, %v17915_v47  ;;  %v5474_v53 = vmul.f32 %v5460_v4, %v17918_v33  ;;  %v5475_v62 = vmul.f32 %v5460_v4, %v17921_v20  ;;  %v5476_v14 = vmul.f32 %v5460_v4, %v17924_v32 }
 0xac4   : > { %v5463_v58 = vmul.f32 %v5460_v4, %v17885_v45  ;;  %v5464_v63 = vmul.f32 %v5460_v4, %v17888_v38  ;;  %v5465_v8 = vmul.f32 %v5460_v4, %v17891_v61  ;;  %v18112_v12 = vmul.f32 %v5460_v4, %v17894_v2 }
 0xac5   : > { %v18093_v17 = vpop.f32.mrb[48].mxu0  ;;  %v5487_v51 = vmul.f32 %v5460_v4, %v17957_v3  ;;  %v5488_v44 = vmul.f32 %v5460_v4, %v17960_v35  ;;  %v5489_v47 = vmul.f32 %v5460_v4, %v17963_v16  ;;  %v5490_v33 = vmul.f32 %v5460_v4, %v17966_v52 }
 0xac6   : > { %v10842_v50 = vpop.f32.mrb[49].mxu0  ;;  %v5491_v20 = vmul.f32 %v5460_v4, %v17969_v60  ;;  %v5492_v32 = vmul.f32 %v5460_v4, %v17972_v43  ;;  %v18121_v45 = vadd.f32 %v18102_v26, %v5471_v7  ;;  %v18124_v61 = vadd.f32 %v18102_v26, %v5472_v39 }
 0xac7   : > { %v18127_v2 = vadd.f32 %v18102_v26, %v5473_v11  ;;  %v18130_v38 = vadd.f32 %v18102_v26, %v5474_v53  ;;  %v18133_v3 = vadd.f32 %v18102_v26, %v5475_v62  ;;  %v18136_v35 = vadd.f32 %v18102_v26, %v5476_v14 }
 0xac8   : > { %v5467_v16 = vmul.f32 %v5460_v4, %v17897_v1  ;;  %v18140_v52 = vmul.f32 %v5460_v4, %v17900_v28  ;;  %v5477_v60 = vmul.f32 %v5460_v4, %v17927_v30  ;;  %v5478_v43 = vmul.f32 %v5460_v4, %v17930_v34 }
 0xac9   : > { %v18145_v25 = vmul.f32 %v5460_v4, %v17903_v15  ;;  %v5479_v41 = vmul.f32 %v5460_v4, %v17933_v46  ;;  %v5480_v31 = vmul.f32 %v5460_v4, %v17936_v0  ;;  %v5481_v24 = vmul.f32 %v5460_v4, %v17939_v40 }
 0xaca   : > { %v5482_v5 = vmul.f32 %v5460_v4, %v17942_v36  ;;  %v5499_v1 = vadd.f32 %v18102_v26, %v5461_v49  ;;  %v5525_v28 = vadd.f32 %v18102_v26, %v5487_v51  ;;  %v5526_v6 = vadd.f32 %v18102_v26, %v5488_v44 }
 0xacb   : > { %v5527_v30 = vadd.f32 %v18102_v26, %v5489_v47  ;;  %v5528_v34 = vadd.f32 %v18102_v26, %v5490_v33  ;;  %v5529_v15 = vadd.f32 %v18102_v26, %v5491_v20  ;;  %v5530_v46 = vadd.f32 %v18102_v26, %v5492_v32 }
 0xacc   : > { %v18159_v0 = vmul.f32 %v5460_v4, %v17906_v59  ;;  %v5500_v40 = vadd.f32 %v18102_v26, %v5462_v42  ;;  %v5515_v36 = vadd.f32 %v18102_v26, %v5477_v60  ;;  %v5516_v50 = vadd.f32 %v18102_v26, %v5478_v43 }
 0xacd   : > { %v5483_v49 = vmul.f32 %v5460_v4, %v17945_v22  ;;  %v5484_v7 = vmul.f32 %v5460_v4, %v17948_v54  ;;  %v5485_v39 = vmul.f32 %v5460_v4, %v17951_v21  ;;  %v5486_v11 = vmul.f32 %v5460_v4, %v17954_v29 }
 0xace   : > { %v5501_v53 = vadd.f32 %v18102_v26, %v5463_v58  ;;  %v5502_v62 = vadd.f32 %v18102_v26, %v5464_v63  ;;  %v5517_v59 = vadd.f32 %v18102_v26, %v5479_v41  ;;  %v5518_v42 = vadd.f32 %v18102_v26, %v5480_v31 }
 0xacf   : > { %v18173_v14 = vadd.f32 %v18102_v26, %v5465_v8  ;;  %v5519_v51 = vadd.f32 %v18102_v26, %v5481_v24  ;;  %v5520_v22 = vadd.f32 %v18102_v26, %v5482_v5  ;;  %v5531_v54 = vmax.f32 %v5499_v1, 0.0 }
 0xad0   : > { %v5532_v44 = vmax.f32 %v5500_v40, 0.0  ;;  %v5541_v21 = vmax.f32 %v18121_v45, 0.0  ;;  %v5547_v29 = vmax.f32 %v5515_v36, 0.0  ;;  %v5548_v4 = vmax.f32 %v5516_v50, 0.0 }
 0xad1   : > { %v5542_v58 = vmax.f32 %v18124_v61, 0.0  ;;  %v5543_v63 = vmax.f32 %v18127_v2, 0.0  ;;  %v5544_v47 = vmax.f32 %v18130_v38, 0.0  ;;  %v5545_v33 = vmax.f32 %v18133_v3, 0.0 }
 0xad2   : > { %v5546_v8 = vmax.f32 %v18136_v35, 0.0  ;;  %v5549_v20 = vmax.f32 %v5517_v59, 0.0  ;;  %v5550_v32 = vmax.f32 %v5518_v42, 0.0  ;;  %v5557_v60 = vmax.f32 %v5525_v28, 0.0 }
 0xad3   : > { %v5558_v43 = vmax.f32 %v5526_v6, 0.0  ;;  %v5559_v41 = vmax.f32 %v5527_v30, 0.0  ;;  %v5560_v31 = vmax.f32 %v5528_v34, 0.0  ;;  %v5561_v24 = vmax.f32 %v5529_v15, 0.0 }
 0xad4   : > { %v5562_v45 = vmax.f32 %v5530_v46, 0.0  ;;  %v7356_v5 = vmul.f32 0.001953125, %v18093_v17  ;;  %v12960_v1 = vpack.i.bf16 %v5548_v4, %v5547_v29  ;;  %v12965_v61 = vpack.i.bf16 %v5532_v44, %v5531_v54 }
 0xad5   : > { %v5504_v2 = vadd.f32 %v18102_v26, %v18112_v12  ;;  %v5505_v38 = vadd.f32 %v18102_v26, %v5467_v16  ;;  %v5533_v3 = vmax.f32 %v5501_v53, 0.0  ;;  %v5534_v40 = vmax.f32 %v5502_v62, 0.0 }
 0xad6   : > { %v5521_v35 = vadd.f32 %v18102_v26, %v5483_v49  ;;  %v5522_v28 = vadd.f32 %v18102_v26, %v5484_v7  ;;  %10848 = vmatmul.mubr.msk.f32.vlgmr.msra.gmra.mrb[50].mxu0 %vm2294_vm4, %v7356_v5  ;;  %12961 = vrot.lane.b32.xlu0 %v12960_v1, %s20187_s20  ;;  %v12970_v6 = vpack.i.bf16 %v5550_v32, %v5549_v20  ;;  %v5551_v30 = vmax.f32 %v5519_v51, 0.0 }
 0xad7   : > { %12966 = vrot.lane.b32.xlu1 %v12965_v61, %s20187_s20  ;;  %11068 = vmatpush3.bf16.msra.mxu0 %v20585_v57  ;;  %v18193_v17 = vpack.i.bf16 %v5558_v43, %v5557_v60  ;;  %v18195_v12 = vpack.i.bf16 %v5542_v58, %v5541_v21  ;;  %v18197_v16 = vpack.i.bf16 %v5560_v31, %v5559_v41  ;;  %v5552_v34 = vmax.f32 %v5520_v22, 0.0 }
 0xad8   : > { %11069 = vmatprep.subr.bf16.mxu0 %v20519_v19  ;;  %10858 = vmatprep.mubr.msk.f32.mxu0 %vm13307_vm10, %v20608_v37  ;;  %v18202_v15 = vpack.i.bf16 %v5544_v47, %v5543_v63  ;;  %v18204_v46 = vpack.i.bf16 %v5562_v45, %v5561_v24  ;;  %v18206_v36 = vpack.i.bf16 %v5546_v8, %v5545_v33  ;;  %v5535_v49 = vmax.f32 %v18173_v14, 0.0 }
 0xad9   : > { %20707 = vst [vmem:[#allocation198_spill] sm:$0xff] %v18193_v17  ;;  %20708 = vst [vmem:[#allocation199_spill] sm:$0xff] %v18195_v12  ;;  %v5506_v50 = vadd.f32 %v18102_v26, %v18140_v52  ;;  %v5536_v7 = vmax.f32 %v5504_v2, 0.0  ;;  %v12975_v53 = vpack.i.bf16 %v5534_v40, %v5533_v3  ;;  %v5507_v62 = vadd.f32 %v18102_v26, %v18145_v25 }
 0xada   : > { %20709 = vst [vmem:[#allocation204_spill] sm:$0xff] %v18197_v16  ;;  %20710 = vst [vmem:[#allocation202_spill] sm:$0xff] %v18202_v15  ;;  %12971 = vrot.lane.b32.xlu0 %v12970_v6, %s20187_s20  ;;  %v5523_v59 = vadd.f32 %v18102_v26, %v5485_v39  ;;  %v5524_v42 = vadd.f32 %v18102_v26, %v5486_v11  ;;  %v5553_v51 = vmax.f32 %v5521_v35, 0.0  ;;  %v5554_v22 = vmax.f32 %v5522_v28, 0.0  ;;  %v20716_v6 = vld [vmem:[#allocation143_spill] sm:$0xff] }
 0xadb   : > { %20711 = vst [vmem:[#allocation200_spill] sm:$0xff] %v18204_v46  ;;  %20712 = vst [vmem:[#allocation206_spill] sm:$0xff] %v18206_v36  ;;  %12976 = vrot.lane.b32.xlu1 %v12975_v53, %s20187_s20  ;;  %11071 = vmatpush3.bf16.msra.mxu0 %v20588_v18  ;;  %v12980_v52 = vpack.i.bf16 %v5552_v34, %v5551_v30  ;;  %v5508_v14 = vadd.f32 %v18102_v26, %v18159_v0  ;;  %v5537_v54 = vmax.f32 %v5505_v38, 0.0  ;;  %v20717_v34 = vld [vmem:[#allocation144_spill] sm:$0xff]  ;;  %v20720_v53 = vld [vmem:[#allocation147_spill] sm:$0xff] }
 0xadc   : > { %11072 = vmatprep.subr.bf16.mxu0 %v20519_v19  ;;  %v5538_v44 = vmax.f32 %v5506_v50, 0.0  ;;  %v12985_v21 = vpack.i.bf16 %v5536_v7, %v5535_v49  ;;  %v5555_v25 = vmax.f32 %v5523_v59, 0.0  ;;  %v5556_v39 = vmax.f32 %v5524_v42, 0.0  ;;  %v20719_v49 = vld [vmem:[#allocation139_spill] sm:$0xff]  ;;  %v20721_v59 = vld [vmem:[#allocation152_spill] sm:$0xff] }
 0xadd   : > { %v12990_v29 = vpack.i.bf16 %v5554_v22, %v5553_v51  ;;  %v5539_v4 = vmax.f32 %v5507_v62, 0.0  ;;  %v5540_v11 = vmax.f32 %v5508_v14, 0.0  ;;  %v3289_v33 = vmax.f32 %v17618_v55, 0.0  ;;  %v20722_v51 = vld [vmem:[#allocation145_spill] sm:$0xff] }
 0xade   : > { %12981 = vrot.lane.b32.xlu0 %v12980_v52, %s20187_s20  ;;  %v12995_v58 = vpack.i.bf16 %v5538_v44, %v5537_v54  ;;  %v13000_v63 = vpack.i.bf16 %v5556_v39, %v5555_v25  ;;  %v3290_v8 = vmax.f32 %v17620_v13, 0.0  ;;  %v3291_v31 = vmax.f32 %v17622_v27, 0.0  ;;  %v20723_v52 = vld [vmem:[#allocation149_spill] sm:$0xff]  ;;  %v20726_v39 = vld [vmem:[#allocation156_spill] sm:$0xff] }
 0xadf   : > { %12986 = vrot.lane.b32.xlu1 %v12985_v21, %s20187_s20  ;;  %v13005_v47 = vpack.i.bf16 %v5540_v11, %v5539_v4  ;;  %v3292_v24 = vmax.f32 %v17624_v10, 0.0  ;;  %v3293_v61 = vmax.f32 %v17626_v56, 0.0  ;;  %v3294_v2 = vmax.f32 %v17628_v48, 0.0  ;;  %v20718_v56 = vld [vmem:[#allocation135_spill] sm:$0xff]  ;;  %v20724_v54 = vld [vmem:[#allocation157_spill] sm:$0xff]  ;;  %v20725_v21 = vld [vmem:[#allocation158_spill] sm:$0xff] }
 0xae0   : > { %v20727_v4 = vld [vmem:[#allocation154_spill] sm:$0xff] }
 0xae2   : > { %12991 = vrot.lane.b32.xlu0 %v12990_v29, %s20187_s20 }
 0xae3   : > { %12996 = vrot.lane.b32.xlu1 %v12995_v58, %s20187_s20  ;;  %v20728_v58 = vld [vmem:[#allocation155_spill] sm:$0xff] }
 0xae6   : > { %13001 = vrot.lane.b32.xlu0 %v13000_v63, %s20187_s20 }
 0xae7   : > { %13006 = vrot.lane.b32.xlu1 %v13005_v47, %s20187_s20  ;;  %v20729_v47 = vld [vmem:[#allocation161_spill] sm:$0xff] }
 0xb48   : > { %v18227_v26 = vpop.permute.xlu0 %12961 }
 0xb49   : > { %20713 = vst [vmem:[#allocation203_spill] sm:$0xff] %v18227_v26 }
 0xb4c   : > { %v12972_v0 = vpop.permute.xlu0 %12971 }
 0xb4d   : > { %v12974_v20 = vunpack.i.h.bf16 %v12972_v0  ;;  %v12973_v32 = vunpack.i.l.bf16 %v12972_v0 }
 0xb4f   : > { %v18232_v60 = vsel %vm2426_vm8, %v3290_v8, %v12974_v20  ;;  %v18235_v43 = vsel %vm2426_vm8, %v3289_v33, %v12973_v32  ;;  %v20730_v33 = vld [vmem:[#allocation159_spill] sm:$0xff]  ;;  %v20731_v20 = vld [vmem:[#allocation160_spill] sm:$0xff] }
 0xb50   : > { %v12982_v41 = vpop.permute.xlu0 %12981 }
 0xb51   : > { %v12984_v45 = vunpack.i.h.bf16 %v12982_v41  ;;  %v12983_v5 = vunpack.i.l.bf16 %v12982_v41  ;;  %v20732_v41 = vld [vmem:[#allocation37_spill] sm:$0xff] }
 0xb53   : > { %v18240_v1 = vsel %vm2426_vm8, %v3292_v24, %v12984_v45  ;;  %v18243_v55 = vsel %vm2426_vm8, %v3291_v31, %v12983_v5  ;;  %v20733_v24 = vld [vmem:[#allocation163_spill] sm:$0xff]  ;;  %v20734_v5 = vld [vmem:[#allocation162_spill] sm:$0xff] }
 0xb54   : > { %v12992_v13 = vpop.permute.xlu0 %12991 }
 0xb55   : > { %v12994_v38 = vunpack.i.h.bf16 %v12992_v13  ;;  %v12993_v3 = vunpack.i.l.bf16 %v12992_v13 }
 0xb57   : > { %v18248_v40 = vsel %vm2426_vm8, %v3294_v2, %v12994_v38  ;;  %v18251_v27 = vsel %vm2426_vm8, %v3293_v61, %v12993_v3  ;;  %v20735_v61 = vld [vmem:[#allocation36_spill] sm:$0xff]  ;;  %v20736_v38 = vld [vmem:[#allocation34_spill] sm:$0xff] }
 0xb58   : > { %20714 = vst [vmem:[#allocation208_spill] sm:$0xff] %v18248_v40  ;;  %20715 = vst [vmem:[#allocation205_spill] sm:$0xff] %v18251_v27 }
 0xba9   : > { %v7426_v10 = vpop.f32.mrb[50].mxu0 }
 0xbaa   : > { %v7433_v35 = vrot.slane %v7426_v10, %v20609_v23  ;;  %v10849_v28 = vpop.f32.mrb[51].mxu0  ;;  %v20737_v10 = vld [vmem:[#allocation41_spill] sm:$0xff] }
 0xbac   : > { %v18255_v30 = vsub.f32 %v20716_v6, %v7433_v35  ;;  %v18258_v50 = vsub.f32 %v20717_v34, %v7433_v35  ;;  %v18261_v48 = vsub.f32 %v20718_v56, %v7433_v35  ;;  %v18264_v7 = vsub.f32 %v20719_v49, %v7433_v35  ;;  %v20738_v6 = vld [vmem:[#allocation35_spill] sm:$0xff]  ;;  %v20739_v56 = vld [vmem:[#allocation54_spill] sm:$0xff] }
 0xbad   : > { %v18267_v62 = vsub.f32 %v20720_v53, %v7433_v35  ;;  %v18270_v42 = vsub.f32 %v20721_v59, %v7433_v35  ;;  %v18273_v22 = vsub.f32 %v20722_v51, %v7433_v35  ;;  %v18276_v14 = vsub.f32 %v20723_v52, %v7433_v35  ;;  %v20740_v53 = vld [vmem:[#allocation40_spill] sm:$0xff]  ;;  %v20741_v51 = vld [vmem:[#allocation38_spill] sm:$0xff] }
 0xbae   : > { %v18279_v44 = vsub.f32 %v20724_v54, %v7433_v35  ;;  %v18282_v25 = vsub.f32 %v20725_v21, %v7433_v35  ;;  %v18285_v29 = vsub.f32 %v20726_v39, %v7433_v35  ;;  %v18288_v11 = vsub.f32 %v20727_v4, %v7433_v35  ;;  %v20742_v54 = vld [vmem:[#allocation55_spill] sm:$0xff] }
 0xbaf   : > { %v18291_v63 = vsub.f32 %v20728_v58, %v7433_v35  ;;  %v18294_v0 = vsub.f32 %v20729_v47, %v7433_v35  ;;  %v18297_v8 = vsub.f32 %v20730_v33, %v7433_v35  ;;  %v18300_v32 = vsub.f32 %v20731_v20, %v7433_v35  ;;  %v20743_v39 = vld [vmem:[#allocation39_spill] sm:$0xff]  ;;  %v20744_v58 = vld [vmem:[#allocation201_spill] sm:$0xff] }
 0xbb0   : > { %v18303_v31 = vsub.f32 %v20732_v41, %v7433_v35  ;;  %v18306_v45 = vsub.f32 %v20733_v24, %v7433_v35  ;;  %v18309_v13 = vsub.f32 %v20734_v5, %v7433_v35  ;;  %v18312_v2 = vsub.f32 %v20735_v61, %v7433_v35  ;;  %v20745_v33 = vld [vmem:[#allocation79_spill] sm:$0xff]  ;;  %v20746_v41 = vld [vmem:[#allocation56_spill] sm:$0xff] }
 0xbb1   : > { %v18315_v3 = vsub.f32 %v20736_v38, %v7433_v35  ;;  %v18318_v28 = vsub.f32 %v20737_v10, %v7433_v35  ;;  %v18321_v34 = vsub.f32 %v20738_v6, %v7433_v35  ;;  %v18324_v49 = vsub.f32 %v20739_v56, %v7433_v35  ;;  %v20747_v5 = vld [vmem:[#allocation80_spill] sm:$0xff] }
 0xbb2   : > { %v18327_v59 = vsub.f32 %v20740_v53, %v7433_v35  ;;  %v18330_v52 = vsub.f32 %v20741_v51, %v7433_v35  ;;  %v18333_v21 = vsub.f32 %v20742_v54, %v7433_v35  ;;  %v18336_v4 = vsub.f32 %v20743_v39, %v7433_v35 }
 0xbb3   : > { %v18339_v47 = vsub.f32 %v20744_v58, %v7433_v35  ;;  %v18342_v20 = vsub.f32 %v20745_v33, %v7433_v35  ;;  %v18345_v24 = vsub.f32 %v20746_v41, %v7433_v35  ;;  %v18348_v61 = vsub.f32 %v20747_v5, %v7433_v35 }
 0xbb4   : > { %v7466_v38 = vmul.f32 %v18255_v30, %v18255_v30  ;;  %v7467_v10 = vmul.f32 %v18258_v50, %v18258_v50  ;;  %v7468_v6 = vmul.f32 %v18261_v48, %v18261_v48  ;;  %v7469_v56 = vmul.f32 %v18264_v7, %v18264_v7 }
 0xbb5   : > { %v7470_v35 = vmul.f32 %v18267_v62, %v18267_v62  ;;  %v7471_v33 = vmul.f32 %v18270_v42, %v18270_v42  ;;  %v7472_v27 = vmul.f32 %v18273_v22, %v18273_v22 }
 0xbb6   : > { %v7498_v53 = vsel %vm2426_vm8, %v7466_v38, 0.0  ;;  %v7499_v51 = vsel %vm2426_vm8, %v7467_v10, 0.0  ;;  %v7501_v39 = vsel %vm2426_vm8, %v7468_v6, 0.0  ;;  %v7503_v41 = vsel %vm2426_vm8, %v7469_v56, 0.0 }
 0xbb7   : > { %v7500_v54 = vadd.f32 %v7499_v51, %v7498_v53  ;;  %v7505_v38 = vsel %vm2426_vm8, %v7470_v35, 0.0  ;;  %v7473_v10 = vmul.f32 %v18276_v14, %v18276_v14  ;;  %v7507_v53 = vsel %vm2426_vm8, %v7471_v33, 0.0 }
 0xbb8   : > { %v7474_v6 = vmul.f32 %v18279_v44, %v18279_v44  ;;  %v7475_v56 = vmul.f32 %v18282_v25, %v18282_v25  ;;  %v7476_v35 = vmul.f32 %v18285_v29, %v18285_v29 }
 0xbb9   : > { %v7502_v58 = vadd.f32 %v7501_v39, %v7500_v54  ;;  %v7509_v54 = vsel %vm2426_vm8, %v7472_v27, 0.0  ;;  %v7478_v27 = vmul.f32 %v18291_v63, %v18291_v63 }
 0xbba   : > { %v7515_v33 = vsel %vm2426_vm8, %v7475_v56, 0.0  ;;  %v7481_v56 = vmul.f32 %v18300_v32, %v18300_v32 }
 0xbbb   : > { %v7504_v5 = vadd.f32 %v7503_v41, %v7502_v58  ;;  %v7511_v58 = vsel %vm2426_vm8, %v7473_v10, 0.0  ;;  %v7479_v10 = vmul.f32 %v18294_v0, %v18294_v0 }
 0xbbd   : > { %v7506_v40 = vadd.f32 %v7505_v38, %v7504_v5  ;;  %v7513_v5 = vsel %vm2426_vm8, %v7474_v6, 0.0  ;;  %v7480_v6 = vmul.f32 %v18297_v8, %v18297_v8 }
 0xbbf   : > { %v7508_v51 = vadd.f32 %v7507_v53, %v7506_v40  ;;  %v7477_v40 = vmul.f32 %v18288_v11, %v18288_v11 }
 0xbc1   : > { %v7510_v39 = vadd.f32 %v7509_v54, %v7508_v51  ;;  %v7517_v51 = vsel %vm2426_vm8, %v7476_v35, 0.0  ;;  %v7482_v35 = vmul.f32 %v18303_v31, %v18303_v31 }
 0xbc3   : > { %v7512_v41 = vadd.f32 %v7511_v58, %v7510_v39  ;;  %v7519_v39 = vsel %vm2426_vm8, %v7477_v40, 0.0  ;;  %v7483_v40 = vmul.f32 %v18306_v45, %v18306_v45 }
 0xbc5   : > { %v7514_v38 = vadd.f32 %v7513_v5, %v7512_v41  ;;  %v7521_v41 = vsel %vm2426_vm8, %v7478_v27, 0.0  ;;  %v7484_v27 = vmul.f32 %v18309_v13, %v18309_v13 }
 0xbc7   : > { %v7516_v53 = vadd.f32 %v7515_v33, %v7514_v38  ;;  %v7523_v38 = vsel %vm2426_vm8, %v7479_v10, 0.0  ;;  %v7485_v10 = vmul.f32 %v18312_v2, %v18312_v2 }
 0xbc9   : > { %v7518_v54 = vadd.f32 %v7517_v51, %v7516_v53  ;;  %v7525_v53 = vsel %vm2426_vm8, %v7480_v6, 0.0  ;;  %v7486_v6 = vmul.f32 %v18315_v3, %v18315_v3 }
 0xbcb   : > { %v7520_v58 = vadd.f32 %v7519_v39, %v7518_v54  ;;  %v7527_v54 = vsel %vm2426_vm8, %v7481_v56, 0.0  ;;  %v7487_v56 = vmul.f32 %v18318_v28, %v18318_v28 }
 0xbcd   : > { %v7522_v5 = vadd.f32 %v7521_v41, %v7520_v58  ;;  %v7529_v58 = vsel %vm2426_vm8, %v7482_v35, 0.0  ;;  %v7488_v35 = vmul.f32 %v18321_v34, %v18321_v34 }
 0xbcf   : > { %v7524_v33 = vadd.f32 %v7523_v38, %v7522_v5  ;;  %v7531_v5 = vsel %vm2426_vm8, %v7483_v40, 0.0  ;;  %v7489_v40 = vmul.f32 %v18324_v49, %v18324_v49 }
 0xbd1   : > { %v7526_v51 = vadd.f32 %v7525_v53, %v7524_v33  ;;  %v7533_v33 = vsel %vm2426_vm8, %v7484_v27, 0.0  ;;  %v7490_v27 = vmul.f32 %v18327_v59, %v18327_v59 }
 0xbd3   : > { %v7528_v39 = vadd.f32 %v7527_v54, %v7526_v51  ;;  %v7535_v51 = vsel %vm2426_vm8, %v7485_v10, 0.0  ;;  %v7491_v10 = vmul.f32 %v18330_v52, %v18330_v52 }
 0xbd5   : > { %v7530_v41 = vadd.f32 %v7529_v58, %v7528_v39  ;;  %v7537_v39 = vsel %vm2426_vm8, %v7486_v6, 0.0  ;;  %v7492_v6 = vmul.f32 %v18333_v21, %v18333_v21 }
 0xbd7   : > { %v7532_v38 = vadd.f32 %v7531_v5, %v7530_v41  ;;  %v7539_v41 = vsel %vm2426_vm8, %v7487_v56, 0.0  ;;  %v7493_v56 = vmul.f32 %v18336_v4, %v18336_v4 }
 0xbd9   : > { %v7534_v53 = vadd.f32 %v7533_v33, %v7532_v38  ;;  %v7541_v38 = vsel %vm2426_vm8, %v7488_v35, 0.0  ;;  %v7494_v35 = vmul.f32 %v18339_v47, %v18339_v47 }
 0xbdb   : > { %v7536_v54 = vadd.f32 %v7535_v51, %v7534_v53  ;;  %v7543_v53 = vsel %vm2426_vm8, %v7489_v40, 0.0  ;;  %v7495_v40 = vmul.f32 %v18342_v20, %v18342_v20 }
 0xbdd   : > { %v7538_v58 = vadd.f32 %v7537_v39, %v7536_v54  ;;  %v7545_v54 = vsel %vm2426_vm8, %v7490_v27, 0.0  ;;  %v7496_v27 = vmul.f32 %v18345_v24, %v18345_v24 }
 0xbdf   : > { %v7540_v5 = vadd.f32 %v7539_v41, %v7538_v58  ;;  %v7547_v58 = vsel %vm2426_vm8, %v7491_v10, 0.0  ;;  %v7497_v10 = vmul.f32 %v18348_v61, %v18348_v61 }
 0xbe1   : > { %v7542_v33 = vadd.f32 %v7541_v38, %v7540_v5  ;;  %v7549_v5 = vsel %vm2426_vm8, %v7492_v6, 0.0  ;;  %v7557_v6 = vsel %vm2426_vm8, %v7496_v27, 0.0 }
 0xbe3   : > { %v7544_v51 = vadd.f32 %v7543_v53, %v7542_v33  ;;  %v7551_v33 = vsel %vm2426_vm8, %v7493_v56, 0.0 }
 0xbe5   : > { %v7546_v39 = vadd.f32 %v7545_v54, %v7544_v51  ;;  %v7553_v51 = vsel %vm2426_vm8, %v7494_v35, 0.0  ;;  %v10395_v35 = vld [vmem:[%s19770_s1 + $0x88] sm:$0xff] }
 0xbe7   : > { %v7548_v41 = vadd.f32 %v7547_v58, %v7546_v39  ;;  %v7555_v39 = vsel %vm2426_vm8, %v7495_v40, 0.0  ;;  %v7841_v40 = vpack.c.bf16 %v10395_v35, %v10395_v35 }
 0xbe9   : > { %v7550_v38 = vadd.f32 %v7549_v5, %v7548_v41  ;;  %v7559_v5 = vsel %vm2426_vm8, %v7497_v10, 0.0 }
 0xbeb   : > { %v7552_v53 = vadd.f32 %v7551_v33, %v7550_v38 }
 0xbed   : > { %v7554_v54 = vadd.f32 %v7553_v51, %v7552_v53 }
 0xbef   : > { %v7556_v58 = vadd.f32 %v7555_v39, %v7554_v54  ;;  %v20749_v54 = vld [vmem:[#allocation10_spill] sm:$0xff]  ;;  %v20751_v39 = vld [vmem:[#allocation13_spill] sm:$0xff] }
 0xbf1   : > { %v7558_v41 = vadd.f32 %v7557_v6, %v7556_v58  ;;  %v20752_v58 = vld [vmem:[#allocation12_spill] sm:$0xff] }
 0xbf2   : > { %v20753_v6 = vpack.c.bf16 %v20751_v39, %v20752_v58  ;;  %v20770_v39 = vld [vmem:[#allocation24_spill] sm:$0xff] }
 0xbf3   : > { %v7560_v26 = vadd.f32 %v7559_v5, %v7558_v41  ;;  %v20754_v41 = vld [vmem:[#allocation15_spill] sm:$0xff]  ;;  %v20755_v5 = vld [vmem:[#allocation14_spill] sm:$0xff] }
 0xbf5   : > { %v7561_v56 = vrot.slane %v7560_v26, 4 }
 0xbf7   : > { %v7562_v38 = vadd.f32 %v7561_v56, %v7560_v26  ;;  %v20756_v56 = vpack.c.bf16 %v20754_v41, %v20755_v5  ;;  %v20773_v41 = vld [vmem:[#allocation26_spill] sm:$0xff] }
 0xbf9   : > { %v7563_v33 = vrot.slane %v7562_v38, 2 }
 0xbfb   : > { %v7564_v36 = vadd.f32 %v7563_v33, %v7562_v38  ;;  %v20757_v38 = vld [vmem:[#allocation17_spill] sm:$0xff]  ;;  %v20758_v33 = vld [vmem:[#allocation16_spill] sm:$0xff] }
 0xbfc   : > { %v20759_v35 = vpack.c.bf16 %v20757_v38, %v20758_v33  ;;  %v20776_v38 = vld [vmem:[#allocation28_spill] sm:$0xff] }
 0xbfd   : > { %v7565_v46 = vrot.slane %v7564_v36, 1 }
 0xbff   : > { %v7566_v15 = vadd.f32 %v7565_v46, %v7564_v36  ;;  %v7891_v46 = vsel %vm2527_vm1, %v7841_v40, 0  ;;  %v20748_v36 = vld [vmem:[#allocation11_spill] sm:$0xff] }
 0xc00   : > { %v20750_v10 = vpack.c.bf16 %v20748_v36, %v20749_v54  ;;  %v20767_v36 = vld [vmem:[#allocation22_spill] sm:$0xff] }
 0xc01   : > { %10859 = vmatmul.mubr.msk.f32.vlgmr.msra.gmra.mrb[52].mxu0 %vm2426_vm8, %v7566_v15 }
 0xc02   : > { %11074 = vmatpush3.bf16.msra.mxu0 %v20682_v9  ;;  %10865 = vmatprep.mubr.msk.f32.mxu0 %vm13307_vm10, %v20608_v37 }
 0xc03   : > { %11145 = vmatprep.subr.msk.bf16.mxu0 %vm2527_vm1, %v7841_v40  ;;  %v20760_v40 = vld [vmem:[#allocation19_spill] sm:$0xff] }
 0xcd4   : > { %v7636_v53 = vpop.f32.mrb[52].mxu0 }
 0xcd5   : > { %v7640_v26 = vmul.f32 0.001953125, %v7636_v53  ;;  %v10860_v27 = vpop.f32.mrb[53].mxu0  ;;  %v20761_v53 = vld [vmem:[#allocation18_spill] sm:$0xff] }
 0xcd6   : > { %v20763_v27 = vld [vmem:[#allocation21_spill] sm:$0xff] }
 0xcd7   : > { %v7641_v51 = vadd.f32 1e-05, %v7640_v26  ;;  %v20762_v26 = vpack.c.bf16 %v20760_v40, %v20761_v53  ;;  %v20779_v40 = vld [vmem:[#allocation30_spill] sm:$0xff] }
 0xcd9   : > { %13208 = vrsqrt.f32 %v7641_v51  ;;  %v20764_v51 = vld [vmem:[#allocation20_spill] sm:$0xff] }
 0xce3   : > { %v13209_v15 = vpop.eup %13208 }
 0xce4   : > { %10866 = vmatmul.mubr.msk.f32.vlgmr.msra.gmra.mrb[54].mxu0 %vm2294_vm4, %v13209_v15  ;;  %v20766_v15 = vld [vmem:[#allocation23_spill] sm:$0xff] }
 0xce5   : > { %10869 = vmatpush3.bf16.msra.mxu0 %v7891_v46  ;;  %10870 = vmatprep.mubr.msk.bf16.mxu0 %vm446_vm0, %v20750_v10  ;;  %v20765_v46 = vpack.c.bf16 %v20763_v27, %v20764_v51  ;;  %v20768_v54 = vpack.c.bf16 %v20766_v15, %v20767_v36  ;;  %v20769_v10 = vld [vmem:[#allocation25_spill] sm:$0xff]  ;;  %v13219_v27 = vld [vmem:[#allocation2 + $0x6aa] sm:$0xff] }
 0xce6   : > { %11084 = vmatprep.subr.bf16.mxu0 %v20519_v19  ;;  %v20771_v58 = vpack.c.bf16 %v20769_v10, %v20770_v39  ;;  %v20782_v15 = vld [vmem:[#allocation32_spill] sm:$0xff]  ;;  %v13221_v10 = vld [vmem:[#allocation2 + $0x6e2] sm:$0xff] }
 0xce8   : > { %10871 = vmatmul.mubr.msk.bf16.vlgmr.msra.gmra.mrb[56].mxu0 %vm446_vm0, %v20753_v6  ;;  %v20772_v6 = vld [vmem:[#allocation27_spill] sm:$0xff] }
 0xce9   : > { %10874 = vmatprep.mubr.msk.bf16.mxu0 %vm446_vm0, %v20756_v56  ;;  %11086 = vmatpush3.bf16.msra.mxu0 %v20585_v57  ;;  %v20774_v5 = vpack.c.bf16 %v20772_v6, %v20773_v41  ;;  %v20775_v56 = vld [vmem:[#allocation29_spill] sm:$0xff] }
 0xcea   : > { %11087 = vmatprep.subr.bf16.mxu0 %v20519_v19  ;;  %v20777_v33 = vpack.c.bf16 %v20775_v56, %v20776_v38  ;;  %v13223_v6 = vld [vmem:[#allocation2 + $0x71a] sm:$0xff]  ;;  %v13225_v56 = vld [vmem:[#allocation2 + $0x752] sm:$0xff] }
 0xced   : > { %11089 = vmatpush3.bf16.msra.mxu0 %v20588_v18 }
 0xcee   : > { %10938 = vmatprep.subr.mxu0 %v20608_v37 }
 0xcf0   : > { %10875 = vmatmul.mubr.msk.bf16.gmra.mrb[60].mxu0 %vm446_vm0, %v20759_v35  ;;  %v20778_v35 = vld [vmem:[#allocation31_spill] sm:$0xff] }
 0xcf1   : > { %10878 = vmatprep.mubr.msk.bf16.mxu0 %vm446_vm0, %v20762_v26  ;;  %v20780_v53 = vpack.c.bf16 %v20778_v35, %v20779_v40  ;;  %v13218_v26 = vld [vmem:[#allocation2 + $0x6a2] sm:$0xff] }
 0xcf2   : > { %v7837_v51 = vpack.c.bf16 %v13219_v27, %v13218_v26 }
 0xcf8   : > { %10879 = vmatmul.mubr.msk.bf16.gmra.mrb[64].mxu0 %vm446_vm0, %v20765_v46  ;;  %v20781_v46 = vld [vmem:[#allocation33_spill] sm:$0xff] }
 0xcf9   : > { %10882 = vmatprep.mubr.msk.bf16.mxu0 %vm446_vm0, %v20768_v54  ;;  %v20783_v36 = vpack.c.bf16 %v20781_v46, %v20782_v15  ;;  %v13220_v54 = vld [vmem:[#allocation2 + $0x6da] sm:$0xff] }
 0xcfa   : > { %v7838_v39 = vpack.c.bf16 %v13221_v10, %v13220_v54 }
 0xd00   : > { %10883 = vmatmul.mubr.msk.bf16.gmra.mrb[68].mxu0 %vm446_vm0, %v20771_v58  ;;  %v13222_v58 = vld [vmem:[#allocation2 + $0x712] sm:$0xff] }
 0xd01   : > { %10886 = vmatprep.mubr.msk.bf16.mxu0 %vm446_vm0, %v20774_v5  ;;  %v7839_v41 = vpack.c.bf16 %v13223_v6, %v13222_v58  ;;  %v13224_v5 = vld [vmem:[#allocation2 + $0x74a] sm:$0xff] }
 0xd02   : > { %v7840_v38 = vpack.c.bf16 %v13225_v56, %v13224_v5 }
 0xd08   : > { %10887 = vmatmul.mubr.msk.bf16.gmra.mrb[72].mxu0 %vm446_vm0, %v20777_v33  ;;  %v10388_v33 = vld [vmem:[%s19771_s2 + $0x2] sm:$0x1] }
 0xd09   : > { %10890 = vmatprep.mubr.msk.bf16.mxu0 %vm446_vm0, %v20780_v53 }
 0xd10   : > { %10891 = vmatmul.mubr.msk.bf16.gmra.mrb[76].mxu0 %vm446_vm0, %v20783_v36 }
 0xd11   : > { %10894 = vmatprep.mubr.msk.bf16.mxu0 %vm446_vm0, %v7837_v51 }
 0xd18   : > { %10895 = vmatmul.mubr.msk.bf16.gmra.mrb[80].mxu0 %vm446_vm0, %v7838_v39 }
 0xd19   : > { %10898 = vmatprep.mubr.msk.bf16.mxu0 %vm446_vm0, %v7839_v41 }
 0xd20   : > { %10899 = vmatmul.mubr.msk.bf16.gmra.mrb[84].mxu0 %vm446_vm0, %v7840_v38 }
 0xd21   : > { %10928 = vmatprep.mubr.msk.f32.mxu0 %vm13307_vm10, %v20608_v37 }
 0xdb7   : > { %v7712_v35 = vpop.f32.mrb[54].mxu0 }
 0xdb8   : > { %v7716_v40 = vmul.f32 %v10388_v33, %v7712_v35  ;;  %v10867_v53 = vpop.f32.mrb[55].mxu0 }
 0xdba   : > { %v7720_v26 = vrot.slane %v7716_v40, %v20609_v23 }
 0xdbb   : > { %v18519_v27 = vpop.f32.mrb[56].mxu0 }
 0xdbc   : > { %v18521_v51 = vpop.f32.mrb[57].mxu0  ;;  %v7721_v36 = vmul.f32 %v7720_v26, %v18255_v30  ;;  %v7722_v54 = vmul.f32 %v7720_v26, %v18258_v50  ;;  %v7723_v10 = vmul.f32 %v7720_v26, %v18261_v48  ;;  %v7724_v39 = vmul.f32 %v7720_v26, %v18264_v7  ;;  %v10394_v7 = vld [vmem:[%s19772_s3 + $0x2] ss:$0 sm:$0xff] }
 0xdbd   : > { %20784 = vst [vmem:[#allocation45_spill] sm:$0xff] %v18521_v51  ;;  %v18523_v46 = vpop.f32.mrb[58].mxu0  ;;  %v7725_v58 = vmul.f32 %v7720_v26, %v18267_v62  ;;  %v7726_v6 = vmul.f32 %v7720_v26, %v18270_v42  ;;  %v7727_v41 = vmul.f32 %v7720_v26, %v18273_v22  ;;  %v7728_v5 = vmul.f32 %v7720_v26, %v18276_v14 }
 0xdbe   : > { %v18525_v15 = vpop.f32.mrb[59].mxu0  ;;  %v7729_v56 = vmul.f32 %v7720_v26, %v18279_v44  ;;  %v7730_v38 = vmul.f32 %v7720_v26, %v18282_v25  ;;  %v7731_v30 = vmul.f32 %v7720_v26, %v18285_v29  ;;  %v7732_v50 = vmul.f32 %v7720_v26, %v18288_v11 }
 0xdbf   : > { %20785 = vst [vmem:[#allocation44_spill] sm:$0xff] %v18525_v15  ;;  %v7733_v48 = vmul.f32 %v7720_v26, %v18291_v63  ;;  %v7734_v62 = vmul.f32 %v7720_v26, %v18294_v0  ;;  %v7735_v42 = vmul.f32 %v7720_v26, %v18297_v8  ;;  %v7736_v22 = vmul.f32 %v7720_v26, %v18300_v32 }
 0xdc0   : > { %v7737_v14 = vmul.f32 %v7720_v26, %v18303_v31  ;;  %v7745_v25 = vmul.f32 %v7720_v26, %v18327_v59  ;;  %v7746_v29 = vmul.f32 %v7720_v26, %v18330_v52  ;;  %v7747_v11 = vmul.f32 %v7720_v26, %v18333_v21 }
 0xdc1   : > { %v7748_v63 = vmul.f32 %v7720_v26, %v18336_v4  ;;  %v7749_v0 = vmul.f32 %v7720_v26, %v18339_v47  ;;  %v7750_v8 = vmul.f32 %v7720_v26, %v18342_v20  ;;  %v7751_v32 = vmul.f32 %v7720_v26, %v18345_v24 }
 0xdc2   : > { %v7752_v31 = vmul.f32 %v7720_v26, %v18348_v61  ;;  %v18561_v40 = vadd.f32 %v10394_v7, %v7729_v56  ;;  %v18563_v59 = vadd.f32 %v10394_v7, %v7730_v38  ;;  %v18565_v52 = vadd.f32 %v10394_v7, %v7731_v30 }
 0xdc3   : > { %v18547_v44 = vpop.f32.mrb[60].mxu0  ;;  %v18567_v21 = vadd.f32 %v10394_v7, %v7732_v50  ;;  %v18571_v53 = vadd.f32 %v10394_v7, %v7733_v48  ;;  %v18573_v47 = vadd.f32 %v10394_v7, %v7734_v62  ;;  %v18575_v20 = vadd.f32 %v10394_v7, %v7735_v42 }
 0xdc4   : > { %v18553_v33 = vpop.f32.mrb[61].mxu0  ;;  %v18577_v24 = vadd.f32 %v10394_v7, %v7736_v22  ;;  %v7738_v61 = vmul.f32 %v7720_v26, %v18306_v45  ;;  %v7739_v56 = vmul.f32 %v7720_v26, %v18309_v13  ;;  %v7740_v38 = vmul.f32 %v7720_v26, %v18312_v2 }
 0xdc5   : > { %v18559_v35 = vpop.f32.mrb[62].mxu0  ;;  %v7741_v30 = vmul.f32 %v7720_v26, %v18315_v3  ;;  %v7742_v50 = vmul.f32 %v7720_v26, %v18318_v28  ;;  %v7743_v16 = vmul.f32 %v7720_v26, %v18321_v34  ;;  %v7744_v48 = vmul.f32 %v7720_v26, %v18324_v49 }
 0xdc6   : > { %v18569_v4 = vpop.f32.mrb[63].mxu0  ;;  %v7759_v62 = vadd.f32 %v10394_v7, %v7721_v36  ;;  %v18586_v12 = vadd.f32 %v10394_v7, %v7745_v25  ;;  %v18588_v42 = vadd.f32 %v10394_v7, %v7746_v29  ;;  %v18590_v22 = vadd.f32 %v10394_v7, %v7747_v11 }
 0xdc7   : > { %v18592_v45 = vadd.f32 %v10394_v7, %v7748_v63  ;;  %v18594_v13 = vadd.f32 %v10394_v7, %v7749_v0  ;;  %v18596_v2 = vadd.f32 %v10394_v7, %v7750_v8  ;;  %v18598_v3 = vadd.f32 %v10394_v7, %v7751_v32 }
 0xdc8   : > { %v18600_v28 = vadd.f32 %v10394_v7, %v7752_v31  ;;  %v7760_v49 = vadd.f32 %v10394_v7, %v7722_v54  ;;  %v18604_v26 = vadd.f32 %v10394_v7, %v7723_v10  ;;  %v18606_v36 = vadd.f32 %v10394_v7, %v7724_v39 }
 0xdc9   : > { %v18608_v25 = vadd.f32 %v10394_v7, %v7725_v58  ;;  %v18612_v11 = vadd.f32 %v10394_v7, %v7726_v6  ;;  %v18614_v63 = vadd.f32 %v10394_v7, %v7727_v41  ;;  %v7775_v0 = vadd.f32 %v10394_v7, %v7737_v14 }
 0xdca   : > { %v7776_v8 = vadd.f32 %v10394_v7, %v7738_v61  ;;  %v18618_v31 = vadd.f32 %v10394_v7, %v7728_v5  ;;  %v7777_v17 = vadd.f32 %v10394_v7, %v7739_v56  ;;  %v7778_v54 = vadd.f32 %v10394_v7, %v7740_v38 }
 0xdcb   : > { %v18602_v34 = vpop.f32.mrb[64].mxu0  ;;  %v18620_v10 = vadd.f32 %v10394_v7, %v7741_v30  ;;  %v18624_v58 = vadd.f32 %v10394_v7, %v7742_v50  ;;  %v18626_v18 = vadd.f32 %v10394_v7, %v7743_v16  ;;  %v18628_v6 = vadd.f32 %v10394_v7, %v7744_v48 }
 0xdcc   : > { %v18610_v29 = vpop.f32.mrb[65].mxu0  ;;  %v7791_v41 = vmax.f32 %v7759_v62, 0.0  ;;  %v7792_v57 = vmax.f32 %v7760_v49, 0.0  ;;  %v7793_v14 = vmax.f32 %v18604_v26, 0.0  ;;  %v7794_v61 = vmax.f32 %v18606_v36, 0.0 }
 0xdcd   : > { %v18616_v32 = vpop.f32.mrb[66].mxu0  ;;  %v7795_v5 = vmax.f32 %v18608_v25, 0.0  ;;  %v7796_v56 = vmax.f32 %v18612_v11, 0.0  ;;  %v7807_v30 = vmax.f32 %v7775_v0, 0.0  ;;  %v7808_v23 = vmax.f32 %v7776_v8, 0.0 }
 0xdce   : > { %v18622_v39 = vpop.f32.mrb[67].mxu0  ;;  %v7799_v50 = vmax.f32 %v18561_v40, 0.0  ;;  %v7800_v16 = vmax.f32 %v18563_v59, 0.0  ;;  %v7801_v7 = vmax.f32 %v18565_v52, 0.0  ;;  %v7802_v48 = vmax.f32 %v18567_v21, 0.0 }
 0xdcf   : > { %v7803_v62 = vmax.f32 %v18571_v53, 0.0  ;;  %v7804_v49 = vmax.f32 %v18573_v47, 0.0  ;;  %v7805_v26 = vmax.f32 %v18575_v20, 0.0  ;;  %v7806_v36 = vmax.f32 %v18577_v24, 0.0 }
 0xdd0   : > { %v7809_v11 = vmax.f32 %v7777_v17, 0.0  ;;  %v7810_v0 = vmax.f32 %v7778_v54, 0.0  ;;  %v8058_v40 = vsel %vm2426_vm8, %v18521_v51, 0.0  ;;  %v8059_v59 = vsel %vm2426_vm8, %v18525_v15, 0.0 }
 0xdd1   : > { %v7811_v21 = vmax.f32 %v18620_v10, 0.0  ;;  %v8060_v53 = vadd.f32 %v8059_v59, %v8058_v40  ;;  %v13010_v47 = vpack.i.bf16 %v7808_v23, %v7807_v30  ;;  %v13015_v8 = vpack.i.bf16 %v7792_v57, %v7791_v41 }
 0xdd2   : > { %v7812_v24 = vmax.f32 %v18624_v58, 0.0  ;;  %v7815_v17 = vmax.f32 %v18586_v12, 0.0  ;;  %v7816_v54 = vmax.f32 %v18588_v42, 0.0  ;;  %v8061_v38 = vsel %vm2426_vm8, %v18519_v27, 0.0 }
 0xdd3   : > { %v18643_v25 = vpop.f32.mrb[68].mxu0  ;;  %v7817_v15 = vmax.f32 %v18590_v22, 0.0  ;;  %v7818_v10 = vmax.f32 %v18592_v45, 0.0  ;;  %v7819_v23 = vmax.f32 %v18594_v13, 0.0  ;;  %v8062_v57 = vadd.f32 %v8061_v38, %v8060_v53  ;;  %13011 = vrot.lane.b32.xlu0 %v13010_v47, %s13308_s14  ;;  %13016 = vrot.lane.b32.xlu1 %v13015_v8, %s13308_s14 }
 0xdd4   : > { %v18649_v52 = vpop.f32.mrb[69].mxu0  ;;  %v7820_v12 = vmax.f32 %v18596_v2, 0.0  ;;  %v7821_v42 = vmax.f32 %v18598_v3, 0.0  ;;  %v8063_v58 = vsel %vm2426_vm8, %v18523_v46, 0.0  ;;  %v8065_v22 = vsel %vm2426_vm8, %v18553_v33, 0.0 }
 0xdd5   : > { %v18652_v20 = vpop.f32.mrb[70].mxu0  ;;  %v7822_v45 = vmax.f32 %v18600_v28, 0.0  ;;  %v8064_v41 = vadd.f32 %v8063_v58, %v8062_v57  ;;  %v13020_v13 = vpack.i.bf16 %v7810_v0, %v7809_v11  ;;  %v13025_v38 = vpack.i.bf16 %v7794_v61, %v7793_v14 }
 0xdd6   : > { %v18659_v51 = vpop.f32.mrb[71].mxu0  ;;  %v7798_v30 = vmax.f32 %v18618_v31, 0.0  ;;  %v7813_v40 = vmax.f32 %v18626_v18, 0.0  ;;  %v8067_v2 = vsel %vm2426_vm8, %v18569_v4, 0.0  ;;  %v18677_v59 = vpack.i.bf16 %v7816_v54, %v7815_v17 }
 0xdd7   : > { %v7814_v3 = vmax.f32 %v18628_v6, 0.0  ;;  %v8066_v53 = vadd.f32 %v8065_v22, %v8064_v41  ;;  %13021 = vrot.lane.b32.xlu0 %v13020_v13, %s13308_s14  ;;  %13026 = vrot.lane.b32.xlu1 %v13025_v38, %s13308_s14  ;;  %v18684_v11 = vpack.i.bf16 %v7800_v16, %v7799_v50  ;;  %v18686_v14 = vpack.i.bf16 %v7818_v10, %v7817_v15 }
 0xdd8   : > { %v13030_v31 = vpack.i.bf16 %v7812_v24, %v7811_v21  ;;  %v18690_v61 = vpack.i.bf16 %v7802_v48, %v7801_v7  ;;  %v18692_v0 = vpack.i.bf16 %v7820_v12, %v7819_v23  ;;  %v18694_v47 = vpack.i.bf16 %v7804_v49, %v7803_v62 }
 0xdd9   : > { %v8068_v6 = vadd.f32 %v8067_v2, %v8066_v53  ;;  %v13035_v8 = vpack.i.bf16 %v7796_v56, %v7795_v5  ;;  %v18698_v54 = vpack.i.bf16 %v7822_v45, %v7821_v42  ;;  %v18700_v57 = vpack.i.bf16 %v7806_v36, %v7805_v26 }
 0xdda   : > { %v8069_v15 = vsel %vm2426_vm8, %v18547_v44, 0.0  ;;  %v8071_v7 = vsel %vm2426_vm8, %v18559_v35, 0.0  ;;  %v8073_v5 = vsel %vm2426_vm8, %v18610_v29, 0.0  ;;  %v13040_v48 = vpack.i.bf16 %v7814_v3, %v7813_v40 }
 0xddb   : > { %v18682_v28 = vpop.f32.mrb[72].mxu0  ;;  %20786 = vst [vmem:[#allocation43_spill] sm:$0xff] %v18700_v57  ;;  %v8070_v16 = vadd.f32 %v8069_v15, %v8068_v6  ;;  %13031 = vrot.lane.b32.xlu0 %v13030_v31, %s13308_s14  ;;  %13036 = vrot.lane.b32.xlu1 %v13035_v8, %s13308_s14  ;;  %v20787_v62 = vmax.f32 %v18614_v63, 0.0  ;;  %v8075_v26 = vsel %vm2426_vm8, %v18622_v39, 0.0  ;;  %v8077_v12 = vsel %vm2426_vm8, %v18602_v34, 0.0 }
 0xddc   : > { %v18688_v18 = vpop.f32.mrb[73].mxu0  ;;  %v8079_v58 = vsel %vm2426_vm8, %v18616_v32, 0.0  ;;  %v8081_v22 = vsel %vm2426_vm8, %v18649_v52, 0.0  ;;  %v8083_v41 = vsel %vm2426_vm8, %v18659_v51, 0.0  ;;  %v8085_v3 = vsel %vm2426_vm8, %v18643_v25, 0.0 }
 0xddd   : > { %v18696_v17 = vpop.f32.mrb[74].mxu0  ;;  %v8072_v56 = vadd.f32 %v8071_v7, %v8070_v16  ;;  %v13045_v49 = vpack.i.bf16 %v7798_v30, %v20787_v62  ;;  %v8087_v6 = vsel %vm2426_vm8, %v18652_v20, 0.0  ;;  %v8089_v8 = vsel %vm2426_vm8, %v18688_v18, 0.0 }
 0xdde   : > { %v18704_v50 = vpop.f32.mrb[75].mxu0 }
 0xddf   : > { %v8074_v36 = vadd.f32 %v8073_v5, %v8072_v56  ;;  %13041 = vrot.lane.b32.xlu0 %v13040_v48, %s13308_s14  ;;  %13046 = vrot.lane.b32.xlu1 %v13045_v49, %s13308_s14  ;;  %v8091_v16 = vsel %vm2426_vm8, %v18704_v50, 0.0  ;;  %v8093_v49 = vsel %vm2426_vm8, %v18682_v28, 0.0 }
 0xde1   : > { %v8076_v10 = vadd.f32 %v8075_v26, %v8074_v36 }
 0xde3   : > { %v18718_v21 = vpop.f32.mrb[76].mxu0  ;;  %v8078_v42 = vadd.f32 %v8077_v12, %v8076_v10  ;;  %v8095_v10 = vsel %vm2426_vm8, %v18696_v17, 0.0 }
 0xde4   : > { %v18720_v24 = vpop.f32.mrb[77].mxu0 }
 0xde5   : > { %v18722_v23 = vpop.f32.mrb[78].mxu0  ;;  %v8080_v45 = vadd.f32 %v8079_v58, %v8078_v42  ;;  %v8097_v12 = vsel %vm2426_vm8, %v18720_v24, 0.0 }
 0xde6   : > { %v18726_v63 = vpop.f32.mrb[79].mxu0 }
 0xde7   : > { %v8082_v13 = vadd.f32 %v8081_v22, %v8080_v45  ;;  %v8099_v58 = vsel %vm2426_vm8, %v18726_v63, 0.0 }
 0xde9   : > { %v8084_v40 = vadd.f32 %v8083_v41, %v8082_v13  ;;  %v8101_v41 = vsel %vm2426_vm8, %v18718_v21, 0.0 }
 0xdeb   : > { %v18734_v38 = vpop.f32.mrb[80].mxu0  ;;  %v8086_v31 = vadd.f32 %v8085_v3, %v8084_v40  ;;  %v8103_v40 = vsel %vm2426_vm8, %v18722_v23, 0.0 }
 0xdec   : > { %v18736_v30 = vpop.f32.mrb[81].mxu0 }
 0xded   : > { %v18738_v2 = vpop.f32.mrb[82].mxu0  ;;  %v8088_v15 = vadd.f32 %v8087_v6, %v8086_v31  ;;  %v8105_v3 = vsel %vm2426_vm8, %v18736_v30, 0.0 }
 0xdee   : > { %v18742_v53 = vpop.f32.mrb[83].mxu0 }
 0xdef   : > { %v8090_v7 = vadd.f32 %v8089_v8, %v8088_v15  ;;  %v8107_v6 = vsel %vm2426_vm8, %v18742_v53, 0.0 }
 0xdf1   : > { %v8092_v48 = vadd.f32 %v8091_v16, %v8090_v7  ;;  %v8109_v16 = vsel %vm2426_vm8, %v18734_v38, 0.0 }
 0xdf3   : > { %v18750_v5 = vpop.f32.mrb[84].mxu0  ;;  %v8094_v36 = vadd.f32 %v8093_v49, %v8092_v48  ;;  %v8111_v48 = vsel %vm2426_vm8, %v18738_v2, 0.0 }
 0xdf4   : > { %v18752_v56 = vpop.f32.mrb[85].mxu0 }
 0xdf5   : > { %v18754_v62 = vpop.f32.mrb[86].mxu0  ;;  %v8096_v42 = vadd.f32 %v8095_v10, %v8094_v36  ;;  %v8113_v49 = vsel %vm2426_vm8, %v18752_v56, 0.0 }
 0xdf6   : > { %v18758_v26 = vpop.f32.mrb[87].mxu0 }
 0xdf7   : > { %v8098_v22 = vadd.f32 %v8097_v12, %v8096_v42  ;;  %v8115_v10 = vsel %vm2426_vm8, %v18758_v26, 0.0 }
 0xdf9   : > { %v8100_v45 = vadd.f32 %v8099_v58, %v8098_v22  ;;  %v8117_v58 = vsel %vm2426_vm8, %v18750_v5, 0.0 }
 0xdfb   : > { %v8102_v13 = vadd.f32 %v8101_v41, %v8100_v45  ;;  %v8119_v45 = vsel %vm2426_vm8, %v18754_v62, 0.0 }
 0xdfd   : > { %v8104_v31 = vadd.f32 %v8103_v40, %v8102_v13 }
 0xdff   : > { %v8106_v8 = vadd.f32 %v8105_v3, %v8104_v31 }
 0xe01   : > { %v8108_v15 = vadd.f32 %v8107_v6, %v8106_v8 }
 0xe03   : > { %v8110_v7 = vadd.f32 %v8109_v16, %v8108_v15  ;;  %v18791_v15 = vpop.permute.xlu0 %13001 }
 0xe04   : > { %20788 = vst [vmem:[#allocation42_spill] sm:$0xff] %v18791_v15  ;;  %v9182_v15 = vld [vmem:[%s13916_s24 + $0x88] sm:$0xff] }
 0xe05   : > { %v8112_v36 = vadd.f32 %v8111_v48, %v8110_v7 }
 0xe07   : > { %v8114_v12 = vadd.f32 %v8113_v49, %v8112_v36 }
 0xe09   : > { %v8116_v42 = vadd.f32 %v8115_v10, %v8114_v12 }
 0xe0b   : > { %v8118_v22 = vadd.f32 %v8117_v58, %v8116_v42 }
 0xe0d   : > { %v8120_v41 = vadd.f32 %v8119_v45, %v8118_v22 }
 0xe0f   : > { %v8121_v13 = vrot.slane %v8120_v41, 4 }
 0xe11   : > { %v8122_v40 = vadd.f32 %v8121_v13, %v8120_v41 }
 0xe13   : > { %v8123_v3 = vrot.slane %v8122_v40, 2 }
 0xe15   : > { %v8124_v31 = vadd.f32 %v8123_v3, %v8122_v40  ;;  %v9167_v3 = vld [vmem:[%s13916_s24 + $0x10] sm:$0xff] }
 0xe17   : > { %v8125_v6 = vrot.slane %v8124_v31, 1 }
 0xe19   : > { %v8126_v8 = vadd.f32 %v8125_v6, %v8124_v31  ;;  %v9200_v6 = vsel %vm446_vm0, %v9167_v3, 0.0 }
 0xe1b   : > { %10911 = vmatmul.mubr.msk.f32.vlgmr.msra.gmra.mrb[64].mxu1 %vm2426_vm8, %v8126_v8  ;;  %v9168_v8 = vld [vmem:[%s13916_s24 + $0x18] sm:$0xff] }
 0xe1c   : > { %11083 = vmatpush3.bf16.msra.mxu1 %v20682_v9  ;;  %10917 = vmatprep.mubr.msk.f32.mxu1 %vm13307_vm10, %v20608_v37 }
 0xe1d   : > { %11090 = vmatprep.subr.bf16.mxu1 %v20519_v19 }
 0xe45   : > { %v18793_v16 = vpop.permute.xlu0 %13011 }
 0xe46   : > { %20789 = vst [vmem:[#allocation212_spill] sm:$0xff] %v18793_v16 }
 0xe49   : > { %v13022_v7 = vpop.permute.xlu0 %13021 }
 0xe4a   : > { %v13024_v48 = vunpack.i.h.bf16 %v13022_v7  ;;  %v13023_v49 = vunpack.i.l.bf16 %v13022_v7 }
 0xe4c   : > { %v18797_v36 = vsel %vm9083_vm11, %v18232_v60, %v13024_v48  ;;  %v18801_v10 = vsel %vm9083_vm11, %v18235_v43, %v13023_v49  ;;  %v9165_v43 = vld [vmem:[%s13916_s24] sm:$0xff]  ;;  %v9202_v48 = vsel %vm446_vm0, %v9168_v8, 0.0 }
 0xe4d   : > { %20790 = vst [vmem:[#allocation70_spill] sm:$0xff] %v18797_v36  ;;  %20791 = vst [vmem:[#allocation210_spill] sm:$0xff] %v18801_v10  ;;  %v13032_v12 = vpop.permute.xlu0 %13031  ;;  %v9169_v49 = vld [vmem:[%s13916_s24 + $0x20] sm:$0xff]  ;;  %v9187_v36 = vld [vmem:[%s13916_s24 + $0xb0] sm:$0xff] }
 0xe4e   : > { %v13034_v42 = vunpack.i.h.bf16 %v13032_v12  ;;  %v13033_v58 = vunpack.i.l.bf16 %v13032_v12 }
 0xe50   : > { %v18805_v22 = vsel %vm9083_vm11, %v18240_v1, %v13034_v42  ;;  %v18809_v45 = vsel %vm9083_vm11, %v18243_v55, %v13033_v58  ;;  %v9166_v1 = vld [vmem:[%s13916_s24 + $0x8] sm:$0xff]  ;;  %v9197_v55 = vsel %vm446_vm0, %v9165_v43, 0.0  ;;  %v9204_v42 = vsel %vm446_vm0, %v9169_v49, 0.0 }
 0xe51   : > { %20792 = vst [vmem:[#allocation207_spill] sm:$0xff] %v18805_v22  ;;  %20793 = vst [vmem:[#allocation93_spill] sm:$0xff] %v18809_v45  ;;  %v9198_v40 = vsel %vm446_vm0, %v9166_v1, 0.0  ;;  %v9170_v58 = vld [vmem:[%s13916_s24 + $0x28] sm:$0xff] }
 0xe52   : > { %v9199_v31 = vadd.f32 %v9198_v40, %v9197_v55  ;;  %v9172_v55 = vld [vmem:[%s13916_s24 + $0x38] sm:$0xff] }
 0xe53   : > { %v9210_v3 = vsel %vm446_vm0, %v9172_v55, 0.0 }
 0xe54   : > { %v9201_v7 = vadd.f32 %v9200_v6, %v9199_v31  ;;  %v9173_v31 = vld [vmem:[%s13916_s24 + $0x40] sm:$0xff] }
 0xe55   : > { %v9212_v8 = vsel %vm446_vm0, %v9173_v31, 0.0 }
 0xe56   : > { %v9203_v12 = vadd.f32 %v9202_v48, %v9201_v7  ;;  %v9174_v7 = vld [vmem:[%s13916_s24 + $0x48] sm:$0xff] }
 0xe57   : > { %v9214_v49 = vsel %vm446_vm0, %v9174_v7, 0.0 }
 0xeee   : > { %v8196_v41 = vpop.f32.mrb[64].mxu1 }
 0xeef   : > { %v8200_v60 = vmul.f32 0.001953125, %v8196_v41  ;;  %v10912_v13 = vpop.f32.mrb[65].mxu1  ;;  %v9205_v41 = vadd.f32 %v9204_v42, %v9203_v12  ;;  %v9175_v12 = vld [vmem:[%s13916_s24 + $0x50] sm:$0xff] }
 0xef0   : > { %v9171_v13 = vld [vmem:[%s13916_s24 + $0x30] sm:$0xff] }
 0xef1   : > { %10918 = vmatmul.mubr.msk.f32.vlgmr.msra.gmra.mrb[66].mxu1 %vm2294_vm4, %v8200_v60  ;;  %v9206_v60 = vsel %vm446_vm0, %v9170_v58, 0.0  ;;  %v9208_v1 = vsel %vm446_vm0, %v9171_v13, 0.0  ;;  %v9216_v58 = vsel %vm446_vm0, %v9175_v12, 0.0 }
 0xef2   : > { %11092 = vmatpush3.bf16.msra.mxu1 %v20682_v9  ;;  %10935 = vmatprep.mubr.msk.f32.mxu1 %vm13307_vm10, %v20608_v37  ;;  %v9207_v43 = vadd.f32 %v9206_v60, %v9205_v41  ;;  %v9176_v41 = vld [vmem:[%s13916_s24 + $0x58] sm:$0xff] }
 0xef3   : > { %11093 = vmatprep.subr.bf16.mxu1 %v20519_v19  ;;  %v9218_v13 = vsel %vm446_vm0, %v9176_v41, 0.0 }
 0xef4   : > { %v9209_v40 = vadd.f32 %v9208_v1, %v9207_v43  ;;  %v9177_v43 = vld [vmem:[%s13916_s24 + $0x60] sm:$0xff] }
 0xef5   : > { %v9220_v55 = vsel %vm446_vm0, %v9177_v43, 0.0 }
 0xef6   : > { %v9211_v6 = vadd.f32 %v9210_v3, %v9209_v40  ;;  %v9178_v40 = vld [vmem:[%s13916_s24 + $0x68] sm:$0xff] }
 0xef7   : > { %v9222_v31 = vsel %vm446_vm0, %v9178_v40, 0.0 }
 0xef8   : > { %v9213_v48 = vadd.f32 %v9212_v8, %v9211_v6  ;;  %v9179_v6 = vld [vmem:[%s13916_s24 + $0x70] sm:$0xff] }
 0xef9   : > { %v9224_v7 = vsel %vm446_vm0, %v9179_v6, 0.0  ;;  %v20796_v6 = vld [vmem:[#allocation44_spill] sm:$0xff] }
 0xefa   : > { %v9215_v42 = vadd.f32 %v9214_v49, %v9213_v48  ;;  %v9180_v48 = vld [vmem:[%s13916_s24 + $0x78] sm:$0xff] }
 0xefb   : > { %v9226_v12 = vsel %vm446_vm0, %v9180_v48, 0.0 }
 0xefc   : > { %v9217_v60 = vadd.f32 %v9216_v58, %v9215_v42  ;;  %v9181_v42 = vld [vmem:[%s13916_s24 + $0x80] sm:$0xff] }
 0xefd   : > { %v9228_v41 = vsel %vm446_vm0, %v9181_v42, 0.0 }
 0xefe   : > { %v9219_v1 = vadd.f32 %v9218_v13, %v9217_v60  ;;  %v9230_v13 = vsel %vm446_vm0, %v9182_v15, 0.0 }
 0xf00   : > { %v9221_v3 = vadd.f32 %v9220_v55, %v9219_v1  ;;  %v20794_v1 = vld [vmem:[#allocation165_spill] sm:$0xff] }
 0xf02   : > { %v9223_v8 = vadd.f32 %v9222_v31, %v9221_v3  ;;  %v20795_v3 = vld [vmem:[#allocation45_spill] sm:$0xff] }
 0xf04   : > { %v9225_v49 = vadd.f32 %v9224_v7, %v9223_v8 }
 0xf06   : > { %v9227_v58 = vadd.f32 %v9226_v12, %v9225_v49 }
 0xf08   : > { %v9229_v60 = vadd.f32 %v9228_v41, %v9227_v58 }
 0xf0a   : > { %v9231_v22 = vadd.f32 %v9230_v13, %v9229_v60  ;;  %v9185_v13 = vld [vmem:[%s13916_s24 + $0xa0] sm:$0xff] }
 0xfc4   : > { %v8270_v43 = vpop.f32.mrb[66].mxu1 }
 0xfc5   : > { %v8277_v55 = vrot.slane %v8270_v43, %v20794_v1  ;;  %v10919_v40 = vpop.f32.mrb[67].mxu1 }
 0xfc6   : > { %v9236_v40 = vsel %vm446_vm0, %v9185_v13, 0.0 }
 0xfc7   : > { %v18854_v31 = vsub.f32 %v20795_v3, %v8277_v55  ;;  %v18857_v8 = vsub.f32 %v20796_v6, %v8277_v55  ;;  %v18860_v7 = vsub.f32 %v18519_v27, %v8277_v55  ;;  %v18863_v48 = vsub.f32 %v18523_v46, %v8277_v55  ;;  %v9186_v6 = vld [vmem:[%s13916_s24 + $0xa8] sm:$0xff] }
 0xfc8   : > { %v18866_v49 = vsub.f32 %v18553_v33, %v8277_v55  ;;  %v18869_v15 = vsub.f32 %v18569_v4, %v8277_v55  ;;  %v18872_v12 = vsub.f32 %v18547_v44, %v8277_v55  ;;  %v18875_v42 = vsub.f32 %v18559_v35, %v8277_v55 }
 0xfc9   : > { %v18878_v58 = vsub.f32 %v18610_v29, %v8277_v55  ;;  %v18881_v27 = vsub.f32 %v18622_v39, %v8277_v55  ;;  %v18884_v46 = vsub.f32 %v18602_v34, %v8277_v55  ;;  %v18887_v33 = vsub.f32 %v18616_v32, %v8277_v55 }
 0xfca   : > { %v18890_v4 = vsub.f32 %v18649_v52, %v8277_v55  ;;  %v18893_v44 = vsub.f32 %v18659_v51, %v8277_v55  ;;  %v18896_v35 = vsub.f32 %v18643_v25, %v8277_v55  ;;  %v18899_v29 = vsub.f32 %v18652_v20, %v8277_v55 }
 0xfcb   : > { %v18902_v39 = vsub.f32 %v18688_v18, %v8277_v55  ;;  %v18905_v34 = vsub.f32 %v18704_v50, %v8277_v55  ;;  %v18908_v32 = vsub.f32 %v18682_v28, %v8277_v55  ;;  %v18911_v52 = vsub.f32 %v18696_v17, %v8277_v55  ;;  %v9183_v50 = vld [vmem:[%s13916_s24 + $0x90] sm:$0xff] }
 0xfcc   : > { %v18914_v51 = vsub.f32 %v18720_v24, %v8277_v55  ;;  %v18917_v25 = vsub.f32 %v18726_v63, %v8277_v55  ;;  %v18920_v20 = vsub.f32 %v18718_v21, %v8277_v55  ;;  %v18923_v18 = vsub.f32 %v18722_v23, %v8277_v55 }
 0xfcd   : > { %v18927_v28 = vsub.f32 %v18736_v30, %v8277_v55  ;;  %v18930_v17 = vsub.f32 %v18742_v53, %v8277_v55  ;;  %v18933_v24 = vsub.f32 %v18734_v38, %v8277_v55  ;;  %v18936_v63 = vsub.f32 %v18738_v2, %v8277_v55  ;;  %v9184_v38 = vld [vmem:[%s13916_s24 + $0x98] sm:$0xff] }
 0xfce   : > { %v18939_v21 = vsub.f32 %v18752_v56, %v8277_v55  ;;  %v18942_v23 = vsub.f32 %v18758_v26, %v8277_v55  ;;  %v18945_v41 = vsub.f32 %v18750_v5, %v8277_v55  ;;  %v18948_v30 = vsub.f32 %v18754_v62, %v8277_v55 }
 0xfcf   : > { %v9232_v53 = vsel %vm446_vm0, %v9183_v50, 0.0  ;;  %v8310_v2 = vmul.f32 %v18854_v31, %v18854_v31  ;;  %v8311_v56 = vmul.f32 %v18857_v8, %v18857_v8  ;;  %v9234_v26 = vsel %vm446_vm0, %v9184_v38, 0.0 }
 0xfd0   : > { %v9233_v60 = vadd.f32 %v9232_v53, %v9231_v22  ;;  %v8312_v5 = vmul.f32 %v18860_v7, %v18860_v7  ;;  %v8313_v62 = vmul.f32 %v18863_v48, %v18863_v48  ;;  %v8314_v50 = vmul.f32 %v18866_v49, %v18866_v49 }
 0xfd1   : > { %v8342_v55 = vsel %vm2426_vm8, %v8310_v2, 0.0  ;;  %v8343_v22 = vsel %vm2426_vm8, %v8311_v56, 0.0  ;;  %v9238_v2 = vsel %vm446_vm0, %v9186_v6, 0.0  ;;  %v8316_v13 = vmul.f32 %v18872_v12, %v18872_v12 }
 0xfd2   : > { %v9235_v43 = vadd.f32 %v9234_v26, %v9233_v60  ;;  %v8344_v3 = vadd.f32 %v8343_v22, %v8342_v55  ;;  %v8345_v53 = vsel %vm2426_vm8, %v8312_v5, 0.0  ;;  %v8315_v60 = vmul.f32 %v18869_v15, %v18869_v15 }
 0xfd3   : > { %v8347_v26 = vsel %vm2426_vm8, %v8313_v62, 0.0  ;;  %v8349_v55 = vsel %vm2426_vm8, %v8314_v50, 0.0  ;;  %v8318_v6 = vmul.f32 %v18878_v58, %v18878_v58 }
 0xfd4   : > { %v8346_v38 = vadd.f32 %v8345_v53, %v8344_v3  ;;  %v9237_v45 = vadd.f32 %v9236_v40, %v9235_v43  ;;  %v8317_v43 = vmul.f32 %v18875_v42, %v18875_v42  ;;  %v8351_v40 = vsel %vm2426_vm8, %v8315_v60, 0.0  ;;  %v9188_v53 = vld [vmem:[%s13916_s24 + $0xb8] sm:$0xff] }
 0xfd5   : > { %v9240_v3 = vsel %vm446_vm0, %v9187_v36, 0.0  ;;  %v8320_v36 = vmul.f32 %v18884_v46, %v18884_v46 }
 0xfd6   : > { %v8348_v56 = vadd.f32 %v8347_v26, %v8346_v38  ;;  %v9239_v5 = vadd.f32 %v9238_v2, %v9237_v45  ;;  %v8353_v38 = vsel %vm2426_vm8, %v8316_v13, 0.0  ;;  %v8319_v45 = vmul.f32 %v18881_v27, %v18881_v27 }
 0xfd7   : > { %v8355_v2 = vsel %vm2426_vm8, %v8317_v43, 0.0 }
 0xfd8   : > { %v8350_v22 = vadd.f32 %v8349_v55, %v8348_v56  ;;  %v9241_v50 = vadd.f32 %v9240_v3, %v9239_v5  ;;  %v9242_v56 = vsel %vm446_vm0, %v9188_v53, 0.0  ;;  %v9189_v55 = vld [vmem:[%s13916_s24 + $0xc0] sm:$0xff]  ;;  %v8321_v5 = vmul.f32 %v18887_v33, %v18887_v33 }
 0xfd9   : > { %v8359_v3 = vsel %vm2426_vm8, %v8319_v45, 0.0  ;;  %v8322_v53 = vmul.f32 %v18890_v4, %v18890_v4 }
 0xfda   : > { %v8352_v62 = vadd.f32 %v8351_v40, %v8350_v22  ;;  %v8357_v22 = vsel %vm2426_vm8, %v8318_v6, 0.0  ;;  %v9243_v13 = vadd.f32 %v9242_v56, %v9241_v50  ;;  %v8323_v50 = vmul.f32 %v18893_v44, %v18893_v44 }
 0xfdb   : > { %v8363_v56 = vsel %vm2426_vm8, %v8321_v5, 0.0 }
 0xfdc   : > { %v8354_v26 = vadd.f32 %v8353_v38, %v8352_v62  ;;  %v9244_v62 = vsel %vm446_vm0, %v9189_v55, 0.0  ;;  %v9190_v38 = vld [vmem:[%s13916_s24 + $0xc8] sm:$0xff]  ;;  %v8324_v55 = vmul.f32 %v18896_v35, %v18896_v35 }
 0xfdd   : > { %v9245_v6 = vadd.f32 %v9244_v62, %v9243_v13  ;;  %v8325_v13 = vmul.f32 %v18899_v29, %v18899_v29  ;;  %v8367_v62 = vsel %vm2426_vm8, %v8323_v50, 0.0 }
 0xfde   : > { %v8356_v60 = vadd.f32 %v8355_v2, %v8354_v26  ;;  %v8361_v26 = vsel %vm2426_vm8, %v8320_v36, 0.0 }
 0xfe0   : > { %v8358_v40 = vadd.f32 %v8357_v22, %v8356_v60  ;;  %v9246_v60 = vsel %vm446_vm0, %v9190_v38, 0.0  ;;  %v9191_v22 = vld [vmem:[%s13916_s24 + $0xd0] sm:$0xff]  ;;  %v8326_v38 = vmul.f32 %v18902_v39, %v18902_v39 }
 0xfe1   : > { %v9247_v36 = vadd.f32 %v9246_v60, %v9245_v6  ;;  %v8327_v6 = vmul.f32 %v18905_v34, %v18905_v34  ;;  %v8371_v60 = vsel %vm2426_vm8, %v8325_v13, 0.0 }
 0xfe2   : > { %v8360_v43 = vadd.f32 %v8359_v3, %v8358_v40  ;;  %v8365_v40 = vsel %vm2426_vm8, %v8322_v53, 0.0 }
 0xfe4   : > { %v8362_v2 = vadd.f32 %v8361_v26, %v8360_v43  ;;  %v9248_v43 = vsel %vm446_vm0, %v9191_v22, 0.0  ;;  %v9192_v26 = vld [vmem:[%s13916_s24 + $0xd8] sm:$0xff]  ;;  %v8328_v22 = vmul.f32 %v18908_v32, %v18908_v32 }
 0xfe5   : > { %v9249_v53 = vadd.f32 %v9248_v43, %v9247_v36  ;;  %v8329_v36 = vmul.f32 %v18911_v52, %v18911_v52  ;;  %v8375_v43 = vsel %vm2426_vm8, %v8327_v6, 0.0 }
 0xfe6   : > { %v8364_v45 = vadd.f32 %v8363_v56, %v8362_v2  ;;  %v8369_v2 = vsel %vm2426_vm8, %v8324_v55, 0.0 }
 0xfe8   : > { %v8366_v3 = vadd.f32 %v8365_v40, %v8364_v45  ;;  %v9250_v45 = vsel %vm446_vm0, %v9192_v26, 0.0  ;;  %v9193_v40 = vld [vmem:[%s13916_s24 + $0xe0] sm:$0xff]  ;;  %v8330_v26 = vmul.f32 %v18914_v51, %v18914_v51 }
 0xfe9   : > { %v9251_v55 = vadd.f32 %v9250_v45, %v9249_v53  ;;  %v8331_v53 = vmul.f32 %v18917_v25, %v18917_v25  ;;  %v8379_v45 = vsel %vm2426_vm8, %v8329_v36, 0.0  ;;  %v9196_v36 = vld [vmem:[%s13916_s24 + $0xf8] sm:$0xff] }
 0xfea   : > { %v8368_v5 = vadd.f32 %v8367_v62, %v8366_v3  ;;  %v8373_v3 = vsel %vm2426_vm8, %v8326_v38, 0.0 }
 0xfec   : > { %v8370_v56 = vadd.f32 %v8369_v2, %v8368_v5  ;;  %v9252_v5 = vsel %vm446_vm0, %v9193_v40, 0.0  ;;  %v9194_v2 = vld [vmem:[%s13916_s24 + $0xe8] sm:$0xff]  ;;  %v8332_v40 = vmul.f32 %v18920_v20, %v18920_v20 }
 0xfed   : > { %v9253_v38 = vadd.f32 %v9252_v5, %v9251_v55  ;;  %v8383_v55 = vsel %vm2426_vm8, %v8331_v53, 0.0  ;;  %v8336_v53 = vmul.f32 %v18933_v24, %v18933_v24 }
 0xfee   : > { %v8372_v50 = vadd.f32 %v8371_v60, %v8370_v56  ;;  %v8377_v56 = vsel %vm2426_vm8, %v8328_v22, 0.0  ;;  %v8333_v22 = vmul.f32 %v18923_v18, %v18923_v18 }
 0xff0   : > { %v8374_v62 = vadd.f32 %v8373_v3, %v8372_v50  ;;  %v9254_v50 = vsel %vm446_vm0, %v9194_v2, 0.0  ;;  %v9195_v3 = vld [vmem:[%s13916_s24 + $0xf0] sm:$0xff]  ;;  %v8334_v2 = vmul.f32 %v18927_v28, %v18927_v28  ;;  %s19721_s24 = scalar_lea.hbm %s19782_s13, %s10445_s17 }
 0xff1   : > { %v9255_v10 = vadd.f32 %v9254_v50, %v9253_v38  ;;  %v9256_v5 = vsel %vm446_vm0, %v9195_v3, 0.0  ;;  %v8387_v38 = vsel %vm2426_vm8, %v8333_v22, 0.0  ;;  %v9258_v50 = vsel %vm446_vm0, %v9196_v36, 0.0 }
 0xff2   : > { %v8376_v13 = vadd.f32 %v8375_v43, %v8374_v62  ;;  %v8381_v62 = vsel %vm2426_vm8, %v8330_v26, 0.0  ;;  %v8335_v26 = vmul.f32 %v18930_v17, %v18930_v17  ;;  %v8389_v3 = vsel %vm2426_vm8, %v8334_v2, 0.0 }
 0xff3   : > { %v8393_v22 = vsel %vm2426_vm8, %v8336_v53, 0.0 }
 0xff4   : > { %v8378_v60 = vadd.f32 %v8377_v56, %v8376_v13  ;;  %v8385_v56 = vsel %vm2426_vm8, %v8332_v40, 0.0  ;;  %v8337_v40 = vmul.f32 %v18936_v63, %v18936_v63 }
 0xff6   : > { %v8380_v6 = vadd.f32 %v8379_v45, %v8378_v60  ;;  %v9257_v45 = vadd.f32 %v9256_v5, %v9255_v10  ;;  %v8391_v10 = vsel %vm2426_vm8, %v8335_v26, 0.0  ;;  %v8338_v5 = vmul.f32 %v18939_v21, %v18939_v21 }
 0xff7   : > { %v8395_v2 = vsel %vm2426_vm8, %v8337_v40, 0.0 }
 0xff8   : > { %v8382_v43 = vadd.f32 %v8381_v62, %v8380_v6 }
 0xffa   : > { %v8384_v13 = vadd.f32 %v8383_v55, %v8382_v43  ;;  %v9259_v43 = vadd.f32 %v9258_v50, %v9257_v45  ;;  %v8340_v45 = vmul.f32 %v18945_v41, %v18945_v41 }
 0xffc   : > { %v8386_v60 = vadd.f32 %v8385_v56, %v8384_v13  ;;  %v9260_v36 = vrot.slane %v9259_v43, 4  ;;  %v8339_v56 = vmul.f32 %v18942_v23, %v18942_v23 }
 0xffe   : > { %v8388_v6 = vadd.f32 %v8387_v38, %v8386_v60  ;;  %v8397_v38 = vsel %vm2426_vm8, %v8338_v5, 0.0  ;;  %v9261_v50 = vadd.f32 %v9260_v36, %v9259_v43  ;;  %v8399_v53 = vsel %vm2426_vm8, %v8339_v56, 0.0  ;;  %v9268_v56 = vld [vmem:[%s19773_s4] sm:$0xf] }
0x1000   : > { %v8390_v62 = vadd.f32 %v8389_v3, %v8388_v6  ;;  %v8341_v6 = vmul.f32 %v18948_v30, %v18948_v30 }
0x1002   : > { %v8392_v55 = vadd.f32 %v8391_v10, %v8390_v62  ;;  %v8401_v62 = vsel %vm2426_vm8, %v8340_v45, 0.0  ;;  %v8403_v40 = vsel %vm2426_vm8, %v8341_v6, 0.0 }
0x1004   : > { %v8394_v13 = vadd.f32 %v8393_v22, %v8392_v55  ;;  %v9262_v55 = vrot.slane %v9261_v50, 2 }
0x1006   : > { %v8396_v60 = vadd.f32 %v8395_v2, %v8394_v13  ;;  %v9263_v2 = vadd.f32 %v9262_v55, %v9261_v50 }
0x1008   : > { %v8398_v26 = vadd.f32 %v8397_v38, %v8396_v60  ;;  %v9264_v5 = vrot.slane %v9263_v2, 1 }
0x100a   : > { %v8400_v3 = vadd.f32 %v8399_v53, %v8398_v26  ;;  %v9265_v36 = vadd.f32 %v9264_v5, %v9263_v2 }
0x100c   : > { %v8402_v10 = vadd.f32 %v8401_v62, %v8400_v3  ;;  %v9267_v45 = vmul.f32 0.00390625, %v9265_v36  ;;  %v20797_v62 = vld [vmem:[#allocation85_spill] sm:$0xff] }
0x100e   : > { %v8404_v22 = vadd.f32 %v8403_v40, %v8402_v10  ;;  %v20798_v10 = vld [vmem:[#allocation86_spill] sm:$0xff] }
0x1010   : > { %v8405_v13 = vrot.slane %v8404_v22, 4 }
0x1012   : > { %v8406_v16 = vadd.f32 %v8405_v13, %v8404_v22  ;;  %v10412_v22 = vld [vmem:[%s19771_s2 + $0x3] sm:$0x1] }
0x1014   : > { %v8407_v57 = vrot.slane %v8406_v16, 2 }
0x1016   : > { %v8408_v60 = vadd.f32 %v8407_v57, %v8406_v16 }
0x1018   : > { %v8409_v43 = vrot.slane %v8408_v60, 1 }
0x101a   : > { %v8410_v38 = vadd.f32 %v8409_v43, %v8408_v60 }
0x101c   : > { %10929 = vmatmul.mubr.msk.f32.vlgmr.msra.gmra.mrb[88].mxu0 %vm2426_vm8, %v8410_v38 }
0x101d   : > { %10939 = vmatpush3.msk.msra.mxu0 %vm9272_vm12, %v9268_v56  ;;  %10940 = vmatprep.mubr.msk.f32.mxu0 %vm13307_vm10, %v20608_v37  ;;  %v19116_v56 = vld [vmem:[%s19772_s3 + $0x3] ss:$0 sm:$0xff] }
0x101e   : > { %11099 = vmatprep.subr.bf16.mxu0 %v20519_v19 }
0x1020   : > { %10941 = vmatmul.mubr.msk.f32.vlgmr.msra.gmra.mrb[90].mxu0 %vm446_vm0, %v9267_v45 }
0x1021   : > { %11101 = vmatpush3.bf16.msra.mxu0 %v20682_v9  ;;  %10958 = vmatprep.mubr.msk.f32.mxu0 %vm13307_vm10, %v20608_v37 }
0x1022   : > { %11102 = vmatprep.subr.bf16.mxu0 %v20519_v19 }
0x10ef   : > { %v8480_v57 = vpop.f32.mrb[88].mxu0 }
0x10f0   : > { %v8484_v16 = vmul.f32 0.001953125, %v8480_v57  ;;  %v10930_v26 = vpop.f32.mrb[89].mxu0 }
0x10f2   : > { %v8485_v50 = vadd.f32 1e-05, %v8484_v16 }
0x10f3   : > { %v19085_v6 = vpop.f32.mrb[90].mxu0 }
0x10f4   : > { %13210 = vrsqrt.f32 %v8485_v50  ;;  %v10942_v53 = vpop.f32.mrb[91].mxu0 }
0x10fe   : > { %v13211_v3 = vpop.eup %13210 }
0x10ff   : > { %10936 = vmatmul.mubr.msk.f32.vlgmr.msra.gmra.mrb[68].mxu1 %vm2294_vm4, %v13211_v3 }
0x1100   : > { %11095 = vmatpush3.bf16.msra.mxu1 %v20797_v62  ;;  %10951 = vmatprep.mubr.msk.f32.mxu1 %vm13307_vm10, %v20608_v37 }
0x1101   : > { %11096 = vmatprep.subr.bf16.mxu1 %v20519_v19 }
0x1104   : > { %11098 = vmatpush3.bf16.msra.mxu1 %v20798_v10 }
0x1105   : > { %11108 = vmatprep.subr.bf16.mxu1 %v20519_v19 }
0x1107   : > { %10952 = vmatmul.mubr.msk.f32.vlgmr.msra.gmra.mrb[70].mxu1 %vm2426_vm8, %v19085_v6 }
0x1108   : > { %11110 = vmatpush3.bf16.msra.mxu1 %v20682_v9  ;;  %10976 = vmatprep.mubr.msk.f32.mxu1 %vm13307_vm10, %v20608_v37 }
0x11d2   : > { %v8556_v55 = vpop.f32.mrb[68].mxu1 }
0x11d3   : > { %v10937_v40 = vpop.f32.mrb[69].mxu1  ;;  %v8560_v2 = vmul.f32 %v10412_v22, %v8556_v55 }
0x11d5   : > { %v19103_v60 = vrot.slane %v8560_v2, %v20794_v1 }
0x11d7   : > { %v8565_v43 = vmul.f32 %v19103_v60, %v18854_v31  ;;  %v8566_v9 = vmul.f32 %v19103_v60, %v18857_v8  ;;  %v8581_v36 = vmul.f32 %v19103_v60, %v18902_v39  ;;  %v8582_v38 = vmul.f32 %v19103_v60, %v18905_v34 }
0x11d8   : > { %v8583_v8 = vmul.f32 %v19103_v60, %v18908_v32  ;;  %v8584_v39 = vmul.f32 %v19103_v60, %v18911_v52  ;;  %v8567_v3 = vmul.f32 %v19103_v60, %v18860_v7  ;;  %v8568_v55 = vmul.f32 %v19103_v60, %v18863_v48 }
0x11d9   : > { %v8603_v45 = vadd.f32 %v19116_v56, %v8565_v43  ;;  %v8604_v57 = vadd.f32 %v19116_v56, %v8566_v9  ;;  %v8619_v31 = vadd.f32 %v19116_v56, %v8581_v36  ;;  %v8620_v16 = vadd.f32 %v19116_v56, %v8582_v38 }
0x11da   : > { %v9418_v13 = vpop.f32.mrb[70].mxu1  ;;  %v8621_v40 = vadd.f32 %v19116_v56, %v8583_v8  ;;  %v8622_v22 = vadd.f32 %v19116_v56, %v8584_v39  ;;  %v8605_v43 = vadd.f32 %v19116_v56, %v8567_v3  ;;  %v8606_v52 = vadd.f32 %v19116_v56, %v8568_v55 }
0x11db   : > { %v10953_v5 = vpop.f32.mrb[71].mxu1  ;;  %v8635_v34 = vmax.f32 %v8603_v45, 0.0  ;;  %v8636_v26 = vmax.f32 %v8604_v57, 0.0  ;;  %v8651_v50 = vmax.f32 %v8619_v31, 0.0  ;;  %v8652_v53 = vmax.f32 %v8620_v16, 0.0 }
0x11dc   : > { %v9422_v2 = vmul.f32 0.5, %v9418_v13  ;;  %v8585_v7 = vmul.f32 %v19103_v60, %v18914_v51  ;;  %v8586_v48 = vmul.f32 %v19103_v60, %v18917_v25  ;;  %v8653_v13 = vmax.f32 %v8621_v40, 0.0 }
0x11dd   : > { %v13050_v5 = vpack.i.bf16 %v8652_v53, %v8651_v50  ;;  %v13060_v32 = vpack.i.bf16 %v8636_v26, %v8635_v34  ;;  %v8654_v9 = vmax.f32 %v8622_v22, 0.0  ;;  %v8569_v36 = vmul.f32 %v19103_v60, %v18866_v49  ;;  %v20799_v34 = vld [vmem:[#allocation198_spill] sm:$0xff]  ;;  %v20800_v26 = vld [vmem:[#allocation199_spill] sm:$0xff] }
0x11de   : > { %10959 = vmatmul.mubr.msk.f32.vlgmr.msra.gmra.mrb[92].mxu0 %vm2294_vm4, %v9422_v2  ;;  %v8570_v38 = vmul.f32 %v19103_v60, %v18869_v15  ;;  %v8637_v45 = vmax.f32 %v8605_v43, 0.0  ;;  %v8638_v57 = vmax.f32 %v8606_v52, 0.0  ;;  %v8623_v51 = vadd.f32 %v19116_v56, %v8585_v7 }
0x11df   : > { %13051 = vrot.lane.b32.xlu0 %v13050_v5, %s13309_s22  ;;  %13061 = vrot.lane.b32.xlu1 %v13060_v32, %s13309_s22  ;;  %v13070_v25 = vpack.i.bf16 %v8654_v9, %v8653_v13  ;;  %v8607_v49 = vadd.f32 %v19116_v56, %v8569_v36  ;;  %v8572_v16 = vmul.f32 %v19103_v60, %v18875_v42 }
0x11e0   : > { %11104 = vmatpush3.bf16.msra.mxu0 %v20797_v62  ;;  %10969 = vmatprep.mubr.msk.f32.mxu0 %vm13307_vm10, %v20608_v37  ;;  %v8624_v37 = vadd.f32 %v19116_v56, %v8586_v48  ;;  %v8608_v15 = vadd.f32 %v19116_v56, %v8570_v38  ;;  %v13080_v62 = vpack.i.bf16 %v8638_v57, %v8637_v45  ;;  %v20801_v57 = vld [vmem:[#allocation204_spill] sm:$0xff] }
0x11e1   : > { %11105 = vmatprep.subr.bf16.mxu0 %v20519_v19  ;;  %v8587_v19 = vmul.f32 %v19103_v60, %v18920_v20  ;;  %v8639_v8 = vmax.f32 %v8607_v49, 0.0  ;;  %v8589_v42 = vmul.f32 %v19103_v60, %v18927_v28  ;;  %v8590_v55 = vmul.f32 %v19103_v60, %v18930_v17 }
0x11e2   : > { %v8656_v31 = vmax.f32 %v8624_v37, 0.0  ;;  %v8640_v39 = vmax.f32 %v8608_v15, 0.0  ;;  %v8573_v2 = vmul.f32 %v19103_v60, %v18878_v58  ;;  %v8574_v5 = vmul.f32 %v19103_v60, %v18881_v27 }
0x11e3   : > { %13056 = vrot.lane.b32.xlu0 %v18677_v59, %s13308_s14  ;;  %13066 = vrot.lane.b32.xlu1 %v18684_v11, %s13308_s14  ;;  %v8588_v59 = vmul.f32 %v19103_v60, %v18923_v18  ;;  %v8655_v11 = vmax.f32 %v8623_v51, 0.0  ;;  %v8625_v20 = vadd.f32 %v19116_v56, %v8587_v19  ;;  %v8627_v28 = vadd.f32 %v19116_v56, %v8589_v42  ;;  %v20802_v51 = vld [vmem:[#allocation202_spill] sm:$0xff] }
0x11e4   : > { %11107 = vmatpush3.bf16.msra.mxu0 %v20798_v10  ;;  %v8571_v10 = vmul.f32 %v19103_v60, %v18872_v12  ;;  %v8610_v12 = vadd.f32 %v19116_v56, %v8572_v16  ;;  %v13100_v3 = vpack.i.bf16 %v8640_v39, %v8639_v8  ;;  %v8628_v17 = vadd.f32 %v19116_v56, %v8590_v55 }
0x11e5   : > { %v8626_v18 = vadd.f32 %v19116_v56, %v8588_v59  ;;  %v13090_v50 = vpack.i.bf16 %v8656_v31, %v8655_v11  ;;  %v8657_v40 = vmax.f32 %v8625_v20, 0.0  ;;  %v8611_v7 = vadd.f32 %v19116_v56, %v8573_v2  ;;  %v20805_v2 = vld [vmem:[#allocation43_spill] sm:$0xff] }
0x11e6   : > { %v8609_v53 = vadd.f32 %v19116_v56, %v8571_v10  ;;  %v8642_v43 = vmax.f32 %v8610_v12, 0.0  ;;  %v8612_v58 = vadd.f32 %v19116_v56, %v8574_v5  ;;  %v8659_v27 = vmax.f32 %v8627_v28, 0.0  ;;  %v20804_v12 = vld [vmem:[#allocation206_spill] sm:$0xff] }
0x11e7   : > { %13071 = vrot.lane.b32.xlu0 %v13070_v25, %s13309_s22  ;;  %13081 = vrot.lane.b32.xlu1 %v13080_v62, %s13309_s22  ;;  %v8658_v22 = vmax.f32 %v8626_v18, 0.0  ;;  %v8660_v13 = vmax.f32 %v8628_v17, 0.0  ;;  %v8575_v9 = vmul.f32 %v19103_v60, %v18884_v46  ;;  %v8576_v36 = vmul.f32 %v19103_v60, %v18887_v33 }
0x11e8   : > { %v8641_v32 = vmax.f32 %v8609_v53, 0.0  ;;  %v8643_v38 = vmax.f32 %v8611_v7, 0.0  ;;  %v8644_v45 = vmax.f32 %v8612_v58, 0.0  ;;  %v8593_v33 = vmul.f32 %v19103_v60, %v18939_v21  ;;  %v20803_v53 = vld [vmem:[#allocation200_spill] sm:$0xff]  ;;  %v20806_v58 = vld [vmem:[#allocation182_spill] sm:$0xff] }
0x11e9   : > { %v13110_v52 = vpack.i.bf16 %v8658_v22, %v8657_v40  ;;  %v13130_v37 = vpack.i.bf16 %v8660_v13, %v8659_v27  ;;  %v8613_v25 = vadd.f32 %v19116_v56, %v8575_v9  ;;  %v8614_v46 = vadd.f32 %v19116_v56, %v8576_v36  ;;  %v13226_v9 = vld [vmem:[%s19772_s3] ss:$0 sm:$0xff] }
0x11ea   : > { %v13120_v48 = vpack.i.bf16 %v8642_v43, %v8641_v32  ;;  %v13140_v49 = vpack.i.bf16 %v8644_v45, %v8643_v38  ;;  %v8594_v15 = vmul.f32 %v19103_v60, %v18942_v23  ;;  %v8577_v59 = vmul.f32 %v19103_v60, %v18890_v4  ;;  %v20809_v45 = vld [vmem:[#allocation203_spill] sm:$0xff] }
0x11eb   : > { %13076 = vrot.lane.b32.xlu0 %v20799_v34, %s20187_s20  ;;  %13086 = vrot.lane.b32.xlu1 %v20800_v26, %s20187_s20  ;;  %v8578_v11 = vmul.f32 %v19103_v60, %v18893_v44  ;;  %v8645_v31 = vmax.f32 %v8613_v25, 0.0  ;;  %v8646_v10 = vmax.f32 %v8614_v46, 0.0  ;;  %v8631_v21 = vadd.f32 %v19116_v56, %v8593_v33  ;;  %v20810_v33 = vld [vmem:[#allocation212_spill] sm:$0xff] }
0x11ec   : > { %v8632_v23 = vadd.f32 %v19116_v56, %v8594_v15  ;;  %v8615_v8 = vadd.f32 %v19116_v56, %v8577_v59  ;;  %v8579_v26 = vmul.f32 %v19103_v60, %v18896_v35  ;;  %v8580_v20 = vmul.f32 %v19103_v60, %v18899_v29 }
0x11ed   : > { %v8616_v4 = vadd.f32 %v19116_v56, %v8578_v11  ;;  %v13160_v39 = vpack.i.bf16 %v8646_v10, %v8645_v31  ;;  %v8663_v44 = vmax.f32 %v8631_v21, 0.0  ;;  %v13014_v15 = vunpack.i.h.bf16 %v20810_v33  ;;  %v20812_v11 = vld [vmem:[#allocation114_spill] sm:$0xff] }
0x11ee   : > { %v8664_v34 = vmax.f32 %v8632_v23, 0.0  ;;  %v8647_v18 = vmax.f32 %v8615_v8, 0.0  ;;  %v8617_v42 = vadd.f32 %v19116_v56, %v8579_v26  ;;  %v8618_v35 = vadd.f32 %v19116_v56, %v8580_v20 }
0x11ef   : > { %13091 = vrot.lane.b32.xlu0 %v13090_v50, %s13309_s22  ;;  %13101 = vrot.lane.b32.xlu1 %v13100_v3, %s13309_s22  ;;  %v8648_v50 = vmax.f32 %v8616_v4, 0.0  ;;  %v3272_v31 = vmax.f32 %v20812_v11, 0.0  ;;  %v20817_v11 = vld [vmem:[#allocation121_spill] sm:$0xff] }
0x11f0   : > { %v13170_v3 = vpack.i.bf16 %v8664_v34, %v8663_v44  ;;  %v8649_v40 = vmax.f32 %v8617_v42, 0.0  ;;  %v8650_v22 = vmax.f32 %v8618_v35, 0.0 }
0x11f1   : > { %v13180_v55 = vpack.i.bf16 %v8648_v50, %v8647_v18 }
0x11f2   : > { %v13195_v32 = vpack.i.bf16 %v8650_v22, %v8649_v40 }
0x11f3   : > { %13096 = vrot.lane.b32.xlu0 %v18686_v14, %s13308_s14  ;;  %13106 = vrot.lane.b32.xlu1 %v18690_v61, %s13308_s14  ;;  %v8591_v14 = vmul.f32 %v19103_v60, %v18933_v24  ;;  %v8592_v61 = vmul.f32 %v19103_v60, %v18936_v63 }
0x11f5   : > { %v8629_v24 = vadd.f32 %v19116_v56, %v8591_v14  ;;  %v8630_v63 = vadd.f32 %v19116_v56, %v8592_v61  ;;  %v20808_v61 = vld [vmem:[#allocation183_spill] sm:$0xff] }
0x11f7   : > { %13111 = vrot.lane.b32.xlu0 %v13110_v52, %s13309_s22  ;;  %13121 = vrot.lane.b32.xlu1 %v13120_v48, %s13309_s22  ;;  %v8661_v62 = vmax.f32 %v8629_v24, 0.0  ;;  %v8662_v19 = vmax.f32 %v8630_v63, 0.0  ;;  %v20807_v48 = vld [vmem:[#allocation108_spill] sm:$0xff]  ;;  %v19275_v24 = vpop.permute.xlu0 %13041 }
0x11f8   : > { %v3217_v14 = vmul.f32 %v20807_v48, %v20806_v58  ;;  %v3218_v27 = vmul.f32 %v20807_v48, %v20808_v61 }
0x11f9   : > { %v13150_v16 = vpack.i.bf16 %v8662_v19, %v8661_v62  ;;  %v13013_v62 = vunpack.i.l.bf16 %v20810_v33  ;;  %v20811_v19 = vld [vmem:[#allocation113_spill] sm:$0xff] }
0x11fa   : > { %v3255_v36 = vadd.f32 %v13226_v9, %v3217_v14  ;;  %v3256_v38 = vadd.f32 %v13226_v9, %v3218_v27  ;;  %v3271_v59 = vmax.f32 %v20811_v19, 0.0 }
0x11fb   : > { %13116 = vrot.lane.b32.xlu0 %v20801_v57, %s20187_s20  ;;  %13126 = vrot.lane.b32.xlu1 %v20802_v51, %s20187_s20  ;;  %v12964_v57 = vunpack.i.h.bf16 %v20809_v45  ;;  %v12963_v51 = vunpack.i.l.bf16 %v20809_v45 }
0x11fc   : > { %v3287_v46 = vmax.f32 %v3255_v36, 0.0 }
0x11ff   : > { %13131 = vrot.lane.b32.xlu0 %v13130_v37, %s13309_s22  ;;  %13141 = vrot.lane.b32.xlu1 %v13140_v49, %s13309_s22  ;;  %v3288_v49 = vmax.f32 %v3256_v38, 0.0 }
0x1201   : > { %v9068_v23 = vsel %vm2426_vm8, %v3288_v49, %v12964_v57  ;;  %v20815_v57 = vld [vmem:[#allocation210_spill] sm:$0xff] }
0x1202   : > { %v9101_v34 = vsel %vm9083_vm11, %v9068_v23, %v13014_v15  ;;  %v20818_v23 = vld [vmem:[#allocation118_spill] sm:$0xff] }
0x1203   : > { %13136 = vrot.lane.b32.xlu0 %v18692_v0, %s13308_s14  ;;  %13146 = vrot.lane.b32.xlu1 %v18694_v47, %s13308_s14  ;;  %v8595_v0 = vmul.f32 %v19103_v60, %v18945_v41  ;;  %v8596_v47 = vmul.f32 %v19103_v60, %v18948_v30 }
0x1205   : > { %v8633_v41 = vadd.f32 %v19116_v56, %v8595_v0  ;;  %v8634_v30 = vadd.f32 %v19116_v56, %v8596_v47  ;;  %v12967_v56 = vpop.permute.xlu1 %12966 }
0x1206   : > { %v12969_v63 = vunpack.i.h.bf16 %v12967_v56  ;;  %v12968_v37 = vunpack.i.l.bf16 %v12967_v56  ;;  %v20814_v56 = vld [vmem:[#allocation116_spill] sm:$0xff] }
0x1207   : > { %13151 = vrot.lane.b32.xlu0 %v13150_v16, %s13309_s22  ;;  %13161 = vrot.lane.b32.xlu1 %v13160_v39, %s13309_s22  ;;  %v8665_v29 = vmax.f32 %v8633_v41, 0.0  ;;  %v8666_v60 = vmax.f32 %v8634_v30, 0.0  ;;  %v9067_v16 = vsel %vm2426_vm8, %v3287_v46, %v12963_v51  ;;  %v20816_v51 = vld [vmem:[#allocation70_spill] sm:$0xff] }
0x1208   : > { %v9052_v4 = vsel %vm2426_vm8, %v3272_v31, %v12969_v63  ;;  %v9051_v39 = vsel %vm2426_vm8, %v3271_v59, %v12968_v37  ;;  %v9100_v26 = vsel %vm9083_vm11, %v9067_v16, %v13013_v62  ;;  %v3276_v31 = vmax.f32 %v20817_v11, 0.0  ;;  %v20824_v11 = vld [vmem:[#allocation208_spill] sm:$0xff] }
0x1209   : > { %v13190_v5 = vpack.i.bf16 %v8666_v60, %v8665_v29  ;;  %v19256_v43 = vpop.permute.xlu1 %12976  ;;  %v3275_v16 = vmax.f32 %v20818_v23, 0.0 }
0x120a   : > { %v12979_v60 = vunpack.i.h.bf16 %v19256_v43  ;;  %v12978_v40 = vunpack.i.l.bf16 %v19256_v43 }
0x120b   : > { %13156 = vrot.lane.b32.xlu0 %v20803_v53, %s20187_s20  ;;  %13166 = vrot.lane.b32.xlu1 %v20804_v12, %s20187_s20 }
0x120d   : > { %v19258_v28 = vpop.permute.xlu1 %12986 }
0x120e   : > { %v12989_v15 = vunpack.i.h.bf16 %v19258_v28  ;;  %v12988_v59 = vunpack.i.l.bf16 %v19258_v28 }
0x120f   : > { %13171 = vrot.lane.b32.xlu0 %v13170_v3, %s13309_s22  ;;  %13181 = vrot.lane.b32.xlu1 %v13180_v55, %s13309_s22 }
0x1211   : > { %v19260_v17 = vpop.permute.xlu1 %12996 }
0x1213   : > { %13176 = vrot.lane.b32.xlu0 %v18698_v54, %s13308_s14  ;;  %13186 = vrot.lane.b32.xlu1 %v20805_v2, %s13308_s14 }
0x1215   : > { %v19262_v52 = vpop.permute.xlu1 %13006 }
0x1217   : > { %13191 = vrot.lane.b32.xlu0 %v13190_v5, %s13309_s22  ;;  %13196 = vrot.lane.b32.xlu1 %v13195_v32, %s13309_s22  ;;  %v20813_v5 = vld [vmem:[#allocation115_spill] sm:$0xff]  ;;  %s10315_s22 = sshll.u32 %s431_s27, 6 }
0x1218   : > { %v3273_v32 = vmax.f32 %v20813_v5, 0.0  ;;  %s433_s20 = scalar_lea.vmem [#allocation3], %s10315_s22 }
0x1219   : > { %v13017_v7 = vpop.permute.xlu1 %13016  ;;  %s10249_s23 = sshll.u32 %s433_s20, 4  ;;  %s19723_s23 = int_to_ptr.vmem [resolvable:$true] %s10249_s23 }
0x121a   : > { %v13019_v10 = vunpack.i.h.bf16 %v13017_v7  ;;  %v13018_v21 = vunpack.i.l.bf16 %v13017_v7  ;;  %v3274_v7 = vmax.f32 %v20814_v56, 0.0  ;;  %v9053_v9 = vsel %vm2426_vm8, %v3273_v32, %v12978_v40  ;;  %v20821_v32 = vld [vmem:[#allocation119_spill] sm:$0xff]  ;;  %s13233_s19 = scalar_lea.vmem %s19723_s23, 1024  ;;  %p13240_p0 = scmp.lt.s32.totalorder %s19723_s23, %s13238_s15 }
0x121b   : > { %v3277_v56 = vmax.f32 %v20821_v32, 0.0  ;;  %p13234_p11 = scmp.ne.s32.totalorder %s19723_s23, %s13233_s19  ;;  %p13241_p1 = scmp.lt.s32.totalorder %s13239_s16, %s13233_s19 }
0x121c   : > { %v9085_v50 = vsel %vm9083_vm11, %v9052_v4, %v13019_v10  ;;  %v9084_v53 = vsel %vm9083_vm11, %v9051_v39, %v13018_v21  ;;  %v9054_v27 = vsel %vm2426_vm8, %v3274_v7, %v12979_v60  ;;  %v9056_v4 = vsel %vm2426_vm8, %v3276_v31, %v12989_v15  ;;  %v20822_v7 = vld [vmem:[#allocation117_spill] sm:$0xff] }
0x121d   : > { %v13027_v54 = vpop.permute.xlu1 %13026  ;;  %p13235_p12 = pnand %p13234_p11, %p13421_p5  ;;  %p13242_p2 = por %p13241_p1, %p13240_p0 }
0x121e   : > { %v13029_v22 = vunpack.i.h.bf16 %v13027_v54  ;;  %v13028_v2 = vunpack.i.l.bf16 %v13027_v54 }
0x121f   : > { %p13236_p13 = pneg %p13235_p12 }
0x1220   : > { %v9087_v45 = vsel %vm9083_vm11, %v9054_v27, %v13029_v22  ;;  %v9086_v43 = vsel %vm9083_vm11, %v9053_v9, %v13028_v2 }
0x1221   : > { %v19268_v13 = vpop.permute.xlu1 %13036  ;;  %p13243_p3 = pnand %p13242_p2, %p13236_p13 }
0x1222   : > { %v13039_v10 = vunpack.i.h.bf16 %v19268_v13  ;;  %v13038_v21 = vunpack.i.l.bf16 %v19268_v13 }
0x1225   : > { %v19277_v25 = vpop.permute.xlu1 %13046 }
0x1251   : > { %v13052_v8 = vpop.permute.xlu0 %13051  ;;  %v13062_v44 = vpop.permute.xlu1 %13061 }
0x1252   : > { %v13054_v0 = vunpack.i.h.bf16 %v13052_v8  ;;  %v13053_v47 = vunpack.i.l.bf16 %v13052_v8  ;;  %v13064_v20 = vunpack.i.h.bf16 %v13062_v44  ;;  %v13063_v18 = vunpack.i.l.bf16 %v13062_v44 }
0x1253   : > { %v9055_v44 = vsel %vm2426_vm8, %v3275_v16, %v12988_v59 }
0x1254   : > { %v9133_v12 = vsel %vm9116_vm13, %v9100_v26, %v13053_v47  ;;  %v9134_v41 = vsel %vm9116_vm13, %v9101_v34, %v13054_v0  ;;  %v19294_v30 = vsel %vm9116_vm13, %v9085_v50, %v13064_v20  ;;  %v19297_v3 = vsel %vm9116_vm13, %v9084_v53, %v13063_v18  ;;  %v20819_v50 = vld [vmem:[#allocation93_spill] sm:$0xff]  ;;  %v20820_v53 = vld [vmem:[#allocation207_spill] sm:$0xff] }
0x1255   : > { %v19299_v42 = vpop.permute.xlu0 %13056  ;;  %v9157_v35 = vpack.c.bf16 %v9134_v41, %v9133_v12  ;;  %v9149_v55 = vpack.c.bf16 %v19294_v30, %v19297_v3  ;;  %v19303_v29 = vpop.permute.xlu1 %13066  ;;  %v12999_v34 = vunpack.i.h.bf16 %v19260_v17  ;;  %v9089_v20 = vsel %vm9083_vm11, %v9056_v4, %v13039_v10  ;;  %v13203_v30 = vld [vmem:[%s19776_s7 + $0x8] sm:$0xff]   ;;  %v9346_v3 = vld [vmem:[%s19774_s5] sm:$0x1] }
0x1256   : > { %v9088_v18 = vsel %vm9083_vm11, %v9055_v44, %v13038_v21  ;;  %v12998_v41 = vunpack.i.l.bf16 %v19260_v17  ;;  %v3278_v17 = vmax.f32 %v20822_v7, 0.0 }
0x1257   : > { %10602 = vmatprep.subr.bf16.mxu1 %v9157_v35 }
0x1258   : > { %v9058_v27 = vsel %vm2426_vm8, %v3278_v17, %v12999_v34  ;;  %v9057_v9 = vsel %vm2426_vm8, %v3277_v56, %v12998_v41  ;;  %v20827_v41 = vld [vmem:[#allocation120_spill] sm:$0xff]  ;;  %v20828_v56 = vld [vmem:[#allocation123_spill] sm:$0xff]  ;;  %v20829_v17 = vld [vmem:[#allocation129_spill] sm:$0xff] }
0x1259   : > { %v13072_v58 = vpop.permute.xlu0 %13071  ;;  %v13082_v61 = vpop.permute.xlu1 %13081  ;;  %v3279_v32 = vmax.f32 %v20827_v41, 0.0  ;;  %v3280_v7 = vmax.f32 %v20828_v56, 0.0  ;;  %v20832_v56 = vld [vmem:[#allocation133_spill] sm:$0xff] }
0x125a   : > { %v13074_v48 = vunpack.i.h.bf16 %v13072_v58  ;;  %v13073_v14 = vunpack.i.l.bf16 %v13072_v58  ;;  %v13084_v36 = vunpack.i.h.bf16 %v13082_v61  ;;  %v13083_v38 = vunpack.i.l.bf16 %v13082_v61 }
0x125b   : > { %v13044_v58 = vunpack.i.h.bf16 %v19275_v24  ;;  %v13048_v61 = vunpack.i.l.bf16 %v19277_v25 }
0x125c   : > { %v19315_v54 = vsel %vm9116_vm13, %v20815_v57, %v13073_v14  ;;  %v19319_v63 = vsel %vm9116_vm13, %v20816_v51, %v13074_v48  ;;  %v19322_v37 = vsel %vm9116_vm13, %v9087_v45, %v13084_v36  ;;  %v19325_v46 = vsel %vm9116_vm13, %v9086_v43, %v13083_v38  ;;  %v20823_v36 = vld [vmem:[#allocation42_spill] sm:$0xff] }
0x125d   : > { %v19327_v49 = vpop.permute.xlu0 %13076  ;;  %v9158_v33 = vpack.c.bf16 %v19319_v63, %v19315_v54  ;;  %v9150_v62 = vpack.c.bf16 %v19322_v37, %v19325_v46  ;;  %v19334_v19 = vpop.permute.xlu1 %13086  ;;  %v13043_v48 = vunpack.i.l.bf16 %v19275_v24  ;;  %v13049_v14 = vunpack.i.h.bf16 %v19277_v25  ;;  %v20825_v25 = vld [vmem:[#allocation205_spill] sm:$0xff]  ;;  %v9347_v37 = vld [vmem:[%s19775_s6] sm:$0x1] }
0x125e   : > { %v13004_v38 = vunpack.i.h.bf16 %v20823_v36  ;;  %v13003_v45 = vunpack.i.l.bf16 %v20823_v36  ;;  %v13009_v57 = vunpack.i.h.bf16 %v19262_v52  ;;  %v13008_v51 = vunpack.i.l.bf16 %v19262_v52 }
0x125f   : > { %v9107_v31 = vsel %vm9083_vm11, %v20824_v11, %v13044_v58  ;;  %v9106_v10 = vsel %vm9083_vm11, %v20825_v25, %v13043_v48  ;;  %v9091_v16 = vsel %vm9083_vm11, %v9058_v27, %v13049_v14  ;;  %v3295_v58 = vmax.f32 %v20829_v17, 0.0  ;;  %v20830_v14 = vld [vmem:[#allocation124_spill] sm:$0xff] }
0x1260   : > { %v13068_v48 = vunpack.i.l.bf16 %v19303_v29  ;;  %v9059_v36 = vsel %vm2426_vm8, %v3279_v32, %v13008_v51  ;;  %v13089_v51 = vunpack.i.h.bf16 %v19334_v19  ;;  %v20833_v17 = vld [vmem:[#allocation140_spill] sm:$0xff] }
0x1261   : > { %v13092_v8 = vpop.permute.xlu0 %13091  ;;  %v13102_v47 = vpop.permute.xlu1 %13101 }
0x1262   : > { %v13094_v39 = vunpack.i.h.bf16 %v13092_v8  ;;  %v13093_v0 = vunpack.i.l.bf16 %v13092_v8  ;;  %v13104_v26 = vunpack.i.h.bf16 %v13102_v47  ;;  %v13103_v28 = vunpack.i.l.bf16 %v13102_v47 }
0x1263   : > { %v9090_v8 = vsel %vm9083_vm11, %v9057_v9, %v13048_v61  ;;  %v3281_v61 = vmax.f32 %v20830_v14, 0.0  ;;  %v9060_v9 = vsel %vm2426_vm8, %v3280_v7, %v13009_v57  ;;  %v9092_v25 = vsel %vm9083_vm11, %v9059_v36, %v13068_v48 }
0x1264   : > { %v19348_v13 = vsel %vm9116_vm13, %v20819_v50, %v13093_v0  ;;  %v19352_v12 = vsel %vm9116_vm13, %v20820_v53, %v13094_v39  ;;  %v19356_v35 = vsel %vm9116_vm13, %v9089_v20, %v13104_v26  ;;  %v19359_v60 = vsel %vm9116_vm13, %v9088_v18, %v13103_v28  ;;  %v20826_v26 = vld [vmem:[#allocation130_spill] sm:$0xff] }
0x1265   : > { %v19361_v40 = vpop.permute.xlu0 %13096  ;;  %v9159_v22 = vpack.c.bf16 %v19352_v12, %v19348_v13  ;;  %v9151_v2 = vpack.c.bf16 %v19356_v35, %v19359_v60  ;;  %v19367_v5 = vpop.permute.xlu1 %13106  ;;  %v13059_v39 = vunpack.i.h.bf16 %v19299_v42  ;;  %v3296_v28 = vmax.f32 %v20826_v26, 0.0  ;;  %v9657_v13 = vld [vmem:[%s19777_s8 + $0x8] sm:$0xff]  ;;  %v9656_v12 = vld [vmem:[%s19777_s8] sm:$0xff]  ;;  %v9658_v60 = vld [vmem:[%s19777_s8 + $0x10] sm:$0xff] }
0x1266   : > { %v13058_v20 = vunpack.i.l.bf16 %v19299_v42  ;;  %v13069_v18 = vunpack.i.h.bf16 %v19303_v29  ;;  %v9075_v42 = vsel %vm2426_vm8, %v3295_v58, %v13003_v45  ;;  %v13078_v57 = vunpack.i.l.bf16 %v19327_v49 }
0x1267   : > { %v9076_v27 = vsel %vm2426_vm8, %v3296_v28, %v13004_v38  ;;  %v13079_v38 = vunpack.i.h.bf16 %v19327_v49  ;;  %v20831_v28 = vld [vmem:[#allocation122_spill] sm:$0xff]  ;;  %v13098_v41 = vunpack.i.l.bf16 %v19361_v40  ;;  %v3297_v7 = vmax.f32 %v20832_v56, 0.0 }
0x1268   : > { %v3298_v58 = vmax.f32 %v20833_v17, 0.0  ;;  %v13109_v48 = vunpack.i.h.bf16 %v19367_v5  ;;  %v13108_v14 = vunpack.i.l.bf16 %v19367_v5 }
0x1269   : > { %v13112_v43 = vpop.permute.xlu0 %13111  ;;  %v13122_v24 = vpop.permute.xlu1 %13121 }
0x126a   : > { %v13114_v15 = vunpack.i.h.bf16 %v13112_v43  ;;  %v13113_v59 = vunpack.i.l.bf16 %v13112_v43  ;;  %v13124_v21 = vunpack.i.h.bf16 %v13122_v24  ;;  %v13123_v23 = vunpack.i.l.bf16 %v13122_v24 }
0x126b   : > { %v9109_v43 = vsel %vm9083_vm11, %v9076_v27, %v13059_v39  ;;  %v9093_v24 = vsel %vm9083_vm11, %v9060_v9, %v13069_v18  ;;  %v13099_v18 = vunpack.i.h.bf16 %v19361_v40  ;;  %v9078_v27 = vsel %vm2426_vm8, %v3298_v58, %v13079_v38  ;;  %v20835_v58 = vld [vmem:[#allocation131_spill] sm:$0xff] }
0x126c   : > { %v19388_v4 = vsel %vm9116_vm13, %v9106_v10, %v13113_v59  ;;  %v19391_v52 = vsel %vm9116_vm13, %v9107_v31, %v13114_v15  ;;  %v19395_v0 = vsel %vm9116_vm13, %v9091_v16, %v13124_v21  ;;  %v19398_v47 = vsel %vm9116_vm13, %v9090_v8, %v13123_v23 }
0x126d   : > { %v19400_v44 = vpop.permute.xlu0 %13116  ;;  %v9160_v34 = vpack.c.bf16 %v19391_v52, %v19388_v4  ;;  %v9152_v50 = vpack.c.bf16 %v19395_v0, %v19398_v47  ;;  %v19409_v53 = vpop.permute.xlu1 %13126  ;;  %v9108_v59 = vsel %vm9083_vm11, %v9075_v42, %v13058_v20  ;;  %v13088_v16 = vunpack.i.l.bf16 %v19334_v19  ;;  %v9659_v47 = vld [vmem:[%s19777_s8 + $0x18] sm:$0xff] }
0x126e   : > { %v3282_v20 = vmax.f32 %v20831_v28, 0.0  ;;  %v9077_v42 = vsel %vm2426_vm8, %v3297_v7, %v13078_v57  ;;  %v13119_v38 = vunpack.i.h.bf16 %v19400_v44  ;;  %v13129_v57 = vunpack.i.h.bf16 %v19409_v53 }
0x126f   : > { %v9061_v40 = vsel %vm2426_vm8, %v3281_v61, %v13088_v16 }
0x1270   : > { %v9062_v9 = vsel %vm2426_vm8, %v3282_v20, %v13089_v51 }
0x1271   : > { %v13132_v15 = vpop.permute.xlu0 %13131  ;;  %v13142_v29 = vpop.permute.xlu1 %13141  ;;  %v9095_v5 = vsel %vm9083_vm11, %v9062_v9, %v13109_v48  ;;  %v3299_v48 = vmax.f32 %v20835_v58, 0.0 }
0x1272   : > { %v13134_v11 = vunpack.i.h.bf16 %v13132_v15  ;;  %v13133_v31 = vunpack.i.l.bf16 %v13132_v15  ;;  %v13144_v10 = vunpack.i.h.bf16 %v13142_v29  ;;  %v13143_v45 = vunpack.i.l.bf16 %v13142_v29 }
0x1273   : > { %v9111_v15 = vsel %vm9083_vm11, %v9078_v27, %v13099_v18  ;;  %v20834_v18 = vld [vmem:[#allocation126_spill] sm:$0xff] }
0x1274   : > { %v19428_v21 = vsel %vm9116_vm13, %v9108_v59, %v13133_v31  ;;  %v19431_v23 = vsel %vm9116_vm13, %v9109_v43, %v13134_v11  ;;  %v19435_v8 = vsel %vm9116_vm13, %v9092_v25, %v13143_v45  ;;  %v19438_v39 = vsel %vm9116_vm13, %v9093_v24, %v13144_v10 }
0x1275   : > { %v13137_v26 = vpop.permute.xlu0 %13136  ;;  %v9161_v49 = vpack.c.bf16 %v19431_v23, %v19428_v21  ;;  %v9153_v32 = vpack.c.bf16 %v19438_v39, %v19435_v8  ;;  %v13147_v19 = vpop.permute.xlu1 %13146  ;;  %v9110_v43 = vsel %vm9083_vm11, %v9077_v42, %v13098_v41  ;;  %v9094_v31 = vsel %vm9083_vm11, %v9061_v40, %v13108_v14  ;;  %v20836_v14 = vld [vmem:[#allocation141_spill] sm:$0xff] }
0x1276   : > { %v13118_v10 = vunpack.i.l.bf16 %v19400_v44  ;;  %v3284_v44 = vmax.f32 %v20834_v18, 0.0  ;;  %v13128_v41 = vunpack.i.l.bf16 %v19409_v53  ;;  %v13138_v56 = vunpack.i.l.bf16 %v13137_v26  ;;  %v20837_v40 = vld [vmem:[#allocation125_spill] sm:$0xff] }
0x1277   : > { %v3300_v27 = vmax.f32 %v20836_v14, 0.0  ;;  %v13139_v42 = vunpack.i.h.bf16 %v13137_v26  ;;  %v13148_v9 = vunpack.i.l.bf16 %v13147_v19 }
0x1278   : > { %v9064_v53 = vsel %vm2426_vm8, %v3284_v44, %v13129_v57 }
0x1279   : > { %v13152_v36 = vpop.permute.xlu0 %13151  ;;  %v13162_v11 = vpop.permute.xlu1 %13161 }
0x127a   : > { %v13154_v59 = vunpack.i.h.bf16 %v13152_v36  ;;  %v13153_v24 = vunpack.i.l.bf16 %v13152_v36  ;;  %v13164_v29 = vunpack.i.h.bf16 %v13162_v11  ;;  %v13163_v25 = vunpack.i.l.bf16 %v13162_v11 }
0x127b   : > { %v3283_v36 = vmax.f32 %v20837_v40, 0.0 }
0x127c   : > { %v19462_v61 = vsel %vm9116_vm13, %v9110_v43, %v13153_v24  ;;  %v19465_v45 = vsel %vm9116_vm13, %v9111_v15, %v13154_v59  ;;  %v19469_v51 = vsel %vm9116_vm13, %v9094_v31, %v13163_v25  ;;  %v19472_v16 = vsel %vm9116_vm13, %v9095_v5, %v13164_v29 }
0x127d   : > { %v13157_v28 = vpop.permute.xlu0 %13156  ;;  %v9162_v20 = vpack.c.bf16 %v19465_v45, %v19462_v61  ;;  %v9154_v7 = vpack.c.bf16 %v19472_v16, %v19469_v51  ;;  %v13167_v17 = vpop.permute.xlu1 %13166  ;;  %v13149_v43 = vunpack.i.h.bf16 %v13147_v19  ;;  %v9080_v15 = vsel %vm2426_vm8, %v3300_v27, %v13119_v38 }
0x127e   : > { %v9079_v59 = vsel %vm2426_vm8, %v3299_v48, %v13118_v10  ;;  %v9063_v11 = vsel %vm2426_vm8, %v3283_v36, %v13128_v41  ;;  %v9113_v26 = vsel %vm9083_vm11, %v9080_v15, %v13139_v42  ;;  %v13159_v14 = vunpack.i.h.bf16 %v13157_v28 }
0x127f   : > { %v9112_v31 = vsel %vm9083_vm11, %v9079_v59, %v13138_v56  ;;  %v9096_v18 = vsel %vm9083_vm11, %v9063_v11, %v13148_v9  ;;  %v9097_v38 = vsel %vm9083_vm11, %v9064_v53, %v13149_v43  ;;  %v13158_v44 = vunpack.i.l.bf16 %v13157_v28  ;;  %v20838_v43 = vld [vmem:[#allocation132_spill] sm:$0xff]  ;;  %v20839_v59 = vld [vmem:[#allocation142_spill] sm:$0xff]  ;;  %v20840_v11 = vld [vmem:[#allocation127_spill] sm:$0xff] }
0x1280   : > { %v13169_v42 = vunpack.i.h.bf16 %v13167_v17  ;;  %v13168_v9 = vunpack.i.l.bf16 %v13167_v17  ;;  %v3301_v15 = vmax.f32 %v20838_v43, 0.0  ;;  %v3302_v28 = vmax.f32 %v20839_v59, 0.0 }
0x1281   : > { %v13172_v24 = vpop.permute.xlu0 %13171  ;;  %v13182_v25 = vpop.permute.xlu1 %13181 }
0x1282   : > { %v13174_v5 = vunpack.i.h.bf16 %v13172_v24  ;;  %v13173_v29 = vunpack.i.l.bf16 %v13172_v24  ;;  %v13184_v58 = vunpack.i.h.bf16 %v13182_v25  ;;  %v13183_v19 = vunpack.i.l.bf16 %v13182_v25 }
0x1283   : > { %v9081_v17 = vsel %vm2426_vm8, %v3301_v15, %v13158_v44 }
0x1284   : > { %v19492_v10 = vsel %vm9116_vm13, %v9112_v31, %v13173_v29  ;;  %v19495_v57 = vsel %vm9116_vm13, %v9113_v26, %v13174_v5  ;;  %v19498_v41 = vsel %vm9116_vm13, %v9096_v18, %v13183_v19  ;;  %v19501_v56 = vsel %vm9116_vm13, %v9097_v38, %v13184_v58  ;;  %v20841_v5 = vld [vmem:[#allocation128_spill] sm:$0xff] }
0x1285   : > { %v13177_v48 = vpop.permute.xlu0 %13176  ;;  %v9163_v27 = vpack.c.bf16 %v19495_v57, %v19492_v10  ;;  %v9155_v40 = vpack.c.bf16 %v19501_v56, %v19498_v41  ;;  %v13187_v36 = vpop.permute.xlu1 %13186  ;;  %v3285_v31 = vmax.f32 %v20840_v11, 0.0  ;;  %v3286_v29 = vmax.f32 %v20841_v5, 0.0 }
0x1286   : > { %v13179_v53 = vunpack.i.h.bf16 %v13177_v48  ;;  %v13178_v24 = vunpack.i.l.bf16 %v13177_v48  ;;  %v13189_v25 = vunpack.i.h.bf16 %v13187_v36  ;;  %v13188_v26 = vunpack.i.l.bf16 %v13187_v36 }
0x1287   : > { %v9082_v18 = vsel %vm2426_vm8, %v3302_v28, %v13159_v14  ;;  %v9066_v19 = vsel %vm2426_vm8, %v3286_v29, %v13169_v42  ;;  %v9065_v38 = vsel %vm2426_vm8, %v3285_v31, %v13168_v9  ;;  %v19528_v29 = vld [vmem:[%s19781_s12] sm:$0xff] }
0x1288   : > { %v9114_v56 = vsel %vm9083_vm11, %v9081_v17, %v13178_v24  ;;  %v9115_v48 = vsel %vm9083_vm11, %v9082_v18, %v13179_v53  ;;  %v9098_v36 = vsel %vm9083_vm11, %v9065_v38, %v13188_v26  ;;  %v9099_v14 = vsel %vm9083_vm11, %v9066_v19, %v13189_v25 }
0x1289   : > { %v13192_v58 = vpop.permute.xlu0 %13191  ;;  %v13197_v41 = vpop.permute.xlu1 %13196 }
0x128a   : > { %v13194_v10 = vunpack.i.h.bf16 %v13192_v58  ;;  %v13193_v57 = vunpack.i.l.bf16 %v13192_v58  ;;  %v13199_v43 = vunpack.i.h.bf16 %v13197_v41  ;;  %v13198_v59 = vunpack.i.l.bf16 %v13197_v41 }
0x128c   : > { %v9147_v44 = vsel %vm9116_vm13, %v9114_v56, %v13193_v57  ;;  %v9148_v15 = vsel %vm9116_vm13, %v9115_v48, %v13194_v10  ;;  %v9131_v42 = vsel %vm9116_vm13, %v9098_v36, %v13198_v59  ;;  %v9132_v9 = vsel %vm9116_vm13, %v9099_v14, %v13199_v43 }
0x128d   : > { %v9164_v28 = vpack.c.bf16 %v9148_v15, %v9147_v44  ;;  %v9156_v11 = vpack.c.bf16 %v9132_v9, %v9131_v42 }
0x12b1   : > { %v9492_v31 = vpop.f32.mrb[92].mxu0 }
0x12b2   : > { %v9496_v24 = vsub.f32 %v19085_v6, %v9492_v31  ;;  %v10960_v53 = vpop.f32.mrb[93].mxu0  ;;  %v13202_v6 = vld [vmem:[%s19776_s7] sm:$0xff]  }
0x12b3   : > { %v19611_v31 = vld [vmem:[%s19780_s11] sm:$0xff] }
0x12b4   : > { %v9497_v5 = vmul.f32 %v9496_v24, %v9496_v24 }
0x12b6   : > { %10970 = vmatmul.mubr.msk.f32.vlgmr.msra.gmra.mrb[94].mxu0 %vm2426_vm8, %v9497_v5 }
0x12b7   : > { %10987 = vmatprep.mubr.msk.f32.mxu0 %vm2426_vm8, %v19528_v29 }
0x1389   : > { %v9568_v25 = vpop.f32.mrb[94].mxu0 }
0x138a   : > { %v9572_v26 = vmul.f32 0.5, %v9568_v25  ;;  %v10971_v18 = vpop.f32.mrb[95].mxu0 }
0x138c   : > { %v9573_v17 = vadd.f32 1e-05, %v9572_v26 }
0x138e   : > { %13212 = vrsqrt.f32 %v9573_v17  ;;  %v19618_v17 = vld [vmem:[%s19780_s11 + $0x8] sm:$0xff] }
0x1398   : > { %v13213_v58 = vpop.eup %13212 }
0x1399   : > { %10977 = vmatmul.mubr.msk.f32.vlgmr.msra.gmra.mrb[72].mxu1 %vm2294_vm4, %v13213_v58  ;;  %v19632_v58 = vld [vmem:[%s19780_s11 + $0x18] sm:$0xff] }
0x139a   : > { %10603 = vmatpush3.bf16.xpose.msra.mxu1 %v9149_v55  ;;  %10618 = vmatprep.mubr.bf16.mxu1 %v13202_v6 }
0x139b   : > { %10604 = vmatprep.subr.bf16.mxu1 %v9158_v33 }
0x13a2   : > { %10605 = vmatpush3.bf16.xpose.msra.mxu1 %v9150_v62 }
0x13a3   : > { %10606 = vmatprep.subr.bf16.mxu1 %v9159_v22 }
0x13aa   : > { %10607 = vmatpush3.bf16.xpose.msra.mxu1 %v9151_v2 }
0x13ab   : > { %10608 = vmatprep.subr.bf16.mxu1 %v9160_v34 }
0x13b2   : > { %10609 = vmatpush3.bf16.xpose.msra.mxu1 %v9152_v50 }
0x13b3   : > { %10610 = vmatprep.subr.bf16.mxu1 %v9161_v49 }
0x13ba   : > { %10611 = vmatpush3.bf16.xpose.msra.mxu1 %v9153_v32 }
0x13bb   : > { %10612 = vmatprep.subr.bf16.mxu1 %v9162_v20 }
0x13c2   : > { %10613 = vmatpush3.bf16.xpose.msra.mxu1 %v9154_v7 }
0x13c3   : > { %10614 = vmatprep.subr.bf16.mxu1 %v9163_v27 }
0x13ca   : > { %10615 = vmatpush3.bf16.xpose.msra.mxu1 %v9155_v40 }
0x13cb   : > { %10616 = vmatprep.subr.bf16.mxu1 %v9164_v28 }
0x13d2   : > { %10617 = vmatpush3.bf16.xpose.msra.mxu1 %v9156_v11  ;;  %v19604_v11 = vld [vmem:[%s19781_s12 + $0x8] sm:$0xff] }
0x13d9   : > { %10619 = vmatmul.mubr.bf16.vlgmr.msra.gmra.mrb[76].mxu1 %v13202_v6  ;;  %v19625_v6 = vld [vmem:[%s19780_s11 + $0x10] sm:$0xff] }
0x13da   : > { %10620 = vmatprep.mubr.bf16.mxu1 %v13203_v30 }
0x13e1   : > { %10621 = vmatmul.mubr.bf16.gmra.mrb[80].mxu1 %v13203_v30 }
0x146c   : > { %v9644_v55 = vpop.f32.mrb[72].mxu1 }
0x146d   : > { %v9648_v54 = vmul.f32 %v9644_v55, %v9346_v3  ;;  %v10978_v63 = vpop.f32.mrb[73].mxu1 }
0x146f   : > { %v9649_v46 = vmul.f32 %v9648_v54, %v9496_v24  ;;  %v13310_v24 = vmov 0  }
0x1470   : > { %13200 = vset.pattern.permute.xlu0 %v13310_v24  ;;  %13201 = vset.pattern.permute.xlu1 %v13310_v24 }
0x1471   : > { %v9650_v33 = vadd.f32 %v9649_v46, %v9347_v37 }
0x1473   : > { %v9651_v62 = vmax.f32 %v9650_v33, 0.0 }
0x1475   : > { %v9663_v35 = vrot.slane %v9651_v62, %v20794_v1 }
0x1477   : > { %v9665_v22 = vmul.f32 %v9663_v35, %v9657_v13  ;;  %v9664_v2 = vmul.f32 %v9663_v35, %v9656_v12  ;;  %v9666_v0 = vmul.f32 %v9663_v35, %v9658_v60  ;;  %v9667_v1 = vmul.f32 %v9663_v35, %v9659_v47 }
0x1479   : > { %v9671_v4 = vsel %vm2426_vm8, %v9665_v22, 0.0  ;;  %v9668_v52 = vsel %vm2426_vm8, %v9664_v2, 0.0  ;;  %v9674_v34 = vsel %vm2426_vm8, %v9666_v0, 0.0  ;;  %v9677_v50 = vsel %vm2426_vm8, %v9667_v1, 0.0 }
0x147a   : > { %9672 = vadd.xlane.f32.xlu1 %v9671_v4  ;;  %9669 = vadd.xlane.f32.xlu0 %v9668_v52 }
0x147e   : > { %9675 = vadd.xlane.f32.xlu0 %v9674_v34 }
0x1482   : > { %9678 = vadd.xlane.f32.xlu0 %v9677_v50 }
0x14ac   : > { %v9726_v21 = vpop.f32.mrb[76].mxu1 }
0x14ad   : > { %v9728_v23 = vpop.f32.mrb[77].mxu1 }
0x14ae   : > { %v9730_v8 = vpop.f32.mrb[78].mxu1 }
0x14af   : > { %v9732_v39 = vpop.f32.mrb[79].mxu1 }
0x14b4   : > { %v9736_v49 = vpop.f32.mrb[80].mxu1 }
0x14b5   : > { %v9738_v32 = vpop.f32.mrb[81].mxu1 }
0x14b6   : > { %v9740_v61 = vpop.f32.mrb[82].mxu1 }
0x14b7   : > { %v9742_v45 = vpop.f32.mrb[83].mxu1 }
0x1507   : > { %v9673_v51 = vpop.xlane.xlu1 %9672  ;;  %v9670_v16 = vpop.xlane.xlu0 %9669 }
0x1508   : > { %v9731_v20 = vadd.f32 %v9730_v8, %v9673_v51  ;;  %v9733_v7 = vadd.f32 %v9732_v39, %v9673_v51  ;;  %v9727_v27 = vadd.f32 %v9726_v21, %v9670_v16  ;;  %v9729_v40 = vadd.f32 %v9728_v23, %v9670_v16 }
0x150a   : > { %v9756_v19 = vadd.f32 %v9733_v7, %v9731_v20  ;;  %v9753_v38 = vadd.f32 %v9729_v40, %v9727_v27 }
0x150b   : > { %v9676_v10 = vpop.xlane.xlu0 %9675 }
0x150c   : > { %v9737_v57 = vadd.f32 %v9736_v49, %v9676_v10  ;;  %v9739_v41 = vadd.f32 %v9738_v32, %v9676_v10  ;;  %9757 = vadd.xlane.f32.xlu0 %v9756_v19  ;;  %9754 = vadd.xlane.f32.xlu1 %v9753_v38  ;;  %v9749_v32 = vld [vmem:[%s19779_s10] sm:$0xff] }
0x150e   : > { %v9759_v56 = vadd.f32 %v9739_v41, %v9737_v57 }
0x150f   : > { %v9679_v48 = vpop.xlane.xlu0 %9678 }
0x1510   : > { %v19595_v43 = vadd.f32 %v9740_v61, %v9679_v48  ;;  %v19597_v59 = vadd.f32 %v9742_v45, %v9679_v48  ;;  %9760 = vadd.xlane.f32.xlu1 %v9759_v56  ;;  %v9750_v61 = vld [vmem:[%s19779_s10 + $0x8] sm:$0xff] }
0x1512   : > { %v9762_v36 = vadd.f32 %v19597_v59, %v19595_v43 }
0x1514   : > { %9763 = vadd.xlane.f32.xlu0 %v9762_v36  ;;  %v9745_v36 = vld [vmem:[%s19778_s9] sm:$0xff] }
0x1599   : > { %v9758_v14 = vpop.xlane.xlu0 %9757  ;;  %v9755_v44 = vpop.xlane.xlu1 %9754 }
0x159a   : > { %v11111_v15 = vpack.c.bf16 %v9758_v14, %v9755_v44 }
0x159c   : > { %11112 = vmatprep.subr.bf16.mxu0 %v11111_v15 }
0x159d   : > { %11114 = vmatpush3.bf16.msra.mxu0 %v11111_v15  ;;  %v9761_v42 = vpop.xlane.xlu1 %9760 }
0x15a1   : > { %v9764_v9 = vpop.xlane.xlu0 %9763 }
0x15a2   : > { %v11115_v28 = vpack.c.bf16 %v9764_v9, %v9761_v42  ;;  %v9748_v9 = vld [vmem:[%s19778_s9 + $0x18] sm:$0xff] }
0x15a4   : > { %11116 = vmatprep.subr.bf16.mxu0 %v11115_v28 }
0x15a5   : > { %11118 = vmatpush3.bf16.msra.mxu0 %v11115_v28 }
0x15a8   : > { %10988 = vmatmul.mubr.msk.f32.vlgmr.msra.gmra.mrb[96].mxu0 %vm2426_vm8, %v19604_v11 }
0x15a9   : > { %10994 = vmatprep.mubr.msk.f32.mxu0 %vm2294_vm4, %v19611_v31 }
0x167b   : > { %v10989_v53 = vpop.f32.mrb[96].mxu0 }
0x167c   : > { %v9847_v5 = vmul.f32 0.001953125, %v10989_v53  ;;  %v9837_v25 = vpop.f32.mrb[97].mxu0  ;;  %v9747_v53 = vld [vmem:[%s19778_s9 + $0x10] sm:$0xff] }
0x167d   : > { %v9846_v26 = vmul.f32 0.001953125, %v9837_v25  ;;  %v9752_v25 = vld [vmem:[%s19779_s10 + $0x18] sm:$0xff] }
0x167f   : > { %v11119_v18 = vpack.c.bf16 %v9847_v5, %v9846_v26 }
0x1681   : > { %11120 = vmatprep.subr.bf16.mxu0 %v11119_v18 }
0x1682   : > { %11122 = vmatpush3.bf16.msra.mxu0 %v11119_v18 }
0x1685   : > { %10995 = vmatmul.mubr.msk.f32.vlgmr.msra.gmra.mrb[98].mxu0 %vm2294_vm4, %v19618_v17 }
0x1686   : > { %10997 = vmatprep.mubr.msk.f32.mxu0 %vm2294_vm4, %v19625_v6 }
0x1689   : > { %10998 = vmatmul.mubr.msk.f32.gmra.mrb[100].mxu0 %vm2294_vm4, %v19632_v58 }
0x168a   : > { %11008 = vmatprep.mubr.msk.f32.mxu0 %vm2426_vm8, %v19528_v29 }
0x1758   : > { %v10996_v30 = vpop.f32.mrb[98].mxu0 }
0x1759   : > { %9952 = vperm.xlu0 %13200, %v10996_v30   ;;  %v9926_v3 = vpop.f32.mrb[99].mxu0 }
0x175a   : > { %9947 = vperm.xlu1 %13201, %v9926_v3  }
0x175c   : > { %v10999_v55 = vpop.f32.mrb[100].mxu0 }
0x175d   : > { %v9936_v54 = vpop.f32.mrb[101].mxu0 }
0x175e   : > { %9957 = vperm.xlu1 %13201, %v9936_v54  }
0x1762   : > { %9962 = vperm.xlu1 %13201, %v10999_v55  }
0x17d8   : > { %v9953_v63 = vpop.permute.xlu0 %9952 }
0x17d9   : > { %v19638_v37 = vsub.f32 %v9731_v20, %v9953_v63  ;;  %v19640_v46 = vsub.f32 %v9733_v7, %v9953_v63  ;;  %v9948_v33 = vpop.permute.xlu1 %9947 }
0x17da   : > { %v19642_v62 = vsub.f32 %v9727_v27, %v9948_v33  ;;  %v19644_v13 = vsub.f32 %v9729_v40, %v9948_v33 }
0x17db   : > { %v9975_v29 = vmul.f32 %v19638_v37, %v19638_v37  ;;  %v9976_v12 = vmul.f32 %v19640_v46, %v19640_v46 }
0x17dc   : > { %v9973_v35 = vmul.f32 %v19642_v62, %v19642_v62  ;;  %v9974_v60 = vmul.f32 %v19644_v13, %v19644_v13 }
0x17dd   : > { %v9958_v22 = vpop.permute.xlu1 %9957  ;;  %v9984_v2 = vadd.f32 %v9976_v12, %v9975_v29 }
0x17de   : > { %v19654_v4 = vsub.f32 %v9737_v57, %v9958_v22  ;;  %v19656_v52 = vsub.f32 %v9739_v41, %v9958_v22  ;;  %v9981_v0 = vadd.f32 %v9974_v60, %v9973_v35 }
0x17df   : > { %9985 = vadd.xlane.f32.xlu0 %v9984_v2 }
0x17e0   : > { %v9977_v47 = vmul.f32 %v19654_v4, %v19654_v4  ;;  %v9978_v34 = vmul.f32 %v19656_v52, %v19656_v52  ;;  %9982 = vadd.xlane.f32.xlu1 %v9981_v0 }
0x17e1   : > { %v9963_v1 = vpop.permute.xlu1 %9962 }
0x17e2   : > { %v19663_v50 = vsub.f32 %v19595_v43, %v9963_v1  ;;  %v19666_v21 = vsub.f32 %v19597_v59, %v9963_v1  ;;  %v9987_v23 = vadd.f32 %v9978_v34, %v9977_v47  ;;  %v9746_v59 = vld [vmem:[%s19778_s9 + $0x8] sm:$0xff] }
0x17e4   : > { %v9979_v8 = vmul.f32 %v19663_v50, %v19663_v50  ;;  %v9980_v39 = vmul.f32 %v19666_v21, %v19666_v21  ;;  %9988 = vadd.xlane.f32.xlu1 %v9987_v23 }
0x17e6   : > { %v9990_v49 = vadd.f32 %v9980_v39, %v9979_v8 }
0x17e8   : > { %9991 = vadd.xlane.f32.xlu1 %v9990_v49 }
0x17f9   : > { %10193 = vperm.xlu1 %13201, %v9749_v32  }
0x17fd   : > { %10198 = vperm.xlu1 %13201, %v9750_v61  }
0x186c   : > { %v9986_v45 = vpop.xlane.xlu0 %9985 }
0x186d   : > { %v9983_v51 = vpop.xlane.xlu1 %9982 }
0x186e   : > { %v11123_v16 = vpack.c.bf16 %v9986_v45, %v9983_v51 }
0x1870   : > { %11124 = vmatprep.subr.bf16.mxu0 %v11123_v16 }
0x1871   : > { %11126 = vmatpush3.bf16.msra.mxu0 %v11123_v16  ;;  %v9989_v20 = vpop.xlane.xlu1 %9988 }
0x1875   : > { %v9992_v7 = vpop.xlane.xlu1 %9991 }
0x1876   : > { %v11127_v27 = vpack.c.bf16 %v9992_v7, %v9989_v20 }
0x1878   : > { %11128 = vmatprep.subr.bf16.mxu0 %v11127_v27 }
0x1879   : > { %11130 = vmatpush3.bf16.msra.mxu0 %v11127_v27  ;;  %v10194_v26 = vpop.permute.xlu1 %10193 }
0x187c   : > { %11009 = vmatmul.mubr.msk.f32.vlgmr.msra.gmra.mrb[102].mxu0 %vm2426_vm8, %v19604_v11  ;;  %v9751_v11 = vld [vmem:[%s19779_s10 + $0x10] sm:$0xff] }
0x187d   : > { %11015 = vmatprep.mubr.msk.f32.mxu0 %vm2294_vm4, %v19611_v31  ;;  %v10199_v18 = vpop.permute.xlu1 %10198 }
0x194f   : > { %v11010_v40 = vpop.f32.mrb[102].mxu0 }
0x1950   : > { %v10069_v19 = vmul.f32 0.001953125, %v11010_v40  ;;  %v10059_v38 = vpop.f32.mrb[103].mxu0 }
0x1951   : > { %v10068_v10 = vmul.f32 0.001953125, %v10059_v38 }
0x1952   : > { %v10071_v57 = vadd.f32 1e-05, %v10069_v19 }
0x1953   : > { %v10070_v41 = vadd.f32 1e-05, %v10068_v10 }
0x1954   : > { %13214 = vrsqrt.f32 %v10071_v57 }
0x1955   : > { %13216 = vrsqrt.f32 %v10070_v41 }
0x195e   : > { %v13215_v56 = vpop.eup %13214 }
0x195f   : > { %v13217_v48 = vpop.eup %13216 }
0x1960   : > { %v11131_v43 = vpack.c.bf16 %v13215_v56, %v13217_v48 }
0x1962   : > { %11132 = vmatprep.subr.bf16.mxu0 %v11131_v43 }
0x1963   : > { %11134 = vmatpush3.bf16.msra.mxu0 %v11131_v43 }
0x1966   : > { %11016 = vmatmul.mubr.msk.f32.vlgmr.msra.gmra.mrb[104].mxu0 %vm2294_vm4, %v19618_v17 }
0x1967   : > { %11018 = vmatprep.mubr.msk.f32.mxu0 %vm2294_vm4, %v19625_v6 }
0x196a   : > { %11019 = vmatmul.mubr.msk.f32.gmra.mrb[106].mxu0 %vm2294_vm4, %v19632_v58 }
0x1a39   : > { %v11017_v14 = vpop.f32.mrb[104].mxu0 }
0x1a3a   : > { %v10160_v44 = vmul.f32 %v11017_v14, %v9746_v59  ;;  %v10140_v15 = vpop.f32.mrb[105].mxu0 }
0x1a3b   : > { %v10159_v42 = vmul.f32 %v10140_v15, %v9745_v36 }
0x1a3c   : > { %10170 = vperm.xlu0 %13200, %v10160_v44  }
0x1a3d   : > { %10165 = vperm.xlu1 %13201, %v10159_v42   ;;  %v11020_v28 = vpop.f32.mrb[106].mxu0 }
0x1a3e   : > { %v10162_v31 = vmul.f32 %v11020_v28, %v9748_v9  ;;  %v10150_v24 = vpop.f32.mrb[107].mxu0 }
0x1a3f   : > { %v10161_v5 = vmul.f32 %v10150_v24, %v9747_v53 }
0x1a40   : > { %10203 = vperm.xlu0 %13200, %v9751_v11  }
0x1a41   : > { %10180 = vperm.xlu1 %13201, %v10162_v31  }
0x1a45   : > { %10175 = vperm.xlu1 %13201, %v10161_v5  }
0x1a49   : > { %10208 = vperm.xlu1 %13201, %v9752_v25  }
0x1abb   : > { %v10171_v17 = vpop.permute.xlu0 %10170 }
0x1abc   : > { %v10185_v6 = vmul.f32 %v10171_v17, %v19638_v37  ;;  %v10186_v58 = vmul.f32 %v10171_v17, %v19640_v46  ;;  %v10166_v30 = vpop.permute.xlu1 %10165 }
0x1abd   : > { %v10183_v3 = vmul.f32 %v10166_v30, %v19642_v62  ;;  %v10184_v55 = vmul.f32 %v10166_v30, %v19644_v13 }
0x1abe   : > { %v10213_v54 = vadd.f32 %v10199_v18, %v10185_v6  ;;  %v10214_v63 = vadd.f32 %v10199_v18, %v10186_v58 }
0x1abf   : > { %v10211_v33 = vadd.f32 %v10194_v26, %v10183_v3  ;;  %v10212_v29 = vadd.f32 %v10194_v26, %v10184_v55  ;;  %v10204_v13 = vpop.permute.xlu0 %10203 }
0x1ac0   : > { %v10221_v12 = vmax.f32 %v10213_v54, 0.0  ;;  %v10222_v35 = vmax.f32 %v10214_v63, 0.0  ;;  %v10181_v60 = vpop.permute.xlu1 %10180 }
0x1ac1   : > { %v10219_v22 = vmax.f32 %v10211_v33, 0.0  ;;  %v10220_v2 = vmax.f32 %v10212_v29, 0.0  ;;  %v10189_v0 = vmul.f32 %v10181_v60, %v19663_v50  ;;  %v10190_v47 = vmul.f32 %v10181_v60, %v19666_v21 }
0x1ac2   : > { %10229 = vst [vmem:[%s433_s20 + $0x10] sm:$0xff] %v10221_v12  ;;  %10230 = vst [vmem:[%s433_s20 + $0x18] sm:$0xff] %v10222_v35 }
0x1ac3   : > { %10227 = vst [vmem:[%s433_s20] sm:$0xff] %v10219_v22  ;;  %10228 = vst [vmem:[%s433_s20 + $0x8] sm:$0xff] %v10220_v2 }
0x1ac4   : > { %v10176_v37 = vpop.permute.xlu1 %10175 }
0x1ac5   : > { %v10187_v46 = vmul.f32 %v10176_v37, %v19654_v4  ;;  %v10188_v62 = vmul.f32 %v10176_v37, %v19656_v52 }
0x1ac7   : > { %v10215_v34 = vadd.f32 %v10204_v13, %v10187_v46  ;;  %v10216_v1 = vadd.f32 %v10204_v13, %v10188_v62 }
0x1ac8   : > { %v10209_v23 = vpop.permute.xlu1 %10208 }
0x1ac9   : > { %v10223_v8 = vmax.f32 %v10215_v34, 0.0  ;;  %v10224_v39 = vmax.f32 %v10216_v1, 0.0  ;;  %v10217_v49 = vadd.f32 %v10209_v23, %v10189_v0  ;;  %v10218_v32 = vadd.f32 %v10209_v23, %v10190_v47 }
0x1acb   : > { %10231 = vst [vmem:[%s433_s20 + $0x20] sm:$0xff] %v10223_v8  ;;  %10232 = vst [vmem:[%s433_s20 + $0x28] sm:$0xff] %v10224_v39  ;;  %v10225_v4 = vmax.f32 %v10217_v49, 0.0  ;;  %v10226_v52 = vmax.f32 %v10218_v32, 0.0 }
0x1acd   : > { %10233 = vst [vmem:[%s433_s20 + $0x30] sm:$0xff] %v10225_v4  ;;  %10234 = vst [vmem:[%s433_s20 + $0x38] sm:$0xff] %v10226_v52 }
0x1ace   : > { %13246 = shalt.err (!%p13243_p3)
}
0x1acf   : > { %s13247_s27 = scalar_lea.hbm %s19721_s24, 1024  ;;  %s13251_s17 = scalar_lea.hbm %s19782_s13, 2048 }
0x1ad0   : > { %p13248_p4 = scmp.ne.s32.totalorder %s19721_s24, %s13247_s27  ;;  %p13252_p9 = scmp.lt.u32.totalorder %s19721_s24, %s19782_s13 }
0x1ad1   : > { %p13253_p10 = scmp.lt.u32.totalorder %s13251_s17, %s13247_s27  ;;  %p13255_p12 = scmp.lt.u32.totalorder %s13247_s27, %s19721_s24 }
0x1ad2   : > { %p13249_p7 = pnand %p13248_p4, %p13421_p5 }
0x1ad3   : > { %p13254_p11 = por %p13253_p10, %p13252_p9 }
0x1ad4   : > { %p13250_p8 = pneg %p13249_p7 }
0x1ad5   : > { %p13256_p13 = por %p13255_p12, %p13254_p11 }
0x1ad7   : > { %p13257_p0 = pnand %p13256_p13, %p13250_p8 }
0x1ad9   : > { %13260 = shalt.err (!%p13257_p0)
}
0x1ada   : > { %s13312_s19 = smov 256  }
0x1adb   : > { %11146 = dma.vmem_to_hbm [thread:$0]  (%p13421_p5), %s19723_s23, 1024, %s19721_s24, %s19727_s29, %s13312_s19, %s13312_s19, %s20154_s21  }
0x1adc PF: > { %p11152_p1 = scmp.ge.s32.totalorder %s13295_s28, 2  ;;  %s10264_s15 = sand.u32 1, %s13283_s25  }
0x1add   : > { %s10265_s16 = scalar_lea.sflag [#allocation4], %s10264_s15 }
0x1ade   : > { %p11149_p2 = pnand %p11152_p1, %p13425_p6 }
0x1ae0   : > { %13278 = dma.done.wait (!%p11149_p2), %s10265_s16, 1024  }
0x1ae1   : > { %13280 = vsyncadd (!%p11149_p2), %s10265_s16, 4294966272  ;;  %s20843_s28 = sld [smem:[#allocation7_spill]]  ;;  %s20844_s27 = sld [smem:[#allocation6_spill]] }
0x1ae2   : > { %s20845_s18 = sld [smem:[#allocation8_spill]]  ;;  %s20846_s25 = smov %s13287_s26 }
0x1ae7   : > { %p23_p3 = scmp.ge.s32.totalorder %s20843_s28, 4   ;;  %s20847_s26 = smov %s20844_s27 }
0x1ae8   : > { %s20848_s27 = smov %s20845_s18 }
0x1ae9   :  { %25 = sbr.rel (!%p23_p3) target bundleno = 5 (0x5), region = 123 }
0x1af0   :  { %10270 = vsyncpa [#allocation4], 1 }
0x1af1   :  { %10272 = vsyncpa [#allocation4 + $0x1], 1 }

</bundles_post_ra>
